<compile_context>
chip_gen: v6e
topology: v6e:2x2x1
jax: 0.10.0
libtpu: 0.0.40
codegen_flags: <defaults>
</compile_context>

<pallas_src>
import functools

import jax
import jax.numpy as jnp
from jax.experimental import pallas as pl
from jax.experimental.pallas import tpu as pltpu

# Activation / weight storage dtype.  bf16 keeps the MXU fast path; set to jnp.float32
# for stricter end-to-end parity with the f32 PyTorch reference (accumulation is f32
# either way).
_ACT_DTYPE = jnp.bfloat16


@functools.lru_cache(maxsize=None)
def _vmem_limit_bytes():
    """Scoped-VMEM budget, queried lazily at trace time: <= 3/4 of physical, 96 MiB cap
    (v5e/v6e: 128 MiB -> 96 MiB; v7x: 64 MiB -> 48 MiB)."""
    try:
        cap = pltpu.get_tpu_info().vmem_capacity_bytes
        return int(min(cap * 3 // 4, 96 * 1024 * 1024))
    except Exception:
        return 64 * 1024 * 1024


def _round_up(x, m):
    return (x + m - 1) // m * m


def _pick_tap_group(k, cin_pad, n_wide, itemsize, budget_bytes=4 << 20):
    """Largest tap-group size (divisor of K*K) whose in-VMEM patch slab fits the budget.
    Bigger group => larger MXU contraction (gsz*cin_pad) and ~gsz fewer MXU issues."""
    total = k * k
    best = 1
    for g in range(1, total + 1):
        if total % g:
            continue
        if g * cin_pad * n_wide * itemsize <= budget_bytes and g * cin_pad <= 2048:
            best = g
    return best


# ----------------------------------------------------------------------------
# Pallas kernel: grouped-tap conv + bias + InstanceNorm + ReLU [+ residual]
# ----------------------------------------------------------------------------
def _conv_group_kernel(*refs, groups, cin_pad, n_valid, use_norm, use_relu,
                       has_residual, eps=1e-5):
    if has_residual:
        x_ref, w_ref, b_ref, m_ref, r_ref, o_ref, slab_ref = refs
    else:
        x_ref, w_ref, b_ref, m_ref, o_ref, slab_ref = refs
        r_ref = None

    n_wide = o_ref.shape[-1]

    # Grouped shifted matmuls: stage gsz taps into the slab (channels stacked along the
    # sublane axis), one big-contraction dot per group.  Partials accumulate as a value
    # (no f32 scratch zero-init, no per-tap read-modify-write).
    acc = None
    for g, taps in enumerate(groups):
        for j, (parity, off) in enumerate(taps):
            slab_ref[j * cin_pad:(j + 1) * cin_pad, :] = (
                x_ref[0, parity, :, pl.ds(off, n_wide)])
        part = jnp.dot(w_ref[g], slab_ref[...],
                       preferred_element_type=jnp.float32)
        acc = part if acc is None else acc + part

    y = acc + b_ref[...]                              # bias (Cout,1) broadcasts

    if use_norm:
        # InstanceNorm2d(affine=False): per-channel stats over valid pixels only.
        # mask is 0/1 so mask^2 == mask -> multiply by mask exactly once.
        mask = m_ref[...]                             # (1, n_wide) f32
        inv_n = 1.0 / float(n_valid)
        ym = y * mask
        mean = jnp.sum(ym, axis=1, keepdims=True) * inv_n
        ex2 = jnp.sum(ym * ym, axis=1, keepdims=True) * inv_n
        var = jnp.maximum(ex2 - mean * mean, 0.0)     # guard f32 cancellation
        y = (y - mean) * jax.lax.rsqrt(var + eps)

    if use_relu:
        y = jnp.maximum(y, 0.0)

    if r_ref is not None:
        y = y + r_ref[0].astype(jnp.float32)          # residual add (after IN + ReLU)

    o_ref[0] = y.astype(o_ref.dtype)


# ----------------------------------------------------------------------------
# Host-side prep: reflection pad, parity split (stride>1), wide flattening
# ----------------------------------------------------------------------------
def _prep_taps(x, kernel_size, stride, cin_pad):
    """x: (B, C, H, W) -> ((B, s*s, cin_pad, Hq*Wq) act-dtype, (Ho, Wo, Wq)).

    Parity slab p = ph*s + pw holds x_pad[:, :, ph::s, pw::s], zero-padded to (Hq, Wq)
    with Hq = Ho + (K-1)//s + 1 (one all-zero safety row for the wide slices) and
    Wq = Wo + (K-1)//s.  Tap (kh, kw) reads slab (kh%s)*s + (kw%s) at flat lane offset
    (kh//s)*Wq + (kw//s).  Channels are zero-padded to cin_pad (multiple of 8) so all
    in-kernel slab writes are sublane-aligned; the zero channels contribute nothing."""
    B, C, H, W = x.shape
    K, s = kernel_size, stride
    pad = K // 2
    if cin_pad > C:
        x = jnp.pad(x, ((0, 0), (0, cin_pad - C), (0, 0), (0, 0)))
    xp = jnp.pad(x, ((0, 0), (0, 0), (pad, pad), (pad, pad)), mode="reflect")
    Hp, Wp = H + 2 * pad, W + 2 * pad
    Ho = (Hp - K) // s + 1
    Wo = (Wp - K) // s + 1
    Dm = (K - 1) // s
    Hq = Ho + Dm + 1
    Wq = Wo + Dm

    slabs = []
    for ph in range(s):
        for pw in range(s):
            sub = xp[:, :, ph::s, pw::s][:, :, :Hq, :Wq]
            sub = jnp.pad(sub, ((0, 0), (0, 0),
                                (0, Hq - sub.shape[2]), (0, Wq - sub.shape[3])))
            slabs.append(sub)
    x_taps = jnp.stack(slabs, axis=1).reshape(B, s * s, cin_pad, Hq * Wq)
    return x_taps.astype(_ACT_DTYPE), (Ho, Wo, Wq)


# ----------------------------------------------------------------------------
# One ConvLayer: Upsample? -> ReflectionPad -> Conv -> InstanceNorm? -> ReLU? [+res]
# ----------------------------------------------------------------------------
def pallas_conv_layer(x, w, b, *, kernel_size, stride=1, upsample=None,
                      instance_norm=True, relu=True, residual=None):
    """x: (B, Cin, H, W).  w: PyTorch layout (Cout, Cin, K, K).  b: (Cout,).
    residual: (B, Cout, Ho, Wo) or None.  Returns (B, Cout, Ho, Wo) in _ACT_DTYPE."""
    K, s = kernel_size, stride
    if upsample:
        # nn.Upsample(mode='nearest', scale_factor=upsample)
        # TODO(synk): sub-pixel formulation to avoid materializing the upsampled tensor.
        x = jnp.repeat(jnp.repeat(x, upsample, axis=2), upsample, axis=3)

    B, Cin, _, _ = x.shape
    Cout = w.shape[0]
    cin_pad = _round_up(Cin, 8)

    x_taps, (Ho, Wo, Wq) = _prep_taps(x, K, s, cin_pad)
    n_pad = x_taps.shape[-1]
    n_wide = Ho * Wq                                   # lane-dense pixel axis

    # Tap list in (kh, kw) order: (parity slab index, flat lane offset).
    taps = []
    for kh in range(K):
        for kw in range(K):
            taps.append(((kh % s) * s + (kw % s), (kh // s) * Wq + (kw // s)))

    itemsize = jnp.dtype(_ACT_DTYPE).itemsize
    gsz = _pick_tap_group(K, cin_pad, n_wide, itemsize)
    n_groups = (K * K) // gsz
    groups = tuple(tuple(taps[g * gsz:(g + 1) * gsz]) for g in range(n_groups))

    # Weights (Cout, Cin, K, K) -> per-group packed (n_groups, Cout, gsz*cin_pad),
    # matching the slab's [tap-major, channel-minor] contraction order; padded channels
    # get zero weights.
    w_f = jnp.transpose(w, (2, 3, 0, 1)).reshape(K * K, Cout, Cin)
    w_p = jnp.zeros((K * K, Cout, cin_pad), jnp.float32).at[:, :, :Cin].set(w_f)
    w_packed = (w_p.reshape(n_groups, gsz, Cout, cin_pad)
                   .transpose(0, 2, 1, 3)
                   .reshape(n_groups, Cout, gsz * cin_pad)).astype(_ACT_DTYPE)

    bias = b.reshape(Cout, 1).astype(jnp.float32)
    mask = jnp.broadcast_to((jnp.arange(Wq) < Wo)[None, :], (Ho, Wq))
    mask = mask.reshape(1, n_wide).astype(jnp.float32)

    in_specs = [
        pl.BlockSpec((1, s * s, cin_pad, n_pad), lambda bi: (bi, 0, 0, 0)),
        pl.BlockSpec((n_groups, Cout, gsz * cin_pad), lambda bi: (0, 0, 0)),
        pl.BlockSpec((Cout, 1), lambda bi: (0, 0)),
        pl.BlockSpec((1, n_wide), lambda bi: (0, 0)),
    ]
    args = [x_taps, w_packed, bias, mask]
    if residual is not None:
        res_w = jnp.pad(residual, ((0, 0), (0, 0), (0, 0), (0, Wq - Wo)))
        res_w = res_w.reshape(B, Cout, n_wide).astype(_ACT_DTYPE)
        in_specs.append(pl.BlockSpec((1, Cout, n_wide), lambda bi: (bi, 0, 0)))
        args.append(res_w)

    kern = functools.partial(
        _conv_group_kernel, groups=groups, cin_pad=cin_pad, n_valid=Ho * Wo,
        use_norm=instance_norm, use_relu=relu, has_residual=residual is not None)

    out = pl.pallas_call(
        kern,
        out_shape=jax.ShapeDtypeStruct((B, Cout, n_wide), _ACT_DTYPE),
        grid=(B,),
        in_specs=in_specs,
        out_specs=pl.BlockSpec((1, Cout, n_wide), lambda bi: (bi, 0, 0)),
        scratch_shapes=[pltpu.VMEM((gsz * cin_pad, n_wide), _ACT_DTYPE)],
        compiler_params=pltpu.CompilerParams(
            dimension_semantics=("parallel",),
            vmem_limit_bytes=_vmem_limit_bytes()),
    )(*args)

    # Drop the garbage columns of the wide layout -> (B, Cout, Ho, Wo).
    return out.reshape(B, Cout, Ho, Wq)[:, :, :, :Wo]


# ----------------------------------------------------------------------------
# Parameter initialization (deterministic, Kaiming-like normal)
# ----------------------------------------------------------------------------
def _init_conv(key, cin, cout, k):
    w_key, b_key = jax.random.split(key)
    std = (2.0 / (cin * k * k)) ** 0.5
    w = jax.random.normal(w_key, (cout, cin, k, k), jnp.float32) * std
    b = jax.random.normal(b_key, (cout,), jnp.float32) * 0.01
    return w, b


def init_transform_net_params(base, key):
    layer_shapes = []
    # downsampling
    layer_shapes += [(3, base, 9), (base, 2 * base, 3), (2 * base, 4 * base, 3)]
    # 5 residual blocks, 2 convs each
    for _ in range(5):
        layer_shapes += [(4 * base, 4 * base, 3), (4 * base, 4 * base, 3)]
    # upsampling
    layer_shapes += [(4 * base, 2 * base, 3), (2 * base, base, 3), (base, 3, 9)]

    keys = jax.random.split(key, len(layer_shapes))
    return [_init_conv(k, cin, cout, ks)
            for k, (cin, cout, ks) in zip(keys, layer_shapes)]


# ----------------------------------------------------------------------------
# Full TransformNet forward (NCHW in / NCHW out, like the PyTorch module)
# ----------------------------------------------------------------------------
def transform_net_forward(params, x_nchw):
    x = x_nchw.astype(jnp.float32)
    p = list(params)
    i = 0

    # downsampling
    x = pallas_conv_layer(x, *p[i], kernel_size=9, stride=1); i += 1
    x = pallas_conv_layer(x, *p[i], kernel_size=3, stride=2); i += 1
    x = pallas_conv_layer(x, *p[i], kernel_size=3, stride=2); i += 1

    # residual blocks: both convs carry IN + ReLU (ConvLayer defaults in the reference),
    # residual added after conv2's ReLU — matches the given PyTorch spec exactly.
    # TODO(synk): fuse each conv pair into one pallas_call (keep the mid-activation in VMEM).
    for _ in range(5):
        h = pallas_conv_layer(x, *p[i], kernel_size=3, stride=1); i += 1
        x = pallas_conv_layer(h, *p[i], kernel_size=3, stride=1, residual=x); i += 1

    # upsampling
    x = pallas_conv_layer(x, *p[i], kernel_size=3, upsample=2); i += 1
    x = pallas_conv_layer(x, *p[i], kernel_size=3, upsample=2); i += 1
    x = pallas_conv_layer(x, *p[i], kernel_size=9,
                          instance_norm=False, relu=False); i += 1

    return x.astype(jnp.float32)


if __name__ == "__main__":
    base = 4
    key = jax.random.PRNGKey(0)
    pkey, xkey = jax.random.split(key)

    params = init_transform_net_params(base, pkey)
    x = jax.random.normal(xkey, (2, 3, 16, 16), jnp.float32)       # NCHW input

    fwd = jax.jit(transform_net_forward)
    y = jax.block_until_ready(fwd(params, x))

    assert y.shape == (2, 3, 16, 16), y.shape
    assert bool(jnp.all(jnp.isfinite(y)))
    print("KERNEL_OK")
</pallas_src>

<mosaic_0001>
module attributes {stable_mosaic.version = 11 : i64} {
  func.func @_conv_group_kernel(%arg0: i32, %arg1: memref<1x1x8x600xbf16, #tpu.memory_space<vmem>>, %arg2: memref<1x4x648xbf16, #tpu.memory_space<vmem>>, %arg3: memref<4x1xf32, #tpu.memory_space<vmem>>, %arg4: memref<1x384xf32, #tpu.memory_space<vmem>>, %arg5: memref<1x4x384xbf16, #tpu.memory_space<vmem>>, %arg6: memref<648x384xbf16, #tpu.memory_space<vmem>>) attributes {dimension_semantics = [#tpu.dimension_semantics<parallel>], iteration_bounds = array<i64: 2>, scalar_prefetch = 0 : i64, scratch_operands = 1 : i64, tpu.core_type = #tpu.core_type<tc>, window_params = [{transform_indices = @transform_0, window_bounds = array<i64: 1, 1, 8, 600>}, {pipeline_mode = #tpu.pipeline_mode<synchronous>, transform_indices = @transform_1, window_bounds = array<i64: 1, 4, 648>}, {pipeline_mode = #tpu.pipeline_mode<synchronous>, transform_indices = @transform_2, window_bounds = array<i64: 4, 1>}, {pipeline_mode = #tpu.pipeline_mode<synchronous>, transform_indices = @transform_3, window_bounds = array<i64: 1, 384>}, {transform_indices = @transform_4, window_bounds = array<i64: 1, 4, 384>}]} {
    %c0 = arith.constant 0 : index
    %c0_0 = arith.constant 0 : index
    %c0_1 = arith.constant 0 : index
    %c0_2 = arith.constant 0 : index
    %0 = vector.load %arg1[%c0, %c0_0, %c0_1, %c0_2] : memref<1x1x8x600xbf16, #tpu.memory_space<vmem>>, vector<1x1x8x384xbf16>
    %1 = vector.shape_cast %0 : vector<1x1x8x384xbf16> to vector<8x384xbf16>
    %c0_3 = arith.constant 0 : index
    %c0_4 = arith.constant 0 : index
    %2 = vector.load %arg6[%c0_3, %c0_4] : memref<648x384xbf16, #tpu.memory_space<vmem>>, vector<8x384xbf16>
    tpu.vector_store %arg6[%c0_3, %c0_4], %1 {strides = array<i32>} : memref<648x384xbf16, #tpu.memory_space<vmem>>, vector<8x384xbf16>,
    %c0_5 = arith.constant 0 : index
    %c0_6 = arith.constant 0 : index
    %c0_7 = arith.constant 0 : index
    %c1 = arith.constant 1 : index
    %3 = vector.load %arg1[%c0_5, %c0_6, %c0_7, %c1] : memref<1x1x8x600xbf16, #tpu.memory_space<vmem>>, vector<1x1x8x384xbf16>
    %4 = vector.shape_cast %3 : vector<1x1x8x384xbf16> to vector<8x384xbf16>
    %c8 = arith.constant 8 : index
    %c0_8 = arith.constant 0 : index
    %5 = vector.load %arg6[%c8, %c0_8] : memref<648x384xbf16, #tpu.memory_space<vmem>>, vector<8x384xbf16>
    tpu.vector_store %arg6[%c8, %c0_8], %4 {strides = array<i32>} : memref<648x384xbf16, #tpu.memory_space<vmem>>, vector<8x384xbf16>,
    %c0_9 = arith.constant 0 : index
    %c0_10 = arith.constant 0 : index
    %c0_11 = arith.constant 0 : index
    %c2 = arith.constant 2 : index
    %6 = vector.load %arg1[%c0_9, %c0_10, %c0_11, %c2] : memref<1x1x8x600xbf16, #tpu.memory_space<vmem>>, vector<1x1x8x384xbf16>
    %7 = vector.shape_cast %6 : vector<1x1x8x384xbf16> to vector<8x384xbf16>
    %c16 = arith.constant 16 : index
    %c0_12 = arith.constant 0 : index
    %8 = vector.load %arg6[%c16, %c0_12] : memref<648x384xbf16, #tpu.memory_space<vmem>>, vector<8x384xbf16>
    tpu.vector_store %arg6[%c16, %c0_12], %7 {strides = array<i32>} : memref<648x384xbf16, #tpu.memory_space<vmem>>, vector<8x384xbf16>,
    %c0_13 = arith.constant 0 : index
    %c0_14 = arith.constant 0 : index
    %c0_15 = arith.constant 0 : index
    %c3 = arith.constant 3 : index
    %9 = vector.load %arg1[%c0_13, %c0_14, %c0_15, %c3] : memref<1x1x8x600xbf16, #tpu.memory_space<vmem>>, vector<1x1x8x384xbf16>
    %10 = vector.shape_cast %9 : vector<1x1x8x384xbf16> to vector<8x384xbf16>
    %c24 = arith.constant 24 : index
    %c0_16 = arith.constant 0 : index
    %11 = vector.load %arg6[%c24, %c0_16] : memref<648x384xbf16, #tpu.memory_space<vmem>>, vector<8x384xbf16>
    tpu.vector_store %arg6[%c24, %c0_16], %10 {strides = array<i32>} : memref<648x384xbf16, #tpu.memory_space<vmem>>, vector<8x384xbf16>,
    %c0_17 = arith.constant 0 : index
    %c0_18 = arith.constant 0 : index
    %c0_19 = arith.constant 0 : index
    %c4 = arith.constant 4 : index
    %12 = vector.load %arg1[%c0_17, %c0_18, %c0_19, %c4] : memref<1x1x8x600xbf16, #tpu.memory_space<vmem>>, vector<1x1x8x384xbf16>
    %13 = vector.shape_cast %12 : vector<1x1x8x384xbf16> to vector<8x384xbf16>
    %c32 = arith.constant 32 : index
    %c0_20 = arith.constant 0 : index
    %14 = vector.load %arg6[%c32, %c0_20] : memref<648x384xbf16, #tpu.memory_space<vmem>>, vector<8x384xbf16>
    tpu.vector_store %arg6[%c32, %c0_20], %13 {strides = array<i32>} : memref<648x384xbf16, #tpu.memory_space<vmem>>, vector<8x384xbf16>,
    %c0_21 = arith.constant 0 : index
    %c0_22 = arith.constant 0 : index
    %c0_23 = arith.constant 0 : index
    %c5 = arith.constant 5 : index
    %15 = vector.load %arg1[%c0_21, %c0_22, %c0_23, %c5] : memref<1x1x8x600xbf16, #tpu.memory_space<vmem>>, vector<1x1x8x384xbf16>
    %16 = vector.shape_cast %15 : vector<1x1x8x384xbf16> to vector<8x384xbf16>
    %c40 = arith.constant 40 : index
    %c0_24 = arith.constant 0 : index
    %17 = vector.load %arg6[%c40, %c0_24] : memref<648x384xbf16, #tpu.memory_space<vmem>>, vector<8x384xbf16>
    tpu.vector_store %arg6[%c40, %c0_24], %16 {strides = array<i32>} : memref<648x384xbf16, #tpu.memory_space<vmem>>, vector<8x384xbf16>,
    %c0_25 = arith.constant 0 : index
    %c0_26 = arith.constant 0 : index
    %c0_27 = arith.constant 0 : index
    %c6 = arith.constant 6 : index
    %18 = vector.load %arg1[%c0_25, %c0_26, %c0_27, %c6] : memref<1x1x8x600xbf16, #tpu.memory_space<vmem>>, vector<1x1x8x384xbf16>
    %19 = vector.shape_cast %18 : vector<1x1x8x384xbf16> to vector<8x384xbf16>
    %c48 = arith.constant 48 : index
    %c0_28 = arith.constant 0 : index
    %20 = vector.load %arg6[%c48, %c0_28] : memref<648x384xbf16, #tpu.memory_space<vmem>>, vector<8x384xbf16>
    tpu.vector_store %arg6[%c48, %c0_28], %19 {strides = array<i32>} : memref<648x384xbf16, #tpu.memory_space<vmem>>, vector<8x384xbf16>,
    %c0_29 = arith.constant 0 : index
    %c0_30 = arith.constant 0 : index
    %c0_31 = arith.constant 0 : index
    %c7 = arith.constant 7 : index
    %21 = vector.load %arg1[%c0_29, %c0_30, %c0_31, %c7] : memref<1x1x8x600xbf16, #tpu.memory_space<vmem>>, vector<1x1x8x384xbf16>
    %22 = vector.shape_cast %21 : vector<1x1x8x384xbf16> to vector<8x384xbf16>
    %c56 = arith.constant 56 : index
    %c0_32 = arith.constant 0 : index
    %23 = vector.load %arg6[%c56, %c0_32] : memref<648x384xbf16, #tpu.memory_space<vmem>>, vector<8x384xbf16>
    tpu.vector_store %arg6[%c56, %c0_32], %22 {strides = array<i32>} : memref<648x384xbf16, #tpu.memory_space<vmem>>, vector<8x384xbf16>,
    %c0_33 = arith.constant 0 : index
    %c0_34 = arith.constant 0 : index
    %c0_35 = arith.constant 0 : index
    %c8_36 = arith.constant 8 : index
    %24 = vector.load %arg1[%c0_33, %c0_34, %c0_35, %c8_36] : memref<1x1x8x600xbf16, #tpu.memory_space<vmem>>, vector<1x1x8x384xbf16>
    %25 = vector.shape_cast %24 : vector<1x1x8x384xbf16> to vector<8x384xbf16>
    %c64 = arith.constant 64 : index
    %c0_37 = arith.constant 0 : index
    %26 = vector.load %arg6[%c64, %c0_37] : memref<648x384xbf16, #tpu.memory_space<vmem>>, vector<8x384xbf16>
    tpu.vector_store %arg6[%c64, %c0_37], %25 {strides = array<i32>} : memref<648x384xbf16, #tpu.memory_space<vmem>>, vector<8x384xbf16>,
    %c0_38 = arith.constant 0 : index
    %c0_39 = arith.constant 0 : index
    %c0_40 = arith.constant 0 : index
    %c24_41 = arith.constant 24 : index
    %27 = vector.load %arg1[%c0_38, %c0_39, %c0_40, %c24_41] : memref<1x1x8x600xbf16, #tpu.memory_space<vmem>>, vector<1x1x8x384xbf16>
    %28 = vector.shape_cast %27 : vector<1x1x8x384xbf16> to vector<8x384xbf16>
    %c72 = arith.constant 72 : index
    %c0_42 = arith.constant 0 : index
    %29 = vector.load %arg6[%c72, %c0_42] : memref<648x384xbf16, #tpu.memory_space<vmem>>, vector<8x384xbf16>
    tpu.vector_store %arg6[%c72, %c0_42], %28 {strides = array<i32>} : memref<648x384xbf16, #tpu.memory_space<vmem>>, vector<8x384xbf16>,
    %c0_43 = arith.constant 0 : index
    %c0_44 = arith.constant 0 : index
    %c0_45 = arith.constant 0 : index
    %c25 = arith.constant 25 : index
    %30 = vector.load %arg1[%c0_43, %c0_44, %c0_45, %c25] : memref<1x1x8x600xbf16, #tpu.memory_space<vmem>>, vector<1x1x8x384xbf16>
    %31 = vector.shape_cast %30 : vector<1x1x8x384xbf16> to vector<8x384xbf16>
    %c80 = arith.constant 80 : index
    %c0_46 = arith.constant 0 : index
    %32 = vector.load %arg6[%c80, %c0_46] : memref<648x384xbf16, #tpu.memory_space<vmem>>, vector<8x384xbf16>
    tpu.vector_store %arg6[%c80, %c0_46], %31 {strides = array<i32>} : memref<648x384xbf16, #tpu.memory_space<vmem>>, vector<8x384xbf16>,
    %c0_47 = arith.constant 0 : index
    %c0_48 = arith.constant 0 : index
    %c0_49 = arith.constant 0 : index
    %c26 = arith.constant 26 : index
    %33 = vector.load %arg1[%c0_47, %c0_48, %c0_49, %c26] : memref<1x1x8x600xbf16, #tpu.memory_space<vmem>>, vector<1x1x8x384xbf16>
    %34 = vector.shape_cast %33 : vector<1x1x8x384xbf16> to vector<8x384xbf16>
    %c88 = arith.constant 88 : index
    %c0_50 = arith.constant 0 : index
    %35 = vector.load %arg6[%c88, %c0_50] : memref<648x384xbf16, #tpu.memory_space<vmem>>, vector<8x384xbf16>
    tpu.vector_store %arg6[%c88, %c0_50], %34 {strides = array<i32>} : memref<648x384xbf16, #tpu.memory_space<vmem>>, vector<8x384xbf16>,
    %c0_51 = arith.constant 0 : index
    %c0_52 = arith.constant 0 : index
    %c0_53 = arith.constant 0 : index
    %c27 = arith.constant 27 : index
    %36 = vector.load %arg1[%c0_51, %c0_52, %c0_53, %c27] : memref<1x1x8x600xbf16, #tpu.memory_space<vmem>>, vector<1x1x8x384xbf16>
    %37 = vector.shape_cast %36 : vector<1x1x8x384xbf16> to vector<8x384xbf16>
    %c96 = arith.constant 96 : index
    %c0_54 = arith.constant 0 : index
    %38 = vector.load %arg6[%c96, %c0_54] : memref<648x384xbf16, #tpu.memory_space<vmem>>, vector<8x384xbf16>
    tpu.vector_store %arg6[%c96, %c0_54], %37 {strides = array<i32>} : memref<648x384xbf16, #tpu.memory_space<vmem>>, vector<8x384xbf16>,
    %c0_55 = arith.constant 0 : index
    %c0_56 = arith.constant 0 : index
    %c0_57 = arith.constant 0 : index
    %c28 = arith.constant 28 : index
    %39 = vector.load %arg1[%c0_55, %c0_56, %c0_57, %c28] : memref<1x1x8x600xbf16, #tpu.memory_space<vmem>>, vector<1x1x8x384xbf16>
    %40 = vector.shape_cast %39 : vector<1x1x8x384xbf16> to vector<8x384xbf16>
    %c104 = arith.constant 104 : index
    %c0_58 = arith.constant 0 : index
    %41 = vector.load %arg6[%c104, %c0_58] : memref<648x384xbf16, #tpu.memory_space<vmem>>, vector<8x384xbf16>
    tpu.vector_store %arg6[%c104, %c0_58], %40 {strides = array<i32>} : memref<648x384xbf16, #tpu.memory_space<vmem>>, vector<8x384xbf16>,
    %c0_59 = arith.constant 0 : index
    %c0_60 = arith.constant 0 : index
    %c0_61 = arith.constant 0 : index
    %c29 = arith.constant 29 : index
    %42 = vector.load %arg1[%c0_59, %c0_60, %c0_61, %c29] : memref<1x1x8x600xbf16, #tpu.memory_space<vmem>>, vector<1x1x8x384xbf16>
    %43 = vector.shape_cast %42 : vector<1x1x8x384xbf16> to vector<8x384xbf16>
    %c112 = arith.constant 112 : index
    %c0_62 = arith.constant 0 : index
    %44 = vector.load %arg6[%c112, %c0_62] : memref<648x384xbf16, #tpu.memory_space<vmem>>, vector<8x384xbf16>
    tpu.vector_store %arg6[%c112, %c0_62], %43 {strides = array<i32>} : memref<648x384xbf16, #tpu.memory_space<vmem>>, vector<8x384xbf16>,
    %c0_63 = arith.constant 0 : index
    %c0_64 = arith.constant 0 : index
    %c0_65 = arith.constant 0 : index
    %c30 = arith.constant 30 : index
    %45 = vector.load %arg1[%c0_63, %c0_64, %c0_65, %c30] : memref<1x1x8x600xbf16, #tpu.memory_space<vmem>>, vector<1x1x8x384xbf16>
    %46 = vector.shape_cast %45 : vector<1x1x8x384xbf16> to vector<8x384xbf16>
    %c120 = arith.constant 120 : index
    %c0_66 = arith.constant 0 : index
    %47 = vector.load %arg6[%c120, %c0_66] : memref<648x384xbf16, #tpu.memory_space<vmem>>, vector<8x384xbf16>
    tpu.vector_store %arg6[%c120, %c0_66], %46 {strides = array<i32>} : memref<648x384xbf16, #tpu.memory_space<vmem>>, vector<8x384xbf16>,
    %c0_67 = arith.constant 0 : index
    %c0_68 = arith.constant 0 : index
    %c0_69 = arith.constant 0 : index
    %c31 = arith.constant 31 : index
    %48 = vector.load %arg1[%c0_67, %c0_68, %c0_69, %c31] : memref<1x1x8x600xbf16, #tpu.memory_space<vmem>>, vector<1x1x8x384xbf16>
    %49 = vector.shape_cast %48 : vector<1x1x8x384xbf16> to vector<8x384xbf16>
    %c128 = arith.constant 128 : index
    %c0_70 = arith.constant 0 : index
    %50 = vector.load %arg6[%c128, %c0_70] : memref<648x384xbf16, #tpu.memory_space<vmem>>, vector<8x384xbf16>
    tpu.vector_store %arg6[%c128, %c0_70], %49 {strides = array<i32>} : memref<648x384xbf16, #tpu.memory_space<vmem>>, vector<8x384xbf16>,
    %c0_71 = arith.constant 0 : index
    %c0_72 = arith.constant 0 : index
    %c0_73 = arith.constant 0 : index
    %c32_74 = arith.constant 32 : index
    %51 = vector.load %arg1[%c0_71, %c0_72, %c0_73, %c32_74] : memref<1x1x8x600xbf16, #tpu.memory_space<vmem>>, vector<1x1x8x384xbf16>
    %52 = vector.shape_cast %51 : vector<1x1x8x384xbf16> to vector<8x384xbf16>
    %c136 = arith.constant 136 : index
    %c0_75 = arith.constant 0 : index
    %53 = vector.load %arg6[%c136, %c0_75] : memref<648x384xbf16, #tpu.memory_space<vmem>>, vector<8x384xbf16>
    tpu.vector_store %arg6[%c136, %c0_75], %52 {strides = array<i32>} : memref<648x384xbf16, #tpu.memory_space<vmem>>, vector<8x384xbf16>,
    %c0_76 = arith.constant 0 : index
    %c0_77 = arith.constant 0 : index
    %c0_78 = arith.constant 0 : index
    %c48_79 = arith.constant 48 : index
    %54 = vector.load %arg1[%c0_76, %c0_77, %c0_78, %c48_79] : memref<1x1x8x600xbf16, #tpu.memory_space<vmem>>, vector<1x1x8x384xbf16>
    %55 = vector.shape_cast %54 : vector<1x1x8x384xbf16> to vector<8x384xbf16>
    %c144 = arith.constant 144 : index
    %c0_80 = arith.constant 0 : index
    %56 = vector.load %arg6[%c144, %c0_80] : memref<648x384xbf16, #tpu.memory_space<vmem>>, vector<8x384xbf16>
    tpu.vector_store %arg6[%c144, %c0_80], %55 {strides = array<i32>} : memref<648x384xbf16, #tpu.memory_space<vmem>>, vector<8x384xbf16>,
    %c0_81 = arith.constant 0 : index
    %c0_82 = arith.constant 0 : index
    %c0_83 = arith.constant 0 : index
    %c49 = arith.constant 49 : index
    %57 = vector.load %arg1[%c0_81, %c0_82, %c0_83, %c49] : memref<1x1x8x600xbf16, #tpu.memory_space<vmem>>, vector<1x1x8x384xbf16>
    %58 = vector.shape_cast %57 : vector<1x1x8x384xbf16> to vector<8x384xbf16>
    %c152 = arith.constant 152 : index
    %c0_84 = arith.constant 0 : index
    %59 = vector.load %arg6[%c152, %c0_84] : memref<648x384xbf16, #tpu.memory_space<vmem>>, vector<8x384xbf16>
    tpu.vector_store %arg6[%c152, %c0_84], %58 {strides = array<i32>} : memref<648x384xbf16, #tpu.memory_space<vmem>>, vector<8x384xbf16>,
    %c0_85 = arith.constant 0 : index
    %c0_86 = arith.constant 0 : index
    %c0_87 = arith.constant 0 : index
    %c50 = arith.constant 50 : index
    %60 = vector.load %arg1[%c0_85, %c0_86, %c0_87, %c50] : memref<1x1x8x600xbf16, #tpu.memory_space<vmem>>, vector<1x1x8x384xbf16>
    %61 = vector.shape_cast %60 : vector<1x1x8x384xbf16> to vector<8x384xbf16>
    %c160 = arith.constant 160 : index
    %c0_88 = arith.constant 0 : index
    %62 = vector.load %arg6[%c160, %c0_88] : memref<648x384xbf16, #tpu.memory_space<vmem>>, vector<8x384xbf16>
    tpu.vector_store %arg6[%c160, %c0_88], %61 {strides = array<i32>} : memref<648x384xbf16, #tpu.memory_space<vmem>>, vector<8x384xbf16>,
    %c0_89 = arith.constant 0 : index
    %c0_90 = arith.constant 0 : index
    %c0_91 = arith.constant 0 : index
    %c51 = arith.constant 51 : index
    %63 = vector.load %arg1[%c0_89, %c0_90, %c0_91, %c51] : memref<1x1x8x600xbf16, #tpu.memory_space<vmem>>, vector<1x1x8x384xbf16>
    %64 = vector.shape_cast %63 : vector<1x1x8x384xbf16> to vector<8x384xbf16>
    %c168 = arith.constant 168 : index
    %c0_92 = arith.constant 0 : index
    %65 = vector.load %arg6[%c168, %c0_92] : memref<648x384xbf16, #tpu.memory_space<vmem>>, vector<8x384xbf16>
    tpu.vector_store %arg6[%c168, %c0_92], %64 {strides = array<i32>} : memref<648x384xbf16, #tpu.memory_space<vmem>>, vector<8x384xbf16>,
    %c0_93 = arith.constant 0 : index
    %c0_94 = arith.constant 0 : index
    %c0_95 = arith.constant 0 : index
    %c52 = arith.constant 52 : index
    %66 = vector.load %arg1[%c0_93, %c0_94, %c0_95, %c52] : memref<1x1x8x600xbf16, #tpu.memory_space<vmem>>, vector<1x1x8x384xbf16>
    %67 = vector.shape_cast %66 : vector<1x1x8x384xbf16> to vector<8x384xbf16>
    %c176 = arith.constant 176 : index
    %c0_96 = arith.constant 0 : index
    %68 = vector.load %arg6[%c176, %c0_96] : memref<648x384xbf16, #tpu.memory_space<vmem>>, vector<8x384xbf16>
    tpu.vector_store %arg6[%c176, %c0_96], %67 {strides = array<i32>} : memref<648x384xbf16, #tpu.memory_space<vmem>>, vector<8x384xbf16>,
    %c0_97 = arith.constant 0 : index
    %c0_98 = arith.constant 0 : index
    %c0_99 = arith.constant 0 : index
    %c53 = arith.constant 53 : index
    %69 = vector.load %arg1[%c0_97, %c0_98, %c0_99, %c53] : memref<1x1x8x600xbf16, #tpu.memory_space<vmem>>, vector<1x1x8x384xbf16>
    %70 = vector.shape_cast %69 : vector<1x1x8x384xbf16> to vector<8x384xbf16>
    %c184 = arith.constant 184 : index
    %c0_100 = arith.constant 0 : index
    %71 = vector.load %arg6[%c184, %c0_100] : memref<648x384xbf16, #tpu.memory_space<vmem>>, vector<8x384xbf16>
    tpu.vector_store %arg6[%c184, %c0_100], %70 {strides = array<i32>} : memref<648x384xbf16, #tpu.memory_space<vmem>>, vector<8x384xbf16>,
    %c0_101 = arith.constant 0 : index
    %c0_102 = arith.constant 0 : index
    %c0_103 = arith.constant 0 : index
    %c54 = arith.constant 54 : index
    %72 = vector.load %arg1[%c0_101, %c0_102, %c0_103, %c54] : memref<1x1x8x600xbf16, #tpu.memory_space<vmem>>, vector<1x1x8x384xbf16>
    %73 = vector.shape_cast %72 : vector<1x1x8x384xbf16> to vector<8x384xbf16>
    %c192 = arith.constant 192 : index
    %c0_104 = arith.constant 0 : index
    %74 = vector.load %arg6[%c192, %c0_104] : memref<648x384xbf16, #tpu.memory_space<vmem>>, vector<8x384xbf16>
    tpu.vector_store %arg6[%c192, %c0_104], %73 {strides = array<i32>} : memref<648x384xbf16, #tpu.memory_space<vmem>>, vector<8x384xbf16>,
    %c0_105 = arith.constant 0 : index
    %c0_106 = arith.constant 0 : index
    %c0_107 = arith.constant 0 : index
    %c55 = arith.constant 55 : index
    %75 = vector.load %arg1[%c0_105, %c0_106, %c0_107, %c55] : memref<1x1x8x600xbf16, #tpu.memory_space<vmem>>, vector<1x1x8x384xbf16>
    %76 = vector.shape_cast %75 : vector<1x1x8x384xbf16> to vector<8x384xbf16>
    %c200 = arith.constant 200 : index
    %c0_108 = arith.constant 0 : index
    %77 = vector.load %arg6[%c200, %c0_108] : memref<648x384xbf16, #tpu.memory_space<vmem>>, vector<8x384xbf16>
    tpu.vector_store %arg6[%c200, %c0_108], %76 {strides = array<i32>} : memref<648x384xbf16, #tpu.memory_space<vmem>>, vector<8x384xbf16>,
    %c0_109 = arith.constant 0 : index
    %c0_110 = arith.constant 0 : index
    %c0_111 = arith.constant 0 : index
    %c56_112 = arith.constant 56 : index
    %78 = vector.load %arg1[%c0_109, %c0_110, %c0_111, %c56_112] : memref<1x1x8x600xbf16, #tpu.memory_space<vmem>>, vector<1x1x8x384xbf16>
    %79 = vector.shape_cast %78 : vector<1x1x8x384xbf16> to vector<8x384xbf16>
    %c208 = arith.constant 208 : index
    %c0_113 = arith.constant 0 : index
    %80 = vector.load %arg6[%c208, %c0_113] : memref<648x384xbf16, #tpu.memory_space<vmem>>, vector<8x384xbf16>
    tpu.vector_store %arg6[%c208, %c0_113], %79 {strides = array<i32>} : memref<648x384xbf16, #tpu.memory_space<vmem>>, vector<8x384xbf16>,
    %c0_114 = arith.constant 0 : index
    %c0_115 = arith.constant 0 : index
    %c0_116 = arith.constant 0 : index
    %c72_117 = arith.constant 72 : index
    %81 = vector.load %arg1[%c0_114, %c0_115, %c0_116, %c72_117] : memref<1x1x8x600xbf16, #tpu.memory_space<vmem>>, vector<1x1x8x384xbf16>
    %82 = vector.shape_cast %81 : vector<1x1x8x384xbf16> to vector<8x384xbf16>
    %c216 = arith.constant 216 : index
    %c0_118 = arith.constant 0 : index
    %83 = vector.load %arg6[%c216, %c0_118] : memref<648x384xbf16, #tpu.memory_space<vmem>>, vector<8x384xbf16>
    tpu.vector_store %arg6[%c216, %c0_118], %82 {strides = array<i32>} : memref<648x384xbf16, #tpu.memory_space<vmem>>, vector<8x384xbf16>,
    %c0_119 = arith.constant 0 : index
    %c0_120 = arith.constant 0 : index
    %c0_121 = arith.constant 0 : index
    %c73 = arith.constant 73 : index
    %84 = vector.load %arg1[%c0_119, %c0_120, %c0_121, %c73] : memref<1x1x8x600xbf16, #tpu.memory_space<vmem>>, vector<1x1x8x384xbf16>
    %85 = vector.shape_cast %84 : vector<1x1x8x384xbf16> to vector<8x384xbf16>
    %c224 = arith.constant 224 : index
    %c0_122 = arith.constant 0 : index
    %86 = vector.load %arg6[%c224, %c0_122] : memref<648x384xbf16, #tpu.memory_space<vmem>>, vector<8x384xbf16>
    tpu.vector_store %arg6[%c224, %c0_122], %85 {strides = array<i32>} : memref<648x384xbf16, #tpu.memory_space<vmem>>, vector<8x384xbf16>,
    %c0_123 = arith.constant 0 : index
    %c0_124 = arith.constant 0 : index
    %c0_125 = arith.constant 0 : index
    %c74 = arith.constant 74 : index
    %87 = vector.load %arg1[%c0_123, %c0_124, %c0_125, %c74] : memref<1x1x8x600xbf16, #tpu.memory_space<vmem>>, vector<1x1x8x384xbf16>
    %88 = vector.shape_cast %87 : vector<1x1x8x384xbf16> to vector<8x384xbf16>
    %c232 = arith.constant 232 : index
    %c0_126 = arith.constant 0 : index
    %89 = vector.load %arg6[%c232, %c0_126] : memref<648x384xbf16, #tpu.memory_space<vmem>>, vector<8x384xbf16>
    tpu.vector_store %arg6[%c232, %c0_126], %88 {strides = array<i32>} : memref<648x384xbf16, #tpu.memory_space<vmem>>, vector<8x384xbf16>,
    %c0_127 = arith.constant 0 : index
    %c0_128 = arith.constant 0 : index
    %c0_129 = arith.constant 0 : index
    %c75 = arith.constant 75 : index
    %90 = vector.load %arg1[%c0_127, %c0_128, %c0_129, %c75] : memref<1x1x8x600xbf16, #tpu.memory_space<vmem>>, vector<1x1x8x384xbf16>
    %91 = vector.shape_cast %90 : vector<1x1x8x384xbf16> to vector<8x384xbf16>
    %c240 = arith.constant 240 : index
    %c0_130 = arith.constant 0 : index
    %92 = vector.load %arg6[%c240, %c0_130] : memref<648x384xbf16, #tpu.memory_space<vmem>>, vector<8x384xbf16>
    tpu.vector_store %arg6[%c240, %c0_130], %91 {strides = array<i32>} : memref<648x384xbf16, #tpu.memory_space<vmem>>, vector<8x384xbf16>,
    %c0_131 = arith.constant 0 : index
    %c0_132 = arith.constant 0 : index
    %c0_133 = arith.constant 0 : index
    %c76 = arith.constant 76 : index
    %93 = vector.load %arg1[%c0_131, %c0_132, %c0_133, %c76] : memref<1x1x8x600xbf16, #tpu.memory_space<vmem>>, vector<1x1x8x384xbf16>
    %94 = vector.shape_cast %93 : vector<1x1x8x384xbf16> to vector<8x384xbf16>
    %c248 = arith.constant 248 : index
    %c0_134 = arith.constant 0 : index
    %95 = vector.load %arg6[%c248, %c0_134] : memref<648x384xbf16, #tpu.memory_space<vmem>>, vector<8x384xbf16>
    tpu.vector_store %arg6[%c248, %c0_134], %94 {strides = array<i32>} : memref<648x384xbf16, #tpu.memory_space<vmem>>, vector<8x384xbf16>,
    %c0_135 = arith.constant 0 : index
    %c0_136 = arith.constant 0 : index
    %c0_137 = arith.constant 0 : index
    %c77 = arith.constant 77 : index
    %96 = vector.load %arg1[%c0_135, %c0_136, %c0_137, %c77] : memref<1x1x8x600xbf16, #tpu.memory_space<vmem>>, vector<1x1x8x384xbf16>
    %97 = vector.shape_cast %96 : vector<1x1x8x384xbf16> to vector<8x384xbf16>
    %c256 = arith.constant 256 : index
    %c0_138 = arith.constant 0 : index
    %98 = vector.load %arg6[%c256, %c0_138] : memref<648x384xbf16, #tpu.memory_space<vmem>>, vector<8x384xbf16>
    tpu.vector_store %arg6[%c256, %c0_138], %97 {strides = array<i32>} : memref<648x384xbf16, #tpu.memory_space<vmem>>, vector<8x384xbf16>,
    %c0_139 = arith.constant 0 : index
    %c0_140 = arith.constant 0 : index
    %c0_141 = arith.constant 0 : index
    %c78 = arith.constant 78 : index
    %99 = vector.load %arg1[%c0_139, %c0_140, %c0_141, %c78] : memref<1x1x8x600xbf16, #tpu.memory_space<vmem>>, vector<1x1x8x384xbf16>
    %100 = vector.shape_cast %99 : vector<1x1x8x384xbf16> to vector<8x384xbf16>
    %c264 = arith.constant 264 : index
    %c0_142 = arith.constant 0 : index
    %101 = vector.load %arg6[%c264, %c0_142] : memref<648x384xbf16, #tpu.memory_space<vmem>>, vector<8x384xbf16>
    tpu.vector_store %arg6[%c264, %c0_142], %100 {strides = array<i32>} : memref<648x384xbf16, #tpu.memory_space<vmem>>, vector<8x384xbf16>,
    %c0_143 = arith.constant 0 : index
    %c0_144 = arith.constant 0 : index
    %c0_145 = arith.constant 0 : index
    %c79 = arith.constant 79 : index
    %102 = vector.load %arg1[%c0_143, %c0_144, %c0_145, %c79] : memref<1x1x8x600xbf16, #tpu.memory_space<vmem>>, vector<1x1x8x384xbf16>
    %103 = vector.shape_cast %102 : vector<1x1x8x384xbf16> to vector<8x384xbf16>
    %c272 = arith.constant 272 : index
    %c0_146 = arith.constant 0 : index
    %104 = vector.load %arg6[%c272, %c0_146] : memref<648x384xbf16, #tpu.memory_space<vmem>>, vector<8x384xbf16>
    tpu.vector_store %arg6[%c272, %c0_146], %103 {strides = array<i32>} : memref<648x384xbf16, #tpu.memory_space<vmem>>, vector<8x384xbf16>,
    %c0_147 = arith.constant 0 : index
    %c0_148 = arith.constant 0 : index
    %c0_149 = arith.constant 0 : index
    %c80_150 = arith.constant 80 : index
    %105 = vector.load %arg1[%c0_147, %c0_148, %c0_149, %c80_150] : memref<1x1x8x600xbf16, #tpu.memory_space<vmem>>, vector<1x1x8x384xbf16>
    %106 = vector.shape_cast %105 : vector<1x1x8x384xbf16> to vector<8x384xbf16>
    %c280 = arith.constant 280 : index
    %c0_151 = arith.constant 0 : index
    %107 = vector.load %arg6[%c280, %c0_151] : memref<648x384xbf16, #tpu.memory_space<vmem>>, vector<8x384xbf16>
    tpu.vector_store %arg6[%c280, %c0_151], %106 {strides = array<i32>} : memref<648x384xbf16, #tpu.memory_space<vmem>>, vector<8x384xbf16>,
    %c0_152 = arith.constant 0 : index
    %c0_153 = arith.constant 0 : index
    %c0_154 = arith.constant 0 : index
    %c96_155 = arith.constant 96 : index
    %108 = vector.load %arg1[%c0_152, %c0_153, %c0_154, %c96_155] : memref<1x1x8x600xbf16, #tpu.memory_space<vmem>>, vector<1x1x8x384xbf16>
    %109 = vector.shape_cast %108 : vector<1x1x8x384xbf16> to vector<8x384xbf16>
    %c288 = arith.constant 288 : index
    %c0_156 = arith.constant 0 : index
    %110 = vector.load %arg6[%c288, %c0_156] : memref<648x384xbf16, #tpu.memory_space<vmem>>, vector<8x384xbf16>
    tpu.vector_store %arg6[%c288, %c0_156], %109 {strides = array<i32>} : memref<648x384xbf16, #tpu.memory_space<vmem>>, vector<8x384xbf16>,
    %c0_157 = arith.constant 0 : index
    %c0_158 = arith.constant 0 : index
    %c0_159 = arith.constant 0 : index
    %c97 = arith.constant 97 : index
    %111 = vector.load %arg1[%c0_157, %c0_158, %c0_159, %c97] : memref<1x1x8x600xbf16, #tpu.memory_space<vmem>>, vector<1x1x8x384xbf16>
    %112 = vector.shape_cast %111 : vector<1x1x8x384xbf16> to vector<8x384xbf16>
    %c296 = arith.constant 296 : index
    %c0_160 = arith.constant 0 : index
    %113 = vector.load %arg6[%c296, %c0_160] : memref<648x384xbf16, #tpu.memory_space<vmem>>, vector<8x384xbf16>
    tpu.vector_store %arg6[%c296, %c0_160], %112 {strides = array<i32>} : memref<648x384xbf16, #tpu.memory_space<vmem>>, vector<8x384xbf16>,
    %c0_161 = arith.constant 0 : index
    %c0_162 = arith.constant 0 : index
    %c0_163 = arith.constant 0 : index
    %c98 = arith.constant 98 : index
    %114 = vector.load %arg1[%c0_161, %c0_162, %c0_163, %c98] : memref<1x1x8x600xbf16, #tpu.memory_space<vmem>>, vector<1x1x8x384xbf16>
    %115 = vector.shape_cast %114 : vector<1x1x8x384xbf16> to vector<8x384xbf16>
    %c304 = arith.constant 304 : index
    %c0_164 = arith.constant 0 : index
    %116 = vector.load %arg6[%c304, %c0_164] : memref<648x384xbf16, #tpu.memory_space<vmem>>, vector<8x384xbf16>
    tpu.vector_store %arg6[%c304, %c0_164], %115 {strides = array<i32>} : memref<648x384xbf16, #tpu.memory_space<vmem>>, vector<8x384xbf16>,
    %c0_165 = arith.constant 0 : index
    %c0_166 = arith.constant 0 : index
    %c0_167 = arith.constant 0 : index
    %c99 = arith.constant 99 : index
    %117 = vector.load %arg1[%c0_165, %c0_166, %c0_167, %c99] : memref<1x1x8x600xbf16, #tpu.memory_space<vmem>>, vector<1x1x8x384xbf16>
    %118 = vector.shape_cast %117 : vector<1x1x8x384xbf16> to vector<8x384xbf16>
    %c312 = arith.constant 312 : index
    %c0_168 = arith.constant 0 : index
    %119 = vector.load %arg6[%c312, %c0_168] : memref<648x384xbf16, #tpu.memory_space<vmem>>, vector<8x384xbf16>
    tpu.vector_store %arg6[%c312, %c0_168], %118 {strides = array<i32>} : memref<648x384xbf16, #tpu.memory_space<vmem>>, vector<8x384xbf16>,
    %c0_169 = arith.constant 0 : index
    %c0_170 = arith.constant 0 : index
    %c0_171 = arith.constant 0 : index
    %c100 = arith.constant 100 : index
    %120 = vector.load %arg1[%c0_169, %c0_170, %c0_171, %c100] : memref<1x1x8x600xbf16, #tpu.memory_space<vmem>>, vector<1x1x8x384xbf16>
    %121 = vector.shape_cast %120 : vector<1x1x8x384xbf16> to vector<8x384xbf16>
    %c320 = arith.constant 320 : index
    %c0_172 = arith.constant 0 : index
    %122 = vector.load %arg6[%c320, %c0_172] : memref<648x384xbf16, #tpu.memory_space<vmem>>, vector<8x384xbf16>
    tpu.vector_store %arg6[%c320, %c0_172], %121 {strides = array<i32>} : memref<648x384xbf16, #tpu.memory_space<vmem>>, vector<8x384xbf16>,
    %c0_173 = arith.constant 0 : index
    %c0_174 = arith.constant 0 : index
    %c0_175 = arith.constant 0 : index
    %c101 = arith.constant 101 : index
    %123 = vector.load %arg1[%c0_173, %c0_174, %c0_175, %c101] : memref<1x1x8x600xbf16, #tpu.memory_space<vmem>>, vector<1x1x8x384xbf16>
    %124 = vector.shape_cast %123 : vector<1x1x8x384xbf16> to vector<8x384xbf16>
    %c328 = arith.constant 328 : index
    %c0_176 = arith.constant 0 : index
    %125 = vector.load %arg6[%c328, %c0_176] : memref<648x384xbf16, #tpu.memory_space<vmem>>, vector<8x384xbf16>
    tpu.vector_store %arg6[%c328, %c0_176], %124 {strides = array<i32>} : memref<648x384xbf16, #tpu.memory_space<vmem>>, vector<8x384xbf16>,
    %c0_177 = arith.constant 0 : index
    %c0_178 = arith.constant 0 : index
    %c0_179 = arith.constant 0 : index
    %c102 = arith.constant 102 : index
    %126 = vector.load %arg1[%c0_177, %c0_178, %c0_179, %c102] : memref<1x1x8x600xbf16, #tpu.memory_space<vmem>>, vector<1x1x8x384xbf16>
    %127 = vector.shape_cast %126 : vector<1x1x8x384xbf16> to vector<8x384xbf16>
    %c336 = arith.constant 336 : index
    %c0_180 = arith.constant 0 : index
    %128 = vector.load %arg6[%c336, %c0_180] : memref<648x384xbf16, #tpu.memory_space<vmem>>, vector<8x384xbf16>
    tpu.vector_store %arg6[%c336, %c0_180], %127 {strides = array<i32>} : memref<648x384xbf16, #tpu.memory_space<vmem>>, vector<8x384xbf16>,
    %c0_181 = arith.constant 0 : index
    %c0_182 = arith.constant 0 : index
    %c0_183 = arith.constant 0 : index
    %c103 = arith.constant 103 : index
    %129 = vector.load %arg1[%c0_181, %c0_182, %c0_183, %c103] : memref<1x1x8x600xbf16, #tpu.memory_space<vmem>>, vector<1x1x8x384xbf16>
    %130 = vector.shape_cast %129 : vector<1x1x8x384xbf16> to vector<8x384xbf16>
    %c344 = arith.constant 344 : index
    %c0_184 = arith.constant 0 : index
    %131 = vector.load %arg6[%c344, %c0_184] : memref<648x384xbf16, #tpu.memory_space<vmem>>, vector<8x384xbf16>
    tpu.vector_store %arg6[%c344, %c0_184], %130 {strides = array<i32>} : memref<648x384xbf16, #tpu.memory_space<vmem>>, vector<8x384xbf16>,
    %c0_185 = arith.constant 0 : index
    %c0_186 = arith.constant 0 : index
    %c0_187 = arith.constant 0 : index
    %c104_188 = arith.constant 104 : index
    %132 = vector.load %arg1[%c0_185, %c0_186, %c0_187, %c104_188] : memref<1x1x8x600xbf16, #tpu.memory_space<vmem>>, vector<1x1x8x384xbf16>
    %133 = vector.shape_cast %132 : vector<1x1x8x384xbf16> to vector<8x384xbf16>
    %c352 = arith.constant 352 : index
    %c0_189 = arith.constant 0 : index
    %134 = vector.load %arg6[%c352, %c0_189] : memref<648x384xbf16, #tpu.memory_space<vmem>>, vector<8x384xbf16>
    tpu.vector_store %arg6[%c352, %c0_189], %133 {strides = array<i32>} : memref<648x384xbf16, #tpu.memory_space<vmem>>, vector<8x384xbf16>,
    %c0_190 = arith.constant 0 : index
    %c0_191 = arith.constant 0 : index
    %c0_192 = arith.constant 0 : index
    %c120_193 = arith.constant 120 : index
    %135 = vector.load %arg1[%c0_190, %c0_191, %c0_192, %c120_193] : memref<1x1x8x600xbf16, #tpu.memory_space<vmem>>, vector<1x1x8x384xbf16>
    %136 = vector.shape_cast %135 : vector<1x1x8x384xbf16> to vector<8x384xbf16>
    %c360 = arith.constant 360 : index
    %c0_194 = arith.constant 0 : index
    %137 = vector.load %arg6[%c360, %c0_194] : memref<648x384xbf16, #tpu.memory_space<vmem>>, vector<8x384xbf16>
    tpu.vector_store %arg6[%c360, %c0_194], %136 {strides = array<i32>} : memref<648x384xbf16, #tpu.memory_space<vmem>>, vector<8x384xbf16>,
    %c0_195 = arith.constant 0 : index
    %c0_196 = arith.constant 0 : index
    %c0_197 = arith.constant 0 : index
    %c121 = arith.constant 121 : index
    %138 = vector.load %arg1[%c0_195, %c0_196, %c0_197, %c121] : memref<1x1x8x600xbf16, #tpu.memory_space<vmem>>, vector<1x1x8x384xbf16>
    %139 = vector.shape_cast %138 : vector<1x1x8x384xbf16> to vector<8x384xbf16>
    %c368 = arith.constant 368 : index
    %c0_198 = arith.constant 0 : index
    %140 = vector.load %arg6[%c368, %c0_198] : memref<648x384xbf16, #tpu.memory_space<vmem>>, vector<8x384xbf16>
    tpu.vector_store %arg6[%c368, %c0_198], %139 {strides = array<i32>} : memref<648x384xbf16, #tpu.memory_space<vmem>>, vector<8x384xbf16>,
    %c0_199 = arith.constant 0 : index
    %c0_200 = arith.constant 0 : index
    %c0_201 = arith.constant 0 : index
    %c122 = arith.constant 122 : index
    %141 = vector.load %arg1[%c0_199, %c0_200, %c0_201, %c122] : memref<1x1x8x600xbf16, #tpu.memory_space<vmem>>, vector<1x1x8x384xbf16>
    %142 = vector.shape_cast %141 : vector<1x1x8x384xbf16> to vector<8x384xbf16>
    %c376 = arith.constant 376 : index
    %c0_202 = arith.constant 0 : index
    %143 = vector.load %arg6[%c376, %c0_202] : memref<648x384xbf16, #tpu.memory_space<vmem>>, vector<8x384xbf16>
    tpu.vector_store %arg6[%c376, %c0_202], %142 {strides = array<i32>} : memref<648x384xbf16, #tpu.memory_space<vmem>>, vector<8x384xbf16>,
    %c0_203 = arith.constant 0 : index
    %c0_204 = arith.constant 0 : index
    %c0_205 = arith.constant 0 : index
    %c123 = arith.constant 123 : index
    %144 = vector.load %arg1[%c0_203, %c0_204, %c0_205, %c123] : memref<1x1x8x600xbf16, #tpu.memory_space<vmem>>, vector<1x1x8x384xbf16>
    %145 = vector.shape_cast %144 : vector<1x1x8x384xbf16> to vector<8x384xbf16>
    %c384 = arith.constant 384 : index
    %c0_206 = arith.constant 0 : index
    %146 = vector.load %arg6[%c384, %c0_206] : memref<648x384xbf16, #tpu.memory_space<vmem>>, vector<8x384xbf16>
    tpu.vector_store %arg6[%c384, %c0_206], %145 {strides = array<i32>} : memref<648x384xbf16, #tpu.memory_space<vmem>>, vector<8x384xbf16>,
    %c0_207 = arith.constant 0 : index
    %c0_208 = arith.constant 0 : index
    %c0_209 = arith.constant 0 : index
    %c124 = arith.constant 124 : index
    %147 = vector.load %arg1[%c0_207, %c0_208, %c0_209, %c124] : memref<1x1x8x600xbf16, #tpu.memory_space<vmem>>, vector<1x1x8x384xbf16>
    %148 = vector.shape_cast %147 : vector<1x1x8x384xbf16> to vector<8x384xbf16>
    %c392 = arith.constant 392 : index
    %c0_210 = arith.constant 0 : index
    %149 = vector.load %arg6[%c392, %c0_210] : memref<648x384xbf16, #tpu.memory_space<vmem>>, vector<8x384xbf16>
    tpu.vector_store %arg6[%c392, %c0_210], %148 {strides = array<i32>} : memref<648x384xbf16, #tpu.memory_space<vmem>>, vector<8x384xbf16>,
    %c0_211 = arith.constant 0 : index
    %c0_212 = arith.constant 0 : index
    %c0_213 = arith.constant 0 : index
    %c125 = arith.constant 125 : index
    %150 = vector.load %arg1[%c0_211, %c0_212, %c0_213, %c125] : memref<1x1x8x600xbf16, #tpu.memory_space<vmem>>, vector<1x1x8x384xbf16>
    %151 = vector.shape_cast %150 : vector<1x1x8x384xbf16> to vector<8x384xbf16>
    %c400 = arith.constant 400 : index
    %c0_214 = arith.constant 0 : index
    %152 = vector.load %arg6[%c400, %c0_214] : memref<648x384xbf16, #tpu.memory_space<vmem>>, vector<8x384xbf16>
    tpu.vector_store %arg6[%c400, %c0_214], %151 {strides = array<i32>} : memref<648x384xbf16, #tpu.memory_space<vmem>>, vector<8x384xbf16>,
    %c0_215 = arith.constant 0 : index
    %c0_216 = arith.constant 0 : index
    %c0_217 = arith.constant 0 : index
    %c126 = arith.constant 126 : index
    %153 = vector.load %arg1[%c0_215, %c0_216, %c0_217, %c126] : memref<1x1x8x600xbf16, #tpu.memory_space<vmem>>, vector<1x1x8x384xbf16>
    %154 = vector.shape_cast %153 : vector<1x1x8x384xbf16> to vector<8x384xbf16>
    %c408 = arith.constant 408 : index
    %c0_218 = arith.constant 0 : index
    %155 = vector.load %arg6[%c408, %c0_218] : memref<648x384xbf16, #tpu.memory_space<vmem>>, vector<8x384xbf16>
    tpu.vector_store %arg6[%c408, %c0_218], %154 {strides = array<i32>} : memref<648x384xbf16, #tpu.memory_space<vmem>>, vector<8x384xbf16>,
    %c0_219 = arith.constant 0 : index
    %c0_220 = arith.constant 0 : index
    %c0_221 = arith.constant 0 : index
    %c127 = arith.constant 127 : index
    %156 = vector.load %arg1[%c0_219, %c0_220, %c0_221, %c127] : memref<1x1x8x600xbf16, #tpu.memory_space<vmem>>, vector<1x1x8x384xbf16>
    %157 = vector.shape_cast %156 : vector<1x1x8x384xbf16> to vector<8x384xbf16>
    %c416 = arith.constant 416 : index
    %c0_222 = arith.constant 0 : index
    %158 = vector.load %arg6[%c416, %c0_222] : memref<648x384xbf16, #tpu.memory_space<vmem>>, vector<8x384xbf16>
    tpu.vector_store %arg6[%c416, %c0_222], %157 {strides = array<i32>} : memref<648x384xbf16, #tpu.memory_space<vmem>>, vector<8x384xbf16>,
    %c0_223 = arith.constant 0 : index
    %c0_224 = arith.constant 0 : index
    %c0_225 = arith.constant 0 : index
    %c128_226 = arith.constant 128 : index
    %159 = vector.load %arg1[%c0_223, %c0_224, %c0_225, %c128_226] : memref<1x1x8x600xbf16, #tpu.memory_space<vmem>>, vector<1x1x8x384xbf16>
    %160 = vector.shape_cast %159 : vector<1x1x8x384xbf16> to vector<8x384xbf16>
    %c424 = arith.constant 424 : index
    %c0_227 = arith.constant 0 : index
    %161 = vector.load %arg6[%c424, %c0_227] : memref<648x384xbf16, #tpu.memory_space<vmem>>, vector<8x384xbf16>
    tpu.vector_store %arg6[%c424, %c0_227], %160 {strides = array<i32>} : memref<648x384xbf16, #tpu.memory_space<vmem>>, vector<8x384xbf16>,
    %c0_228 = arith.constant 0 : index
    %c0_229 = arith.constant 0 : index
    %c0_230 = arith.constant 0 : index
    %c144_231 = arith.constant 144 : index
    %162 = vector.load %arg1[%c0_228, %c0_229, %c0_230, %c144_231] : memref<1x1x8x600xbf16, #tpu.memory_space<vmem>>, vector<1x1x8x384xbf16>
    %163 = vector.shape_cast %162 : vector<1x1x8x384xbf16> to vector<8x384xbf16>
    %c432 = arith.constant 432 : index
    %c0_232 = arith.constant 0 : index
    %164 = vector.load %arg6[%c432, %c0_232] : memref<648x384xbf16, #tpu.memory_space<vmem>>, vector<8x384xbf16>
    tpu.vector_store %arg6[%c432, %c0_232], %163 {strides = array<i32>} : memref<648x384xbf16, #tpu.memory_space<vmem>>, vector<8x384xbf16>,
    %c0_233 = arith.constant 0 : index
    %c0_234 = arith.constant 0 : index
    %c0_235 = arith.constant 0 : index
    %c145 = arith.constant 145 : index
    %165 = vector.load %arg1[%c0_233, %c0_234, %c0_235, %c145] : memref<1x1x8x600xbf16, #tpu.memory_space<vmem>>, vector<1x1x8x384xbf16>
    %166 = vector.shape_cast %165 : vector<1x1x8x384xbf16> to vector<8x384xbf16>
    %c440 = arith.constant 440 : index
    %c0_236 = arith.constant 0 : index
    %167 = vector.load %arg6[%c440, %c0_236] : memref<648x384xbf16, #tpu.memory_space<vmem>>, vector<8x384xbf16>
    tpu.vector_store %arg6[%c440, %c0_236], %166 {strides = array<i32>} : memref<648x384xbf16, #tpu.memory_space<vmem>>, vector<8x384xbf16>,
    %c0_237 = arith.constant 0 : index
    %c0_238 = arith.constant 0 : index
    %c0_239 = arith.constant 0 : index
    %c146 = arith.constant 146 : index
    %168 = vector.load %arg1[%c0_237, %c0_238, %c0_239, %c146] : memref<1x1x8x600xbf16, #tpu.memory_space<vmem>>, vector<1x1x8x384xbf16>
    %169 = vector.shape_cast %168 : vector<1x1x8x384xbf16> to vector<8x384xbf16>
    %c448 = arith.constant 448 : index
    %c0_240 = arith.constant 0 : index
    %170 = vector.load %arg6[%c448, %c0_240] : memref<648x384xbf16, #tpu.memory_space<vmem>>, vector<8x384xbf16>
    tpu.vector_store %arg6[%c448, %c0_240], %169 {strides = array<i32>} : memref<648x384xbf16, #tpu.memory_space<vmem>>, vector<8x384xbf16>,
    %c0_241 = arith.constant 0 : index
    %c0_242 = arith.constant 0 : index
    %c0_243 = arith.constant 0 : index
    %c147 = arith.constant 147 : index
    %171 = vector.load %arg1[%c0_241, %c0_242, %c0_243, %c147] : memref<1x1x8x600xbf16, #tpu.memory_space<vmem>>, vector<1x1x8x384xbf16>
    %172 = vector.shape_cast %171 : vector<1x1x8x384xbf16> to vector<8x384xbf16>
    %c456 = arith.constant 456 : index
    %c0_244 = arith.constant 0 : index
    %173 = vector.load %arg6[%c456, %c0_244] : memref<648x384xbf16, #tpu.memory_space<vmem>>, vector<8x384xbf16>
    tpu.vector_store %arg6[%c456, %c0_244], %172 {strides = array<i32>} : memref<648x384xbf16, #tpu.memory_space<vmem>>, vector<8x384xbf16>,
    %c0_245 = arith.constant 0 : index
    %c0_246 = arith.constant 0 : index
    %c0_247 = arith.constant 0 : index
    %c148 = arith.constant 148 : index
    %174 = vector.load %arg1[%c0_245, %c0_246, %c0_247, %c148] : memref<1x1x8x600xbf16, #tpu.memory_space<vmem>>, vector<1x1x8x384xbf16>
    %175 = vector.shape_cast %174 : vector<1x1x8x384xbf16> to vector<8x384xbf16>
    %c464 = arith.constant 464 : index
    %c0_248 = arith.constant 0 : index
    %176 = vector.load %arg6[%c464, %c0_248] : memref<648x384xbf16, #tpu.memory_space<vmem>>, vector<8x384xbf16>
    tpu.vector_store %arg6[%c464, %c0_248], %175 {strides = array<i32>} : memref<648x384xbf16, #tpu.memory_space<vmem>>, vector<8x384xbf16>,
    %c0_249 = arith.constant 0 : index
    %c0_250 = arith.constant 0 : index
    %c0_251 = arith.constant 0 : index
    %c149 = arith.constant 149 : index
    %177 = vector.load %arg1[%c0_249, %c0_250, %c0_251, %c149] : memref<1x1x8x600xbf16, #tpu.memory_space<vmem>>, vector<1x1x8x384xbf16>
    %178 = vector.shape_cast %177 : vector<1x1x8x384xbf16> to vector<8x384xbf16>
    %c472 = arith.constant 472 : index
    %c0_252 = arith.constant 0 : index
    %179 = vector.load %arg6[%c472, %c0_252] : memref<648x384xbf16, #tpu.memory_space<vmem>>, vector<8x384xbf16>
    tpu.vector_store %arg6[%c472, %c0_252], %178 {strides = array<i32>} : memref<648x384xbf16, #tpu.memory_space<vmem>>, vector<8x384xbf16>,
    %c0_253 = arith.constant 0 : index
    %c0_254 = arith.constant 0 : index
    %c0_255 = arith.constant 0 : index
    %c150 = arith.constant 150 : index
    %180 = vector.load %arg1[%c0_253, %c0_254, %c0_255, %c150] : memref<1x1x8x600xbf16, #tpu.memory_space<vmem>>, vector<1x1x8x384xbf16>
    %181 = vector.shape_cast %180 : vector<1x1x8x384xbf16> to vector<8x384xbf16>
    %c480 = arith.constant 480 : index
    %c0_256 = arith.constant 0 : index
    %182 = vector.load %arg6[%c480, %c0_256] : memref<648x384xbf16, #tpu.memory_space<vmem>>, vector<8x384xbf16>
    tpu.vector_store %arg6[%c480, %c0_256], %181 {strides = array<i32>} : memref<648x384xbf16, #tpu.memory_space<vmem>>, vector<8x384xbf16>,
    %c0_257 = arith.constant 0 : index
    %c0_258 = arith.constant 0 : index
    %c0_259 = arith.constant 0 : index
    %c151 = arith.constant 151 : index
    %183 = vector.load %arg1[%c0_257, %c0_258, %c0_259, %c151] : memref<1x1x8x600xbf16, #tpu.memory_space<vmem>>, vector<1x1x8x384xbf16>
    %184 = vector.shape_cast %183 : vector<1x1x8x384xbf16> to vector<8x384xbf16>
    %c488 = arith.constant 488 : index
    %c0_260 = arith.constant 0 : index
    %185 = vector.load %arg6[%c488, %c0_260] : memref<648x384xbf16, #tpu.memory_space<vmem>>, vector<8x384xbf16>
    tpu.vector_store %arg6[%c488, %c0_260], %184 {strides = array<i32>} : memref<648x384xbf16, #tpu.memory_space<vmem>>, vector<8x384xbf16>,
    %c0_261 = arith.constant 0 : index
    %c0_262 = arith.constant 0 : index
    %c0_263 = arith.constant 0 : index
    %c152_264 = arith.constant 152 : index
    %186 = vector.load %arg1[%c0_261, %c0_262, %c0_263, %c152_264] : memref<1x1x8x600xbf16, #tpu.memory_space<vmem>>, vector<1x1x8x384xbf16>
    %187 = vector.shape_cast %186 : vector<1x1x8x384xbf16> to vector<8x384xbf16>
    %c496 = arith.constant 496 : index
    %c0_265 = arith.constant 0 : index
    %188 = vector.load %arg6[%c496, %c0_265] : memref<648x384xbf16, #tpu.memory_space<vmem>>, vector<8x384xbf16>
    tpu.vector_store %arg6[%c496, %c0_265], %187 {strides = array<i32>} : memref<648x384xbf16, #tpu.memory_space<vmem>>, vector<8x384xbf16>,
    %c0_266 = arith.constant 0 : index
    %c0_267 = arith.constant 0 : index
    %c0_268 = arith.constant 0 : index
    %c168_269 = arith.constant 168 : index
    %189 = vector.load %arg1[%c0_266, %c0_267, %c0_268, %c168_269] : memref<1x1x8x600xbf16, #tpu.memory_space<vmem>>, vector<1x1x8x384xbf16>
    %190 = vector.shape_cast %189 : vector<1x1x8x384xbf16> to vector<8x384xbf16>
    %c504 = arith.constant 504 : index
    %c0_270 = arith.constant 0 : index
    %191 = vector.load %arg6[%c504, %c0_270] : memref<648x384xbf16, #tpu.memory_space<vmem>>, vector<8x384xbf16>
    tpu.vector_store %arg6[%c504, %c0_270], %190 {strides = array<i32>} : memref<648x384xbf16, #tpu.memory_space<vmem>>, vector<8x384xbf16>,
    %c0_271 = arith.constant 0 : index
    %c0_272 = arith.constant 0 : index
    %c0_273 = arith.constant 0 : index
    %c169 = arith.constant 169 : index
    %192 = vector.load %arg1[%c0_271, %c0_272, %c0_273, %c169] : memref<1x1x8x600xbf16, #tpu.memory_space<vmem>>, vector<1x1x8x384xbf16>
    %193 = vector.shape_cast %192 : vector<1x1x8x384xbf16> to vector<8x384xbf16>
    %c512 = arith.constant 512 : index
    %c0_274 = arith.constant 0 : index
    %194 = vector.load %arg6[%c512, %c0_274] : memref<648x384xbf16, #tpu.memory_space<vmem>>, vector<8x384xbf16>
    tpu.vector_store %arg6[%c512, %c0_274], %193 {strides = array<i32>} : memref<648x384xbf16, #tpu.memory_space<vmem>>, vector<8x384xbf16>,
    %c0_275 = arith.constant 0 : index
    %c0_276 = arith.constant 0 : index
    %c0_277 = arith.constant 0 : index
    %c170 = arith.constant 170 : index
    %195 = vector.load %arg1[%c0_275, %c0_276, %c0_277, %c170] : memref<1x1x8x600xbf16, #tpu.memory_space<vmem>>, vector<1x1x8x384xbf16>
    %196 = vector.shape_cast %195 : vector<1x1x8x384xbf16> to vector<8x384xbf16>
    %c520 = arith.constant 520 : index
    %c0_278 = arith.constant 0 : index
    %197 = vector.load %arg6[%c520, %c0_278] : memref<648x384xbf16, #tpu.memory_space<vmem>>, vector<8x384xbf16>
    tpu.vector_store %arg6[%c520, %c0_278], %196 {strides = array<i32>} : memref<648x384xbf16, #tpu.memory_space<vmem>>, vector<8x384xbf16>,
    %c0_279 = arith.constant 0 : index
    %c0_280 = arith.constant 0 : index
    %c0_281 = arith.constant 0 : index
    %c171 = arith.constant 171 : index
    %198 = vector.load %arg1[%c0_279, %c0_280, %c0_281, %c171] : memref<1x1x8x600xbf16, #tpu.memory_space<vmem>>, vector<1x1x8x384xbf16>
    %199 = vector.shape_cast %198 : vector<1x1x8x384xbf16> to vector<8x384xbf16>
    %c528 = arith.constant 528 : index
    %c0_282 = arith.constant 0 : index
    %200 = vector.load %arg6[%c528, %c0_282] : memref<648x384xbf16, #tpu.memory_space<vmem>>, vector<8x384xbf16>
    tpu.vector_store %arg6[%c528, %c0_282], %199 {strides = array<i32>} : memref<648x384xbf16, #tpu.memory_space<vmem>>, vector<8x384xbf16>,
    %c0_283 = arith.constant 0 : index
    %c0_284 = arith.constant 0 : index
    %c0_285 = arith.constant 0 : index
    %c172 = arith.constant 172 : index
    %201 = vector.load %arg1[%c0_283, %c0_284, %c0_285, %c172] : memref<1x1x8x600xbf16, #tpu.memory_space<vmem>>, vector<1x1x8x384xbf16>
    %202 = vector.shape_cast %201 : vector<1x1x8x384xbf16> to vector<8x384xbf16>
    %c536 = arith.constant 536 : index
    %c0_286 = arith.constant 0 : index
    %203 = vector.load %arg6[%c536, %c0_286] : memref<648x384xbf16, #tpu.memory_space<vmem>>, vector<8x384xbf16>
    tpu.vector_store %arg6[%c536, %c0_286], %202 {strides = array<i32>} : memref<648x384xbf16, #tpu.memory_space<vmem>>, vector<8x384xbf16>,
    %c0_287 = arith.constant 0 : index
    %c0_288 = arith.constant 0 : index
    %c0_289 = arith.constant 0 : index
    %c173 = arith.constant 173 : index
    %204 = vector.load %arg1[%c0_287, %c0_288, %c0_289, %c173] : memref<1x1x8x600xbf16, #tpu.memory_space<vmem>>, vector<1x1x8x384xbf16>
    %205 = vector.shape_cast %204 : vector<1x1x8x384xbf16> to vector<8x384xbf16>
    %c544 = arith.constant 544 : index
    %c0_290 = arith.constant 0 : index
    %206 = vector.load %arg6[%c544, %c0_290] : memref<648x384xbf16, #tpu.memory_space<vmem>>, vector<8x384xbf16>
    tpu.vector_store %arg6[%c544, %c0_290], %205 {strides = array<i32>} : memref<648x384xbf16, #tpu.memory_space<vmem>>, vector<8x384xbf16>,
    %c0_291 = arith.constant 0 : index
    %c0_292 = arith.constant 0 : index
    %c0_293 = arith.constant 0 : index
    %c174 = arith.constant 174 : index
    %207 = vector.load %arg1[%c0_291, %c0_292, %c0_293, %c174] : memref<1x1x8x600xbf16, #tpu.memory_space<vmem>>, vector<1x1x8x384xbf16>
    %208 = vector.shape_cast %207 : vector<1x1x8x384xbf16> to vector<8x384xbf16>
    %c552 = arith.constant 552 : index
    %c0_294 = arith.constant 0 : index
    %209 = vector.load %arg6[%c552, %c0_294] : memref<648x384xbf16, #tpu.memory_space<vmem>>, vector<8x384xbf16>
    tpu.vector_store %arg6[%c552, %c0_294], %208 {strides = array<i32>} : memref<648x384xbf16, #tpu.memory_space<vmem>>, vector<8x384xbf16>,
    %c0_295 = arith.constant 0 : index
    %c0_296 = arith.constant 0 : index
    %c0_297 = arith.constant 0 : index
    %c175 = arith.constant 175 : index
    %210 = vector.load %arg1[%c0_295, %c0_296, %c0_297, %c175] : memref<1x1x8x600xbf16, #tpu.memory_space<vmem>>, vector<1x1x8x384xbf16>
    %211 = vector.shape_cast %210 : vector<1x1x8x384xbf16> to vector<8x384xbf16>
    %c560 = arith.constant 560 : index
    %c0_298 = arith.constant 0 : index
    %212 = vector.load %arg6[%c560, %c0_298] : memref<648x384xbf16, #tpu.memory_space<vmem>>, vector<8x384xbf16>
    tpu.vector_store %arg6[%c560, %c0_298], %211 {strides = array<i32>} : memref<648x384xbf16, #tpu.memory_space<vmem>>, vector<8x384xbf16>,
    %c0_299 = arith.constant 0 : index
    %c0_300 = arith.constant 0 : index
    %c0_301 = arith.constant 0 : index
    %c176_302 = arith.constant 176 : index
    %213 = vector.load %arg1[%c0_299, %c0_300, %c0_301, %c176_302] : memref<1x1x8x600xbf16, #tpu.memory_space<vmem>>, vector<1x1x8x384xbf16>
    %214 = vector.shape_cast %213 : vector<1x1x8x384xbf16> to vector<8x384xbf16>
    %c568 = arith.constant 568 : index
    %c0_303 = arith.constant 0 : index
    %215 = vector.load %arg6[%c568, %c0_303] : memref<648x384xbf16, #tpu.memory_space<vmem>>, vector<8x384xbf16>
    tpu.vector_store %arg6[%c568, %c0_303], %214 {strides = array<i32>} : memref<648x384xbf16, #tpu.memory_space<vmem>>, vector<8x384xbf16>,
    %c0_304 = arith.constant 0 : index
    %c0_305 = arith.constant 0 : index
    %c0_306 = arith.constant 0 : index
    %c192_307 = arith.constant 192 : index
    %216 = vector.load %arg1[%c0_304, %c0_305, %c0_306, %c192_307] : memref<1x1x8x600xbf16, #tpu.memory_space<vmem>>, vector<1x1x8x384xbf16>
    %217 = vector.shape_cast %216 : vector<1x1x8x384xbf16> to vector<8x384xbf16>
    %c576 = arith.constant 576 : index
    %c0_308 = arith.constant 0 : index
    %218 = vector.load %arg6[%c576, %c0_308] : memref<648x384xbf16, #tpu.memory_space<vmem>>, vector<8x384xbf16>
    tpu.vector_store %arg6[%c576, %c0_308], %217 {strides = array<i32>} : memref<648x384xbf16, #tpu.memory_space<vmem>>, vector<8x384xbf16>,
    %c0_309 = arith.constant 0 : index
    %c0_310 = arith.constant 0 : index
    %c0_311 = arith.constant 0 : index
    %c193 = arith.constant 193 : index
    %219 = vector.load %arg1[%c0_309, %c0_310, %c0_311, %c193] : memref<1x1x8x600xbf16, #tpu.memory_space<vmem>>, vector<1x1x8x384xbf16>
    %220 = vector.shape_cast %219 : vector<1x1x8x384xbf16> to vector<8x384xbf16>
    %c584 = arith.constant 584 : index
    %c0_312 = arith.constant 0 : index
    %221 = vector.load %arg6[%c584, %c0_312] : memref<648x384xbf16, #tpu.memory_space<vmem>>, vector<8x384xbf16>
    tpu.vector_store %arg6[%c584, %c0_312], %220 {strides = array<i32>} : memref<648x384xbf16, #tpu.memory_space<vmem>>, vector<8x384xbf16>,
    %c0_313 = arith.constant 0 : index
    %c0_314 = arith.constant 0 : index
    %c0_315 = arith.constant 0 : index
    %c194 = arith.constant 194 : index
    %222 = vector.load %arg1[%c0_313, %c0_314, %c0_315, %c194] : memref<1x1x8x600xbf16, #tpu.memory_space<vmem>>, vector<1x1x8x384xbf16>
    %223 = vector.shape_cast %222 : vector<1x1x8x384xbf16> to vector<8x384xbf16>
    %c592 = arith.constant 592 : index
    %c0_316 = arith.constant 0 : index
    %224 = vector.load %arg6[%c592, %c0_316] : memref<648x384xbf16, #tpu.memory_space<vmem>>, vector<8x384xbf16>
    tpu.vector_store %arg6[%c592, %c0_316], %223 {strides = array<i32>} : memref<648x384xbf16, #tpu.memory_space<vmem>>, vector<8x384xbf16>,
    %c0_317 = arith.constant 0 : index
    %c0_318 = arith.constant 0 : index
    %c0_319 = arith.constant 0 : index
    %c195 = arith.constant 195 : index
    %225 = vector.load %arg1[%c0_317, %c0_318, %c0_319, %c195] : memref<1x1x8x600xbf16, #tpu.memory_space<vmem>>, vector<1x1x8x384xbf16>
    %226 = vector.shape_cast %225 : vector<1x1x8x384xbf16> to vector<8x384xbf16>
    %c600 = arith.constant 600 : index
    %c0_320 = arith.constant 0 : index
    %227 = vector.load %arg6[%c600, %c0_320] : memref<648x384xbf16, #tpu.memory_space<vmem>>, vector<8x384xbf16>
    tpu.vector_store %arg6[%c600, %c0_320], %226 {strides = array<i32>} : memref<648x384xbf16, #tpu.memory_space<vmem>>, vector<8x384xbf16>,
    %c0_321 = arith.constant 0 : index
    %c0_322 = arith.constant 0 : index
    %c0_323 = arith.constant 0 : index
    %c196 = arith.constant 196 : index
    %228 = vector.load %arg1[%c0_321, %c0_322, %c0_323, %c196] : memref<1x1x8x600xbf16, #tpu.memory_space<vmem>>, vector<1x1x8x384xbf16>
    %229 = vector.shape_cast %228 : vector<1x1x8x384xbf16> to vector<8x384xbf16>
    %c608 = arith.constant 608 : index
    %c0_324 = arith.constant 0 : index
    %230 = vector.load %arg6[%c608, %c0_324] : memref<648x384xbf16, #tpu.memory_space<vmem>>, vector<8x384xbf16>
    tpu.vector_store %arg6[%c608, %c0_324], %229 {strides = array<i32>} : memref<648x384xbf16, #tpu.memory_space<vmem>>, vector<8x384xbf16>,
    %c0_325 = arith.constant 0 : index
    %c0_326 = arith.constant 0 : index
    %c0_327 = arith.constant 0 : index
    %c197 = arith.constant 197 : index
    %231 = vector.load %arg1[%c0_325, %c0_326, %c0_327, %c197] : memref<1x1x8x600xbf16, #tpu.memory_space<vmem>>, vector<1x1x8x384xbf16>
    %232 = vector.shape_cast %231 : vector<1x1x8x384xbf16> to vector<8x384xbf16>
    %c616 = arith.constant 616 : index
    %c0_328 = arith.constant 0 : index
    %233 = vector.load %arg6[%c616, %c0_328] : memref<648x384xbf16, #tpu.memory_space<vmem>>, vector<8x384xbf16>
    tpu.vector_store %arg6[%c616, %c0_328], %232 {strides = array<i32>} : memref<648x384xbf16, #tpu.memory_space<vmem>>, vector<8x384xbf16>,
    %c0_329 = arith.constant 0 : index
    %c0_330 = arith.constant 0 : index
    %c0_331 = arith.constant 0 : index
    %c198 = arith.constant 198 : index
    %234 = vector.load %arg1[%c0_329, %c0_330, %c0_331, %c198] : memref<1x1x8x600xbf16, #tpu.memory_space<vmem>>, vector<1x1x8x384xbf16>
    %235 = vector.shape_cast %234 : vector<1x1x8x384xbf16> to vector<8x384xbf16>
    %c624 = arith.constant 624 : index
    %c0_332 = arith.constant 0 : index
    %236 = vector.load %arg6[%c624, %c0_332] : memref<648x384xbf16, #tpu.memory_space<vmem>>, vector<8x384xbf16>
    tpu.vector_store %arg6[%c624, %c0_332], %235 {strides = array<i32>} : memref<648x384xbf16, #tpu.memory_space<vmem>>, vector<8x384xbf16>,
    %c0_333 = arith.constant 0 : index
    %c0_334 = arith.constant 0 : index
    %c0_335 = arith.constant 0 : index
    %c199 = arith.constant 199 : index
    %237 = vector.load %arg1[%c0_333, %c0_334, %c0_335, %c199] : memref<1x1x8x600xbf16, #tpu.memory_space<vmem>>, vector<1x1x8x384xbf16>
    %238 = vector.shape_cast %237 : vector<1x1x8x384xbf16> to vector<8x384xbf16>
    %c632 = arith.constant 632 : index
    %c0_336 = arith.constant 0 : index
    %239 = vector.load %arg6[%c632, %c0_336] : memref<648x384xbf16, #tpu.memory_space<vmem>>, vector<8x384xbf16>
    tpu.vector_store %arg6[%c632, %c0_336], %238 {strides = array<i32>} : memref<648x384xbf16, #tpu.memory_space<vmem>>, vector<8x384xbf16>,
    %c0_337 = arith.constant 0 : index
    %c0_338 = arith.constant 0 : index
    %c0_339 = arith.constant 0 : index
    %c200_340 = arith.constant 200 : index
    %240 = vector.load %arg1[%c0_337, %c0_338, %c0_339, %c200_340] : memref<1x1x8x600xbf16, #tpu.memory_space<vmem>>, vector<1x1x8x384xbf16>
    %241 = vector.shape_cast %240 : vector<1x1x8x384xbf16> to vector<8x384xbf16>
    %c640 = arith.constant 640 : index
    %c0_341 = arith.constant 0 : index
    %242 = vector.load %arg6[%c640, %c0_341] : memref<648x384xbf16, #tpu.memory_space<vmem>>, vector<8x384xbf16>
    tpu.vector_store %arg6[%c640, %c0_341], %241 {strides = array<i32>} : memref<648x384xbf16, #tpu.memory_space<vmem>>, vector<8x384xbf16>,
    %c0_342 = arith.constant 0 : index
    %c0_343 = arith.constant 0 : index
    %c0_344 = arith.constant 0 : index
    %243 = vector.load %arg2[%c0_342, %c0_343, %c0_344] : memref<1x4x648xbf16, #tpu.memory_space<vmem>>, vector<1x4x648xbf16>
    %244 = vector.shape_cast %243 : vector<1x4x648xbf16> to vector<4x648xbf16>
    %c0_345 = arith.constant 0 : index
    %c0_346 = arith.constant 0 : index
    %245 = vector.load %arg6[%c0_345, %c0_346] : memref<648x384xbf16, #tpu.memory_space<vmem>>, vector<648x384xbf16>
    %cst = arith.constant dense<0.000000e+00> : vector<4x384xf32>
    %246 = tpu.matmul %244, %245, %cst {dimension_numbers = #tpu.dot_dimension_numbers<[1], [0], [0], [1], [0, 0, 1, 1], [], []>} : vector<4x648xbf16>, vector<648x384xbf16>, vector<4x384xf32> -> vector<4x384xf32>
    %c0_347 = arith.constant 0 : index
    %c0_348 = arith.constant 0 : index
    %247 = vector.load %arg3[%c0_347, %c0_348] : memref<4x1xf32, #tpu.memory_space<vmem>>, vector<4x1xf32>
    %248 = vector.broadcast %247 : vector<4x1xf32> to vector<4x384xf32>
    %249 = arith.addf %246, %248 : vector<4x384xf32>
    %c0_349 = arith.constant 0 : index
    %c0_350 = arith.constant 0 : index
    %250 = vector.load %arg4[%c0_349, %c0_350] : memref<1x384xf32, #tpu.memory_space<vmem>>, vector<1x384xf32>
    %251 = vector.broadcast %250 : vector<1x384xf32> to vector<4x384xf32>
    %252 = arith.mulf %249, %251 : vector<4x384xf32>
    %cst_351 = arith.constant dense<0.000000e+00> : vector<4xf32>
    %253 = vector.multi_reduction <add>, %252, %cst_351 [1] : vector<4x384xf32> to vector<4xf32>
    %254 = vector.shape_cast %253 : vector<4xf32> to vector<4x1xf32>
    %cst_352 = arith.constant 3.906250e-03 : f32
    %255 = vector.broadcast %cst_352 : f32 to vector<4x1xf32>
    %256 = arith.mulf %254, %255 : vector<4x1xf32>
    %257 = arith.mulf %252, %252 : vector<4x384xf32>
    %cst_353 = arith.constant dense<0.000000e+00> : vector<4xf32>
    %258 = vector.multi_reduction <add>, %257, %cst_353 [1] : vector<4x384xf32> to vector<4xf32>
    %259 = vector.shape_cast %258 : vector<4xf32> to vector<4x1xf32>
    %cst_354 = arith.constant 3.906250e-03 : f32
    %260 = vector.broadcast %cst_354 : f32 to vector<4x1xf32>
    %261 = arith.mulf %259, %260 : vector<4x1xf32>
    %262 = arith.mulf %256, %256 : vector<4x1xf32>
    %263 = arith.subf %261, %262 : vector<4x1xf32>
    %cst_355 = arith.constant 0.000000e+00 : f32
    %264 = vector.broadcast %cst_355 : f32 to vector<4x1xf32>
    %265 = arith.maximumf %263, %264 : vector<4x1xf32>
    %266 = vector.broadcast %256 : vector<4x1xf32> to vector<4x384xf32>
    %267 = arith.subf %249, %266 : vector<4x384xf32>
    %cst_356 = arith.constant 9.99999974E-6 : f32
    %268 = vector.broadcast %cst_356 : f32 to vector<4x1xf32>
    %269 = arith.addf %265, %268 : vector<4x1xf32>
    %270 = math.rsqrt %269 : vector<4x1xf32>
    %271 = vector.broadcast %270 : vector<4x1xf32> to vector<4x384xf32>
    %272 = arith.mulf %267, %271 : vector<4x384xf32>
    %cst_357 = arith.constant 0.000000e+00 : f32
    %273 = vector.broadcast %cst_357 : f32 to vector<4x384xf32>
    %274 = arith.maximumf %272, %273 : vector<4x384xf32>
    %275 = arith.truncf %274 : vector<4x384xf32> to vector<4x384xbf16>
    %c0_358 = arith.constant 0 : index
    %c0_359 = arith.constant 0 : index
    %c0_360 = arith.constant 0 : index
    %276 = vector.load %arg5[%c0_358, %c0_359, %c0_360] : memref<1x4x384xbf16, #tpu.memory_space<vmem>>, vector<1x4x384xbf16>
    %277 = vector.shape_cast %276 : vector<1x4x384xbf16> to vector<4x384xbf16>
    %278 = vector.shape_cast %275 : vector<4x384xbf16> to vector<1x4x384xbf16>
    tpu.vector_store %arg5[%c0_358, %c0_359, %c0_360], %278 {strides = array<i32>} : memref<1x4x384xbf16, #tpu.memory_space<vmem>>, vector<1x4x384xbf16>,
    return
  }
  func.func @transform_0(%arg0: i32) -> (i32, i32, i32, i32) {
    %c0_i32 = arith.constant 0 : i32
    %c0_i32_0 = arith.constant 0 : i32
    %c0_i32_1 = arith.constant 0 : i32
    %c0_i32_2 = arith.constant 0 : i32
    return %arg0, %c0_i32, %c0_i32_0, %c0_i32_1 : i32, i32, i32, i32
  }
  func.func @transform_1(%arg0: i32) -> (i32, i32, i32) {
    %c0_i32 = arith.constant 0 : i32
    %c0_i32_0 = arith.constant 0 : i32
    %c0_i32_1 = arith.constant 0 : i32
    %c0_i32_2 = arith.constant 0 : i32
    return %c0_i32, %c0_i32_0, %c0_i32_1 : i32, i32, i32
  }
  func.func @transform_2(%arg0: i32) -> (i32, i32) {
    %c0_i32 = arith.constant 0 : i32
    %c0_i32_0 = arith.constant 0 : i32
    %c0_i32_1 = arith.constant 0 : i32
    return %c0_i32, %c0_i32_0 : i32, i32
  }
  func.func @transform_3(%arg0: i32) -> (i32, i32) {
    %c0_i32 = arith.constant 0 : i32
    %c0_i32_0 = arith.constant 0 : i32
    %c0_i32_1 = arith.constant 0 : i32
    return %c0_i32, %c0_i32_0 : i32, i32
  }
  func.func @transform_4(%arg0: i32) -> (i32, i32, i32) {
    %c0_i32 = arith.constant 0 : i32
    %c0_i32_0 = arith.constant 0 : i32
    %c0_i32_1 = arith.constant 0 : i32
    return %arg0, %c0_i32, %c0_i32_0 : i32, i32, i32
  }
}

module attributes {stable_mosaic.version = 11 : i64} {
  func.func @_conv_group_kernel(%arg0: i32, %arg1: memref<1x4x8x90xbf16, #tpu.memory_space<vmem>>, %arg2: memref<1x8x72xbf16, #tpu.memory_space<vmem>>, %arg3: memref<8x1xf32, #tpu.memory_space<vmem>>, %arg4: memref<1x72xf32, #tpu.memory_space<vmem>>, %arg5: memref<1x8x72xbf16, #tpu.memory_space<vmem>>, %arg6: memref<72x72xbf16, #tpu.memory_space<vmem>>) attributes {dimension_semantics = [#tpu.dimension_semantics<parallel>], iteration_bounds = array<i64: 2>, scalar_prefetch = 0 : i64, scratch_operands = 1 : i64, tpu.core_type = #tpu.core_type<tc>, window_params = [{transform_indices = @transform_0, window_bounds = array<i64: 1, 4, 8, 90>}, {pipeline_mode = #tpu.pipeline_mode<synchronous>, transform_indices = @transform_1, window_bounds = array<i64: 1, 8, 72>}, {pipeline_mode = #tpu.pipeline_mode<synchronous>, transform_indices = @transform_2, window_bounds = array<i64: 8, 1>}, {pipeline_mode = #tpu.pipeline_mode<synchronous>, transform_indices = @transform_3, window_bounds = array<i64: 1, 72>}, {transform_indices = @transform_4, window_bounds = array<i64: 1, 8, 72>}]} {
    %c0 = arith.constant 0 : index
    %c0_0 = arith.constant 0 : index
    %c0_1 = arith.constant 0 : index
    %c0_2 = arith.constant 0 : index
    %0 = vector.load %arg1[%c0, %c0_0, %c0_1, %c0_2] : memref<1x4x8x90xbf16, #tpu.memory_space<vmem>>, vector<1x1x8x72xbf16>
    %1 = vector.shape_cast %0 : vector<1x1x8x72xbf16> to vector<8x72xbf16>
    %c0_3 = arith.constant 0 : index
    %c0_4 = arith.constant 0 : index
    %2 = vector.load %arg6[%c0_3, %c0_4] : memref<72x72xbf16, #tpu.memory_space<vmem>>, vector<8x72xbf16>
    tpu.vector_store %arg6[%c0_3, %c0_4], %1 {strides = array<i32>} : memref<72x72xbf16, #tpu.memory_space<vmem>>, vector<8x72xbf16>,
    %c0_5 = arith.constant 0 : index
    %c1 = arith.constant 1 : index
    %c0_6 = arith.constant 0 : index
    %c0_7 = arith.constant 0 : index
    %3 = vector.load %arg1[%c0_5, %c1, %c0_6, %c0_7] : memref<1x4x8x90xbf16, #tpu.memory_space<vmem>>, vector<1x1x8x72xbf16>
    %4 = vector.shape_cast %3 : vector<1x1x8x72xbf16> to vector<8x72xbf16>
    %c8 = arith.constant 8 : index
    %c0_8 = arith.constant 0 : index
    %5 = vector.load %arg6[%c8, %c0_8] : memref<72x72xbf16, #tpu.memory_space<vmem>>, vector<8x72xbf16>
    tpu.vector_store %arg6[%c8, %c0_8], %4 {strides = array<i32>} : memref<72x72xbf16, #tpu.memory_space<vmem>>, vector<8x72xbf16>,
    %c0_9 = arith.constant 0 : index
    %c0_10 = arith.constant 0 : index
    %c0_11 = arith.constant 0 : index
    %c1_12 = arith.constant 1 : index
    %6 = vector.load %arg1[%c0_9, %c0_10, %c0_11, %c1_12] : memref<1x4x8x90xbf16, #tpu.memory_space<vmem>>, vector<1x1x8x72xbf16>
    %7 = vector.shape_cast %6 : vector<1x1x8x72xbf16> to vector<8x72xbf16>
    %c16 = arith.constant 16 : index
    %c0_13 = arith.constant 0 : index
    %8 = vector.load %arg6[%c16, %c0_13] : memref<72x72xbf16, #tpu.memory_space<vmem>>, vector<8x72xbf16>
    tpu.vector_store %arg6[%c16, %c0_13], %7 {strides = array<i32>} : memref<72x72xbf16, #tpu.memory_space<vmem>>, vector<8x72xbf16>,
    %c0_14 = arith.constant 0 : index
    %c2 = arith.constant 2 : index
    %c0_15 = arith.constant 0 : index
    %c0_16 = arith.constant 0 : index
    %9 = vector.load %arg1[%c0_14, %c2, %c0_15, %c0_16] : memref<1x4x8x90xbf16, #tpu.memory_space<vmem>>, vector<1x1x8x72xbf16>
    %10 = vector.shape_cast %9 : vector<1x1x8x72xbf16> to vector<8x72xbf16>
    %c24 = arith.constant 24 : index
    %c0_17 = arith.constant 0 : index
    %11 = vector.load %arg6[%c24, %c0_17] : memref<72x72xbf16, #tpu.memory_space<vmem>>, vector<8x72xbf16>
    tpu.vector_store %arg6[%c24, %c0_17], %10 {strides = array<i32>} : memref<72x72xbf16, #tpu.memory_space<vmem>>, vector<8x72xbf16>,
    %c0_18 = arith.constant 0 : index
    %c3 = arith.constant 3 : index
    %c0_19 = arith.constant 0 : index
    %c0_20 = arith.constant 0 : index
    %12 = vector.load %arg1[%c0_18, %c3, %c0_19, %c0_20] : memref<1x4x8x90xbf16, #tpu.memory_space<vmem>>, vector<1x1x8x72xbf16>
    %13 = vector.shape_cast %12 : vector<1x1x8x72xbf16> to vector<8x72xbf16>
    %c32 = arith.constant 32 : index
    %c0_21 = arith.constant 0 : index
    %14 = vector.load %arg6[%c32, %c0_21] : memref<72x72xbf16, #tpu.memory_space<vmem>>, vector<8x72xbf16>
    tpu.vector_store %arg6[%c32, %c0_21], %13 {strides = array<i32>} : memref<72x72xbf16, #tpu.memory_space<vmem>>, vector<8x72xbf16>,
    %c0_22 = arith.constant 0 : index
    %c2_23 = arith.constant 2 : index
    %c0_24 = arith.constant 0 : index
    %c1_25 = arith.constant 1 : index
    %15 = vector.load %arg1[%c0_22, %c2_23, %c0_24, %c1_25] : memref<1x4x8x90xbf16, #tpu.memory_space<vmem>>, vector<1x1x8x72xbf16>
    %16 = vector.shape_cast %15 : vector<1x1x8x72xbf16> to vector<8x72xbf16>
    %c40 = arith.constant 40 : index
    %c0_26 = arith.constant 0 : index
    %17 = vector.load %arg6[%c40, %c0_26] : memref<72x72xbf16, #tpu.memory_space<vmem>>, vector<8x72xbf16>
    tpu.vector_store %arg6[%c40, %c0_26], %16 {strides = array<i32>} : memref<72x72xbf16, #tpu.memory_space<vmem>>, vector<8x72xbf16>,
    %c0_27 = arith.constant 0 : index
    %c0_28 = arith.constant 0 : index
    %c0_29 = arith.constant 0 : index
    %c9 = arith.constant 9 : index
    %18 = vector.load %arg1[%c0_27, %c0_28, %c0_29, %c9] : memref<1x4x8x90xbf16, #tpu.memory_space<vmem>>, vector<1x1x8x72xbf16>
    %19 = vector.shape_cast %18 : vector<1x1x8x72xbf16> to vector<8x72xbf16>
    %c48 = arith.constant 48 : index
    %c0_30 = arith.constant 0 : index
    %20 = vector.load %arg6[%c48, %c0_30] : memref<72x72xbf16, #tpu.memory_space<vmem>>, vector<8x72xbf16>
    tpu.vector_store %arg6[%c48, %c0_30], %19 {strides = array<i32>} : memref<72x72xbf16, #tpu.memory_space<vmem>>, vector<8x72xbf16>,
    %c0_31 = arith.constant 0 : index
    %c1_32 = arith.constant 1 : index
    %c0_33 = arith.constant 0 : index
    %c9_34 = arith.constant 9 : index
    %21 = vector.load %arg1[%c0_31, %c1_32, %c0_33, %c9_34] : memref<1x4x8x90xbf16, #tpu.memory_space<vmem>>, vector<1x1x8x72xbf16>
    %22 = vector.shape_cast %21 : vector<1x1x8x72xbf16> to vector<8x72xbf16>
    %c56 = arith.constant 56 : index
    %c0_35 = arith.constant 0 : index
    %23 = vector.load %arg6[%c56, %c0_35] : memref<72x72xbf16, #tpu.memory_space<vmem>>, vector<8x72xbf16>
    tpu.vector_store %arg6[%c56, %c0_35], %22 {strides = array<i32>} : memref<72x72xbf16, #tpu.memory_space<vmem>>, vector<8x72xbf16>,
    %c0_36 = arith.constant 0 : index
    %c0_37 = arith.constant 0 : index
    %c0_38 = arith.constant 0 : index
    %c10 = arith.constant 10 : index
    %24 = vector.load %arg1[%c0_36, %c0_37, %c0_38, %c10] : memref<1x4x8x90xbf16, #tpu.memory_space<vmem>>, vector<1x1x8x72xbf16>
    %25 = vector.shape_cast %24 : vector<1x1x8x72xbf16> to vector<8x72xbf16>
    %c64 = arith.constant 64 : index
    %c0_39 = arith.constant 0 : index
    %26 = vector.load %arg6[%c64, %c0_39] : memref<72x72xbf16, #tpu.memory_space<vmem>>, vector<8x72xbf16>
    tpu.vector_store %arg6[%c64, %c0_39], %25 {strides = array<i32>} : memref<72x72xbf16, #tpu.memory_space<vmem>>, vector<8x72xbf16>,
    %c0_40 = arith.constant 0 : index
    %c0_41 = arith.constant 0 : index
    %c0_42 = arith.constant 0 : index
    %27 = vector.load %arg2[%c0_40, %c0_41, %c0_42] : memref<1x8x72xbf16, #tpu.memory_space<vmem>>, vector<1x8x72xbf16>
    %28 = vector.shape_cast %27 : vector<1x8x72xbf16> to vector<8x72xbf16>
    %c0_43 = arith.constant 0 : index
    %c0_44 = arith.constant 0 : index
    %29 = vector.load %arg6[%c0_43, %c0_44] : memref<72x72xbf16, #tpu.memory_space<vmem>>, vector<72x72xbf16>
    %cst = arith.constant dense<0.000000e+00> : vector<8x72xf32>
    %30 = tpu.matmul %28, %29, %cst {dimension_numbers = #tpu.dot_dimension_numbers<[1], [0], [0], [1], [0, 0, 1, 1], [], []>} : vector<8x72xbf16>, vector<72x72xbf16>, vector<8x72xf32> -> vector<8x72xf32>
    %c0_45 = arith.constant 0 : index
    %c0_46 = arith.constant 0 : index
    %31 = vector.load %arg3[%c0_45, %c0_46] : memref<8x1xf32, #tpu.memory_space<vmem>>, vector<8x1xf32>
    %32 = vector.broadcast %31 : vector<8x1xf32> to vector<8x72xf32>
    %33 = arith.addf %30, %32 : vector<8x72xf32>
    %c0_47 = arith.constant 0 : index
    %c0_48 = arith.constant 0 : index
    %34 = vector.load %arg4[%c0_47, %c0_48] : memref<1x72xf32, #tpu.memory_space<vmem>>, vector<1x72xf32>
    %35 = vector.broadcast %34 : vector<1x72xf32> to vector<8x72xf32>
    %36 = arith.mulf %33, %35 : vector<8x72xf32>
    %cst_49 = arith.constant dense<0.000000e+00> : vector<8xf32>
    %37 = vector.multi_reduction <add>, %36, %cst_49 [1] : vector<8x72xf32> to vector<8xf32>
    %38 = vector.shape_cast %37 : vector<8xf32> to vector<8x1xf32>
    %cst_50 = arith.constant 1.562500e-02 : f32
    %39 = vector.broadcast %cst_50 : f32 to vector<8x1xf32>
    %40 = arith.mulf %38, %39 : vector<8x1xf32>
    %41 = arith.mulf %36, %36 : vector<8x72xf32>
    %cst_51 = arith.constant dense<0.000000e+00> : vector<8xf32>
    %42 = vector.multi_reduction <add>, %41, %cst_51 [1] : vector<8x72xf32> to vector<8xf32>
    %43 = vector.shape_cast %42 : vector<8xf32> to vector<8x1xf32>
    %cst_52 = arith.constant 1.562500e-02 : f32
    %44 = vector.broadcast %cst_52 : f32 to vector<8x1xf32>
    %45 = arith.mulf %43, %44 : vector<8x1xf32>
    %46 = arith.mulf %40, %40 : vector<8x1xf32>
    %47 = arith.subf %45, %46 : vector<8x1xf32>
    %cst_53 = arith.constant 0.000000e+00 : f32
    %48 = vector.broadcast %cst_53 : f32 to vector<8x1xf32>
    %49 = arith.maximumf %47, %48 : vector<8x1xf32>
    %50 = vector.broadcast %40 : vector<8x1xf32> to vector<8x72xf32>
    %51 = arith.subf %33, %50 : vector<8x72xf32>
    %cst_54 = arith.constant 9.99999974E-6 : f32
    %52 = vector.broadcast %cst_54 : f32 to vector<8x1xf32>
    %53 = arith.addf %49, %52 : vector<8x1xf32>
    %54 = math.rsqrt %53 : vector<8x1xf32>
    %55 = vector.broadcast %54 : vector<8x1xf32> to vector<8x72xf32>
    %56 = arith.mulf %51, %55 : vector<8x72xf32>
    %cst_55 = arith.constant 0.000000e+00 : f32
    %57 = vector.broadcast %cst_55 : f32 to vector<8x72xf32>
    %58 = arith.maximumf %56, %57 : vector<8x72xf32>
    %59 = arith.truncf %58 : vector<8x72xf32> to vector<8x72xbf16>
    %c0_56 = arith.constant 0 : index
    %c0_57 = arith.constant 0 : index
    %c0_58 = arith.constant 0 : index
    %60 = vector.load %arg5[%c0_56, %c0_57, %c0_58] : memref<1x8x72xbf16, #tpu.memory_space<vmem>>, vector<1x8x72xbf16>
    %61 = vector.shape_cast %60 : vector<1x8x72xbf16> to vector<8x72xbf16>
    %62 = vector.shape_cast %59 : vector<8x72xbf16> to vector<1x8x72xbf16>
    tpu.vector_store %arg5[%c0_56, %c0_57, %c0_58], %62 {strides = array<i32>} : memref<1x8x72xbf16, #tpu.memory_space<vmem>>, vector<1x8x72xbf16>,
    return
  }
  func.func @transform_0(%arg0: i32) -> (i32, i32, i32, i32) {
    %c0_i32 = arith.constant 0 : i32
    %c0_i32_0 = arith.constant 0 : i32
    %c0_i32_1 = arith.constant 0 : i32
    %c0_i32_2 = arith.constant 0 : i32
    return %arg0, %c0_i32, %c0_i32_0, %c0_i32_1 : i32, i32, i32, i32
  }
  func.func @transform_1(%arg0: i32) -> (i32, i32, i32) {
    %c0_i32 = arith.constant 0 : i32
    %c0_i32_0 = arith.constant 0 : i32
    %c0_i32_1 = arith.constant 0 : i32
    %c0_i32_2 = arith.constant 0 : i32
    return %c0_i32, %c0_i32_0, %c0_i32_1 : i32, i32, i32
  }
  func.func @transform_2(%arg0: i32) -> (i32, i32) {
    %c0_i32 = arith.constant 0 : i32
    %c0_i32_0 = arith.constant 0 : i32
    %c0_i32_1 = arith.constant 0 : i32
    return %c0_i32, %c0_i32_0 : i32, i32
  }
  func.func @transform_3(%arg0: i32) -> (i32, i32) {
    %c0_i32 = arith.constant 0 : i32
    %c0_i32_0 = arith.constant 0 : i32
    %c0_i32_1 = arith.constant 0 : i32
    return %c0_i32, %c0_i32_0 : i32, i32
  }
  func.func @transform_4(%arg0: i32) -> (i32, i32, i32) {
    %c0_i32 = arith.constant 0 : i32
    %c0_i32_0 = arith.constant 0 : i32
    %c0_i32_1 = arith.constant 0 : i32
    return %arg0, %c0_i32, %c0_i32_0 : i32, i32, i32
  }
}

module attributes {stable_mosaic.version = 11 : i64} {
  func.func @_conv_group_kernel(%arg0: i32, %arg1: memref<1x4x8x30xbf16, #tpu.memory_space<vmem>>, %arg2: memref<1x16x72xbf16, #tpu.memory_space<vmem>>, %arg3: memref<16x1xf32, #tpu.memory_space<vmem>>, %arg4: memref<1x20xf32, #tpu.memory_space<vmem>>, %arg5: memref<1x16x20xbf16, #tpu.memory_space<vmem>>, %arg6: memref<72x20xbf16, #tpu.memory_space<vmem>>) attributes {dimension_semantics = [#tpu.dimension_semantics<parallel>], iteration_bounds = array<i64: 2>, scalar_prefetch = 0 : i64, scratch_operands = 1 : i64, tpu.core_type = #tpu.core_type<tc>, window_params = [{transform_indices = @transform_0, window_bounds = array<i64: 1, 4, 8, 30>}, {pipeline_mode = #tpu.pipeline_mode<synchronous>, transform_indices = @transform_1, window_bounds = array<i64: 1, 16, 72>}, {pipeline_mode = #tpu.pipeline_mode<synchronous>, transform_indices = @transform_2, window_bounds = array<i64: 16, 1>}, {pipeline_mode = #tpu.pipeline_mode<synchronous>, transform_indices = @transform_3, window_bounds = array<i64: 1, 20>}, {transform_indices = @transform_4, window_bounds = array<i64: 1, 16, 20>}]} {
    %c0 = arith.constant 0 : index
    %c0_0 = arith.constant 0 : index
    %c0_1 = arith.constant 0 : index
    %c0_2 = arith.constant 0 : index
    %0 = vector.load %arg1[%c0, %c0_0, %c0_1, %c0_2] : memref<1x4x8x30xbf16, #tpu.memory_space<vmem>>, vector<1x1x8x20xbf16>
    %1 = vector.shape_cast %0 : vector<1x1x8x20xbf16> to vector<8x20xbf16>
    %c0_3 = arith.constant 0 : index
    %c0_4 = arith.constant 0 : index
    %2 = vector.load %arg6[%c0_3, %c0_4] : memref<72x20xbf16, #tpu.memory_space<vmem>>, vector<8x20xbf16>
    tpu.vector_store %arg6[%c0_3, %c0_4], %1 {strides = array<i32>} : memref<72x20xbf16, #tpu.memory_space<vmem>>, vector<8x20xbf16>,
    %c0_5 = arith.constant 0 : index
    %c1 = arith.constant 1 : index
    %c0_6 = arith.constant 0 : index
    %c0_7 = arith.constant 0 : index
    %3 = vector.load %arg1[%c0_5, %c1, %c0_6, %c0_7] : memref<1x4x8x30xbf16, #tpu.memory_space<vmem>>, vector<1x1x8x20xbf16>
    %4 = vector.shape_cast %3 : vector<1x1x8x20xbf16> to vector<8x20xbf16>
    %c8 = arith.constant 8 : index
    %c0_8 = arith.constant 0 : index
    %5 = vector.load %arg6[%c8, %c0_8] : memref<72x20xbf16, #tpu.memory_space<vmem>>, vector<8x20xbf16>
    tpu.vector_store %arg6[%c8, %c0_8], %4 {strides = array<i32>} : memref<72x20xbf16, #tpu.memory_space<vmem>>, vector<8x20xbf16>,
    %c0_9 = arith.constant 0 : index
    %c0_10 = arith.constant 0 : index
    %c0_11 = arith.constant 0 : index
    %c1_12 = arith.constant 1 : index
    %6 = vector.load %arg1[%c0_9, %c0_10, %c0_11, %c1_12] : memref<1x4x8x30xbf16, #tpu.memory_space<vmem>>, vector<1x1x8x20xbf16>
    %7 = vector.shape_cast %6 : vector<1x1x8x20xbf16> to vector<8x20xbf16>
    %c16 = arith.constant 16 : index
    %c0_13 = arith.constant 0 : index
    %8 = vector.load %arg6[%c16, %c0_13] : memref<72x20xbf16, #tpu.memory_space<vmem>>, vector<8x20xbf16>
    tpu.vector_store %arg6[%c16, %c0_13], %7 {strides = array<i32>} : memref<72x20xbf16, #tpu.memory_space<vmem>>, vector<8x20xbf16>,
    %c0_14 = arith.constant 0 : index
    %c2 = arith.constant 2 : index
    %c0_15 = arith.constant 0 : index
    %c0_16 = arith.constant 0 : index
    %9 = vector.load %arg1[%c0_14, %c2, %c0_15, %c0_16] : memref<1x4x8x30xbf16, #tpu.memory_space<vmem>>, vector<1x1x8x20xbf16>
    %10 = vector.shape_cast %9 : vector<1x1x8x20xbf16> to vector<8x20xbf16>
    %c24 = arith.constant 24 : index
    %c0_17 = arith.constant 0 : index
    %11 = vector.load %arg6[%c24, %c0_17] : memref<72x20xbf16, #tpu.memory_space<vmem>>, vector<8x20xbf16>
    tpu.vector_store %arg6[%c24, %c0_17], %10 {strides = array<i32>} : memref<72x20xbf16, #tpu.memory_space<vmem>>, vector<8x20xbf16>,
    %c0_18 = arith.constant 0 : index
    %c3 = arith.constant 3 : index
    %c0_19 = arith.constant 0 : index
    %c0_20 = arith.constant 0 : index
    %12 = vector.load %arg1[%c0_18, %c3, %c0_19, %c0_20] : memref<1x4x8x30xbf16, #tpu.memory_space<vmem>>, vector<1x1x8x20xbf16>
    %13 = vector.shape_cast %12 : vector<1x1x8x20xbf16> to vector<8x20xbf16>
    %c32 = arith.constant 32 : index
    %c0_21 = arith.constant 0 : index
    %14 = vector.load %arg6[%c32, %c0_21] : memref<72x20xbf16, #tpu.memory_space<vmem>>, vector<8x20xbf16>
    tpu.vector_store %arg6[%c32, %c0_21], %13 {strides = array<i32>} : memref<72x20xbf16, #tpu.memory_space<vmem>>, vector<8x20xbf16>,
    %c0_22 = arith.constant 0 : index
    %c2_23 = arith.constant 2 : index
    %c0_24 = arith.constant 0 : index
    %c1_25 = arith.constant 1 : index
    %15 = vector.load %arg1[%c0_22, %c2_23, %c0_24, %c1_25] : memref<1x4x8x30xbf16, #tpu.memory_space<vmem>>, vector<1x1x8x20xbf16>
    %16 = vector.shape_cast %15 : vector<1x1x8x20xbf16> to vector<8x20xbf16>
    %c40 = arith.constant 40 : index
    %c0_26 = arith.constant 0 : index
    %17 = vector.load %arg6[%c40, %c0_26] : memref<72x20xbf16, #tpu.memory_space<vmem>>, vector<8x20xbf16>
    tpu.vector_store %arg6[%c40, %c0_26], %16 {strides = array<i32>} : memref<72x20xbf16, #tpu.memory_space<vmem>>, vector<8x20xbf16>,
    %c0_27 = arith.constant 0 : index
    %c0_28 = arith.constant 0 : index
    %c0_29 = arith.constant 0 : index
    %c5 = arith.constant 5 : index
    %18 = vector.load %arg1[%c0_27, %c0_28, %c0_29, %c5] : memref<1x4x8x30xbf16, #tpu.memory_space<vmem>>, vector<1x1x8x20xbf16>
    %19 = vector.shape_cast %18 : vector<1x1x8x20xbf16> to vector<8x20xbf16>
    %c48 = arith.constant 48 : index
    %c0_30 = arith.constant 0 : index
    %20 = vector.load %arg6[%c48, %c0_30] : memref<72x20xbf16, #tpu.memory_space<vmem>>, vector<8x20xbf16>
    tpu.vector_store %arg6[%c48, %c0_30], %19 {strides = array<i32>} : memref<72x20xbf16, #tpu.memory_space<vmem>>, vector<8x20xbf16>,
    %c0_31 = arith.constant 0 : index
    %c1_32 = arith.constant 1 : index
    %c0_33 = arith.constant 0 : index
    %c5_34 = arith.constant 5 : index
    %21 = vector.load %arg1[%c0_31, %c1_32, %c0_33, %c5_34] : memref<1x4x8x30xbf16, #tpu.memory_space<vmem>>, vector<1x1x8x20xbf16>
    %22 = vector.shape_cast %21 : vector<1x1x8x20xbf16> to vector<8x20xbf16>
    %c56 = arith.constant 56 : index
    %c0_35 = arith.constant 0 : index
    %23 = vector.load %arg6[%c56, %c0_35] : memref<72x20xbf16, #tpu.memory_space<vmem>>, vector<8x20xbf16>
    tpu.vector_store %arg6[%c56, %c0_35], %22 {strides = array<i32>} : memref<72x20xbf16, #tpu.memory_space<vmem>>, vector<8x20xbf16>,
    %c0_36 = arith.constant 0 : index
    %c0_37 = arith.constant 0 : index
    %c0_38 = arith.constant 0 : index
    %c6 = arith.constant 6 : index
    %24 = vector.load %arg1[%c0_36, %c0_37, %c0_38, %c6] : memref<1x4x8x30xbf16, #tpu.memory_space<vmem>>, vector<1x1x8x20xbf16>
    %25 = vector.shape_cast %24 : vector<1x1x8x20xbf16> to vector<8x20xbf16>
    %c64 = arith.constant 64 : index
    %c0_39 = arith.constant 0 : index
    %26 = vector.load %arg6[%c64, %c0_39] : memref<72x20xbf16, #tpu.memory_space<vmem>>, vector<8x20xbf16>
    tpu.vector_store %arg6[%c64, %c0_39], %25 {strides = array<i32>} : memref<72x20xbf16, #tpu.memory_space<vmem>>, vector<8x20xbf16>,
    %c0_40 = arith.constant 0 : index
    %c0_41 = arith.constant 0 : index
    %c0_42 = arith.constant 0 : index
    %27 = vector.load %arg2[%c0_40, %c0_41, %c0_42] : memref<1x16x72xbf16, #tpu.memory_space<vmem>>, vector<1x16x72xbf16>
    %28 = vector.shape_cast %27 : vector<1x16x72xbf16> to vector<16x72xbf16>
    %c0_43 = arith.constant 0 : index
    %c0_44 = arith.constant 0 : index
    %29 = vector.load %arg6[%c0_43, %c0_44] : memref<72x20xbf16, #tpu.memory_space<vmem>>, vector<72x20xbf16>
    %cst = arith.constant dense<0.000000e+00> : vector<16x20xf32>
    %30 = tpu.matmul %28, %29, %cst {dimension_numbers = #tpu.dot_dimension_numbers<[1], [0], [0], [1], [0, 0, 1, 1], [], []>} : vector<16x72xbf16>, vector<72x20xbf16>, vector<16x20xf32> -> vector<16x20xf32>
    %c0_45 = arith.constant 0 : index
    %c0_46 = arith.constant 0 : index
    %31 = vector.load %arg3[%c0_45, %c0_46] : memref<16x1xf32, #tpu.memory_space<vmem>>, vector<16x1xf32>
    %32 = vector.broadcast %31 : vector<16x1xf32> to vector<16x20xf32>
    %33 = arith.addf %30, %32 : vector<16x20xf32>
    %c0_47 = arith.constant 0 : index
    %c0_48 = arith.constant 0 : index
    %34 = vector.load %arg4[%c0_47, %c0_48] : memref<1x20xf32, #tpu.memory_space<vmem>>, vector<1x20xf32>
    %35 = vector.broadcast %34 : vector<1x20xf32> to vector<16x20xf32>
    %36 = arith.mulf %33, %35 : vector<16x20xf32>
    %cst_49 = arith.constant dense<0.000000e+00> : vector<16xf32>
    %37 = vector.multi_reduction <add>, %36, %cst_49 [1] : vector<16x20xf32> to vector<16xf32>
    %38 = vector.shape_cast %37 : vector<16xf32> to vector<16x1xf32>
    %cst_50 = arith.constant 6.250000e-02 : f32
    %39 = vector.broadcast %cst_50 : f32 to vector<16x1xf32>
    %40 = arith.mulf %38, %39 : vector<16x1xf32>
    %41 = arith.mulf %36, %36 : vector<16x20xf32>
    %cst_51 = arith.constant dense<0.000000e+00> : vector<16xf32>
    %42 = vector.multi_reduction <add>, %41, %cst_51 [1] : vector<16x20xf32> to vector<16xf32>
    %43 = vector.shape_cast %42 : vector<16xf32> to vector<16x1xf32>
    %cst_52 = arith.constant 6.250000e-02 : f32
    %44 = vector.broadcast %cst_52 : f32 to vector<16x1xf32>
    %45 = arith.mulf %43, %44 : vector<16x1xf32>
    %46 = arith.mulf %40, %40 : vector<16x1xf32>
    %47 = arith.subf %45, %46 : vector<16x1xf32>
    %cst_53 = arith.constant 0.000000e+00 : f32
    %48 = vector.broadcast %cst_53 : f32 to vector<16x1xf32>
    %49 = arith.maximumf %47, %48 : vector<16x1xf32>
    %50 = vector.broadcast %40 : vector<16x1xf32> to vector<16x20xf32>
    %51 = arith.subf %33, %50 : vector<16x20xf32>
    %cst_54 = arith.constant 9.99999974E-6 : f32
    %52 = vector.broadcast %cst_54 : f32 to vector<16x1xf32>
    %53 = arith.addf %49, %52 : vector<16x1xf32>
    %54 = math.rsqrt %53 : vector<16x1xf32>
    %55 = vector.broadcast %54 : vector<16x1xf32> to vector<16x20xf32>
    %56 = arith.mulf %51, %55 : vector<16x20xf32>
    %cst_55 = arith.constant 0.000000e+00 : f32
    %57 = vector.broadcast %cst_55 : f32 to vector<16x20xf32>
    %58 = arith.maximumf %56, %57 : vector<16x20xf32>
    %59 = arith.truncf %58 : vector<16x20xf32> to vector<16x20xbf16>
    %c0_56 = arith.constant 0 : index
    %c0_57 = arith.constant 0 : index
    %c0_58 = arith.constant 0 : index
    %60 = vector.load %arg5[%c0_56, %c0_57, %c0_58] : memref<1x16x20xbf16, #tpu.memory_space<vmem>>, vector<1x16x20xbf16>
    %61 = vector.shape_cast %60 : vector<1x16x20xbf16> to vector<16x20xbf16>
    %62 = vector.shape_cast %59 : vector<16x20xbf16> to vector<1x16x20xbf16>
    tpu.vector_store %arg5[%c0_56, %c0_57, %c0_58], %62 {strides = array<i32>} : memref<1x16x20xbf16, #tpu.memory_space<vmem>>, vector<1x16x20xbf16>,
    return
  }
  func.func @transform_0(%arg0: i32) -> (i32, i32, i32, i32) {
    %c0_i32 = arith.constant 0 : i32
    %c0_i32_0 = arith.constant 0 : i32
    %c0_i32_1 = arith.constant 0 : i32
    %c0_i32_2 = arith.constant 0 : i32
    return %arg0, %c0_i32, %c0_i32_0, %c0_i32_1 : i32, i32, i32, i32
  }
  func.func @transform_1(%arg0: i32) -> (i32, i32, i32) {
    %c0_i32 = arith.constant 0 : i32
    %c0_i32_0 = arith.constant 0 : i32
    %c0_i32_1 = arith.constant 0 : i32
    %c0_i32_2 = arith.constant 0 : i32
    return %c0_i32, %c0_i32_0, %c0_i32_1 : i32, i32, i32
  }
  func.func @transform_2(%arg0: i32) -> (i32, i32) {
    %c0_i32 = arith.constant 0 : i32
    %c0_i32_0 = arith.constant 0 : i32
    %c0_i32_1 = arith.constant 0 : i32
    return %c0_i32, %c0_i32_0 : i32, i32
  }
  func.func @transform_3(%arg0: i32) -> (i32, i32) {
    %c0_i32 = arith.constant 0 : i32
    %c0_i32_0 = arith.constant 0 : i32
    %c0_i32_1 = arith.constant 0 : i32
    return %c0_i32, %c0_i32_0 : i32, i32
  }
  func.func @transform_4(%arg0: i32) -> (i32, i32, i32) {
    %c0_i32 = arith.constant 0 : i32
    %c0_i32_0 = arith.constant 0 : i32
    %c0_i32_1 = arith.constant 0 : i32
    return %arg0, %c0_i32, %c0_i32_0 : i32, i32, i32
  }
}

module attributes {stable_mosaic.version = 11 : i64} {
  func.func @_conv_group_kernel(%arg0: i32, %arg1: memref<1x1x16x42xbf16, #tpu.memory_space<vmem>>, %arg2: memref<1x16x144xbf16, #tpu.memory_space<vmem>>, %arg3: memref<16x1xf32, #tpu.memory_space<vmem>>, %arg4: memref<1x24xf32, #tpu.memory_space<vmem>>, %arg5: memref<1x16x24xbf16, #tpu.memory_space<vmem>>, %arg6: memref<144x24xbf16, #tpu.memory_space<vmem>>) attributes {dimension_semantics = [#tpu.dimension_semantics<parallel>], iteration_bounds = array<i64: 2>, scalar_prefetch = 0 : i64, scratch_operands = 1 : i64, tpu.core_type = #tpu.core_type<tc>, window_params = [{transform_indices = @transform_0, window_bounds = array<i64: 1, 1, 16, 42>}, {pipeline_mode = #tpu.pipeline_mode<synchronous>, transform_indices = @transform_1, window_bounds = array<i64: 1, 16, 144>}, {pipeline_mode = #tpu.pipeline_mode<synchronous>, transform_indices = @transform_2, window_bounds = array<i64: 16, 1>}, {pipeline_mode = #tpu.pipeline_mode<synchronous>, transform_indices = @transform_3, window_bounds = array<i64: 1, 24>}, {transform_indices = @transform_4, window_bounds = array<i64: 1, 16, 24>}]} {
    %c0 = arith.constant 0 : index
    %c0_0 = arith.constant 0 : index
    %c0_1 = arith.constant 0 : index
    %c0_2 = arith.constant 0 : index
    %0 = vector.load %arg1[%c0, %c0_0, %c0_1, %c0_2] : memref<1x1x16x42xbf16, #tpu.memory_space<vmem>>, vector<1x1x16x24xbf16>
    %1 = vector.shape_cast %0 : vector<1x1x16x24xbf16> to vector<16x24xbf16>
    %c0_3 = arith.constant 0 : index
    %c0_4 = arith.constant 0 : index
    %2 = vector.load %arg6[%c0_3, %c0_4] : memref<144x24xbf16, #tpu.memory_space<vmem>>, vector<16x24xbf16>
    tpu.vector_store %arg6[%c0_3, %c0_4], %1 {strides = array<i32>} : memref<144x24xbf16, #tpu.memory_space<vmem>>, vector<16x24xbf16>,
    %c0_5 = arith.constant 0 : index
    %c0_6 = arith.constant 0 : index
    %c0_7 = arith.constant 0 : index
    %c1 = arith.constant 1 : index
    %3 = vector.load %arg1[%c0_5, %c0_6, %c0_7, %c1] : memref<1x1x16x42xbf16, #tpu.memory_space<vmem>>, vector<1x1x16x24xbf16>
    %4 = vector.shape_cast %3 : vector<1x1x16x24xbf16> to vector<16x24xbf16>
    %c16 = arith.constant 16 : index
    %c0_8 = arith.constant 0 : index
    %5 = vector.load %arg6[%c16, %c0_8] : memref<144x24xbf16, #tpu.memory_space<vmem>>, vector<16x24xbf16>
    tpu.vector_store %arg6[%c16, %c0_8], %4 {strides = array<i32>} : memref<144x24xbf16, #tpu.memory_space<vmem>>, vector<16x24xbf16>,
    %c0_9 = arith.constant 0 : index
    %c0_10 = arith.constant 0 : index
    %c0_11 = arith.constant 0 : index
    %c2 = arith.constant 2 : index
    %6 = vector.load %arg1[%c0_9, %c0_10, %c0_11, %c2] : memref<1x1x16x42xbf16, #tpu.memory_space<vmem>>, vector<1x1x16x24xbf16>
    %7 = vector.shape_cast %6 : vector<1x1x16x24xbf16> to vector<16x24xbf16>
    %c32 = arith.constant 32 : index
    %c0_12 = arith.constant 0 : index
    %8 = vector.load %arg6[%c32, %c0_12] : memref<144x24xbf16, #tpu.memory_space<vmem>>, vector<16x24xbf16>
    tpu.vector_store %arg6[%c32, %c0_12], %7 {strides = array<i32>} : memref<144x24xbf16, #tpu.memory_space<vmem>>, vector<16x24xbf16>,
    %c0_13 = arith.constant 0 : index
    %c0_14 = arith.constant 0 : index
    %c0_15 = arith.constant 0 : index
    %c6 = arith.constant 6 : index
    %9 = vector.load %arg1[%c0_13, %c0_14, %c0_15, %c6] : memref<1x1x16x42xbf16, #tpu.memory_space<vmem>>, vector<1x1x16x24xbf16>
    %10 = vector.shape_cast %9 : vector<1x1x16x24xbf16> to vector<16x24xbf16>
    %c48 = arith.constant 48 : index
    %c0_16 = arith.constant 0 : index
    %11 = vector.load %arg6[%c48, %c0_16] : memref<144x24xbf16, #tpu.memory_space<vmem>>, vector<16x24xbf16>
    tpu.vector_store %arg6[%c48, %c0_16], %10 {strides = array<i32>} : memref<144x24xbf16, #tpu.memory_space<vmem>>, vector<16x24xbf16>,
    %c0_17 = arith.constant 0 : index
    %c0_18 = arith.constant 0 : index
    %c0_19 = arith.constant 0 : index
    %c7 = arith.constant 7 : index
    %12 = vector.load %arg1[%c0_17, %c0_18, %c0_19, %c7] : memref<1x1x16x42xbf16, #tpu.memory_space<vmem>>, vector<1x1x16x24xbf16>
    %13 = vector.shape_cast %12 : vector<1x1x16x24xbf16> to vector<16x24xbf16>
    %c64 = arith.constant 64 : index
    %c0_20 = arith.constant 0 : index
    %14 = vector.load %arg6[%c64, %c0_20] : memref<144x24xbf16, #tpu.memory_space<vmem>>, vector<16x24xbf16>
    tpu.vector_store %arg6[%c64, %c0_20], %13 {strides = array<i32>} : memref<144x24xbf16, #tpu.memory_space<vmem>>, vector<16x24xbf16>,
    %c0_21 = arith.constant 0 : index
    %c0_22 = arith.constant 0 : index
    %c0_23 = arith.constant 0 : index
    %c8 = arith.constant 8 : index
    %15 = vector.load %arg1[%c0_21, %c0_22, %c0_23, %c8] : memref<1x1x16x42xbf16, #tpu.memory_space<vmem>>, vector<1x1x16x24xbf16>
    %16 = vector.shape_cast %15 : vector<1x1x16x24xbf16> to vector<16x24xbf16>
    %c80 = arith.constant 80 : index
    %c0_24 = arith.constant 0 : index
    %17 = vector.load %arg6[%c80, %c0_24] : memref<144x24xbf16, #tpu.memory_space<vmem>>, vector<16x24xbf16>
    tpu.vector_store %arg6[%c80, %c0_24], %16 {strides = array<i32>} : memref<144x24xbf16, #tpu.memory_space<vmem>>, vector<16x24xbf16>,
    %c0_25 = arith.constant 0 : index
    %c0_26 = arith.constant 0 : index
    %c0_27 = arith.constant 0 : index
    %c12 = arith.constant 12 : index
    %18 = vector.load %arg1[%c0_25, %c0_26, %c0_27, %c12] : memref<1x1x16x42xbf16, #tpu.memory_space<vmem>>, vector<1x1x16x24xbf16>
    %19 = vector.shape_cast %18 : vector<1x1x16x24xbf16> to vector<16x24xbf16>
    %c96 = arith.constant 96 : index
    %c0_28 = arith.constant 0 : index
    %20 = vector.load %arg6[%c96, %c0_28] : memref<144x24xbf16, #tpu.memory_space<vmem>>, vector<16x24xbf16>
    tpu.vector_store %arg6[%c96, %c0_28], %19 {strides = array<i32>} : memref<144x24xbf16, #tpu.memory_space<vmem>>, vector<16x24xbf16>,
    %c0_29 = arith.constant 0 : index
    %c0_30 = arith.constant 0 : index
    %c0_31 = arith.constant 0 : index
    %c13 = arith.constant 13 : index
    %21 = vector.load %arg1[%c0_29, %c0_30, %c0_31, %c13] : memref<1x1x16x42xbf16, #tpu.memory_space<vmem>>, vector<1x1x16x24xbf16>
    %22 = vector.shape_cast %21 : vector<1x1x16x24xbf16> to vector<16x24xbf16>
    %c112 = arith.constant 112 : index
    %c0_32 = arith.constant 0 : index
    %23 = vector.load %arg6[%c112, %c0_32] : memref<144x24xbf16, #tpu.memory_space<vmem>>, vector<16x24xbf16>
    tpu.vector_store %arg6[%c112, %c0_32], %22 {strides = array<i32>} : memref<144x24xbf16, #tpu.memory_space<vmem>>, vector<16x24xbf16>,
    %c0_33 = arith.constant 0 : index
    %c0_34 = arith.constant 0 : index
    %c0_35 = arith.constant 0 : index
    %c14 = arith.constant 14 : index
    %24 = vector.load %arg1[%c0_33, %c0_34, %c0_35, %c14] : memref<1x1x16x42xbf16, #tpu.memory_space<vmem>>, vector<1x1x16x24xbf16>
    %25 = vector.shape_cast %24 : vector<1x1x16x24xbf16> to vector<16x24xbf16>
    %c128 = arith.constant 128 : index
    %c0_36 = arith.constant 0 : index
    %26 = vector.load %arg6[%c128, %c0_36] : memref<144x24xbf16, #tpu.memory_space<vmem>>, vector<16x24xbf16>
    tpu.vector_store %arg6[%c128, %c0_36], %25 {strides = array<i32>} : memref<144x24xbf16, #tpu.memory_space<vmem>>, vector<16x24xbf16>,
    %c0_37 = arith.constant 0 : index
    %c0_38 = arith.constant 0 : index
    %c0_39 = arith.constant 0 : index
    %27 = vector.load %arg2[%c0_37, %c0_38, %c0_39] : memref<1x16x144xbf16, #tpu.memory_space<vmem>>, vector<1x16x144xbf16>
    %28 = vector.shape_cast %27 : vector<1x16x144xbf16> to vector<16x144xbf16>
    %c0_40 = arith.constant 0 : index
    %c0_41 = arith.constant 0 : index
    %29 = vector.load %arg6[%c0_40, %c0_41] : memref<144x24xbf16, #tpu.memory_space<vmem>>, vector<144x24xbf16>
    %cst = arith.constant dense<0.000000e+00> : vector<16x24xf32>
    %30 = tpu.matmul %28, %29, %cst {dimension_numbers = #tpu.dot_dimension_numbers<[1], [0], [0], [1], [0, 0, 1, 1], [], []>} : vector<16x144xbf16>, vector<144x24xbf16>, vector<16x24xf32> -> vector<16x24xf32>
    %c0_42 = arith.constant 0 : index
    %c0_43 = arith.constant 0 : index
    %31 = vector.load %arg3[%c0_42, %c0_43] : memref<16x1xf32, #tpu.memory_space<vmem>>, vector<16x1xf32>
    %32 = vector.broadcast %31 : vector<16x1xf32> to vector<16x24xf32>
    %33 = arith.addf %30, %32 : vector<16x24xf32>
    %c0_44 = arith.constant 0 : index
    %c0_45 = arith.constant 0 : index
    %34 = vector.load %arg4[%c0_44, %c0_45] : memref<1x24xf32, #tpu.memory_space<vmem>>, vector<1x24xf32>
    %35 = vector.broadcast %34 : vector<1x24xf32> to vector<16x24xf32>
    %36 = arith.mulf %33, %35 : vector<16x24xf32>
    %cst_46 = arith.constant dense<0.000000e+00> : vector<16xf32>
    %37 = vector.multi_reduction <add>, %36, %cst_46 [1] : vector<16x24xf32> to vector<16xf32>
    %38 = vector.shape_cast %37 : vector<16xf32> to vector<16x1xf32>
    %cst_47 = arith.constant 6.250000e-02 : f32
    %39 = vector.broadcast %cst_47 : f32 to vector<16x1xf32>
    %40 = arith.mulf %38, %39 : vector<16x1xf32>
    %41 = arith.mulf %36, %36 : vector<16x24xf32>
    %cst_48 = arith.constant dense<0.000000e+00> : vector<16xf32>
    %42 = vector.multi_reduction <add>, %41, %cst_48 [1] : vector<16x24xf32> to vector<16xf32>
    %43 = vector.shape_cast %42 : vector<16xf32> to vector<16x1xf32>
    %cst_49 = arith.constant 6.250000e-02 : f32
    %44 = vector.broadcast %cst_49 : f32 to vector<16x1xf32>
    %45 = arith.mulf %43, %44 : vector<16x1xf32>
    %46 = arith.mulf %40, %40 : vector<16x1xf32>
    %47 = arith.subf %45, %46 : vector<16x1xf32>
    %cst_50 = arith.constant 0.000000e+00 : f32
    %48 = vector.broadcast %cst_50 : f32 to vector<16x1xf32>
    %49 = arith.maximumf %47, %48 : vector<16x1xf32>
    %50 = vector.broadcast %40 : vector<16x1xf32> to vector<16x24xf32>
    %51 = arith.subf %33, %50 : vector<16x24xf32>
    %cst_51 = arith.constant 9.99999974E-6 : f32
    %52 = vector.broadcast %cst_51 : f32 to vector<16x1xf32>
    %53 = arith.addf %49, %52 : vector<16x1xf32>
    %54 = math.rsqrt %53 : vector<16x1xf32>
    %55 = vector.broadcast %54 : vector<16x1xf32> to vector<16x24xf32>
    %56 = arith.mulf %51, %55 : vector<16x24xf32>
    %cst_52 = arith.constant 0.000000e+00 : f32
    %57 = vector.broadcast %cst_52 : f32 to vector<16x24xf32>
    %58 = arith.maximumf %56, %57 : vector<16x24xf32>
    %59 = arith.truncf %58 : vector<16x24xf32> to vector<16x24xbf16>
    %c0_53 = arith.constant 0 : index
    %c0_54 = arith.constant 0 : index
    %c0_55 = arith.constant 0 : index
    %60 = vector.load %arg5[%c0_53, %c0_54, %c0_55] : memref<1x16x24xbf16, #tpu.memory_space<vmem>>, vector<1x16x24xbf16>
    %61 = vector.shape_cast %60 : vector<1x16x24xbf16> to vector<16x24xbf16>
    %62 = vector.shape_cast %59 : vector<16x24xbf16> to vector<1x16x24xbf16>
    tpu.vector_store %arg5[%c0_53, %c0_54, %c0_55], %62 {strides = array<i32>} : memref<1x16x24xbf16, #tpu.memory_space<vmem>>, vector<1x16x24xbf16>,
    return
  }
  func.func @transform_0(%arg0: i32) -> (i32, i32, i32, i32) {
    %c0_i32 = arith.constant 0 : i32
    %c0_i32_0 = arith.constant 0 : i32
    %c0_i32_1 = arith.constant 0 : i32
    %c0_i32_2 = arith.constant 0 : i32
    return %arg0, %c0_i32, %c0_i32_0, %c0_i32_1 : i32, i32, i32, i32
  }
  func.func @transform_1(%arg0: i32) -> (i32, i32, i32) {
    %c0_i32 = arith.constant 0 : i32
    %c0_i32_0 = arith.constant 0 : i32
    %c0_i32_1 = arith.constant 0 : i32
    %c0_i32_2 = arith.constant 0 : i32
    return %c0_i32, %c0_i32_0, %c0_i32_1 : i32, i32, i32
  }
  func.func @transform_2(%arg0: i32) -> (i32, i32) {
    %c0_i32 = arith.constant 0 : i32
    %c0_i32_0 = arith.constant 0 : i32
    %c0_i32_1 = arith.constant 0 : i32
    return %c0_i32, %c0_i32_0 : i32, i32
  }
  func.func @transform_3(%arg0: i32) -> (i32, i32) {
    %c0_i32 = arith.constant 0 : i32
    %c0_i32_0 = arith.constant 0 : i32
    %c0_i32_1 = arith.constant 0 : i32
    return %c0_i32, %c0_i32_0 : i32, i32
  }
  func.func @transform_4(%arg0: i32) -> (i32, i32, i32) {
    %c0_i32 = arith.constant 0 : i32
    %c0_i32_0 = arith.constant 0 : i32
    %c0_i32_1 = arith.constant 0 : i32
    return %arg0, %c0_i32, %c0_i32_0 : i32, i32, i32
  }
}

module attributes {stable_mosaic.version = 11 : i64} {
  func.func @_conv_group_kernel(%arg0: i32, %arg1: memref<1x1x16x42xbf16, #tpu.memory_space<vmem>>, %arg2: memref<1x16x144xbf16, #tpu.memory_space<vmem>>, %arg3: memref<16x1xf32, #tpu.memory_space<vmem>>, %arg4: memref<1x24xf32, #tpu.memory_space<vmem>>, %arg5: memref<1x16x24xbf16, #tpu.memory_space<vmem>>, %arg6: memref<1x16x24xbf16, #tpu.memory_space<vmem>>, %arg7: memref<144x24xbf16, #tpu.memory_space<vmem>>) attributes {dimension_semantics = [#tpu.dimension_semantics<parallel>], iteration_bounds = array<i64: 2>, scalar_prefetch = 0 : i64, scratch_operands = 1 : i64, tpu.core_type = #tpu.core_type<tc>, window_params = [{transform_indices = @transform_0, window_bounds = array<i64: 1, 1, 16, 42>}, {pipeline_mode = #tpu.pipeline_mode<synchronous>, transform_indices = @transform_1, window_bounds = array<i64: 1, 16, 144>}, {pipeline_mode = #tpu.pipeline_mode<synchronous>, transform_indices = @transform_2, window_bounds = array<i64: 16, 1>}, {pipeline_mode = #tpu.pipeline_mode<synchronous>, transform_indices = @transform_3, window_bounds = array<i64: 1, 24>}, {transform_indices = @transform_4, window_bounds = array<i64: 1, 16, 24>}, {transform_indices = @transform_5, window_bounds = array<i64: 1, 16, 24>}]} {
    %c0 = arith.constant 0 : index
    %c0_0 = arith.constant 0 : index
    %c0_1 = arith.constant 0 : index
    %c0_2 = arith.constant 0 : index
    %0 = vector.load %arg1[%c0, %c0_0, %c0_1, %c0_2] : memref<1x1x16x42xbf16, #tpu.memory_space<vmem>>, vector<1x1x16x24xbf16>
    %1 = vector.shape_cast %0 : vector<1x1x16x24xbf16> to vector<16x24xbf16>
    %c0_3 = arith.constant 0 : index
    %c0_4 = arith.constant 0 : index
    %2 = vector.load %arg7[%c0_3, %c0_4] : memref<144x24xbf16, #tpu.memory_space<vmem>>, vector<16x24xbf16>
    tpu.vector_store %arg7[%c0_3, %c0_4], %1 {strides = array<i32>} : memref<144x24xbf16, #tpu.memory_space<vmem>>, vector<16x24xbf16>,
    %c0_5 = arith.constant 0 : index
    %c0_6 = arith.constant 0 : index
    %c0_7 = arith.constant 0 : index
    %c1 = arith.constant 1 : index
    %3 = vector.load %arg1[%c0_5, %c0_6, %c0_7, %c1] : memref<1x1x16x42xbf16, #tpu.memory_space<vmem>>, vector<1x1x16x24xbf16>
    %4 = vector.shape_cast %3 : vector<1x1x16x24xbf16> to vector<16x24xbf16>
    %c16 = arith.constant 16 : index
    %c0_8 = arith.constant 0 : index
    %5 = vector.load %arg7[%c16, %c0_8] : memref<144x24xbf16, #tpu.memory_space<vmem>>, vector<16x24xbf16>
    tpu.vector_store %arg7[%c16, %c0_8], %4 {strides = array<i32>} : memref<144x24xbf16, #tpu.memory_space<vmem>>, vector<16x24xbf16>,
    %c0_9 = arith.constant 0 : index
    %c0_10 = arith.constant 0 : index
    %c0_11 = arith.constant 0 : index
    %c2 = arith.constant 2 : index
    %6 = vector.load %arg1[%c0_9, %c0_10, %c0_11, %c2] : memref<1x1x16x42xbf16, #tpu.memory_space<vmem>>, vector<1x1x16x24xbf16>
    %7 = vector.shape_cast %6 : vector<1x1x16x24xbf16> to vector<16x24xbf16>
    %c32 = arith.constant 32 : index
    %c0_12 = arith.constant 0 : index
    %8 = vector.load %arg7[%c32, %c0_12] : memref<144x24xbf16, #tpu.memory_space<vmem>>, vector<16x24xbf16>
    tpu.vector_store %arg7[%c32, %c0_12], %7 {strides = array<i32>} : memref<144x24xbf16, #tpu.memory_space<vmem>>, vector<16x24xbf16>,
    %c0_13 = arith.constant 0 : index
    %c0_14 = arith.constant 0 : index
    %c0_15 = arith.constant 0 : index
    %c6 = arith.constant 6 : index
    %9 = vector.load %arg1[%c0_13, %c0_14, %c0_15, %c6] : memref<1x1x16x42xbf16, #tpu.memory_space<vmem>>, vector<1x1x16x24xbf16>
    %10 = vector.shape_cast %9 : vector<1x1x16x24xbf16> to vector<16x24xbf16>
    %c48 = arith.constant 48 : index
    %c0_16 = arith.constant 0 : index
    %11 = vector.load %arg7[%c48, %c0_16] : memref<144x24xbf16, #tpu.memory_space<vmem>>, vector<16x24xbf16>
    tpu.vector_store %arg7[%c48, %c0_16], %10 {strides = array<i32>} : memref<144x24xbf16, #tpu.memory_space<vmem>>, vector<16x24xbf16>,
    %c0_17 = arith.constant 0 : index
    %c0_18 = arith.constant 0 : index
    %c0_19 = arith.constant 0 : index
    %c7 = arith.constant 7 : index
    %12 = vector.load %arg1[%c0_17, %c0_18, %c0_19, %c7] : memref<1x1x16x42xbf16, #tpu.memory_space<vmem>>, vector<1x1x16x24xbf16>
    %13 = vector.shape_cast %12 : vector<1x1x16x24xbf16> to vector<16x24xbf16>
    %c64 = arith.constant 64 : index
    %c0_20 = arith.constant 0 : index
    %14 = vector.load %arg7[%c64, %c0_20] : memref<144x24xbf16, #tpu.memory_space<vmem>>, vector<16x24xbf16>
    tpu.vector_store %arg7[%c64, %c0_20], %13 {strides = array<i32>} : memref<144x24xbf16, #tpu.memory_space<vmem>>, vector<16x24xbf16>,
    %c0_21 = arith.constant 0 : index
    %c0_22 = arith.constant 0 : index
    %c0_23 = arith.constant 0 : index
    %c8 = arith.constant 8 : index
    %15 = vector.load %arg1[%c0_21, %c0_22, %c0_23, %c8] : memref<1x1x16x42xbf16, #tpu.memory_space<vmem>>, vector<1x1x16x24xbf16>
    %16 = vector.shape_cast %15 : vector<1x1x16x24xbf16> to vector<16x24xbf16>
    %c80 = arith.constant 80 : index
    %c0_24 = arith.constant 0 : index
    %17 = vector.load %arg7[%c80, %c0_24] : memref<144x24xbf16, #tpu.memory_space<vmem>>, vector<16x24xbf16>
    tpu.vector_store %arg7[%c80, %c0_24], %16 {strides = array<i32>} : memref<144x24xbf16, #tpu.memory_space<vmem>>, vector<16x24xbf16>,
    %c0_25 = arith.constant 0 : index
    %c0_26 = arith.constant 0 : index
    %c0_27 = arith.constant 0 : index
    %c12 = arith.constant 12 : index
    %18 = vector.load %arg1[%c0_25, %c0_26, %c0_27, %c12] : memref<1x1x16x42xbf16, #tpu.memory_space<vmem>>, vector<1x1x16x24xbf16>
    %19 = vector.shape_cast %18 : vector<1x1x16x24xbf16> to vector<16x24xbf16>
    %c96 = arith.constant 96 : index
    %c0_28 = arith.constant 0 : index
    %20 = vector.load %arg7[%c96, %c0_28] : memref<144x24xbf16, #tpu.memory_space<vmem>>, vector<16x24xbf16>
    tpu.vector_store %arg7[%c96, %c0_28], %19 {strides = array<i32>} : memref<144x24xbf16, #tpu.memory_space<vmem>>, vector<16x24xbf16>,
    %c0_29 = arith.constant 0 : index
    %c0_30 = arith.constant 0 : index
    %c0_31 = arith.constant 0 : index
    %c13 = arith.constant 13 : index
    %21 = vector.load %arg1[%c0_29, %c0_30, %c0_31, %c13] : memref<1x1x16x42xbf16, #tpu.memory_space<vmem>>, vector<1x1x16x24xbf16>
    %22 = vector.shape_cast %21 : vector<1x1x16x24xbf16> to vector<16x24xbf16>
    %c112 = arith.constant 112 : index
    %c0_32 = arith.constant 0 : index
    %23 = vector.load %arg7[%c112, %c0_32] : memref<144x24xbf16, #tpu.memory_space<vmem>>, vector<16x24xbf16>
    tpu.vector_store %arg7[%c112, %c0_32], %22 {strides = array<i32>} : memref<144x24xbf16, #tpu.memory_space<vmem>>, vector<16x24xbf16>,
    %c0_33 = arith.constant 0 : index
    %c0_34 = arith.constant 0 : index
    %c0_35 = arith.constant 0 : index
    %c14 = arith.constant 14 : index
    %24 = vector.load %arg1[%c0_33, %c0_34, %c0_35, %c14] : memref<1x1x16x42xbf16, #tpu.memory_space<vmem>>, vector<1x1x16x24xbf16>
    %25 = vector.shape_cast %24 : vector<1x1x16x24xbf16> to vector<16x24xbf16>
    %c128 = arith.constant 128 : index
    %c0_36 = arith.constant 0 : index
    %26 = vector.load %arg7[%c128, %c0_36] : memref<144x24xbf16, #tpu.memory_space<vmem>>, vector<16x24xbf16>
    tpu.vector_store %arg7[%c128, %c0_36], %25 {strides = array<i32>} : memref<144x24xbf16, #tpu.memory_space<vmem>>, vector<16x24xbf16>,
    %c0_37 = arith.constant 0 : index
    %c0_38 = arith.constant 0 : index
    %c0_39 = arith.constant 0 : index
    %27 = vector.load %arg2[%c0_37, %c0_38, %c0_39] : memref<1x16x144xbf16, #tpu.memory_space<vmem>>, vector<1x16x144xbf16>
    %28 = vector.shape_cast %27 : vector<1x16x144xbf16> to vector<16x144xbf16>
    %c0_40 = arith.constant 0 : index
    %c0_41 = arith.constant 0 : index
    %29 = vector.load %arg7[%c0_40, %c0_41] : memref<144x24xbf16, #tpu.memory_space<vmem>>, vector<144x24xbf16>
    %cst = arith.constant dense<0.000000e+00> : vector<16x24xf32>
    %30 = tpu.matmul %28, %29, %cst {dimension_numbers = #tpu.dot_dimension_numbers<[1], [0], [0], [1], [0, 0, 1, 1], [], []>} : vector<16x144xbf16>, vector<144x24xbf16>, vector<16x24xf32> -> vector<16x24xf32>
    %c0_42 = arith.constant 0 : index
    %c0_43 = arith.constant 0 : index
    %31 = vector.load %arg3[%c0_42, %c0_43] : memref<16x1xf32, #tpu.memory_space<vmem>>, vector<16x1xf32>
    %32 = vector.broadcast %31 : vector<16x1xf32> to vector<16x24xf32>
    %33 = arith.addf %30, %32 : vector<16x24xf32>
    %c0_44 = arith.constant 0 : index
    %c0_45 = arith.constant 0 : index
    %34 = vector.load %arg4[%c0_44, %c0_45] : memref<1x24xf32, #tpu.memory_space<vmem>>, vector<1x24xf32>
    %35 = vector.broadcast %34 : vector<1x24xf32> to vector<16x24xf32>
    %36 = arith.mulf %33, %35 : vector<16x24xf32>
    %cst_46 = arith.constant dense<0.000000e+00> : vector<16xf32>
    %37 = vector.multi_reduction <add>, %36, %cst_46 [1] : vector<16x24xf32> to vector<16xf32>
    %38 = vector.shape_cast %37 : vector<16xf32> to vector<16x1xf32>
    %cst_47 = arith.constant 6.250000e-02 : f32
    %39 = vector.broadcast %cst_47 : f32 to vector<16x1xf32>
    %40 = arith.mulf %38, %39 : vector<16x1xf32>
    %41 = arith.mulf %36, %36 : vector<16x24xf32>
    %cst_48 = arith.constant dense<0.000000e+00> : vector<16xf32>
    %42 = vector.multi_reduction <add>, %41, %cst_48 [1] : vector<16x24xf32> to vector<16xf32>
    %43 = vector.shape_cast %42 : vector<16xf32> to vector<16x1xf32>
    %cst_49 = arith.constant 6.250000e-02 : f32
    %44 = vector.broadcast %cst_49 : f32 to vector<16x1xf32>
    %45 = arith.mulf %43, %44 : vector<16x1xf32>
    %46 = arith.mulf %40, %40 : vector<16x1xf32>
    %47 = arith.subf %45, %46 : vector<16x1xf32>
    %cst_50 = arith.constant 0.000000e+00 : f32
    %48 = vector.broadcast %cst_50 : f32 to vector<16x1xf32>
    %49 = arith.maximumf %47, %48 : vector<16x1xf32>
    %50 = vector.broadcast %40 : vector<16x1xf32> to vector<16x24xf32>
    %51 = arith.subf %33, %50 : vector<16x24xf32>
    %cst_51 = arith.constant 9.99999974E-6 : f32
    %52 = vector.broadcast %cst_51 : f32 to vector<16x1xf32>
    %53 = arith.addf %49, %52 : vector<16x1xf32>
    %54 = math.rsqrt %53 : vector<16x1xf32>
    %55 = vector.broadcast %54 : vector<16x1xf32> to vector<16x24xf32>
    %56 = arith.mulf %51, %55 : vector<16x24xf32>
    %cst_52 = arith.constant 0.000000e+00 : f32
    %57 = vector.broadcast %cst_52 : f32 to vector<16x24xf32>
    %58 = arith.maximumf %56, %57 : vector<16x24xf32>
    %c0_53 = arith.constant 0 : index
    %c0_54 = arith.constant 0 : index
    %c0_55 = arith.constant 0 : index
    %59 = vector.load %arg5[%c0_53, %c0_54, %c0_55] : memref<1x16x24xbf16, #tpu.memory_space<vmem>>, vector<1x16x24xbf16>
    %60 = vector.shape_cast %59 : vector<1x16x24xbf16> to vector<16x24xbf16>
    %61 = arith.extf %60 : vector<16x24xbf16> to vector<16x24xf32>
    %62 = arith.addf %58, %61 : vector<16x24xf32>
    %63 = arith.truncf %62 : vector<16x24xf32> to vector<16x24xbf16>
    %c0_56 = arith.constant 0 : index
    %c0_57 = arith.constant 0 : index
    %c0_58 = arith.constant 0 : index
    %64 = vector.load %arg6[%c0_56, %c0_57, %c0_58] : memref<1x16x24xbf16, #tpu.memory_space<vmem>>, vector<1x16x24xbf16>
    %65 = vector.shape_cast %64 : vector<1x16x24xbf16> to vector<16x24xbf16>
    %66 = vector.shape_cast %63 : vector<16x24xbf16> to vector<1x16x24xbf16>
    tpu.vector_store %arg6[%c0_56, %c0_57, %c0_58], %66 {strides = array<i32>} : memref<1x16x24xbf16, #tpu.memory_space<vmem>>, vector<1x16x24xbf16>,
    return
  }
  func.func @transform_0(%arg0: i32) -> (i32, i32, i32, i32) {
    %c0_i32 = arith.constant 0 : i32
    %c0_i32_0 = arith.constant 0 : i32
    %c0_i32_1 = arith.constant 0 : i32
    %c0_i32_2 = arith.constant 0 : i32
    return %arg0, %c0_i32, %c0_i32_0, %c0_i32_1 : i32, i32, i32, i32
  }
  func.func @transform_1(%arg0: i32) -> (i32, i32, i32) {
    %c0_i32 = arith.constant 0 : i32
    %c0_i32_0 = arith.constant 0 : i32
    %c0_i32_1 = arith.constant 0 : i32
    %c0_i32_2 = arith.constant 0 : i32
    return %c0_i32, %c0_i32_0, %c0_i32_1 : i32, i32, i32
  }
  func.func @transform_2(%arg0: i32) -> (i32, i32) {
    %c0_i32 = arith.constant 0 : i32
    %c0_i32_0 = arith.constant 0 : i32
    %c0_i32_1 = arith.constant 0 : i32
    return %c0_i32, %c0_i32_0 : i32, i32
  }
  func.func @transform_3(%arg0: i32) -> (i32, i32) {
    %c0_i32 = arith.constant 0 : i32
    %c0_i32_0 = arith.constant 0 : i32
    %c0_i32_1 = arith.constant 0 : i32
    return %c0_i32, %c0_i32_0 : i32, i32
  }
  func.func @transform_4(%arg0: i32) -> (i32, i32, i32) {
    %c0_i32 = arith.constant 0 : i32
    %c0_i32_0 = arith.constant 0 : i32
    %c0_i32_1 = arith.constant 0 : i32
    return %arg0, %c0_i32, %c0_i32_0 : i32, i32, i32
  }
  func.func @transform_5(%arg0: i32) -> (i32, i32, i32) {
    %c0_i32 = arith.constant 0 : i32
    %c0_i32_0 = arith.constant 0 : i32
    %c0_i32_1 = arith.constant 0 : i32
    return %arg0, %c0_i32, %c0_i32_0 : i32, i32, i32
  }
}

module attributes {stable_mosaic.version = 11 : i64} {
  func.func @_conv_group_kernel(%arg0: i32, %arg1: memref<1x1x16x110xbf16, #tpu.memory_space<vmem>>, %arg2: memref<1x8x144xbf16, #tpu.memory_space<vmem>>, %arg3: memref<8x1xf32, #tpu.memory_space<vmem>>, %arg4: memref<1x80xf32, #tpu.memory_space<vmem>>, %arg5: memref<1x8x80xbf16, #tpu.memory_space<vmem>>, %arg6: memref<144x80xbf16, #tpu.memory_space<vmem>>) attributes {dimension_semantics = [#tpu.dimension_semantics<parallel>], iteration_bounds = array<i64: 2>, scalar_prefetch = 0 : i64, scratch_operands = 1 : i64, tpu.core_type = #tpu.core_type<tc>, window_params = [{transform_indices = @transform_0, window_bounds = array<i64: 1, 1, 16, 110>}, {pipeline_mode = #tpu.pipeline_mode<synchronous>, transform_indices = @transform_1, window_bounds = array<i64: 1, 8, 144>}, {pipeline_mode = #tpu.pipeline_mode<synchronous>, transform_indices = @transform_2, window_bounds = array<i64: 8, 1>}, {pipeline_mode = #tpu.pipeline_mode<synchronous>, transform_indices = @transform_3, window_bounds = array<i64: 1, 80>}, {transform_indices = @transform_4, window_bounds = array<i64: 1, 8, 80>}]} {
    %c0 = arith.constant 0 : index
    %c0_0 = arith.constant 0 : index
    %c0_1 = arith.constant 0 : index
    %c0_2 = arith.constant 0 : index
    %0 = vector.load %arg1[%c0, %c0_0, %c0_1, %c0_2] : memref<1x1x16x110xbf16, #tpu.memory_space<vmem>>, vector<1x1x16x80xbf16>
    %1 = vector.shape_cast %0 : vector<1x1x16x80xbf16> to vector<16x80xbf16>
    %c0_3 = arith.constant 0 : index
    %c0_4 = arith.constant 0 : index
    %2 = vector.load %arg6[%c0_3, %c0_4] : memref<144x80xbf16, #tpu.memory_space<vmem>>, vector<16x80xbf16>
    tpu.vector_store %arg6[%c0_3, %c0_4], %1 {strides = array<i32>} : memref<144x80xbf16, #tpu.memory_space<vmem>>, vector<16x80xbf16>,
    %c0_5 = arith.constant 0 : index
    %c0_6 = arith.constant 0 : index
    %c0_7 = arith.constant 0 : index
    %c1 = arith.constant 1 : index
    %3 = vector.load %arg1[%c0_5, %c0_6, %c0_7, %c1] : memref<1x1x16x110xbf16, #tpu.memory_space<vmem>>, vector<1x1x16x80xbf16>
    %4 = vector.shape_cast %3 : vector<1x1x16x80xbf16> to vector<16x80xbf16>
    %c16 = arith.constant 16 : index
    %c0_8 = arith.constant 0 : index
    %5 = vector.load %arg6[%c16, %c0_8] : memref<144x80xbf16, #tpu.memory_space<vmem>>, vector<16x80xbf16>
    tpu.vector_store %arg6[%c16, %c0_8], %4 {strides = array<i32>} : memref<144x80xbf16, #tpu.memory_space<vmem>>, vector<16x80xbf16>,
    %c0_9 = arith.constant 0 : index
    %c0_10 = arith.constant 0 : index
    %c0_11 = arith.constant 0 : index
    %c2 = arith.constant 2 : index
    %6 = vector.load %arg1[%c0_9, %c0_10, %c0_11, %c2] : memref<1x1x16x110xbf16, #tpu.memory_space<vmem>>, vector<1x1x16x80xbf16>
    %7 = vector.shape_cast %6 : vector<1x1x16x80xbf16> to vector<16x80xbf16>
    %c32 = arith.constant 32 : index
    %c0_12 = arith.constant 0 : index
    %8 = vector.load %arg6[%c32, %c0_12] : memref<144x80xbf16, #tpu.memory_space<vmem>>, vector<16x80xbf16>
    tpu.vector_store %arg6[%c32, %c0_12], %7 {strides = array<i32>} : memref<144x80xbf16, #tpu.memory_space<vmem>>, vector<16x80xbf16>,
    %c0_13 = arith.constant 0 : index
    %c0_14 = arith.constant 0 : index
    %c0_15 = arith.constant 0 : index
    %c10 = arith.constant 10 : index
    %9 = vector.load %arg1[%c0_13, %c0_14, %c0_15, %c10] : memref<1x1x16x110xbf16, #tpu.memory_space<vmem>>, vector<1x1x16x80xbf16>
    %10 = vector.shape_cast %9 : vector<1x1x16x80xbf16> to vector<16x80xbf16>
    %c48 = arith.constant 48 : index
    %c0_16 = arith.constant 0 : index
    %11 = vector.load %arg6[%c48, %c0_16] : memref<144x80xbf16, #tpu.memory_space<vmem>>, vector<16x80xbf16>
    tpu.vector_store %arg6[%c48, %c0_16], %10 {strides = array<i32>} : memref<144x80xbf16, #tpu.memory_space<vmem>>, vector<16x80xbf16>,
    %c0_17 = arith.constant 0 : index
    %c0_18 = arith.constant 0 : index
    %c0_19 = arith.constant 0 : index
    %c11 = arith.constant 11 : index
    %12 = vector.load %arg1[%c0_17, %c0_18, %c0_19, %c11] : memref<1x1x16x110xbf16, #tpu.memory_space<vmem>>, vector<1x1x16x80xbf16>
    %13 = vector.shape_cast %12 : vector<1x1x16x80xbf16> to vector<16x80xbf16>
    %c64 = arith.constant 64 : index
    %c0_20 = arith.constant 0 : index
    %14 = vector.load %arg6[%c64, %c0_20] : memref<144x80xbf16, #tpu.memory_space<vmem>>, vector<16x80xbf16>
    tpu.vector_store %arg6[%c64, %c0_20], %13 {strides = array<i32>} : memref<144x80xbf16, #tpu.memory_space<vmem>>, vector<16x80xbf16>,
    %c0_21 = arith.constant 0 : index
    %c0_22 = arith.constant 0 : index
    %c0_23 = arith.constant 0 : index
    %c12 = arith.constant 12 : index
    %15 = vector.load %arg1[%c0_21, %c0_22, %c0_23, %c12] : memref<1x1x16x110xbf16, #tpu.memory_space<vmem>>, vector<1x1x16x80xbf16>
    %16 = vector.shape_cast %15 : vector<1x1x16x80xbf16> to vector<16x80xbf16>
    %c80 = arith.constant 80 : index
    %c0_24 = arith.constant 0 : index
    %17 = vector.load %arg6[%c80, %c0_24] : memref<144x80xbf16, #tpu.memory_space<vmem>>, vector<16x80xbf16>
    tpu.vector_store %arg6[%c80, %c0_24], %16 {strides = array<i32>} : memref<144x80xbf16, #tpu.memory_space<vmem>>, vector<16x80xbf16>,
    %c0_25 = arith.constant 0 : index
    %c0_26 = arith.constant 0 : index
    %c0_27 = arith.constant 0 : index
    %c20 = arith.constant 20 : index
    %18 = vector.load %arg1[%c0_25, %c0_26, %c0_27, %c20] : memref<1x1x16x110xbf16, #tpu.memory_space<vmem>>, vector<1x1x16x80xbf16>
    %19 = vector.shape_cast %18 : vector<1x1x16x80xbf16> to vector<16x80xbf16>
    %c96 = arith.constant 96 : index
    %c0_28 = arith.constant 0 : index
    %20 = vector.load %arg6[%c96, %c0_28] : memref<144x80xbf16, #tpu.memory_space<vmem>>, vector<16x80xbf16>
    tpu.vector_store %arg6[%c96, %c0_28], %19 {strides = array<i32>} : memref<144x80xbf16, #tpu.memory_space<vmem>>, vector<16x80xbf16>,
    %c0_29 = arith.constant 0 : index
    %c0_30 = arith.constant 0 : index
    %c0_31 = arith.constant 0 : index
    %c21 = arith.constant 21 : index
    %21 = vector.load %arg1[%c0_29, %c0_30, %c0_31, %c21] : memref<1x1x16x110xbf16, #tpu.memory_space<vmem>>, vector<1x1x16x80xbf16>
    %22 = vector.shape_cast %21 : vector<1x1x16x80xbf16> to vector<16x80xbf16>
    %c112 = arith.constant 112 : index
    %c0_32 = arith.constant 0 : index
    %23 = vector.load %arg6[%c112, %c0_32] : memref<144x80xbf16, #tpu.memory_space<vmem>>, vector<16x80xbf16>
    tpu.vector_store %arg6[%c112, %c0_32], %22 {strides = array<i32>} : memref<144x80xbf16, #tpu.memory_space<vmem>>, vector<16x80xbf16>,
    %c0_33 = arith.constant 0 : index
    %c0_34 = arith.constant 0 : index
    %c0_35 = arith.constant 0 : index
    %c22 = arith.constant 22 : index
    %24 = vector.load %arg1[%c0_33, %c0_34, %c0_35, %c22] : memref<1x1x16x110xbf16, #tpu.memory_space<vmem>>, vector<1x1x16x80xbf16>
    %25 = vector.shape_cast %24 : vector<1x1x16x80xbf16> to vector<16x80xbf16>
    %c128 = arith.constant 128 : index
    %c0_36 = arith.constant 0 : index
    %26 = vector.load %arg6[%c128, %c0_36] : memref<144x80xbf16, #tpu.memory_space<vmem>>, vector<16x80xbf16>
    tpu.vector_store %arg6[%c128, %c0_36], %25 {strides = array<i32>} : memref<144x80xbf16, #tpu.memory_space<vmem>>, vector<16x80xbf16>,
    %c0_37 = arith.constant 0 : index
    %c0_38 = arith.constant 0 : index
    %c0_39 = arith.constant 0 : index
    %27 = vector.load %arg2[%c0_37, %c0_38, %c0_39] : memref<1x8x144xbf16, #tpu.memory_space<vmem>>, vector<1x8x144xbf16>
    %28 = vector.shape_cast %27 : vector<1x8x144xbf16> to vector<8x144xbf16>
    %c0_40 = arith.constant 0 : index
    %c0_41 = arith.constant 0 : index
    %29 = vector.load %arg6[%c0_40, %c0_41] : memref<144x80xbf16, #tpu.memory_space<vmem>>, vector<144x80xbf16>
    %cst = arith.constant dense<0.000000e+00> : vector<8x80xf32>
    %30 = tpu.matmul %28, %29, %cst {dimension_numbers = #tpu.dot_dimension_numbers<[1], [0], [0], [1], [0, 0, 1, 1], [], []>} : vector<8x144xbf16>, vector<144x80xbf16>, vector<8x80xf32> -> vector<8x80xf32>
    %c0_42 = arith.constant 0 : index
    %c0_43 = arith.constant 0 : index
    %31 = vector.load %arg3[%c0_42, %c0_43] : memref<8x1xf32, #tpu.memory_space<vmem>>, vector<8x1xf32>
    %32 = vector.broadcast %31 : vector<8x1xf32> to vector<8x80xf32>
    %33 = arith.addf %30, %32 : vector<8x80xf32>
    %c0_44 = arith.constant 0 : index
    %c0_45 = arith.constant 0 : index
    %34 = vector.load %arg4[%c0_44, %c0_45] : memref<1x80xf32, #tpu.memory_space<vmem>>, vector<1x80xf32>
    %35 = vector.broadcast %34 : vector<1x80xf32> to vector<8x80xf32>
    %36 = arith.mulf %33, %35 : vector<8x80xf32>
    %cst_46 = arith.constant dense<0.000000e+00> : vector<8xf32>
    %37 = vector.multi_reduction <add>, %36, %cst_46 [1] : vector<8x80xf32> to vector<8xf32>
    %38 = vector.shape_cast %37 : vector<8xf32> to vector<8x1xf32>
    %cst_47 = arith.constant 1.562500e-02 : f32
    %39 = vector.broadcast %cst_47 : f32 to vector<8x1xf32>
    %40 = arith.mulf %38, %39 : vector<8x1xf32>
    %41 = arith.mulf %36, %36 : vector<8x80xf32>
    %cst_48 = arith.constant dense<0.000000e+00> : vector<8xf32>
    %42 = vector.multi_reduction <add>, %41, %cst_48 [1] : vector<8x80xf32> to vector<8xf32>
    %43 = vector.shape_cast %42 : vector<8xf32> to vector<8x1xf32>
    %cst_49 = arith.constant 1.562500e-02 : f32
    %44 = vector.broadcast %cst_49 : f32 to vector<8x1xf32>
    %45 = arith.mulf %43, %44 : vector<8x1xf32>
    %46 = arith.mulf %40, %40 : vector<8x1xf32>
    %47 = arith.subf %45, %46 : vector<8x1xf32>
    %cst_50 = arith.constant 0.000000e+00 : f32
    %48 = vector.broadcast %cst_50 : f32 to vector<8x1xf32>
    %49 = arith.maximumf %47, %48 : vector<8x1xf32>
    %50 = vector.broadcast %40 : vector<8x1xf32> to vector<8x80xf32>
    %51 = arith.subf %33, %50 : vector<8x80xf32>
    %cst_51 = arith.constant 9.99999974E-6 : f32
    %52 = vector.broadcast %cst_51 : f32 to vector<8x1xf32>
    %53 = arith.addf %49, %52 : vector<8x1xf32>
    %54 = math.rsqrt %53 : vector<8x1xf32>
    %55 = vector.broadcast %54 : vector<8x1xf32> to vector<8x80xf32>
    %56 = arith.mulf %51, %55 : vector<8x80xf32>
    %cst_52 = arith.constant 0.000000e+00 : f32
    %57 = vector.broadcast %cst_52 : f32 to vector<8x80xf32>
    %58 = arith.maximumf %56, %57 : vector<8x80xf32>
    %59 = arith.truncf %58 : vector<8x80xf32> to vector<8x80xbf16>
    %c0_53 = arith.constant 0 : index
    %c0_54 = arith.constant 0 : index
    %c0_55 = arith.constant 0 : index
    %60 = vector.load %arg5[%c0_53, %c0_54, %c0_55] : memref<1x8x80xbf16, #tpu.memory_space<vmem>>, vector<1x8x80xbf16>
    %61 = vector.shape_cast %60 : vector<1x8x80xbf16> to vector<8x80xbf16>
    %62 = vector.shape_cast %59 : vector<8x80xbf16> to vector<1x8x80xbf16>
    tpu.vector_store %arg5[%c0_53, %c0_54, %c0_55], %62 {strides = array<i32>} : memref<1x8x80xbf16, #tpu.memory_space<vmem>>, vector<1x8x80xbf16>,
    return
  }
  func.func @transform_0(%arg0: i32) -> (i32, i32, i32, i32) {
    %c0_i32 = arith.constant 0 : i32
    %c0_i32_0 = arith.constant 0 : i32
    %c0_i32_1 = arith.constant 0 : i32
    %c0_i32_2 = arith.constant 0 : i32
    return %arg0, %c0_i32, %c0_i32_0, %c0_i32_1 : i32, i32, i32, i32
  }
  func.func @transform_1(%arg0: i32) -> (i32, i32, i32) {
    %c0_i32 = arith.constant 0 : i32
    %c0_i32_0 = arith.constant 0 : i32
    %c0_i32_1 = arith.constant 0 : i32
    %c0_i32_2 = arith.constant 0 : i32
    return %c0_i32, %c0_i32_0, %c0_i32_1 : i32, i32, i32
  }
  func.func @transform_2(%arg0: i32) -> (i32, i32) {
    %c0_i32 = arith.constant 0 : i32
    %c0_i32_0 = arith.constant 0 : i32
    %c0_i32_1 = arith.constant 0 : i32
    return %c0_i32, %c0_i32_0 : i32, i32
  }
  func.func @transform_3(%arg0: i32) -> (i32, i32) {
    %c0_i32 = arith.constant 0 : i32
    %c0_i32_0 = arith.constant 0 : i32
    %c0_i32_1 = arith.constant 0 : i32
    return %c0_i32, %c0_i32_0 : i32, i32
  }
  func.func @transform_4(%arg0: i32) -> (i32, i32, i32) {
    %c0_i32 = arith.constant 0 : i32
    %c0_i32_0 = arith.constant 0 : i32
    %c0_i32_1 = arith.constant 0 : i32
    return %arg0, %c0_i32, %c0_i32_0 : i32, i32, i32
  }
}

module attributes {stable_mosaic.version = 11 : i64} {
  func.func @_conv_group_kernel(%arg0: i32, %arg1: memref<1x1x8x342xbf16, #tpu.memory_space<vmem>>, %arg2: memref<1x4x72xbf16, #tpu.memory_space<vmem>>, %arg3: memref<4x1xf32, #tpu.memory_space<vmem>>, %arg4: memref<1x288xf32, #tpu.memory_space<vmem>>, %arg5: memref<1x4x288xbf16, #tpu.memory_space<vmem>>, %arg6: memref<72x288xbf16, #tpu.memory_space<vmem>>) attributes {dimension_semantics = [#tpu.dimension_semantics<parallel>], iteration_bounds = array<i64: 2>, scalar_prefetch = 0 : i64, scratch_operands = 1 : i64, tpu.core_type = #tpu.core_type<tc>, window_params = [{transform_indices = @transform_0, window_bounds = array<i64: 1, 1, 8, 342>}, {pipeline_mode = #tpu.pipeline_mode<synchronous>, transform_indices = @transform_1, window_bounds = array<i64: 1, 4, 72>}, {pipeline_mode = #tpu.pipeline_mode<synchronous>, transform_indices = @transform_2, window_bounds = array<i64: 4, 1>}, {pipeline_mode = #tpu.pipeline_mode<synchronous>, transform_indices = @transform_3, window_bounds = array<i64: 1, 288>}, {transform_indices = @transform_4, window_bounds = array<i64: 1, 4, 288>}]} {
    %c0 = arith.constant 0 : index
    %c0_0 = arith.constant 0 : index
    %c0_1 = arith.constant 0 : index
    %c0_2 = arith.constant 0 : index
    %0 = vector.load %arg1[%c0, %c0_0, %c0_1, %c0_2] : memref<1x1x8x342xbf16, #tpu.memory_space<vmem>>, vector<1x1x8x288xbf16>
    %1 = vector.shape_cast %0 : vector<1x1x8x288xbf16> to vector<8x288xbf16>
    %c0_3 = arith.constant 0 : index
    %c0_4 = arith.constant 0 : index
    %2 = vector.load %arg6[%c0_3, %c0_4] : memref<72x288xbf16, #tpu.memory_space<vmem>>, vector<8x288xbf16>
    tpu.vector_store %arg6[%c0_3, %c0_4], %1 {strides = array<i32>} : memref<72x288xbf16, #tpu.memory_space<vmem>>, vector<8x288xbf16>,
    %c0_5 = arith.constant 0 : index
    %c0_6 = arith.constant 0 : index
    %c0_7 = arith.constant 0 : index
    %c1 = arith.constant 1 : index
    %3 = vector.load %arg1[%c0_5, %c0_6, %c0_7, %c1] : memref<1x1x8x342xbf16, #tpu.memory_space<vmem>>, vector<1x1x8x288xbf16>
    %4 = vector.shape_cast %3 : vector<1x1x8x288xbf16> to vector<8x288xbf16>
    %c8 = arith.constant 8 : index
    %c0_8 = arith.constant 0 : index
    %5 = vector.load %arg6[%c8, %c0_8] : memref<72x288xbf16, #tpu.memory_space<vmem>>, vector<8x288xbf16>
    tpu.vector_store %arg6[%c8, %c0_8], %4 {strides = array<i32>} : memref<72x288xbf16, #tpu.memory_space<vmem>>, vector<8x288xbf16>,
    %c0_9 = arith.constant 0 : index
    %c0_10 = arith.constant 0 : index
    %c0_11 = arith.constant 0 : index
    %c2 = arith.constant 2 : index
    %6 = vector.load %arg1[%c0_9, %c0_10, %c0_11, %c2] : memref<1x1x8x342xbf16, #tpu.memory_space<vmem>>, vector<1x1x8x288xbf16>
    %7 = vector.shape_cast %6 : vector<1x1x8x288xbf16> to vector<8x288xbf16>
    %c16 = arith.constant 16 : index
    %c0_12 = arith.constant 0 : index
    %8 = vector.load %arg6[%c16, %c0_12] : memref<72x288xbf16, #tpu.memory_space<vmem>>, vector<8x288xbf16>
    tpu.vector_store %arg6[%c16, %c0_12], %7 {strides = array<i32>} : memref<72x288xbf16, #tpu.memory_space<vmem>>, vector<8x288xbf16>,
    %c0_13 = arith.constant 0 : index
    %c0_14 = arith.constant 0 : index
    %c0_15 = arith.constant 0 : index
    %c18 = arith.constant 18 : index
    %9 = vector.load %arg1[%c0_13, %c0_14, %c0_15, %c18] : memref<1x1x8x342xbf16, #tpu.memory_space<vmem>>, vector<1x1x8x288xbf16>
    %10 = vector.shape_cast %9 : vector<1x1x8x288xbf16> to vector<8x288xbf16>
    %c24 = arith.constant 24 : index
    %c0_16 = arith.constant 0 : index
    %11 = vector.load %arg6[%c24, %c0_16] : memref<72x288xbf16, #tpu.memory_space<vmem>>, vector<8x288xbf16>
    tpu.vector_store %arg6[%c24, %c0_16], %10 {strides = array<i32>} : memref<72x288xbf16, #tpu.memory_space<vmem>>, vector<8x288xbf16>,
    %c0_17 = arith.constant 0 : index
    %c0_18 = arith.constant 0 : index
    %c0_19 = arith.constant 0 : index
    %c19 = arith.constant 19 : index
    %12 = vector.load %arg1[%c0_17, %c0_18, %c0_19, %c19] : memref<1x1x8x342xbf16, #tpu.memory_space<vmem>>, vector<1x1x8x288xbf16>
    %13 = vector.shape_cast %12 : vector<1x1x8x288xbf16> to vector<8x288xbf16>
    %c32 = arith.constant 32 : index
    %c0_20 = arith.constant 0 : index
    %14 = vector.load %arg6[%c32, %c0_20] : memref<72x288xbf16, #tpu.memory_space<vmem>>, vector<8x288xbf16>
    tpu.vector_store %arg6[%c32, %c0_20], %13 {strides = array<i32>} : memref<72x288xbf16, #tpu.memory_space<vmem>>, vector<8x288xbf16>,
    %c0_21 = arith.constant 0 : index
    %c0_22 = arith.constant 0 : index
    %c0_23 = arith.constant 0 : index
    %c20 = arith.constant 20 : index
    %15 = vector.load %arg1[%c0_21, %c0_22, %c0_23, %c20] : memref<1x1x8x342xbf16, #tpu.memory_space<vmem>>, vector<1x1x8x288xbf16>
    %16 = vector.shape_cast %15 : vector<1x1x8x288xbf16> to vector<8x288xbf16>
    %c40 = arith.constant 40 : index
    %c0_24 = arith.constant 0 : index
    %17 = vector.load %arg6[%c40, %c0_24] : memref<72x288xbf16, #tpu.memory_space<vmem>>, vector<8x288xbf16>
    tpu.vector_store %arg6[%c40, %c0_24], %16 {strides = array<i32>} : memref<72x288xbf16, #tpu.memory_space<vmem>>, vector<8x288xbf16>,
    %c0_25 = arith.constant 0 : index
    %c0_26 = arith.constant 0 : index
    %c0_27 = arith.constant 0 : index
    %c36 = arith.constant 36 : index
    %18 = vector.load %arg1[%c0_25, %c0_26, %c0_27, %c36] : memref<1x1x8x342xbf16, #tpu.memory_space<vmem>>, vector<1x1x8x288xbf16>
    %19 = vector.shape_cast %18 : vector<1x1x8x288xbf16> to vector<8x288xbf16>
    %c48 = arith.constant 48 : index
    %c0_28 = arith.constant 0 : index
    %20 = vector.load %arg6[%c48, %c0_28] : memref<72x288xbf16, #tpu.memory_space<vmem>>, vector<8x288xbf16>
    tpu.vector_store %arg6[%c48, %c0_28], %19 {strides = array<i32>} : memref<72x288xbf16, #tpu.memory_space<vmem>>, vector<8x288xbf16>,
    %c0_29 = arith.constant 0 : index
    %c0_30 = arith.constant 0 : index
    %c0_31 = arith.constant 0 : index
    %c37 = arith.constant 37 : index
    %21 = vector.load %arg1[%c0_29, %c0_30, %c0_31, %c37] : memref<1x1x8x342xbf16, #tpu.memory_space<vmem>>, vector<1x1x8x288xbf16>
    %22 = vector.shape_cast %21 : vector<1x1x8x288xbf16> to vector<8x288xbf16>
    %c56 = arith.constant 56 : index
    %c0_32 = arith.constant 0 : index
    %23 = vector.load %arg6[%c56, %c0_32] : memref<72x288xbf16, #tpu.memory_space<vmem>>, vector<8x288xbf16>
    tpu.vector_store %arg6[%c56, %c0_32], %22 {strides = array<i32>} : memref<72x288xbf16, #tpu.memory_space<vmem>>, vector<8x288xbf16>,
    %c0_33 = arith.constant 0 : index
    %c0_34 = arith.constant 0 : index
    %c0_35 = arith.constant 0 : index
    %c38 = arith.constant 38 : index
    %24 = vector.load %arg1[%c0_33, %c0_34, %c0_35, %c38] : memref<1x1x8x342xbf16, #tpu.memory_space<vmem>>, vector<1x1x8x288xbf16>
    %25 = vector.shape_cast %24 : vector<1x1x8x288xbf16> to vector<8x288xbf16>
    %c64 = arith.constant 64 : index
    %c0_36 = arith.constant 0 : index
    %26 = vector.load %arg6[%c64, %c0_36] : memref<72x288xbf16, #tpu.memory_space<vmem>>, vector<8x288xbf16>
    tpu.vector_store %arg6[%c64, %c0_36], %25 {strides = array<i32>} : memref<72x288xbf16, #tpu.memory_space<vmem>>, vector<8x288xbf16>,
    %c0_37 = arith.constant 0 : index
    %c0_38 = arith.constant 0 : index
    %c0_39 = arith.constant 0 : index
    %27 = vector.load %arg2[%c0_37, %c0_38, %c0_39] : memref<1x4x72xbf16, #tpu.memory_space<vmem>>, vector<1x4x72xbf16>
    %28 = vector.shape_cast %27 : vector<1x4x72xbf16> to vector<4x72xbf16>
    %c0_40 = arith.constant 0 : index
    %c0_41 = arith.constant 0 : index
    %29 = vector.load %arg6[%c0_40, %c0_41] : memref<72x288xbf16, #tpu.memory_space<vmem>>, vector<72x288xbf16>
    %cst = arith.constant dense<0.000000e+00> : vector<4x288xf32>
    %30 = tpu.matmul %28, %29, %cst {dimension_numbers = #tpu.dot_dimension_numbers<[1], [0], [0], [1], [0, 0, 1, 1], [], []>} : vector<4x72xbf16>, vector<72x288xbf16>, vector<4x288xf32> -> vector<4x288xf32>
    %c0_42 = arith.constant 0 : index
    %c0_43 = arith.constant 0 : index
    %31 = vector.load %arg3[%c0_42, %c0_43] : memref<4x1xf32, #tpu.memory_space<vmem>>, vector<4x1xf32>
    %32 = vector.broadcast %31 : vector<4x1xf32> to vector<4x288xf32>
    %33 = arith.addf %30, %32 : vector<4x288xf32>
    %c0_44 = arith.constant 0 : index
    %c0_45 = arith.constant 0 : index
    %34 = vector.load %arg4[%c0_44, %c0_45] : memref<1x288xf32, #tpu.memory_space<vmem>>, vector<1x288xf32>
    %35 = vector.broadcast %34 : vector<1x288xf32> to vector<4x288xf32>
    %36 = arith.mulf %33, %35 : vector<4x288xf32>
    %cst_46 = arith.constant dense<0.000000e+00> : vector<4xf32>
    %37 = vector.multi_reduction <add>, %36, %cst_46 [1] : vector<4x288xf32> to vector<4xf32>
    %38 = vector.shape_cast %37 : vector<4xf32> to vector<4x1xf32>
    %cst_47 = arith.constant 3.906250e-03 : f32
    %39 = vector.broadcast %cst_47 : f32 to vector<4x1xf32>
    %40 = arith.mulf %38, %39 : vector<4x1xf32>
    %41 = arith.mulf %36, %36 : vector<4x288xf32>
    %cst_48 = arith.constant dense<0.000000e+00> : vector<4xf32>
    %42 = vector.multi_reduction <add>, %41, %cst_48 [1] : vector<4x288xf32> to vector<4xf32>
    %43 = vector.shape_cast %42 : vector<4xf32> to vector<4x1xf32>
    %cst_49 = arith.constant 3.906250e-03 : f32
    %44 = vector.broadcast %cst_49 : f32 to vector<4x1xf32>
    %45 = arith.mulf %43, %44 : vector<4x1xf32>
    %46 = arith.mulf %40, %40 : vector<4x1xf32>
    %47 = arith.subf %45, %46 : vector<4x1xf32>
    %cst_50 = arith.constant 0.000000e+00 : f32
    %48 = vector.broadcast %cst_50 : f32 to vector<4x1xf32>
    %49 = arith.maximumf %47, %48 : vector<4x1xf32>
    %50 = vector.broadcast %40 : vector<4x1xf32> to vector<4x288xf32>
    %51 = arith.subf %33, %50 : vector<4x288xf32>
    %cst_51 = arith.constant 9.99999974E-6 : f32
    %52 = vector.broadcast %cst_51 : f32 to vector<4x1xf32>
    %53 = arith.addf %49, %52 : vector<4x1xf32>
    %54 = math.rsqrt %53 : vector<4x1xf32>
    %55 = vector.broadcast %54 : vector<4x1xf32> to vector<4x288xf32>
    %56 = arith.mulf %51, %55 : vector<4x288xf32>
    %cst_52 = arith.constant 0.000000e+00 : f32
    %57 = vector.broadcast %cst_52 : f32 to vector<4x288xf32>
    %58 = arith.maximumf %56, %57 : vector<4x288xf32>
    %59 = arith.truncf %58 : vector<4x288xf32> to vector<4x288xbf16>
    %c0_53 = arith.constant 0 : index
    %c0_54 = arith.constant 0 : index
    %c0_55 = arith.constant 0 : index
    %60 = vector.load %arg5[%c0_53, %c0_54, %c0_55] : memref<1x4x288xbf16, #tpu.memory_space<vmem>>, vector<1x4x288xbf16>
    %61 = vector.shape_cast %60 : vector<1x4x288xbf16> to vector<4x288xbf16>
    %62 = vector.shape_cast %59 : vector<4x288xbf16> to vector<1x4x288xbf16>
    tpu.vector_store %arg5[%c0_53, %c0_54, %c0_55], %62 {strides = array<i32>} : memref<1x4x288xbf16, #tpu.memory_space<vmem>>, vector<1x4x288xbf16>,
    return
  }
  func.func @transform_0(%arg0: i32) -> (i32, i32, i32, i32) {
    %c0_i32 = arith.constant 0 : i32
    %c0_i32_0 = arith.constant 0 : i32
    %c0_i32_1 = arith.constant 0 : i32
    %c0_i32_2 = arith.constant 0 : i32
    return %arg0, %c0_i32, %c0_i32_0, %c0_i32_1 : i32, i32, i32, i32
  }
  func.func @transform_1(%arg0: i32) -> (i32, i32, i32) {
    %c0_i32 = arith.constant 0 : i32
    %c0_i32_0 = arith.constant 0 : i32
    %c0_i32_1 = arith.constant 0 : i32
    %c0_i32_2 = arith.constant 0 : i32
    return %c0_i32, %c0_i32_0, %c0_i32_1 : i32, i32, i32
  }
  func.func @transform_2(%arg0: i32) -> (i32, i32) {
    %c0_i32 = arith.constant 0 : i32
    %c0_i32_0 = arith.constant 0 : i32
    %c0_i32_1 = arith.constant 0 : i32
    return %c0_i32, %c0_i32_0 : i32, i32
  }
  func.func @transform_3(%arg0: i32) -> (i32, i32) {
    %c0_i32 = arith.constant 0 : i32
    %c0_i32_0 = arith.constant 0 : i32
    %c0_i32_1 = arith.constant 0 : i32
    return %c0_i32, %c0_i32_0 : i32, i32
  }
  func.func @transform_4(%arg0: i32) -> (i32, i32, i32) {
    %c0_i32 = arith.constant 0 : i32
    %c0_i32_0 = arith.constant 0 : i32
    %c0_i32_1 = arith.constant 0 : i32
    return %arg0, %c0_i32, %c0_i32_0 : i32, i32, i32
  }
}

module attributes {stable_mosaic.version = 11 : i64} {
  func.func @_conv_group_kernel(%arg0: i32, %arg1: memref<1x1x8x600xbf16, #tpu.memory_space<vmem>>, %arg2: memref<1x3x648xbf16, #tpu.memory_space<vmem>>, %arg3: memref<3x1xf32, #tpu.memory_space<vmem>>, %arg4: memref<1x384xf32, #tpu.memory_space<vmem>>, %arg5: memref<1x3x384xbf16, #tpu.memory_space<vmem>>, %arg6: memref<648x384xbf16, #tpu.memory_space<vmem>>) attributes {dimension_semantics = [#tpu.dimension_semantics<parallel>], iteration_bounds = array<i64: 2>, scalar_prefetch = 0 : i64, scratch_operands = 1 : i64, tpu.core_type = #tpu.core_type<tc>, window_params = [{transform_indices = @transform_0, window_bounds = array<i64: 1, 1, 8, 600>}, {pipeline_mode = #tpu.pipeline_mode<synchronous>, transform_indices = @transform_1, window_bounds = array<i64: 1, 3, 648>}, {pipeline_mode = #tpu.pipeline_mode<synchronous>, transform_indices = @transform_2, window_bounds = array<i64: 3, 1>}, {pipeline_mode = #tpu.pipeline_mode<synchronous>, transform_indices = @transform_3, window_bounds = array<i64: 1, 384>}, {transform_indices = @transform_4, window_bounds = array<i64: 1, 3, 384>}]} {
    %c0 = arith.constant 0 : index
    %c0_0 = arith.constant 0 : index
    %c0_1 = arith.constant 0 : index
    %c0_2 = arith.constant 0 : index
    %0 = vector.load %arg1[%c0, %c0_0, %c0_1, %c0_2] : memref<1x1x8x600xbf16, #tpu.memory_space<vmem>>, vector<1x1x8x384xbf16>
    %1 = vector.shape_cast %0 : vector<1x1x8x384xbf16> to vector<8x384xbf16>
    %c0_3 = arith.constant 0 : index
    %c0_4 = arith.constant 0 : index
    %2 = vector.load %arg6[%c0_3, %c0_4] : memref<648x384xbf16, #tpu.memory_space<vmem>>, vector<8x384xbf16>
    tpu.vector_store %arg6[%c0_3, %c0_4], %1 {strides = array<i32>} : memref<648x384xbf16, #tpu.memory_space<vmem>>, vector<8x384xbf16>,
    %c0_5 = arith.constant 0 : index
    %c0_6 = arith.constant 0 : index
    %c0_7 = arith.constant 0 : index
    %c1 = arith.constant 1 : index
    %3 = vector.load %arg1[%c0_5, %c0_6, %c0_7, %c1] : memref<1x1x8x600xbf16, #tpu.memory_space<vmem>>, vector<1x1x8x384xbf16>
    %4 = vector.shape_cast %3 : vector<1x1x8x384xbf16> to vector<8x384xbf16>
    %c8 = arith.constant 8 : index
    %c0_8 = arith.constant 0 : index
    %5 = vector.load %arg6[%c8, %c0_8] : memref<648x384xbf16, #tpu.memory_space<vmem>>, vector<8x384xbf16>
    tpu.vector_store %arg6[%c8, %c0_8], %4 {strides = array<i32>} : memref<648x384xbf16, #tpu.memory_space<vmem>>, vector<8x384xbf16>,
    %c0_9 = arith.constant 0 : index
    %c0_10 = arith.constant 0 : index
    %c0_11 = arith.constant 0 : index
    %c2 = arith.constant 2 : index
    %6 = vector.load %arg1[%c0_9, %c0_10, %c0_11, %c2] : memref<1x1x8x600xbf16, #tpu.memory_space<vmem>>, vector<1x1x8x384xbf16>
    %7 = vector.shape_cast %6 : vector<1x1x8x384xbf16> to vector<8x384xbf16>
    %c16 = arith.constant 16 : index
    %c0_12 = arith.constant 0 : index
    %8 = vector.load %arg6[%c16, %c0_12] : memref<648x384xbf16, #tpu.memory_space<vmem>>, vector<8x384xbf16>
    tpu.vector_store %arg6[%c16, %c0_12], %7 {strides = array<i32>} : memref<648x384xbf16, #tpu.memory_space<vmem>>, vector<8x384xbf16>,
    %c0_13 = arith.constant 0 : index
    %c0_14 = arith.constant 0 : index
    %c0_15 = arith.constant 0 : index
    %c3 = arith.constant 3 : index
    %9 = vector.load %arg1[%c0_13, %c0_14, %c0_15, %c3] : memref<1x1x8x600xbf16, #tpu.memory_space<vmem>>, vector<1x1x8x384xbf16>
    %10 = vector.shape_cast %9 : vector<1x1x8x384xbf16> to vector<8x384xbf16>
    %c24 = arith.constant 24 : index
    %c0_16 = arith.constant 0 : index
    %11 = vector.load %arg6[%c24, %c0_16] : memref<648x384xbf16, #tpu.memory_space<vmem>>, vector<8x384xbf16>
    tpu.vector_store %arg6[%c24, %c0_16], %10 {strides = array<i32>} : memref<648x384xbf16, #tpu.memory_space<vmem>>, vector<8x384xbf16>,
    %c0_17 = arith.constant 0 : index
    %c0_18 = arith.constant 0 : index
    %c0_19 = arith.constant 0 : index
    %c4 = arith.constant 4 : index
    %12 = vector.load %arg1[%c0_17, %c0_18, %c0_19, %c4] : memref<1x1x8x600xbf16, #tpu.memory_space<vmem>>, vector<1x1x8x384xbf16>
    %13 = vector.shape_cast %12 : vector<1x1x8x384xbf16> to vector<8x384xbf16>
    %c32 = arith.constant 32 : index
    %c0_20 = arith.constant 0 : index
    %14 = vector.load %arg6[%c32, %c0_20] : memref<648x384xbf16, #tpu.memory_space<vmem>>, vector<8x384xbf16>
    tpu.vector_store %arg6[%c32, %c0_20], %13 {strides = array<i32>} : memref<648x384xbf16, #tpu.memory_space<vmem>>, vector<8x384xbf16>,
    %c0_21 = arith.constant 0 : index
    %c0_22 = arith.constant 0 : index
    %c0_23 = arith.constant 0 : index
    %c5 = arith.constant 5 : index
    %15 = vector.load %arg1[%c0_21, %c0_22, %c0_23, %c5] : memref<1x1x8x600xbf16, #tpu.memory_space<vmem>>, vector<1x1x8x384xbf16>
    %16 = vector.shape_cast %15 : vector<1x1x8x384xbf16> to vector<8x384xbf16>
    %c40 = arith.constant 40 : index
    %c0_24 = arith.constant 0 : index
    %17 = vector.load %arg6[%c40, %c0_24] : memref<648x384xbf16, #tpu.memory_space<vmem>>, vector<8x384xbf16>
    tpu.vector_store %arg6[%c40, %c0_24], %16 {strides = array<i32>} : memref<648x384xbf16, #tpu.memory_space<vmem>>, vector<8x384xbf16>,
    %c0_25 = arith.constant 0 : index
    %c0_26 = arith.constant 0 : index
    %c0_27 = arith.constant 0 : index
    %c6 = arith.constant 6 : index
    %18 = vector.load %arg1[%c0_25, %c0_26, %c0_27, %c6] : memref<1x1x8x600xbf16, #tpu.memory_space<vmem>>, vector<1x1x8x384xbf16>
    %19 = vector.shape_cast %18 : vector<1x1x8x384xbf16> to vector<8x384xbf16>
    %c48 = arith.constant 48 : index
    %c0_28 = arith.constant 0 : index
    %20 = vector.load %arg6[%c48, %c0_28] : memref<648x384xbf16, #tpu.memory_space<vmem>>, vector<8x384xbf16>
    tpu.vector_store %arg6[%c48, %c0_28], %19 {strides = array<i32>} : memref<648x384xbf16, #tpu.memory_space<vmem>>, vector<8x384xbf16>,
    %c0_29 = arith.constant 0 : index
    %c0_30 = arith.constant 0 : index
    %c0_31 = arith.constant 0 : index
    %c7 = arith.constant 7 : index
    %21 = vector.load %arg1[%c0_29, %c0_30, %c0_31, %c7] : memref<1x1x8x600xbf16, #tpu.memory_space<vmem>>, vector<1x1x8x384xbf16>
    %22 = vector.shape_cast %21 : vector<1x1x8x384xbf16> to vector<8x384xbf16>
    %c56 = arith.constant 56 : index
    %c0_32 = arith.constant 0 : index
    %23 = vector.load %arg6[%c56, %c0_32] : memref<648x384xbf16, #tpu.memory_space<vmem>>, vector<8x384xbf16>
    tpu.vector_store %arg6[%c56, %c0_32], %22 {strides = array<i32>} : memref<648x384xbf16, #tpu.memory_space<vmem>>, vector<8x384xbf16>,
    %c0_33 = arith.constant 0 : index
    %c0_34 = arith.constant 0 : index
    %c0_35 = arith.constant 0 : index
    %c8_36 = arith.constant 8 : index
    %24 = vector.load %arg1[%c0_33, %c0_34, %c0_35, %c8_36] : memref<1x1x8x600xbf16, #tpu.memory_space<vmem>>, vector<1x1x8x384xbf16>
    %25 = vector.shape_cast %24 : vector<1x1x8x384xbf16> to vector<8x384xbf16>
    %c64 = arith.constant 64 : index
    %c0_37 = arith.constant 0 : index
    %26 = vector.load %arg6[%c64, %c0_37] : memref<648x384xbf16, #tpu.memory_space<vmem>>, vector<8x384xbf16>
    tpu.vector_store %arg6[%c64, %c0_37], %25 {strides = array<i32>} : memref<648x384xbf16, #tpu.memory_space<vmem>>, vector<8x384xbf16>,
    %c0_38 = arith.constant 0 : index
    %c0_39 = arith.constant 0 : index
    %c0_40 = arith.constant 0 : index
    %c24_41 = arith.constant 24 : index
    %27 = vector.load %arg1[%c0_38, %c0_39, %c0_40, %c24_41] : memref<1x1x8x600xbf16, #tpu.memory_space<vmem>>, vector<1x1x8x384xbf16>
    %28 = vector.shape_cast %27 : vector<1x1x8x384xbf16> to vector<8x384xbf16>
    %c72 = arith.constant 72 : index
    %c0_42 = arith.constant 0 : index
    %29 = vector.load %arg6[%c72, %c0_42] : memref<648x384xbf16, #tpu.memory_space<vmem>>, vector<8x384xbf16>
    tpu.vector_store %arg6[%c72, %c0_42], %28 {strides = array<i32>} : memref<648x384xbf16, #tpu.memory_space<vmem>>, vector<8x384xbf16>,
    %c0_43 = arith.constant 0 : index
    %c0_44 = arith.constant 0 : index
    %c0_45 = arith.constant 0 : index
    %c25 = arith.constant 25 : index
    %30 = vector.load %arg1[%c0_43, %c0_44, %c0_45, %c25] : memref<1x1x8x600xbf16, #tpu.memory_space<vmem>>, vector<1x1x8x384xbf16>
    %31 = vector.shape_cast %30 : vector<1x1x8x384xbf16> to vector<8x384xbf16>
    %c80 = arith.constant 80 : index
    %c0_46 = arith.constant 0 : index
    %32 = vector.load %arg6[%c80, %c0_46] : memref<648x384xbf16, #tpu.memory_space<vmem>>, vector<8x384xbf16>
    tpu.vector_store %arg6[%c80, %c0_46], %31 {strides = array<i32>} : memref<648x384xbf16, #tpu.memory_space<vmem>>, vector<8x384xbf16>,
    %c0_47 = arith.constant 0 : index
    %c0_48 = arith.constant 0 : index
    %c0_49 = arith.constant 0 : index
    %c26 = arith.constant 26 : index
    %33 = vector.load %arg1[%c0_47, %c0_48, %c0_49, %c26] : memref<1x1x8x600xbf16, #tpu.memory_space<vmem>>, vector<1x1x8x384xbf16>
    %34 = vector.shape_cast %33 : vector<1x1x8x384xbf16> to vector<8x384xbf16>
    %c88 = arith.constant 88 : index
    %c0_50 = arith.constant 0 : index
    %35 = vector.load %arg6[%c88, %c0_50] : memref<648x384xbf16, #tpu.memory_space<vmem>>, vector<8x384xbf16>
    tpu.vector_store %arg6[%c88, %c0_50], %34 {strides = array<i32>} : memref<648x384xbf16, #tpu.memory_space<vmem>>, vector<8x384xbf16>,
    %c0_51 = arith.constant 0 : index
    %c0_52 = arith.constant 0 : index
    %c0_53 = arith.constant 0 : index
    %c27 = arith.constant 27 : index
    %36 = vector.load %arg1[%c0_51, %c0_52, %c0_53, %c27] : memref<1x1x8x600xbf16, #tpu.memory_space<vmem>>, vector<1x1x8x384xbf16>
    %37 = vector.shape_cast %36 : vector<1x1x8x384xbf16> to vector<8x384xbf16>
    %c96 = arith.constant 96 : index
    %c0_54 = arith.constant 0 : index
    %38 = vector.load %arg6[%c96, %c0_54] : memref<648x384xbf16, #tpu.memory_space<vmem>>, vector<8x384xbf16>
    tpu.vector_store %arg6[%c96, %c0_54], %37 {strides = array<i32>} : memref<648x384xbf16, #tpu.memory_space<vmem>>, vector<8x384xbf16>,
    %c0_55 = arith.constant 0 : index
    %c0_56 = arith.constant 0 : index
    %c0_57 = arith.constant 0 : index
    %c28 = arith.constant 28 : index
    %39 = vector.load %arg1[%c0_55, %c0_56, %c0_57, %c28] : memref<1x1x8x600xbf16, #tpu.memory_space<vmem>>, vector<1x1x8x384xbf16>
    %40 = vector.shape_cast %39 : vector<1x1x8x384xbf16> to vector<8x384xbf16>
    %c104 = arith.constant 104 : index
    %c0_58 = arith.constant 0 : index
    %41 = vector.load %arg6[%c104, %c0_58] : memref<648x384xbf16, #tpu.memory_space<vmem>>, vector<8x384xbf16>
    tpu.vector_store %arg6[%c104, %c0_58], %40 {strides = array<i32>} : memref<648x384xbf16, #tpu.memory_space<vmem>>, vector<8x384xbf16>,
    %c0_59 = arith.constant 0 : index
    %c0_60 = arith.constant 0 : index
    %c0_61 = arith.constant 0 : index
    %c29 = arith.constant 29 : index
    %42 = vector.load %arg1[%c0_59, %c0_60, %c0_61, %c29] : memref<1x1x8x600xbf16, #tpu.memory_space<vmem>>, vector<1x1x8x384xbf16>
    %43 = vector.shape_cast %42 : vector<1x1x8x384xbf16> to vector<8x384xbf16>
    %c112 = arith.constant 112 : index
    %c0_62 = arith.constant 0 : index
    %44 = vector.load %arg6[%c112, %c0_62] : memref<648x384xbf16, #tpu.memory_space<vmem>>, vector<8x384xbf16>
    tpu.vector_store %arg6[%c112, %c0_62], %43 {strides = array<i32>} : memref<648x384xbf16, #tpu.memory_space<vmem>>, vector<8x384xbf16>,
    %c0_63 = arith.constant 0 : index
    %c0_64 = arith.constant 0 : index
    %c0_65 = arith.constant 0 : index
    %c30 = arith.constant 30 : index
    %45 = vector.load %arg1[%c0_63, %c0_64, %c0_65, %c30] : memref<1x1x8x600xbf16, #tpu.memory_space<vmem>>, vector<1x1x8x384xbf16>
    %46 = vector.shape_cast %45 : vector<1x1x8x384xbf16> to vector<8x384xbf16>
    %c120 = arith.constant 120 : index
    %c0_66 = arith.constant 0 : index
    %47 = vector.load %arg6[%c120, %c0_66] : memref<648x384xbf16, #tpu.memory_space<vmem>>, vector<8x384xbf16>
    tpu.vector_store %arg6[%c120, %c0_66], %46 {strides = array<i32>} : memref<648x384xbf16, #tpu.memory_space<vmem>>, vector<8x384xbf16>,
    %c0_67 = arith.constant 0 : index
    %c0_68 = arith.constant 0 : index
    %c0_69 = arith.constant 0 : index
    %c31 = arith.constant 31 : index
    %48 = vector.load %arg1[%c0_67, %c0_68, %c0_69, %c31] : memref<1x1x8x600xbf16, #tpu.memory_space<vmem>>, vector<1x1x8x384xbf16>
    %49 = vector.shape_cast %48 : vector<1x1x8x384xbf16> to vector<8x384xbf16>
    %c128 = arith.constant 128 : index
    %c0_70 = arith.constant 0 : index
    %50 = vector.load %arg6[%c128, %c0_70] : memref<648x384xbf16, #tpu.memory_space<vmem>>, vector<8x384xbf16>
    tpu.vector_store %arg6[%c128, %c0_70], %49 {strides = array<i32>} : memref<648x384xbf16, #tpu.memory_space<vmem>>, vector<8x384xbf16>,
    %c0_71 = arith.constant 0 : index
    %c0_72 = arith.constant 0 : index
    %c0_73 = arith.constant 0 : index
    %c32_74 = arith.constant 32 : index
    %51 = vector.load %arg1[%c0_71, %c0_72, %c0_73, %c32_74] : memref<1x1x8x600xbf16, #tpu.memory_space<vmem>>, vector<1x1x8x384xbf16>
    %52 = vector.shape_cast %51 : vector<1x1x8x384xbf16> to vector<8x384xbf16>
    %c136 = arith.constant 136 : index
    %c0_75 = arith.constant 0 : index
    %53 = vector.load %arg6[%c136, %c0_75] : memref<648x384xbf16, #tpu.memory_space<vmem>>, vector<8x384xbf16>
    tpu.vector_store %arg6[%c136, %c0_75], %52 {strides = array<i32>} : memref<648x384xbf16, #tpu.memory_space<vmem>>, vector<8x384xbf16>,
    %c0_76 = arith.constant 0 : index
    %c0_77 = arith.constant 0 : index
    %c0_78 = arith.constant 0 : index
    %c48_79 = arith.constant 48 : index
    %54 = vector.load %arg1[%c0_76, %c0_77, %c0_78, %c48_79] : memref<1x1x8x600xbf16, #tpu.memory_space<vmem>>, vector<1x1x8x384xbf16>
    %55 = vector.shape_cast %54 : vector<1x1x8x384xbf16> to vector<8x384xbf16>
    %c144 = arith.constant 144 : index
    %c0_80 = arith.constant 0 : index
    %56 = vector.load %arg6[%c144, %c0_80] : memref<648x384xbf16, #tpu.memory_space<vmem>>, vector<8x384xbf16>
    tpu.vector_store %arg6[%c144, %c0_80], %55 {strides = array<i32>} : memref<648x384xbf16, #tpu.memory_space<vmem>>, vector<8x384xbf16>,
    %c0_81 = arith.constant 0 : index
    %c0_82 = arith.constant 0 : index
    %c0_83 = arith.constant 0 : index
    %c49 = arith.constant 49 : index
    %57 = vector.load %arg1[%c0_81, %c0_82, %c0_83, %c49] : memref<1x1x8x600xbf16, #tpu.memory_space<vmem>>, vector<1x1x8x384xbf16>
    %58 = vector.shape_cast %57 : vector<1x1x8x384xbf16> to vector<8x384xbf16>
    %c152 = arith.constant 152 : index
    %c0_84 = arith.constant 0 : index
    %59 = vector.load %arg6[%c152, %c0_84] : memref<648x384xbf16, #tpu.memory_space<vmem>>, vector<8x384xbf16>
    tpu.vector_store %arg6[%c152, %c0_84], %58 {strides = array<i32>} : memref<648x384xbf16, #tpu.memory_space<vmem>>, vector<8x384xbf16>,
    %c0_85 = arith.constant 0 : index
    %c0_86 = arith.constant 0 : index
    %c0_87 = arith.constant 0 : index
    %c50 = arith.constant 50 : index
    %60 = vector.load %arg1[%c0_85, %c0_86, %c0_87, %c50] : memref<1x1x8x600xbf16, #tpu.memory_space<vmem>>, vector<1x1x8x384xbf16>
    %61 = vector.shape_cast %60 : vector<1x1x8x384xbf16> to vector<8x384xbf16>
    %c160 = arith.constant 160 : index
    %c0_88 = arith.constant 0 : index
    %62 = vector.load %arg6[%c160, %c0_88] : memref<648x384xbf16, #tpu.memory_space<vmem>>, vector<8x384xbf16>
    tpu.vector_store %arg6[%c160, %c0_88], %61 {strides = array<i32>} : memref<648x384xbf16, #tpu.memory_space<vmem>>, vector<8x384xbf16>,
    %c0_89 = arith.constant 0 : index
    %c0_90 = arith.constant 0 : index
    %c0_91 = arith.constant 0 : index
    %c51 = arith.constant 51 : index
    %63 = vector.load %arg1[%c0_89, %c0_90, %c0_91, %c51] : memref<1x1x8x600xbf16, #tpu.memory_space<vmem>>, vector<1x1x8x384xbf16>
    %64 = vector.shape_cast %63 : vector<1x1x8x384xbf16> to vector<8x384xbf16>
    %c168 = arith.constant 168 : index
    %c0_92 = arith.constant 0 : index
    %65 = vector.load %arg6[%c168, %c0_92] : memref<648x384xbf16, #tpu.memory_space<vmem>>, vector<8x384xbf16>
    tpu.vector_store %arg6[%c168, %c0_92], %64 {strides = array<i32>} : memref<648x384xbf16, #tpu.memory_space<vmem>>, vector<8x384xbf16>,
    %c0_93 = arith.constant 0 : index
    %c0_94 = arith.constant 0 : index
    %c0_95 = arith.constant 0 : index
    %c52 = arith.constant 52 : index
    %66 = vector.load %arg1[%c0_93, %c0_94, %c0_95, %c52] : memref<1x1x8x600xbf16, #tpu.memory_space<vmem>>, vector<1x1x8x384xbf16>
    %67 = vector.shape_cast %66 : vector<1x1x8x384xbf16> to vector<8x384xbf16>
    %c176 = arith.constant 176 : index
    %c0_96 = arith.constant 0 : index
    %68 = vector.load %arg6[%c176, %c0_96] : memref<648x384xbf16, #tpu.memory_space<vmem>>, vector<8x384xbf16>
    tpu.vector_store %arg6[%c176, %c0_96], %67 {strides = array<i32>} : memref<648x384xbf16, #tpu.memory_space<vmem>>, vector<8x384xbf16>,
    %c0_97 = arith.constant 0 : index
    %c0_98 = arith.constant 0 : index
    %c0_99 = arith.constant 0 : index
    %c53 = arith.constant 53 : index
    %69 = vector.load %arg1[%c0_97, %c0_98, %c0_99, %c53] : memref<1x1x8x600xbf16, #tpu.memory_space<vmem>>, vector<1x1x8x384xbf16>
    %70 = vector.shape_cast %69 : vector<1x1x8x384xbf16> to vector<8x384xbf16>
    %c184 = arith.constant 184 : index
    %c0_100 = arith.constant 0 : index
    %71 = vector.load %arg6[%c184, %c0_100] : memref<648x384xbf16, #tpu.memory_space<vmem>>, vector<8x384xbf16>
    tpu.vector_store %arg6[%c184, %c0_100], %70 {strides = array<i32>} : memref<648x384xbf16, #tpu.memory_space<vmem>>, vector<8x384xbf16>,
    %c0_101 = arith.constant 0 : index
    %c0_102 = arith.constant 0 : index
    %c0_103 = arith.constant 0 : index
    %c54 = arith.constant 54 : index
    %72 = vector.load %arg1[%c0_101, %c0_102, %c0_103, %c54] : memref<1x1x8x600xbf16, #tpu.memory_space<vmem>>, vector<1x1x8x384xbf16>
    %73 = vector.shape_cast %72 : vector<1x1x8x384xbf16> to vector<8x384xbf16>
    %c192 = arith.constant 192 : index
    %c0_104 = arith.constant 0 : index
    %74 = vector.load %arg6[%c192, %c0_104] : memref<648x384xbf16, #tpu.memory_space<vmem>>, vector<8x384xbf16>
    tpu.vector_store %arg6[%c192, %c0_104], %73 {strides = array<i32>} : memref<648x384xbf16, #tpu.memory_space<vmem>>, vector<8x384xbf16>,
    %c0_105 = arith.constant 0 : index
    %c0_106 = arith.constant 0 : index
    %c0_107 = arith.constant 0 : index
    %c55 = arith.constant 55 : index
    %75 = vector.load %arg1[%c0_105, %c0_106, %c0_107, %c55] : memref<1x1x8x600xbf16, #tpu.memory_space<vmem>>, vector<1x1x8x384xbf16>
    %76 = vector.shape_cast %75 : vector<1x1x8x384xbf16> to vector<8x384xbf16>
    %c200 = arith.constant 200 : index
    %c0_108 = arith.constant 0 : index
    %77 = vector.load %arg6[%c200, %c0_108] : memref<648x384xbf16, #tpu.memory_space<vmem>>, vector<8x384xbf16>
    tpu.vector_store %arg6[%c200, %c0_108], %76 {strides = array<i32>} : memref<648x384xbf16, #tpu.memory_space<vmem>>, vector<8x384xbf16>,
    %c0_109 = arith.constant 0 : index
    %c0_110 = arith.constant 0 : index
    %c0_111 = arith.constant 0 : index
    %c56_112 = arith.constant 56 : index
    %78 = vector.load %arg1[%c0_109, %c0_110, %c0_111, %c56_112] : memref<1x1x8x600xbf16, #tpu.memory_space<vmem>>, vector<1x1x8x384xbf16>
    %79 = vector.shape_cast %78 : vector<1x1x8x384xbf16> to vector<8x384xbf16>
    %c208 = arith.constant 208 : index
    %c0_113 = arith.constant 0 : index
    %80 = vector.load %arg6[%c208, %c0_113] : memref<648x384xbf16, #tpu.memory_space<vmem>>, vector<8x384xbf16>
    tpu.vector_store %arg6[%c208, %c0_113], %79 {strides = array<i32>} : memref<648x384xbf16, #tpu.memory_space<vmem>>, vector<8x384xbf16>,
    %c0_114 = arith.constant 0 : index
    %c0_115 = arith.constant 0 : index
    %c0_116 = arith.constant 0 : index
    %c72_117 = arith.constant 72 : index
    %81 = vector.load %arg1[%c0_114, %c0_115, %c0_116, %c72_117] : memref<1x1x8x600xbf16, #tpu.memory_space<vmem>>, vector<1x1x8x384xbf16>
    %82 = vector.shape_cast %81 : vector<1x1x8x384xbf16> to vector<8x384xbf16>
    %c216 = arith.constant 216 : index
    %c0_118 = arith.constant 0 : index
    %83 = vector.load %arg6[%c216, %c0_118] : memref<648x384xbf16, #tpu.memory_space<vmem>>, vector<8x384xbf16>
    tpu.vector_store %arg6[%c216, %c0_118], %82 {strides = array<i32>} : memref<648x384xbf16, #tpu.memory_space<vmem>>, vector<8x384xbf16>,
    %c0_119 = arith.constant 0 : index
    %c0_120 = arith.constant 0 : index
    %c0_121 = arith.constant 0 : index
    %c73 = arith.constant 73 : index
    %84 = vector.load %arg1[%c0_119, %c0_120, %c0_121, %c73] : memref<1x1x8x600xbf16, #tpu.memory_space<vmem>>, vector<1x1x8x384xbf16>
    %85 = vector.shape_cast %84 : vector<1x1x8x384xbf16> to vector<8x384xbf16>
    %c224 = arith.constant 224 : index
    %c0_122 = arith.constant 0 : index
    %86 = vector.load %arg6[%c224, %c0_122] : memref<648x384xbf16, #tpu.memory_space<vmem>>, vector<8x384xbf16>
    tpu.vector_store %arg6[%c224, %c0_122], %85 {strides = array<i32>} : memref<648x384xbf16, #tpu.memory_space<vmem>>, vector<8x384xbf16>,
    %c0_123 = arith.constant 0 : index
    %c0_124 = arith.constant 0 : index
    %c0_125 = arith.constant 0 : index
    %c74 = arith.constant 74 : index
    %87 = vector.load %arg1[%c0_123, %c0_124, %c0_125, %c74] : memref<1x1x8x600xbf16, #tpu.memory_space<vmem>>, vector<1x1x8x384xbf16>
    %88 = vector.shape_cast %87 : vector<1x1x8x384xbf16> to vector<8x384xbf16>
    %c232 = arith.constant 232 : index
    %c0_126 = arith.constant 0 : index
    %89 = vector.load %arg6[%c232, %c0_126] : memref<648x384xbf16, #tpu.memory_space<vmem>>, vector<8x384xbf16>
    tpu.vector_store %arg6[%c232, %c0_126], %88 {strides = array<i32>} : memref<648x384xbf16, #tpu.memory_space<vmem>>, vector<8x384xbf16>,
    %c0_127 = arith.constant 0 : index
    %c0_128 = arith.constant 0 : index
    %c0_129 = arith.constant 0 : index
    %c75 = arith.constant 75 : index
    %90 = vector.load %arg1[%c0_127, %c0_128, %c0_129, %c75] : memref<1x1x8x600xbf16, #tpu.memory_space<vmem>>, vector<1x1x8x384xbf16>
    %91 = vector.shape_cast %90 : vector<1x1x8x384xbf16> to vector<8x384xbf16>
    %c240 = arith.constant 240 : index
    %c0_130 = arith.constant 0 : index
    %92 = vector.load %arg6[%c240, %c0_130] : memref<648x384xbf16, #tpu.memory_space<vmem>>, vector<8x384xbf16>
    tpu.vector_store %arg6[%c240, %c0_130], %91 {strides = array<i32>} : memref<648x384xbf16, #tpu.memory_space<vmem>>, vector<8x384xbf16>,
    %c0_131 = arith.constant 0 : index
    %c0_132 = arith.constant 0 : index
    %c0_133 = arith.constant 0 : index
    %c76 = arith.constant 76 : index
    %93 = vector.load %arg1[%c0_131, %c0_132, %c0_133, %c76] : memref<1x1x8x600xbf16, #tpu.memory_space<vmem>>, vector<1x1x8x384xbf16>
    %94 = vector.shape_cast %93 : vector<1x1x8x384xbf16> to vector<8x384xbf16>
    %c248 = arith.constant 248 : index
    %c0_134 = arith.constant 0 : index
    %95 = vector.load %arg6[%c248, %c0_134] : memref<648x384xbf16, #tpu.memory_space<vmem>>, vector<8x384xbf16>
    tpu.vector_store %arg6[%c248, %c0_134], %94 {strides = array<i32>} : memref<648x384xbf16, #tpu.memory_space<vmem>>, vector<8x384xbf16>,
    %c0_135 = arith.constant 0 : index
    %c0_136 = arith.constant 0 : index
    %c0_137 = arith.constant 0 : index
    %c77 = arith.constant 77 : index
    %96 = vector.load %arg1[%c0_135, %c0_136, %c0_137, %c77] : memref<1x1x8x600xbf16, #tpu.memory_space<vmem>>, vector<1x1x8x384xbf16>
    %97 = vector.shape_cast %96 : vector<1x1x8x384xbf16> to vector<8x384xbf16>
    %c256 = arith.constant 256 : index
    %c0_138 = arith.constant 0 : index
    %98 = vector.load %arg6[%c256, %c0_138] : memref<648x384xbf16, #tpu.memory_space<vmem>>, vector<8x384xbf16>
    tpu.vector_store %arg6[%c256, %c0_138], %97 {strides = array<i32>} : memref<648x384xbf16, #tpu.memory_space<vmem>>, vector<8x384xbf16>,
    %c0_139 = arith.constant 0 : index
    %c0_140 = arith.constant 0 : index
    %c0_141 = arith.constant 0 : index
    %c78 = arith.constant 78 : index
    %99 = vector.load %arg1[%c0_139, %c0_140, %c0_141, %c78] : memref<1x1x8x600xbf16, #tpu.memory_space<vmem>>, vector<1x1x8x384xbf16>
    %100 = vector.shape_cast %99 : vector<1x1x8x384xbf16> to vector<8x384xbf16>
    %c264 = arith.constant 264 : index
    %c0_142 = arith.constant 0 : index
    %101 = vector.load %arg6[%c264, %c0_142] : memref<648x384xbf16, #tpu.memory_space<vmem>>, vector<8x384xbf16>
    tpu.vector_store %arg6[%c264, %c0_142], %100 {strides = array<i32>} : memref<648x384xbf16, #tpu.memory_space<vmem>>, vector<8x384xbf16>,
    %c0_143 = arith.constant 0 : index
    %c0_144 = arith.constant 0 : index
    %c0_145 = arith.constant 0 : index
    %c79 = arith.constant 79 : index
    %102 = vector.load %arg1[%c0_143, %c0_144, %c0_145, %c79] : memref<1x1x8x600xbf16, #tpu.memory_space<vmem>>, vector<1x1x8x384xbf16>
    %103 = vector.shape_cast %102 : vector<1x1x8x384xbf16> to vector<8x384xbf16>
    %c272 = arith.constant 272 : index
    %c0_146 = arith.constant 0 : index
    %104 = vector.load %arg6[%c272, %c0_146] : memref<648x384xbf16, #tpu.memory_space<vmem>>, vector<8x384xbf16>
    tpu.vector_store %arg6[%c272, %c0_146], %103 {strides = array<i32>} : memref<648x384xbf16, #tpu.memory_space<vmem>>, vector<8x384xbf16>,
    %c0_147 = arith.constant 0 : index
    %c0_148 = arith.constant 0 : index
    %c0_149 = arith.constant 0 : index
    %c80_150 = arith.constant 80 : index
    %105 = vector.load %arg1[%c0_147, %c0_148, %c0_149, %c80_150] : memref<1x1x8x600xbf16, #tpu.memory_space<vmem>>, vector<1x1x8x384xbf16>
    %106 = vector.shape_cast %105 : vector<1x1x8x384xbf16> to vector<8x384xbf16>
    %c280 = arith.constant 280 : index
    %c0_151 = arith.constant 0 : index
    %107 = vector.load %arg6[%c280, %c0_151] : memref<648x384xbf16, #tpu.memory_space<vmem>>, vector<8x384xbf16>
    tpu.vector_store %arg6[%c280, %c0_151], %106 {strides = array<i32>} : memref<648x384xbf16, #tpu.memory_space<vmem>>, vector<8x384xbf16>,
    %c0_152 = arith.constant 0 : index
    %c0_153 = arith.constant 0 : index
    %c0_154 = arith.constant 0 : index
    %c96_155 = arith.constant 96 : index
    %108 = vector.load %arg1[%c0_152, %c0_153, %c0_154, %c96_155] : memref<1x1x8x600xbf16, #tpu.memory_space<vmem>>, vector<1x1x8x384xbf16>
    %109 = vector.shape_cast %108 : vector<1x1x8x384xbf16> to vector<8x384xbf16>
    %c288 = arith.constant 288 : index
    %c0_156 = arith.constant 0 : index
    %110 = vector.load %arg6[%c288, %c0_156] : memref<648x384xbf16, #tpu.memory_space<vmem>>, vector<8x384xbf16>
    tpu.vector_store %arg6[%c288, %c0_156], %109 {strides = array<i32>} : memref<648x384xbf16, #tpu.memory_space<vmem>>, vector<8x384xbf16>,
    %c0_157 = arith.constant 0 : index
    %c0_158 = arith.constant 0 : index
    %c0_159 = arith.constant 0 : index
    %c97 = arith.constant 97 : index
    %111 = vector.load %arg1[%c0_157, %c0_158, %c0_159, %c97] : memref<1x1x8x600xbf16, #tpu.memory_space<vmem>>, vector<1x1x8x384xbf16>
    %112 = vector.shape_cast %111 : vector<1x1x8x384xbf16> to vector<8x384xbf16>
    %c296 = arith.constant 296 : index
    %c0_160 = arith.constant 0 : index
    %113 = vector.load %arg6[%c296, %c0_160] : memref<648x384xbf16, #tpu.memory_space<vmem>>, vector<8x384xbf16>
    tpu.vector_store %arg6[%c296, %c0_160], %112 {strides = array<i32>} : memref<648x384xbf16, #tpu.memory_space<vmem>>, vector<8x384xbf16>,
    %c0_161 = arith.constant 0 : index
    %c0_162 = arith.constant 0 : index
    %c0_163 = arith.constant 0 : index
    %c98 = arith.constant 98 : index
    %114 = vector.load %arg1[%c0_161, %c0_162, %c0_163, %c98] : memref<1x1x8x600xbf16, #tpu.memory_space<vmem>>, vector<1x1x8x384xbf16>
    %115 = vector.shape_cast %114 : vector<1x1x8x384xbf16> to vector<8x384xbf16>
    %c304 = arith.constant 304 : index
    %c0_164 = arith.constant 0 : index
    %116 = vector.load %arg6[%c304, %c0_164] : memref<648x384xbf16, #tpu.memory_space<vmem>>, vector<8x384xbf16>
    tpu.vector_store %arg6[%c304, %c0_164], %115 {strides = array<i32>} : memref<648x384xbf16, #tpu.memory_space<vmem>>, vector<8x384xbf16>,
    %c0_165 = arith.constant 0 : index
    %c0_166 = arith.constant 0 : index
    %c0_167 = arith.constant 0 : index
    %c99 = arith.constant 99 : index
    %117 = vector.load %arg1[%c0_165, %c0_166, %c0_167, %c99] : memref<1x1x8x600xbf16, #tpu.memory_space<vmem>>, vector<1x1x8x384xbf16>
    %118 = vector.shape_cast %117 : vector<1x1x8x384xbf16> to vector<8x384xbf16>
    %c312 = arith.constant 312 : index
    %c0_168 = arith.constant 0 : index
    %119 = vector.load %arg6[%c312, %c0_168] : memref<648x384xbf16, #tpu.memory_space<vmem>>, vector<8x384xbf16>
    tpu.vector_store %arg6[%c312, %c0_168], %118 {strides = array<i32>} : memref<648x384xbf16, #tpu.memory_space<vmem>>, vector<8x384xbf16>,
    %c0_169 = arith.constant 0 : index
    %c0_170 = arith.constant 0 : index
    %c0_171 = arith.constant 0 : index
    %c100 = arith.constant 100 : index
    %120 = vector.load %arg1[%c0_169, %c0_170, %c0_171, %c100] : memref<1x1x8x600xbf16, #tpu.memory_space<vmem>>, vector<1x1x8x384xbf16>
    %121 = vector.shape_cast %120 : vector<1x1x8x384xbf16> to vector<8x384xbf16>
    %c320 = arith.constant 320 : index
    %c0_172 = arith.constant 0 : index
    %122 = vector.load %arg6[%c320, %c0_172] : memref<648x384xbf16, #tpu.memory_space<vmem>>, vector<8x384xbf16>
    tpu.vector_store %arg6[%c320, %c0_172], %121 {strides = array<i32>} : memref<648x384xbf16, #tpu.memory_space<vmem>>, vector<8x384xbf16>,
    %c0_173 = arith.constant 0 : index
    %c0_174 = arith.constant 0 : index
    %c0_175 = arith.constant 0 : index
    %c101 = arith.constant 101 : index
    %123 = vector.load %arg1[%c0_173, %c0_174, %c0_175, %c101] : memref<1x1x8x600xbf16, #tpu.memory_space<vmem>>, vector<1x1x8x384xbf16>
    %124 = vector.shape_cast %123 : vector<1x1x8x384xbf16> to vector<8x384xbf16>
    %c328 = arith.constant 328 : index
    %c0_176 = arith.constant 0 : index
    %125 = vector.load %arg6[%c328, %c0_176] : memref<648x384xbf16, #tpu.memory_space<vmem>>, vector<8x384xbf16>
    tpu.vector_store %arg6[%c328, %c0_176], %124 {strides = array<i32>} : memref<648x384xbf16, #tpu.memory_space<vmem>>, vector<8x384xbf16>,
    %c0_177 = arith.constant 0 : index
    %c0_178 = arith.constant 0 : index
    %c0_179 = arith.constant 0 : index
    %c102 = arith.constant 102 : index
    %126 = vector.load %arg1[%c0_177, %c0_178, %c0_179, %c102] : memref<1x1x8x600xbf16, #tpu.memory_space<vmem>>, vector<1x1x8x384xbf16>
    %127 = vector.shape_cast %126 : vector<1x1x8x384xbf16> to vector<8x384xbf16>
    %c336 = arith.constant 336 : index
    %c0_180 = arith.constant 0 : index
    %128 = vector.load %arg6[%c336, %c0_180] : memref<648x384xbf16, #tpu.memory_space<vmem>>, vector<8x384xbf16>
    tpu.vector_store %arg6[%c336, %c0_180], %127 {strides = array<i32>} : memref<648x384xbf16, #tpu.memory_space<vmem>>, vector<8x384xbf16>,
    %c0_181 = arith.constant 0 : index
    %c0_182 = arith.constant 0 : index
    %c0_183 = arith.constant 0 : index
    %c103 = arith.constant 103 : index
    %129 = vector.load %arg1[%c0_181, %c0_182, %c0_183, %c103] : memref<1x1x8x600xbf16, #tpu.memory_space<vmem>>, vector<1x1x8x384xbf16>
    %130 = vector.shape_cast %129 : vector<1x1x8x384xbf16> to vector<8x384xbf16>
    %c344 = arith.constant 344 : index
    %c0_184 = arith.constant 0 : index
    %131 = vector.load %arg6[%c344, %c0_184] : memref<648x384xbf16, #tpu.memory_space<vmem>>, vector<8x384xbf16>
    tpu.vector_store %arg6[%c344, %c0_184], %130 {strides = array<i32>} : memref<648x384xbf16, #tpu.memory_space<vmem>>, vector<8x384xbf16>,
    %c0_185 = arith.constant 0 : index
    %c0_186 = arith.constant 0 : index
    %c0_187 = arith.constant 0 : index
    %c104_188 = arith.constant 104 : index
    %132 = vector.load %arg1[%c0_185, %c0_186, %c0_187, %c104_188] : memref<1x1x8x600xbf16, #tpu.memory_space<vmem>>, vector<1x1x8x384xbf16>
    %133 = vector.shape_cast %132 : vector<1x1x8x384xbf16> to vector<8x384xbf16>
    %c352 = arith.constant 352 : index
    %c0_189 = arith.constant 0 : index
    %134 = vector.load %arg6[%c352, %c0_189] : memref<648x384xbf16, #tpu.memory_space<vmem>>, vector<8x384xbf16>
    tpu.vector_store %arg6[%c352, %c0_189], %133 {strides = array<i32>} : memref<648x384xbf16, #tpu.memory_space<vmem>>, vector<8x384xbf16>,
    %c0_190 = arith.constant 0 : index
    %c0_191 = arith.constant 0 : index
    %c0_192 = arith.constant 0 : index
    %c120_193 = arith.constant 120 : index
    %135 = vector.load %arg1[%c0_190, %c0_191, %c0_192, %c120_193] : memref<1x1x8x600xbf16, #tpu.memory_space<vmem>>, vector<1x1x8x384xbf16>
    %136 = vector.shape_cast %135 : vector<1x1x8x384xbf16> to vector<8x384xbf16>
    %c360 = arith.constant 360 : index
    %c0_194 = arith.constant 0 : index
    %137 = vector.load %arg6[%c360, %c0_194] : memref<648x384xbf16, #tpu.memory_space<vmem>>, vector<8x384xbf16>
    tpu.vector_store %arg6[%c360, %c0_194], %136 {strides = array<i32>} : memref<648x384xbf16, #tpu.memory_space<vmem>>, vector<8x384xbf16>,
    %c0_195 = arith.constant 0 : index
    %c0_196 = arith.constant 0 : index
    %c0_197 = arith.constant 0 : index
    %c121 = arith.constant 121 : index
    %138 = vector.load %arg1[%c0_195, %c0_196, %c0_197, %c121] : memref<1x1x8x600xbf16, #tpu.memory_space<vmem>>, vector<1x1x8x384xbf16>
    %139 = vector.shape_cast %138 : vector<1x1x8x384xbf16> to vector<8x384xbf16>
    %c368 = arith.constant 368 : index
    %c0_198 = arith.constant 0 : index
    %140 = vector.load %arg6[%c368, %c0_198] : memref<648x384xbf16, #tpu.memory_space<vmem>>, vector<8x384xbf16>
    tpu.vector_store %arg6[%c368, %c0_198], %139 {strides = array<i32>} : memref<648x384xbf16, #tpu.memory_space<vmem>>, vector<8x384xbf16>,
    %c0_199 = arith.constant 0 : index
    %c0_200 = arith.constant 0 : index
    %c0_201 = arith.constant 0 : index
    %c122 = arith.constant 122 : index
    %141 = vector.load %arg1[%c0_199, %c0_200, %c0_201, %c122] : memref<1x1x8x600xbf16, #tpu.memory_space<vmem>>, vector<1x1x8x384xbf16>
    %142 = vector.shape_cast %141 : vector<1x1x8x384xbf16> to vector<8x384xbf16>
    %c376 = arith.constant 376 : index
    %c0_202 = arith.constant 0 : index
    %143 = vector.load %arg6[%c376, %c0_202] : memref<648x384xbf16, #tpu.memory_space<vmem>>, vector<8x384xbf16>
    tpu.vector_store %arg6[%c376, %c0_202], %142 {strides = array<i32>} : memref<648x384xbf16, #tpu.memory_space<vmem>>, vector<8x384xbf16>,
    %c0_203 = arith.constant 0 : index
    %c0_204 = arith.constant 0 : index
    %c0_205 = arith.constant 0 : index
    %c123 = arith.constant 123 : index
    %144 = vector.load %arg1[%c0_203, %c0_204, %c0_205, %c123] : memref<1x1x8x600xbf16, #tpu.memory_space<vmem>>, vector<1x1x8x384xbf16>
    %145 = vector.shape_cast %144 : vector<1x1x8x384xbf16> to vector<8x384xbf16>
    %c384 = arith.constant 384 : index
    %c0_206 = arith.constant 0 : index
    %146 = vector.load %arg6[%c384, %c0_206] : memref<648x384xbf16, #tpu.memory_space<vmem>>, vector<8x384xbf16>
    tpu.vector_store %arg6[%c384, %c0_206], %145 {strides = array<i32>} : memref<648x384xbf16, #tpu.memory_space<vmem>>, vector<8x384xbf16>,
    %c0_207 = arith.constant 0 : index
    %c0_208 = arith.constant 0 : index
    %c0_209 = arith.constant 0 : index
    %c124 = arith.constant 124 : index
    %147 = vector.load %arg1[%c0_207, %c0_208, %c0_209, %c124] : memref<1x1x8x600xbf16, #tpu.memory_space<vmem>>, vector<1x1x8x384xbf16>
    %148 = vector.shape_cast %147 : vector<1x1x8x384xbf16> to vector<8x384xbf16>
    %c392 = arith.constant 392 : index
    %c0_210 = arith.constant 0 : index
    %149 = vector.load %arg6[%c392, %c0_210] : memref<648x384xbf16, #tpu.memory_space<vmem>>, vector<8x384xbf16>
    tpu.vector_store %arg6[%c392, %c0_210], %148 {strides = array<i32>} : memref<648x384xbf16, #tpu.memory_space<vmem>>, vector<8x384xbf16>,
    %c0_211 = arith.constant 0 : index
    %c0_212 = arith.constant 0 : index
    %c0_213 = arith.constant 0 : index
    %c125 = arith.constant 125 : index
    %150 = vector.load %arg1[%c0_211, %c0_212, %c0_213, %c125] : memref<1x1x8x600xbf16, #tpu.memory_space<vmem>>, vector<1x1x8x384xbf16>
    %151 = vector.shape_cast %150 : vector<1x1x8x384xbf16> to vector<8x384xbf16>
    %c400 = arith.constant 400 : index
    %c0_214 = arith.constant 0 : index
    %152 = vector.load %arg6[%c400, %c0_214] : memref<648x384xbf16, #tpu.memory_space<vmem>>, vector<8x384xbf16>
    tpu.vector_store %arg6[%c400, %c0_214], %151 {strides = array<i32>} : memref<648x384xbf16, #tpu.memory_space<vmem>>, vector<8x384xbf16>,
    %c0_215 = arith.constant 0 : index
    %c0_216 = arith.constant 0 : index
    %c0_217 = arith.constant 0 : index
    %c126 = arith.constant 126 : index
    %153 = vector.load %arg1[%c0_215, %c0_216, %c0_217, %c126] : memref<1x1x8x600xbf16, #tpu.memory_space<vmem>>, vector<1x1x8x384xbf16>
    %154 = vector.shape_cast %153 : vector<1x1x8x384xbf16> to vector<8x384xbf16>
    %c408 = arith.constant 408 : index
    %c0_218 = arith.constant 0 : index
    %155 = vector.load %arg6[%c408, %c0_218] : memref<648x384xbf16, #tpu.memory_space<vmem>>, vector<8x384xbf16>
    tpu.vector_store %arg6[%c408, %c0_218], %154 {strides = array<i32>} : memref<648x384xbf16, #tpu.memory_space<vmem>>, vector<8x384xbf16>,
    %c0_219 = arith.constant 0 : index
    %c0_220 = arith.constant 0 : index
    %c0_221 = arith.constant 0 : index
    %c127 = arith.constant 127 : index
    %156 = vector.load %arg1[%c0_219, %c0_220, %c0_221, %c127] : memref<1x1x8x600xbf16, #tpu.memory_space<vmem>>, vector<1x1x8x384xbf16>
    %157 = vector.shape_cast %156 : vector<1x1x8x384xbf16> to vector<8x384xbf16>
    %c416 = arith.constant 416 : index
    %c0_222 = arith.constant 0 : index
    %158 = vector.load %arg6[%c416, %c0_222] : memref<648x384xbf16, #tpu.memory_space<vmem>>, vector<8x384xbf16>
    tpu.vector_store %arg6[%c416, %c0_222], %157 {strides = array<i32>} : memref<648x384xbf16, #tpu.memory_space<vmem>>, vector<8x384xbf16>,
    %c0_223 = arith.constant 0 : index
    %c0_224 = arith.constant 0 : index
    %c0_225 = arith.constant 0 : index
    %c128_226 = arith.constant 128 : index
    %159 = vector.load %arg1[%c0_223, %c0_224, %c0_225, %c128_226] : memref<1x1x8x600xbf16, #tpu.memory_space<vmem>>, vector<1x1x8x384xbf16>
    %160 = vector.shape_cast %159 : vector<1x1x8x384xbf16> to vector<8x384xbf16>
    %c424 = arith.constant 424 : index
    %c0_227 = arith.constant 0 : index
    %161 = vector.load %arg6[%c424, %c0_227] : memref<648x384xbf16, #tpu.memory_space<vmem>>, vector<8x384xbf16>
    tpu.vector_store %arg6[%c424, %c0_227], %160 {strides = array<i32>} : memref<648x384xbf16, #tpu.memory_space<vmem>>, vector<8x384xbf16>,
    %c0_228 = arith.constant 0 : index
    %c0_229 = arith.constant 0 : index
    %c0_230 = arith.constant 0 : index
    %c144_231 = arith.constant 144 : index
    %162 = vector.load %arg1[%c0_228, %c0_229, %c0_230, %c144_231] : memref<1x1x8x600xbf16, #tpu.memory_space<vmem>>, vector<1x1x8x384xbf16>
    %163 = vector.shape_cast %162 : vector<1x1x8x384xbf16> to vector<8x384xbf16>
    %c432 = arith.constant 432 : index
    %c0_232 = arith.constant 0 : index
    %164 = vector.load %arg6[%c432, %c0_232] : memref<648x384xbf16, #tpu.memory_space<vmem>>, vector<8x384xbf16>
    tpu.vector_store %arg6[%c432, %c0_232], %163 {strides = array<i32>} : memref<648x384xbf16, #tpu.memory_space<vmem>>, vector<8x384xbf16>,
    %c0_233 = arith.constant 0 : index
    %c0_234 = arith.constant 0 : index
    %c0_235 = arith.constant 0 : index
    %c145 = arith.constant 145 : index
    %165 = vector.load %arg1[%c0_233, %c0_234, %c0_235, %c145] : memref<1x1x8x600xbf16, #tpu.memory_space<vmem>>, vector<1x1x8x384xbf16>
    %166 = vector.shape_cast %165 : vector<1x1x8x384xbf16> to vector<8x384xbf16>
    %c440 = arith.constant 440 : index
    %c0_236 = arith.constant 0 : index
    %167 = vector.load %arg6[%c440, %c0_236] : memref<648x384xbf16, #tpu.memory_space<vmem>>, vector<8x384xbf16>
    tpu.vector_store %arg6[%c440, %c0_236], %166 {strides = array<i32>} : memref<648x384xbf16, #tpu.memory_space<vmem>>, vector<8x384xbf16>,
    %c0_237 = arith.constant 0 : index
    %c0_238 = arith.constant 0 : index
    %c0_239 = arith.constant 0 : index
    %c146 = arith.constant 146 : index
    %168 = vector.load %arg1[%c0_237, %c0_238, %c0_239, %c146] : memref<1x1x8x600xbf16, #tpu.memory_space<vmem>>, vector<1x1x8x384xbf16>
    %169 = vector.shape_cast %168 : vector<1x1x8x384xbf16> to vector<8x384xbf16>
    %c448 = arith.constant 448 : index
    %c0_240 = arith.constant 0 : index
    %170 = vector.load %arg6[%c448, %c0_240] : memref<648x384xbf16, #tpu.memory_space<vmem>>, vector<8x384xbf16>
    tpu.vector_store %arg6[%c448, %c0_240], %169 {strides = array<i32>} : memref<648x384xbf16, #tpu.memory_space<vmem>>, vector<8x384xbf16>,
    %c0_241 = arith.constant 0 : index
    %c0_242 = arith.constant 0 : index
    %c0_243 = arith.constant 0 : index
    %c147 = arith.constant 147 : index
    %171 = vector.load %arg1[%c0_241, %c0_242, %c0_243, %c147] : memref<1x1x8x600xbf16, #tpu.memory_space<vmem>>, vector<1x1x8x384xbf16>
    %172 = vector.shape_cast %171 : vector<1x1x8x384xbf16> to vector<8x384xbf16>
    %c456 = arith.constant 456 : index
    %c0_244 = arith.constant 0 : index
    %173 = vector.load %arg6[%c456, %c0_244] : memref<648x384xbf16, #tpu.memory_space<vmem>>, vector<8x384xbf16>
    tpu.vector_store %arg6[%c456, %c0_244], %172 {strides = array<i32>} : memref<648x384xbf16, #tpu.memory_space<vmem>>, vector<8x384xbf16>,
    %c0_245 = arith.constant 0 : index
    %c0_246 = arith.constant 0 : index
    %c0_247 = arith.constant 0 : index
    %c148 = arith.constant 148 : index
    %174 = vector.load %arg1[%c0_245, %c0_246, %c0_247, %c148] : memref<1x1x8x600xbf16, #tpu.memory_space<vmem>>, vector<1x1x8x384xbf16>
    %175 = vector.shape_cast %174 : vector<1x1x8x384xbf16> to vector<8x384xbf16>
    %c464 = arith.constant 464 : index
    %c0_248 = arith.constant 0 : index
    %176 = vector.load %arg6[%c464, %c0_248] : memref<648x384xbf16, #tpu.memory_space<vmem>>, vector<8x384xbf16>
    tpu.vector_store %arg6[%c464, %c0_248], %175 {strides = array<i32>} : memref<648x384xbf16, #tpu.memory_space<vmem>>, vector<8x384xbf16>,
    %c0_249 = arith.constant 0 : index
    %c0_250 = arith.constant 0 : index
    %c0_251 = arith.constant 0 : index
    %c149 = arith.constant 149 : index
    %177 = vector.load %arg1[%c0_249, %c0_250, %c0_251, %c149] : memref<1x1x8x600xbf16, #tpu.memory_space<vmem>>, vector<1x1x8x384xbf16>
    %178 = vector.shape_cast %177 : vector<1x1x8x384xbf16> to vector<8x384xbf16>
    %c472 = arith.constant 472 : index
    %c0_252 = arith.constant 0 : index
    %179 = vector.load %arg6[%c472, %c0_252] : memref<648x384xbf16, #tpu.memory_space<vmem>>, vector<8x384xbf16>
    tpu.vector_store %arg6[%c472, %c0_252], %178 {strides = array<i32>} : memref<648x384xbf16, #tpu.memory_space<vmem>>, vector<8x384xbf16>,
    %c0_253 = arith.constant 0 : index
    %c0_254 = arith.constant 0 : index
    %c0_255 = arith.constant 0 : index
    %c150 = arith.constant 150 : index
    %180 = vector.load %arg1[%c0_253, %c0_254, %c0_255, %c150] : memref<1x1x8x600xbf16, #tpu.memory_space<vmem>>, vector<1x1x8x384xbf16>
    %181 = vector.shape_cast %180 : vector<1x1x8x384xbf16> to vector<8x384xbf16>
    %c480 = arith.constant 480 : index
    %c0_256 = arith.constant 0 : index
    %182 = vector.load %arg6[%c480, %c0_256] : memref<648x384xbf16, #tpu.memory_space<vmem>>, vector<8x384xbf16>
    tpu.vector_store %arg6[%c480, %c0_256], %181 {strides = array<i32>} : memref<648x384xbf16, #tpu.memory_space<vmem>>, vector<8x384xbf16>,
    %c0_257 = arith.constant 0 : index
    %c0_258 = arith.constant 0 : index
    %c0_259 = arith.constant 0 : index
    %c151 = arith.constant 151 : index
    %183 = vector.load %arg1[%c0_257, %c0_258, %c0_259, %c151] : memref<1x1x8x600xbf16, #tpu.memory_space<vmem>>, vector<1x1x8x384xbf16>
    %184 = vector.shape_cast %183 : vector<1x1x8x384xbf16> to vector<8x384xbf16>
    %c488 = arith.constant 488 : index
    %c0_260 = arith.constant 0 : index
    %185 = vector.load %arg6[%c488, %c0_260] : memref<648x384xbf16, #tpu.memory_space<vmem>>, vector<8x384xbf16>
    tpu.vector_store %arg6[%c488, %c0_260], %184 {strides = array<i32>} : memref<648x384xbf16, #tpu.memory_space<vmem>>, vector<8x384xbf16>,
    %c0_261 = arith.constant 0 : index
    %c0_262 = arith.constant 0 : index
    %c0_263 = arith.constant 0 : index
    %c152_264 = arith.constant 152 : index
    %186 = vector.load %arg1[%c0_261, %c0_262, %c0_263, %c152_264] : memref<1x1x8x600xbf16, #tpu.memory_space<vmem>>, vector<1x1x8x384xbf16>
    %187 = vector.shape_cast %186 : vector<1x1x8x384xbf16> to vector<8x384xbf16>
    %c496 = arith.constant 496 : index
    %c0_265 = arith.constant 0 : index
    %188 = vector.load %arg6[%c496, %c0_265] : memref<648x384xbf16, #tpu.memory_space<vmem>>, vector<8x384xbf16>
    tpu.vector_store %arg6[%c496, %c0_265], %187 {strides = array<i32>} : memref<648x384xbf16, #tpu.memory_space<vmem>>, vector<8x384xbf16>,
    %c0_266 = arith.constant 0 : index
    %c0_267 = arith.constant 0 : index
    %c0_268 = arith.constant 0 : index
    %c168_269 = arith.constant 168 : index
    %189 = vector.load %arg1[%c0_266, %c0_267, %c0_268, %c168_269] : memref<1x1x8x600xbf16, #tpu.memory_space<vmem>>, vector<1x1x8x384xbf16>
    %190 = vector.shape_cast %189 : vector<1x1x8x384xbf16> to vector<8x384xbf16>
    %c504 = arith.constant 504 : index
    %c0_270 = arith.constant 0 : index
    %191 = vector.load %arg6[%c504, %c0_270] : memref<648x384xbf16, #tpu.memory_space<vmem>>, vector<8x384xbf16>
    tpu.vector_store %arg6[%c504, %c0_270], %190 {strides = array<i32>} : memref<648x384xbf16, #tpu.memory_space<vmem>>, vector<8x384xbf16>,
    %c0_271 = arith.constant 0 : index
    %c0_272 = arith.constant 0 : index
    %c0_273 = arith.constant 0 : index
    %c169 = arith.constant 169 : index
    %192 = vector.load %arg1[%c0_271, %c0_272, %c0_273, %c169] : memref<1x1x8x600xbf16, #tpu.memory_space<vmem>>, vector<1x1x8x384xbf16>
    %193 = vector.shape_cast %192 : vector<1x1x8x384xbf16> to vector<8x384xbf16>
    %c512 = arith.constant 512 : index
    %c0_274 = arith.constant 0 : index
    %194 = vector.load %arg6[%c512, %c0_274] : memref<648x384xbf16, #tpu.memory_space<vmem>>, vector<8x384xbf16>
    tpu.vector_store %arg6[%c512, %c0_274], %193 {strides = array<i32>} : memref<648x384xbf16, #tpu.memory_space<vmem>>, vector<8x384xbf16>,
    %c0_275 = arith.constant 0 : index
    %c0_276 = arith.constant 0 : index
    %c0_277 = arith.constant 0 : index
    %c170 = arith.constant 170 : index
    %195 = vector.load %arg1[%c0_275, %c0_276, %c0_277, %c170] : memref<1x1x8x600xbf16, #tpu.memory_space<vmem>>, vector<1x1x8x384xbf16>
    %196 = vector.shape_cast %195 : vector<1x1x8x384xbf16> to vector<8x384xbf16>
    %c520 = arith.constant 520 : index
    %c0_278 = arith.constant 0 : index
    %197 = vector.load %arg6[%c520, %c0_278] : memref<648x384xbf16, #tpu.memory_space<vmem>>, vector<8x384xbf16>
    tpu.vector_store %arg6[%c520, %c0_278], %196 {strides = array<i32>} : memref<648x384xbf16, #tpu.memory_space<vmem>>, vector<8x384xbf16>,
    %c0_279 = arith.constant 0 : index
    %c0_280 = arith.constant 0 : index
    %c0_281 = arith.constant 0 : index
    %c171 = arith.constant 171 : index
    %198 = vector.load %arg1[%c0_279, %c0_280, %c0_281, %c171] : memref<1x1x8x600xbf16, #tpu.memory_space<vmem>>, vector<1x1x8x384xbf16>
    %199 = vector.shape_cast %198 : vector<1x1x8x384xbf16> to vector<8x384xbf16>
    %c528 = arith.constant 528 : index
    %c0_282 = arith.constant 0 : index
    %200 = vector.load %arg6[%c528, %c0_282] : memref<648x384xbf16, #tpu.memory_space<vmem>>, vector<8x384xbf16>
    tpu.vector_store %arg6[%c528, %c0_282], %199 {strides = array<i32>} : memref<648x384xbf16, #tpu.memory_space<vmem>>, vector<8x384xbf16>,
    %c0_283 = arith.constant 0 : index
    %c0_284 = arith.constant 0 : index
    %c0_285 = arith.constant 0 : index
    %c172 = arith.constant 172 : index
    %201 = vector.load %arg1[%c0_283, %c0_284, %c0_285, %c172] : memref<1x1x8x600xbf16, #tpu.memory_space<vmem>>, vector<1x1x8x384xbf16>
    %202 = vector.shape_cast %201 : vector<1x1x8x384xbf16> to vector<8x384xbf16>
    %c536 = arith.constant 536 : index
    %c0_286 = arith.constant 0 : index
    %203 = vector.load %arg6[%c536, %c0_286] : memref<648x384xbf16, #tpu.memory_space<vmem>>, vector<8x384xbf16>
    tpu.vector_store %arg6[%c536, %c0_286], %202 {strides = array<i32>} : memref<648x384xbf16, #tpu.memory_space<vmem>>, vector<8x384xbf16>,
    %c0_287 = arith.constant 0 : index
    %c0_288 = arith.constant 0 : index
    %c0_289 = arith.constant 0 : index
    %c173 = arith.constant 173 : index
    %204 = vector.load %arg1[%c0_287, %c0_288, %c0_289, %c173] : memref<1x1x8x600xbf16, #tpu.memory_space<vmem>>, vector<1x1x8x384xbf16>
    %205 = vector.shape_cast %204 : vector<1x1x8x384xbf16> to vector<8x384xbf16>
    %c544 = arith.constant 544 : index
    %c0_290 = arith.constant 0 : index
    %206 = vector.load %arg6[%c544, %c0_290] : memref<648x384xbf16, #tpu.memory_space<vmem>>, vector<8x384xbf16>
    tpu.vector_store %arg6[%c544, %c0_290], %205 {strides = array<i32>} : memref<648x384xbf16, #tpu.memory_space<vmem>>, vector<8x384xbf16>,
    %c0_291 = arith.constant 0 : index
    %c0_292 = arith.constant 0 : index
    %c0_293 = arith.constant 0 : index
    %c174 = arith.constant 174 : index
    %207 = vector.load %arg1[%c0_291, %c0_292, %c0_293, %c174] : memref<1x1x8x600xbf16, #tpu.memory_space<vmem>>, vector<1x1x8x384xbf16>
    %208 = vector.shape_cast %207 : vector<1x1x8x384xbf16> to vector<8x384xbf16>
    %c552 = arith.constant 552 : index
    %c0_294 = arith.constant 0 : index
    %209 = vector.load %arg6[%c552, %c0_294] : memref<648x384xbf16, #tpu.memory_space<vmem>>, vector<8x384xbf16>
    tpu.vector_store %arg6[%c552, %c0_294], %208 {strides = array<i32>} : memref<648x384xbf16, #tpu.memory_space<vmem>>, vector<8x384xbf16>,
    %c0_295 = arith.constant 0 : index
    %c0_296 = arith.constant 0 : index
    %c0_297 = arith.constant 0 : index
    %c175 = arith.constant 175 : index
    %210 = vector.load %arg1[%c0_295, %c0_296, %c0_297, %c175] : memref<1x1x8x600xbf16, #tpu.memory_space<vmem>>, vector<1x1x8x384xbf16>
    %211 = vector.shape_cast %210 : vector<1x1x8x384xbf16> to vector<8x384xbf16>
    %c560 = arith.constant 560 : index
    %c0_298 = arith.constant 0 : index
    %212 = vector.load %arg6[%c560, %c0_298] : memref<648x384xbf16, #tpu.memory_space<vmem>>, vector<8x384xbf16>
    tpu.vector_store %arg6[%c560, %c0_298], %211 {strides = array<i32>} : memref<648x384xbf16, #tpu.memory_space<vmem>>, vector<8x384xbf16>,
    %c0_299 = arith.constant 0 : index
    %c0_300 = arith.constant 0 : index
    %c0_301 = arith.constant 0 : index
    %c176_302 = arith.constant 176 : index
    %213 = vector.load %arg1[%c0_299, %c0_300, %c0_301, %c176_302] : memref<1x1x8x600xbf16, #tpu.memory_space<vmem>>, vector<1x1x8x384xbf16>
    %214 = vector.shape_cast %213 : vector<1x1x8x384xbf16> to vector<8x384xbf16>
    %c568 = arith.constant 568 : index
    %c0_303 = arith.constant 0 : index
    %215 = vector.load %arg6[%c568, %c0_303] : memref<648x384xbf16, #tpu.memory_space<vmem>>, vector<8x384xbf16>
    tpu.vector_store %arg6[%c568, %c0_303], %214 {strides = array<i32>} : memref<648x384xbf16, #tpu.memory_space<vmem>>, vector<8x384xbf16>,
    %c0_304 = arith.constant 0 : index
    %c0_305 = arith.constant 0 : index
    %c0_306 = arith.constant 0 : index
    %c192_307 = arith.constant 192 : index
    %216 = vector.load %arg1[%c0_304, %c0_305, %c0_306, %c192_307] : memref<1x1x8x600xbf16, #tpu.memory_space<vmem>>, vector<1x1x8x384xbf16>
    %217 = vector.shape_cast %216 : vector<1x1x8x384xbf16> to vector<8x384xbf16>
    %c576 = arith.constant 576 : index
    %c0_308 = arith.constant 0 : index
    %218 = vector.load %arg6[%c576, %c0_308] : memref<648x384xbf16, #tpu.memory_space<vmem>>, vector<8x384xbf16>
    tpu.vector_store %arg6[%c576, %c0_308], %217 {strides = array<i32>} : memref<648x384xbf16, #tpu.memory_space<vmem>>, vector<8x384xbf16>,
    %c0_309 = arith.constant 0 : index
    %c0_310 = arith.constant 0 : index
    %c0_311 = arith.constant 0 : index
    %c193 = arith.constant 193 : index
    %219 = vector.load %arg1[%c0_309, %c0_310, %c0_311, %c193] : memref<1x1x8x600xbf16, #tpu.memory_space<vmem>>, vector<1x1x8x384xbf16>
    %220 = vector.shape_cast %219 : vector<1x1x8x384xbf16> to vector<8x384xbf16>
    %c584 = arith.constant 584 : index
    %c0_312 = arith.constant 0 : index
    %221 = vector.load %arg6[%c584, %c0_312] : memref<648x384xbf16, #tpu.memory_space<vmem>>, vector<8x384xbf16>
    tpu.vector_store %arg6[%c584, %c0_312], %220 {strides = array<i32>} : memref<648x384xbf16, #tpu.memory_space<vmem>>, vector<8x384xbf16>,
    %c0_313 = arith.constant 0 : index
    %c0_314 = arith.constant 0 : index
    %c0_315 = arith.constant 0 : index
    %c194 = arith.constant 194 : index
    %222 = vector.load %arg1[%c0_313, %c0_314, %c0_315, %c194] : memref<1x1x8x600xbf16, #tpu.memory_space<vmem>>, vector<1x1x8x384xbf16>
    %223 = vector.shape_cast %222 : vector<1x1x8x384xbf16> to vector<8x384xbf16>
    %c592 = arith.constant 592 : index
    %c0_316 = arith.constant 0 : index
    %224 = vector.load %arg6[%c592, %c0_316] : memref<648x384xbf16, #tpu.memory_space<vmem>>, vector<8x384xbf16>
    tpu.vector_store %arg6[%c592, %c0_316], %223 {strides = array<i32>} : memref<648x384xbf16, #tpu.memory_space<vmem>>, vector<8x384xbf16>,
    %c0_317 = arith.constant 0 : index
    %c0_318 = arith.constant 0 : index
    %c0_319 = arith.constant 0 : index
    %c195 = arith.constant 195 : index
    %225 = vector.load %arg1[%c0_317, %c0_318, %c0_319, %c195] : memref<1x1x8x600xbf16, #tpu.memory_space<vmem>>, vector<1x1x8x384xbf16>
    %226 = vector.shape_cast %225 : vector<1x1x8x384xbf16> to vector<8x384xbf16>
    %c600 = arith.constant 600 : index
    %c0_320 = arith.constant 0 : index
    %227 = vector.load %arg6[%c600, %c0_320] : memref<648x384xbf16, #tpu.memory_space<vmem>>, vector<8x384xbf16>
    tpu.vector_store %arg6[%c600, %c0_320], %226 {strides = array<i32>} : memref<648x384xbf16, #tpu.memory_space<vmem>>, vector<8x384xbf16>,
    %c0_321 = arith.constant 0 : index
    %c0_322 = arith.constant 0 : index
    %c0_323 = arith.constant 0 : index
    %c196 = arith.constant 196 : index
    %228 = vector.load %arg1[%c0_321, %c0_322, %c0_323, %c196] : memref<1x1x8x600xbf16, #tpu.memory_space<vmem>>, vector<1x1x8x384xbf16>
    %229 = vector.shape_cast %228 : vector<1x1x8x384xbf16> to vector<8x384xbf16>
    %c608 = arith.constant 608 : index
    %c0_324 = arith.constant 0 : index
    %230 = vector.load %arg6[%c608, %c0_324] : memref<648x384xbf16, #tpu.memory_space<vmem>>, vector<8x384xbf16>
    tpu.vector_store %arg6[%c608, %c0_324], %229 {strides = array<i32>} : memref<648x384xbf16, #tpu.memory_space<vmem>>, vector<8x384xbf16>,
    %c0_325 = arith.constant 0 : index
    %c0_326 = arith.constant 0 : index
    %c0_327 = arith.constant 0 : index
    %c197 = arith.constant 197 : index
    %231 = vector.load %arg1[%c0_325, %c0_326, %c0_327, %c197] : memref<1x1x8x600xbf16, #tpu.memory_space<vmem>>, vector<1x1x8x384xbf16>
    %232 = vector.shape_cast %231 : vector<1x1x8x384xbf16> to vector<8x384xbf16>
    %c616 = arith.constant 616 : index
    %c0_328 = arith.constant 0 : index
    %233 = vector.load %arg6[%c616, %c0_328] : memref<648x384xbf16, #tpu.memory_space<vmem>>, vector<8x384xbf16>
    tpu.vector_store %arg6[%c616, %c0_328], %232 {strides = array<i32>} : memref<648x384xbf16, #tpu.memory_space<vmem>>, vector<8x384xbf16>,
    %c0_329 = arith.constant 0 : index
    %c0_330 = arith.constant 0 : index
    %c0_331 = arith.constant 0 : index
    %c198 = arith.constant 198 : index
    %234 = vector.load %arg1[%c0_329, %c0_330, %c0_331, %c198] : memref<1x1x8x600xbf16, #tpu.memory_space<vmem>>, vector<1x1x8x384xbf16>
    %235 = vector.shape_cast %234 : vector<1x1x8x384xbf16> to vector<8x384xbf16>
    %c624 = arith.constant 624 : index
    %c0_332 = arith.constant 0 : index
    %236 = vector.load %arg6[%c624, %c0_332] : memref<648x384xbf16, #tpu.memory_space<vmem>>, vector<8x384xbf16>
    tpu.vector_store %arg6[%c624, %c0_332], %235 {strides = array<i32>} : memref<648x384xbf16, #tpu.memory_space<vmem>>, vector<8x384xbf16>,
    %c0_333 = arith.constant 0 : index
    %c0_334 = arith.constant 0 : index
    %c0_335 = arith.constant 0 : index
    %c199 = arith.constant 199 : index
    %237 = vector.load %arg1[%c0_333, %c0_334, %c0_335, %c199] : memref<1x1x8x600xbf16, #tpu.memory_space<vmem>>, vector<1x1x8x384xbf16>
    %238 = vector.shape_cast %237 : vector<1x1x8x384xbf16> to vector<8x384xbf16>
    %c632 = arith.constant 632 : index
    %c0_336 = arith.constant 0 : index
    %239 = vector.load %arg6[%c632, %c0_336] : memref<648x384xbf16, #tpu.memory_space<vmem>>, vector<8x384xbf16>
    tpu.vector_store %arg6[%c632, %c0_336], %238 {strides = array<i32>} : memref<648x384xbf16, #tpu.memory_space<vmem>>, vector<8x384xbf16>,
    %c0_337 = arith.constant 0 : index
    %c0_338 = arith.constant 0 : index
    %c0_339 = arith.constant 0 : index
    %c200_340 = arith.constant 200 : index
    %240 = vector.load %arg1[%c0_337, %c0_338, %c0_339, %c200_340] : memref<1x1x8x600xbf16, #tpu.memory_space<vmem>>, vector<1x1x8x384xbf16>
    %241 = vector.shape_cast %240 : vector<1x1x8x384xbf16> to vector<8x384xbf16>
    %c640 = arith.constant 640 : index
    %c0_341 = arith.constant 0 : index
    %242 = vector.load %arg6[%c640, %c0_341] : memref<648x384xbf16, #tpu.memory_space<vmem>>, vector<8x384xbf16>
    tpu.vector_store %arg6[%c640, %c0_341], %241 {strides = array<i32>} : memref<648x384xbf16, #tpu.memory_space<vmem>>, vector<8x384xbf16>,
    %c0_342 = arith.constant 0 : index
    %c0_343 = arith.constant 0 : index
    %c0_344 = arith.constant 0 : index
    %243 = vector.load %arg2[%c0_342, %c0_343, %c0_344] : memref<1x3x648xbf16, #tpu.memory_space<vmem>>, vector<1x3x648xbf16>
    %244 = vector.shape_cast %243 : vector<1x3x648xbf16> to vector<3x648xbf16>
    %c0_345 = arith.constant 0 : index
    %c0_346 = arith.constant 0 : index
    %245 = vector.load %arg6[%c0_345, %c0_346] : memref<648x384xbf16, #tpu.memory_space<vmem>>, vector<648x384xbf16>
    %cst = arith.constant dense<0.000000e+00> : vector<3x384xf32>
    %246 = tpu.matmul %244, %245, %cst {dimension_numbers = #tpu.dot_dimension_numbers<[1], [0], [0], [1], [0, 0, 1, 1], [], []>} : vector<3x648xbf16>, vector<648x384xbf16>, vector<3x384xf32> -> vector<3x384xf32>
    %c0_347 = arith.constant 0 : index
    %c0_348 = arith.constant 0 : index
    %247 = vector.load %arg3[%c0_347, %c0_348] : memref<3x1xf32, #tpu.memory_space<vmem>>, vector<3x1xf32>
    %248 = vector.broadcast %247 : vector<3x1xf32> to vector<3x384xf32>
    %249 = arith.addf %246, %248 : vector<3x384xf32>
    %250 = arith.truncf %249 : vector<3x384xf32> to vector<3x384xbf16>
    %c0_349 = arith.constant 0 : index
    %c0_350 = arith.constant 0 : index
    %c0_351 = arith.constant 0 : index
    %251 = vector.load %arg5[%c0_349, %c0_350, %c0_351] : memref<1x3x384xbf16, #tpu.memory_space<vmem>>, vector<1x3x384xbf16>
    %252 = vector.shape_cast %251 : vector<1x3x384xbf16> to vector<3x384xbf16>
    %253 = vector.shape_cast %250 : vector<3x384xbf16> to vector<1x3x384xbf16>
    tpu.vector_store %arg5[%c0_349, %c0_350, %c0_351], %253 {strides = array<i32>} : memref<1x3x384xbf16, #tpu.memory_space<vmem>>, vector<1x3x384xbf16>,
    return
  }
  func.func @transform_0(%arg0: i32) -> (i32, i32, i32, i32) {
    %c0_i32 = arith.constant 0 : i32
    %c0_i32_0 = arith.constant 0 : i32
    %c0_i32_1 = arith.constant 0 : i32
    %c0_i32_2 = arith.constant 0 : i32
    return %arg0, %c0_i32, %c0_i32_0, %c0_i32_1 : i32, i32, i32, i32
  }
  func.func @transform_1(%arg0: i32) -> (i32, i32, i32) {
    %c0_i32 = arith.constant 0 : i32
    %c0_i32_0 = arith.constant 0 : i32
    %c0_i32_1 = arith.constant 0 : i32
    %c0_i32_2 = arith.constant 0 : i32
    return %c0_i32, %c0_i32_0, %c0_i32_1 : i32, i32, i32
  }
  func.func @transform_2(%arg0: i32) -> (i32, i32) {
    %c0_i32 = arith.constant 0 : i32
    %c0_i32_0 = arith.constant 0 : i32
    %c0_i32_1 = arith.constant 0 : i32
    return %c0_i32, %c0_i32_0 : i32, i32
  }
  func.func @transform_3(%arg0: i32) -> (i32, i32) {
    %c0_i32 = arith.constant 0 : i32
    %c0_i32_0 = arith.constant 0 : i32
    %c0_i32_1 = arith.constant 0 : i32
    return %c0_i32, %c0_i32_0 : i32, i32
  }
  func.func @transform_4(%arg0: i32) -> (i32, i32, i32) {
    %c0_i32 = arith.constant 0 : i32
    %c0_i32_0 = arith.constant 0 : i32
    %c0_i32_1 = arith.constant 0 : i32
    return %arg0, %c0_i32, %c0_i32_0 : i32, i32, i32
  }
}

</mosaic_0001>

<bundles_post_ra>
// kernel: transform_net_forward.17
= control target key start
LH: loop header
LB: loop body
LE: loop exit
PB: predicated region body
PF: predicated region fallthrough
CT: control target
= control target key end

     0   :  { %s515_s15 = smov 0   ;;  %s555_s0 = inlined_call_operand.vmem [shape: bf16[2,4,8,90], index: 0, kind: input, shape index: {}]   ;;  %s556_s1 = inlined_call_operand.vmem [shape: bf16[1,8,72], index: 1, kind: input, shape index: {}]   ;;  %s557_s2 = inlined_call_operand.vmem [shape: f32[8,1], index: 2, kind: input, shape index: {}]   ;;  %s558_s3 = inlined_call_operand.vmem [shape: f32[1,72], index: 3, kind: input, shape index: {}]   ;;  %s559_s4 = inlined_call_operand.vmem [shape: bf16[2,8,72], index: 4, kind: output, shape index: {}]  }
   0x1 LB: > { %s410_s16 = sadd.s32 4294967295, %s482_s15   ;;  %p414_p0 = scmp.ge.s32.totalorder %s482_s15, 1  ;;  %s482_s15 = sphi %s515_s15, %s14_s15  }
   0x2   : > { %p162_p1 = scmp.lt.s32.totalorder %s482_s15, 3 }
   0x4   : > { %p163_p2 = pnand %p414_p0, %p162_p1 }
   0x5   : > { %p187_p3 = scmp.lt.s32.totalorder (!%p163_p2), %s410_s16, 1  ;;  %s485_s21 = smov (!%p163_p2), 118  }
   0x6   : > { %166 = sbr.rel (%p163_p2) target bundleno = 525 (0x20d), region = 36  ;;  %s486_s22 = smov (!%p163_p2), 119  }
   0x7   : > { %s487_s23 = smov (!%p163_p2), 127  }
   0xb   : > { %v484_v0 = vmov 0.0   ;;  %s561_s16 = smov (!%p187_p3, %s410_s16), 1  ;;  %vm198_vm0 = vcmask 584704   ;;  %vm488_vm1 = vmmov 0   ;;  %v249_v10 = vld [vmem:[%s557_s2] sm:$0xff]  ;;  %v489_v11 = vmov 0  }
   0xc   : > { %439 = vmatprep.subr.bf16.mxu0 %v484_v0  ;;  %s432_s17 = sshll.u32 %s561_s16, 4  ;;  %449 = vmatprep.mubr.msk.bf16.mxu0 %vm488_vm1, %v484_v0  ;;  %vm286_vm2 = vcmask 1043456   ;;  %v239_v23 = vld [vmem:[%s556_s1] sm:$0xf]  ;;  %vm282_vm3 = vcmask 588800   ;;  %s417_s30 = sshll.u32 %s561_s16, 2 }
   0xd   : > { %s191_s20 = scalar_lea.vmem %s555_s0, %s432_s17  ;;  %467 = vset.pattern.permute.xlu1 %v489_v11  ;;  %468 = vset.pattern.permute.xlu0 %v489_v11  ;;  %v429_v26 = vld [vmem:[%s558_s3] ss:$0 sm:$0xff]  ;;  %s195_s7 = scalar_lea.vmem %s559_s4, %s417_s30 }
   0xe   : > { %v233_v1 = vld [vmem:[%s191_s20] sm:$0xf]  ;;  %v422_v2 = vld [vmem:[%s191_s20 + $0x4] sm:$0xf]  ;;  %v421_v4 = vld [vmem:[%s191_s20 + $0x8] sm:$0xf] }
   0xf   : > { %235 = vrot.lane.b32.xlu0 %v233_v1, %s485_s21  ;;  %229 = vrot.lane.b32.xlu1 %v422_v2, %s486_s22  ;;  %v221_v3 = vld [vmem:[%s191_s20] sm:$0xf]  ;;  %v420_v5 = vld [vmem:[%s191_s20 + $0xc] sm:$0xf] }
  0x10   : > { %v419_v6 = vld [vmem:[%s191_s20 + $0x8] sm:$0xf]  ;;  %214 = vst.msk [vmem:[#allocation2 + $0x10] sm:$0xf] %vm198_vm0, %v420_v5  ;;  %v197_v7 = vld [vmem:[%s191_s20] sm:$0xf] }
  0x11   : > { %211 = vst.msk [vmem:[#allocation2 + $0xc] sm:$0xf] %vm198_vm0, %v419_v6  ;;  %v418_v8 = vld [vmem:[%s191_s20 + $0x4] sm:$0xf]  ;;  %199 = vst.msk [vmem:[#allocation2] sm:$0xf] %vm198_vm0, %v197_v7 }
  0x12   : > { %202 = vst.msk [vmem:[#allocation2 + $0x4] sm:$0xf] %vm198_vm0, %v418_v8  ;;  %v203_v9 = vld [vmem:[%s191_s20] sm:$0xf] }
  0x13   : > { %223 = vrot.lane.b32.xlu0 %v221_v3, %s486_s22  ;;  %217 = vrot.lane.b32.xlu1 %v421_v4, %s487_s23 }
  0x17   : > { %205 = vrot.lane.b32.xlu0 %v203_v9, %s487_s23  ;;  %252 = vperm.xlu1 %467, %v249_v10  }
  0x19   : > { %v473_v22 = vld [vmem:[#allocation2] sm:$0xff]  }
  0x81   : > { %v236_v12 = vpop.permute.xlu0 %235  ;;  %v230_v13 = vpop.permute.xlu1 %229 }
  0x82   : > { %238 = vst.msk [vmem:[#allocation2 + $0x20] sm:$0xf] %vm198_vm0, %v236_v12  ;;  %232 = vst.msk [vmem:[#allocation2 + $0x1c] sm:$0xf] %vm198_vm0, %v230_v13 }
  0x85   : > { %v224_v14 = vpop.permute.xlu0 %223  ;;  %v218_v15 = vpop.permute.xlu1 %217 }
  0x86   : > { %226 = vst.msk [vmem:[#allocation2 + $0x18] sm:$0xf] %vm198_vm0, %v224_v14  ;;  %220 = vst.msk [vmem:[#allocation2 + $0x14] sm:$0xf] %vm198_vm0, %v218_v15 }
  0x89   : > { %v469_v16 = vld [vmem:[#allocation2 + $0x20] ss:$0 sps:$4 sm:$0xff]   ;;  %v206_v17 = vpop.permute.xlu0 %205 }
  0x8a   : > { %208 = vst.msk [vmem:[#allocation2 + $0x8] sm:$0xf] %vm198_vm0, %v206_v17  ;;  %v288_v18 = vsel %vm286_vm2, %v469_v16, 0 }
  0x8b   : > { %440 = vmatpush3.bf16.msra.mxu0 %v288_v18 }
  0x8c   : > { %441 = vmatprep.subr.bf16.mxu0 %v484_v0 }
  0x8d   : > { %v470_v19 = vld [vmem:[#allocation2 + $0x18] sm:$0xff]   ;;  %v471_v20 = vld [vmem:[#allocation2 + $0x10] sm:$0xff]  }
  0x8f   : > { %442 = vmatpush3.bf16.msra.mxu0 %v470_v19 }
  0x90   : > { %443 = vmatprep.subr.bf16.mxu0 %v484_v0 }
  0x91   : > { %v472_v21 = vld [vmem:[#allocation2 + $0x8] sm:$0xff]  }
  0x92   : > { %v253_v24 = vpop.permute.xlu1 %252 }
  0x93   : > { %444 = vmatpush3.bf16.msra.mxu0 %v471_v20 }
  0x94   : > { %445 = vmatprep.subr.bf16.mxu0 %v484_v0 }
  0x97   : > { %446 = vmatpush3.bf16.msra.mxu0 %v472_v21 }
  0x98   : > { %447 = vmatprep.subr.bf16.mxu0 %v484_v0 }
  0x9b   : > { %448 = vmatpush3.bf16.msra.mxu0 %v473_v22 }
  0x9e   : > { %450 = vmatmul.mubr.msk.bf16.vlgmr.msra.gmra.mxu0 %vm282_vm3, %v239_v23 }
 0x15e   : > { %v324_v25 = vpop.f32.mrf.mxu0 }
 0x15f   : > { %v325_v27 = vadd.f32 %v324_v25, %v253_v24 }
 0x160   : > { %v451_v28 = vpop.f32.mrf.mxu0 }
 0x161   : > { %v337_v29 = vmul.f32 %v429_v26, %v325_v27 }
 0x162   : > { %v327_v30 = vpop.f32.mrf.mxu0 }
 0x163   : > { %v338_v31 = vsel %vm282_vm3, %v337_v29, 0.0  ;;  %v342_v32 = vmul.f32 %v337_v29, %v337_v29 }
 0x164   : > { %339 = vadd.xlane.f32.xlu0 %v338_v31  ;;  %v452_v33 = vpop.f32.mrf.mxu0 }
 0x165   : > { %v343_v34 = vsel %vm282_vm3, %v342_v32, 0.0 }
 0x166   : > { %344 = vadd.xlane.f32.xlu1 %v343_v34 }
 0x1ed   : > { %v340_v35 = vpop.xlane.xlu0 %339 }
 0x1ee   : > { %v341_v36 = vmul.f32 0.015625, %v340_v35 }
 0x1ef   : > { %v345_v37 = vpop.xlane.xlu1 %344 }
 0x1f0   : > { %v347_v38 = vmul.f32 %v341_v36, %v341_v36  ;;  %v346_v39 = vmul.f32 0.015625, %v345_v37  ;;  %v350_v43 = vsub.f32 %v325_v27, %v341_v36 }
 0x1f2   : > { %v348_v40 = vsub.f32 %v346_v39, %v347_v38 }
 0x1f4   : > { %v349_v41 = vmax.f32 %v348_v40, 0.0 }
 0x1f6   : > { %v351_v42 = vadd.f32 1e-05, %v349_v41 }
 0x1f8   : > { %474 = vrsqrt.f32 %v351_v42 }
 0x205   : > { %v475_v44 = vpop.eup %474 }
 0x206   : > { %v353_v45 = vmul.f32 %v475_v44, %v350_v43 }
 0x208   : > { %v354_v46 = vmax.f32 %v353_v45, 0.0 }
 0x20a   : > { %v355_v47 = vpack.c.bf16 %v354_v46, %v354_v46 }
 0x20c   : > { %356 = vst.msk [vmem:[%s195_s7] sm:$0xf] %vm198_vm0, %v355_v47 }
 0x20d PF: > { %s14_s15 = sadd.s32 1, %s482_s15  }
 0x20e   : > { %p11_p4 = scmp.ge.s32.totalorder %s14_s15, 4  }
 0x210   :  { %13 = sbr.rel (!%p11_p4) target bundleno = 1 (0x1), region = 69 }

// kernel: transform_net_forward.16
= control target key start
LH: loop header
LB: loop body
LE: loop exit
PB: predicated region body
PF: predicated region fallthrough
CT: control target
= control target key end

     0   :  { %s3293_s15 = smov 0   ;;  %s3698_s0 = inlined_call_operand.vmem [shape: bf16[2,1,8,600], index: 0, kind: input, shape index: {}]   ;;  %s3699_s1 = inlined_call_operand.vmem [shape: bf16[1,4,648], index: 1, kind: input, shape index: {}]   ;;  %s3700_s2 = inlined_call_operand.vmem [shape: f32[4,1], index: 2, kind: input, shape index: {}]   ;;  %s3701_s3 = inlined_call_operand.vmem [shape: f32[1,384], index: 3, kind: input, shape index: {}]   ;;  %s3702_s4 = inlined_call_operand.vmem [shape: bf16[2,4,384], index: 4, kind: output, shape index: {}]  }
   0x1 LB: > { %s2866_s16 = sadd.s32 4294967295, %s3188_s15   ;;  %p2870_p0 = scmp.ge.s32.totalorder %s3188_s15, 1  ;;  %s3188_s15 = sphi %s3293_s15, %s14_s15  }
   0x2   : > { %p162_p1 = scmp.lt.s32.totalorder %s3188_s15, 3 }
   0x4   : > { %p163_p2 = pnand %p2870_p0, %p162_p1 }
   0x5   : > { %p188_p3 = scmp.lt.s32.totalorder (!%p163_p2), %s2866_s16, 1  ;;  %s3190_s21 = smov (!%p163_p2), 98  }
   0x6   : > { %166 = sbr.rel (%p163_p2) target bundleno = 862 (0x35e), region = 36  ;;  %s3191_s22 = smov (!%p163_p2), 99  }
   0x7   : > { %s3192_s23 = smov (!%p163_p2), 7   ;;  %s3193_s24 = smov (!%p163_p2), 6  }
   0x8   : > { %s3194_s25 = smov (!%p163_p2), 101   ;;  %s3195_s26 = smov (!%p163_p2), 100  }
   0x9   : > { %s3196_s27 = smov (!%p163_p2), 24   ;;  %s3197_s28 = smov (!%p163_p2), 8  }
   0xa   : > { %s3198_s29 = smov (!%p163_p2), 103   ;;  %s3199_s30 = smov (!%p163_p2), 102  }
   0xb   : > { %s3704_s16 = smov (!%p188_p3, %s2866_s16), 1  ;;  %s3200_s5 = smov 26   ;;  %vm213_vm0 = vcmask 1043456   ;;  %vm467_vm1 = vcmask 801792   ;;  %vm449_vm2 = vcmask 809984   ;;  %vm1025_vm3 = vcmask 56320  }
   0xc   : > { %s3047_s17 = smul.u32 20, %s3704_s16  ;;  %s3201_s6 = smov 25   ;;  %vm1043_vm4 = vcmask 48128   ;;  %vm413_vm5 = vcmask 826368   ;;  %vm431_vm6 = vcmask 818176   ;;  %vm989_vm7 = vcmask 195584  }
   0xd   : > { %s3202_s7 = smov 120   ;;  %s3203_s8 = smov 104   ;;  %vm1007_vm8 = vcmask 64512   ;;  %vm377_vm9 = vcmask 842752   ;;  %vm395_vm10 = vcmask 834560   ;;  %vm953_vm11 = vcmask 211968  }
   0xe   : > { %s3307_s20 = scalar_lea.vmem %s3698_s0, %s3047_s17  ;;  %s3204_s9 = smov 28   ;;  %vm971_vm12 = vcmask 203776   ;;  %vm341_vm13 = vcmask 982016   ;;  %vm359_vm14 = vcmask 850944   ;;  %vm917_vm15 = vcmask 228352  }
   0xf   : > { %v3310_v0 = vld [vmem:[%s3307_s20] sm:$0xff]  ;;  %v3315_v1 = vld [vmem:[%s3307_s20 + $0x8] sm:$0xff]  ;;  %s3205_s10 = smov 27   ;;  %s3206_s11 = smov 122  }
  0x10   : > { %460 = vrot.lane.b32.xlu1 %v3310_v0, %s3190_s21  ;;  %442 = vrot.lane.b32.xlu0 %v3310_v0, %s3191_s22  ;;  %s3207_s12 = smov 121   ;;  %s3208_s13 = smov 30   ;;  %v3356_v2 = vld [vmem:[%s3307_s20] sm:$0xff]  ;;  %v200_v3 = vld [vmem:[%s3307_s20 + $0x8] sm:$0xf] }
  0x11   : > { %s3209_s14 = smov 29   ;;  %201 = vst [vmem:[#allocation2] sm:$0xff] %v3356_v2  ;;  %s3210_s17 = smov 124   ;;  %202 = vst [vmem:[#allocation2 + $0x8] sm:$0xf] %v200_v3  ;;  %v1574_v12 = vld [vmem:[%s3307_s20 + $0x4] sm:$0xff] }
  0x12   : > { %s3211_s18 = smov 123   ;;  %s3212_s19 = smov 32   ;;  %1142 = vst [vmem:[#allocation2 + $0x27c] sm:$0xff] %v1574_v12  ;;  %v3397_v32 = vld [vmem:[%s3307_s20 + $0xc] sm:$0xff]  ;;  %v3401_v35 = vld [vmem:[%s3307_s20 + $0x4] sm:$0xff] }
  0x14   : > { %462 = vrot.lane.b32.xlu1 %v3315_v1, %s3190_s21  ;;  %444 = vrot.lane.b32.xlu0 %v3315_v1, %s3191_s22  ;;  %s3213_s21 = smov 31   ;;  %s3214_s22 = smov 126  }
  0x18   : > { %1020 = vrot.lane.b32.xlu1 %v3315_v1, %s3192_s23  ;;  %1018 = vrot.lane.b32.xlu0 %v3310_v0, %s3192_s23  ;;  %s3215_s23 = smov 125  }
  0x1c   : > { %1038 = vrot.lane.b32.xlu1 %v3315_v1, %s3193_s24  ;;  %1036 = vrot.lane.b32.xlu0 %v3310_v0, %s3193_s24  ;;  %s3216_s24 = smov 49  }
  0x20   : > { %408 = vrot.lane.b32.xlu1 %v3315_v1, %s3194_s25  ;;  %406 = vrot.lane.b32.xlu0 %v3310_v0, %s3194_s25  ;;  %s3217_s25 = smov 48  }
  0x24   : > { %426 = vrot.lane.b32.xlu1 %v3315_v1, %s3195_s26  ;;  %424 = vrot.lane.b32.xlu0 %v3310_v0, %s3195_s26  ;;  %s3218_s26 = smov 127  }
  0x28   : > { %984 = vrot.lane.b32.xlu1 %v3315_v1, %s3196_s27  ;;  %982 = vrot.lane.b32.xlu0 %v3310_v0, %s3196_s27  ;;  %s3219_s27 = smov 51  }
  0x2c   : > { %1002 = vrot.lane.b32.xlu1 %v3315_v1, %s3197_s28  ;;  %1000 = vrot.lane.b32.xlu0 %v3310_v0, %s3197_s28  ;;  %s3220_s28 = smov 50  }
  0x30   : > { %372 = vrot.lane.b32.xlu1 %v3315_v1, %s3198_s29  ;;  %370 = vrot.lane.b32.xlu0 %v3310_v0, %s3198_s29  ;;  %s3221_s29 = smov 53  }
  0x34   : > { %390 = vrot.lane.b32.xlu1 %v3315_v1, %s3199_s30  ;;  %388 = vrot.lane.b32.xlu0 %v3310_v0, %s3199_s30  ;;  %s3222_s30 = smov 52  }
  0x38   : > { %948 = vrot.lane.b32.xlu1 %v3315_v1, %s3200_s5  ;;  %946 = vrot.lane.b32.xlu0 %v3310_v0, %s3200_s5  ;;  %s3223_s5 = smov 88  }
  0x3c   : > { %966 = vrot.lane.b32.xlu1 %v3315_v1, %s3201_s6  ;;  %964 = vrot.lane.b32.xlu0 %v3310_v0, %s3201_s6  ;;  %s3224_s6 = smov 55  }
  0x40   : > { %336 = vrot.lane.b32.xlu1 %v3315_v1, %s3202_s7  ;;  %334 = vrot.lane.b32.xlu0 %v3310_v0, %s3202_s7  ;;  %s3225_s7 = smov 54  }
  0x44   : > { %354 = vrot.lane.b32.xlu1 %v3315_v1, %s3203_s8  ;;  %352 = vrot.lane.b32.xlu0 %v3310_v0, %s3203_s8 }
  0x48   : > { %912 = vrot.lane.b32.xlu1 %v3315_v1, %s3204_s9  ;;  %910 = vrot.lane.b32.xlu0 %v3310_v0, %s3204_s9  ;;  %s3227_s9 = smov 105  }
  0x4c   : > { %930 = vrot.lane.b32.xlu1 %v3315_v1, %s3205_s10  ;;  %928 = vrot.lane.b32.xlu0 %v3310_v0, %s3205_s10  ;;  %s3228_s10 = smov 72  }
  0x50   : > { %300 = vrot.lane.b32.xlu1 %v3315_v1, %s3206_s11  ;;  %298 = vrot.lane.b32.xlu0 %v3310_v0, %s3206_s11  ;;  %s3229_s11 = smov 56  }
  0x54   : > { %318 = vrot.lane.b32.xlu1 %v3315_v1, %s3207_s12  ;;  %316 = vrot.lane.b32.xlu0 %v3310_v0, %s3207_s12  ;;  %s3230_s12 = smov 108  }
  0x58   : > { %876 = vrot.lane.b32.xlu1 %v3315_v1, %s3208_s13  ;;  %874 = vrot.lane.b32.xlu0 %v3310_v0, %s3208_s13  ;;  %s3231_s13 = smov 107  }
  0x5c   : > { %894 = vrot.lane.b32.xlu1 %v3315_v1, %s3209_s14  ;;  %892 = vrot.lane.b32.xlu0 %v3310_v0, %s3209_s14  ;;  %s3232_s14 = smov 74  }
  0x60   : > { %264 = vrot.lane.b32.xlu1 %v3315_v1, %s3210_s17  ;;  %262 = vrot.lane.b32.xlu0 %v3310_v0, %s3210_s17  ;;  %s3233_s17 = smov 73  }
  0x64   : > { %282 = vrot.lane.b32.xlu1 %v3315_v1, %s3211_s18  ;;  %280 = vrot.lane.b32.xlu0 %v3310_v0, %s3211_s18  ;;  %s3234_s18 = smov 110  }
  0x68   : > { %840 = vrot.lane.b32.xlu1 %v3315_v1, %s3212_s19  ;;  %838 = vrot.lane.b32.xlu0 %v3310_v0, %s3212_s19  ;;  %s3235_s19 = smov 109  }
  0x6c   : > { %858 = vrot.lane.b32.xlu1 %v3315_v1, %s3213_s21  ;;  %856 = vrot.lane.b32.xlu0 %v3310_v0, %s3213_s21  ;;  %s3236_s21 = smov 76  }
  0x70   : > { %228 = vrot.lane.b32.xlu1 %v3315_v1, %s3214_s22  ;;  %226 = vrot.lane.b32.xlu0 %v3310_v0, %s3214_s22  ;;  %s3237_s22 = smov 75  }
  0x74   : > { %246 = vrot.lane.b32.xlu1 %v3315_v1, %s3215_s23  ;;  %244 = vrot.lane.b32.xlu0 %v3310_v0, %s3215_s23  ;;  %s3238_s23 = smov 112  }
  0x78   : > { %804 = vrot.lane.b32.xlu1 %v3315_v1, %s3216_s24  ;;  %802 = vrot.lane.b32.xlu0 %v3310_v0, %s3216_s24  ;;  %s3239_s24 = smov 111  }
  0x7c   : > { %822 = vrot.lane.b32.xlu1 %v3315_v1, %s3217_s25  ;;  %820 = vrot.lane.b32.xlu0 %v3310_v0, %s3217_s25  ;;  %s3240_s25 = smov 78  }
  0x80   : > { %209 = vrot.lane.b32.xlu1 %v3315_v1, %s3218_s26  ;;  %207 = vrot.lane.b32.xlu0 %v3310_v0, %s3218_s26  ;;  %s3241_s26 = smov 77  }
  0x82   : > { %v461_v4 = vpop.permute.xlu1 %460  ;;  %v443_v5 = vpop.permute.xlu0 %442 }
  0x83   : > { %v464_v8 = vrot.slane %v461_v4, 4  ;;  %v446_v9 = vrot.slane %v443_v5, 4 }
  0x84   : > { %768 = vrot.lane.b32.xlu1 %v3315_v1, %s3219_s27  ;;  %766 = vrot.lane.b32.xlu0 %v3310_v0, %s3219_s27  ;;  %s3242_s27 = smov 1  }
  0x86   : > { %v463_v6 = vpop.permute.xlu1 %462  ;;  %v445_v7 = vpop.permute.xlu0 %444 }
  0x87   : > { %v465_v10 = vrot.slane %v463_v6, 4  ;;  %v447_v11 = vrot.slane %v445_v7, 4 }
  0x88   : > { %786 = vrot.lane.b32.xlu1 %v3315_v1, %s3220_s28  ;;  %784 = vrot.lane.b32.xlu0 %v3310_v0, %s3220_s28  ;;  %s3243_s28 = smov 80  }
  0x89   : > { %v466_v13 = vsel %vm213_vm0, %v464_v8, %v465_v10  ;;  %v469_v14 = vsel %vm467_vm1, %v463_v6, %v465_v10  ;;  %v448_v15 = vsel %vm213_vm0, %v446_v9, %v447_v11  ;;  %v451_v16 = vsel %vm449_vm2, %v445_v7, %v447_v11 }
  0x8a   : > { %v468_v17 = vsel %vm467_vm1, %v461_v4, %v466_v13  ;;  %473 = vst [vmem:[#allocation2 + $0xbc] sm:$0xf] %v469_v14  ;;  %v450_v18 = vsel %vm449_vm2, %v443_v5, %v448_v15  ;;  %455 = vst [vmem:[#allocation2 + $0xb0] sm:$0xf] %v451_v16  ;;  %v1021_v19 = vpop.permute.xlu1 %1020  ;;  %v1019_v20 = vpop.permute.xlu0 %1018  ;;  %vm935_vm1 = vcmask 220160   ;;  %vm305_vm2 = vcmask 998400  }
  0x8b   : > { %v1023_v21 = vrot.slane %v1021_v19, 4  ;;  %v1022_v22 = vrot.slane %v1019_v20, 4  ;;  %v2896_v23 = vcombine.high %v450_v18, %v468_v17  ;;  %v2895_v24 = vcombine.low %v450_v18, %v468_v17 }
  0x8c   : > { %732 = vrot.lane.b32.xlu1 %v3315_v1, %s3221_s29  ;;  %730 = vrot.lane.b32.xlu0 %v3310_v0, %s3221_s29  ;;  %s3244_s29 = smov 79  }
  0x8d   : > { %v1027_v25 = vsel %vm1025_vm3, %v1021_v19, %v1023_v21  ;;  %v1024_v26 = vsel %vm213_vm0, %v1022_v22, %v1023_v21  ;;  %2491 = vmatprep.subr.bf16.mxu0 %v2896_v23 }
  0x8e   : > { %1031 = vst [vmem:[#allocation2 + $0x230] sm:$0xf] %v1027_v25  ;;  %v1026_v27 = vsel %vm1025_vm3, %v1019_v20, %v1024_v26  ;;  %v1039_v28 = vpop.permute.xlu1 %1038  ;;  %v1037_v29 = vpop.permute.xlu0 %1036  ;;  %2492 = vmatpush1.bf16.msra.mxu0 %v2895_v24  ;;  %vm323_vm3 = vcmask 990208  }
  0x8f   : > { %v1041_v30 = vrot.slane %v1039_v28, 4  ;;  %v1040_v31 = vrot.slane %v1037_v29, 4 }
  0x90   : > { %750 = vrot.lane.b32.xlu1 %v3315_v1, %s3222_s30  ;;  %748 = vrot.lane.b32.xlu0 %v3310_v0, %s3222_s30  ;;  %s3245_s30 = smov 3  }
  0x91   : > { %v1045_v33 = vsel %vm1043_vm4, %v1039_v28, %v1041_v30  ;;  %v1042_v34 = vsel %vm213_vm0, %v1040_v31, %v1041_v30 }
  0x92   : > { %1049 = vst [vmem:[#allocation2 + $0x23c] sm:$0xf] %v1045_v33  ;;  %v1044_v36 = vsel %vm1043_vm4, %v1037_v29, %v1042_v34  ;;  %v409_v37 = vpop.permute.xlu1 %408  ;;  %v407_v38 = vpop.permute.xlu0 %406  ;;  %vm881_vm4 = vcmask 244736  }
  0x93   : > { %v411_v39 = vrot.slane %v409_v37, 4  ;;  %v410_v40 = vrot.slane %v407_v38, 4  ;;  %v2944_v41 = vcombine.high %v1026_v27, %v1044_v36  ;;  %v2943_v42 = vcombine.low %v1026_v27, %v1044_v36 }
  0x94   : > { %1294 = vrot.lane.b32.xlu1 %v3397_v32, %s3203_s8  ;;  %1292 = vrot.lane.b32.xlu0 %v3401_v35, %s3203_s8  ;;  %s3226_s8 = smov 106  }
  0x95   : > { %v415_v43 = vsel %vm413_vm5, %v409_v37, %v411_v39  ;;  %v412_v44 = vsel %vm213_vm0, %v410_v40, %v411_v39  ;;  %2532 = vmatprep.subr.bf16.mxu1 %v2944_v41 }
  0x96   : > { %419 = vst [vmem:[#allocation2 + $0x98] sm:$0xf] %v415_v43  ;;  %v414_v45 = vsel %vm413_vm5, %v407_v38, %v412_v44  ;;  %v427_v46 = vpop.permute.xlu1 %426  ;;  %v425_v47 = vpop.permute.xlu0 %424  ;;  %2533 = vmatpush1.bf16.msra.mxu1 %v2943_v42  ;;  %vm899_vm5 = vcmask 236544  }
  0x97   : > { %v429_v48 = vrot.slane %v427_v46, 4  ;;  %v428_v49 = vrot.slane %v425_v47, 4 }
  0x98   : > { %1311 = vrot.lane.b32.xlu1 %v3397_v32, %s3223_s5  ;;  %1309 = vrot.lane.b32.xlu0 %v3401_v35, %s3223_s5  ;;  %s3246_s5 = smov 2  }
  0x99   : > { %v433_v50 = vsel %vm431_vm6, %v427_v46, %v429_v48  ;;  %v430_v51 = vsel %vm213_vm0, %v428_v49, %v429_v48 }
  0x9a   : > { %437 = vst [vmem:[#allocation2 + $0xa4] sm:$0xf] %v433_v50  ;;  %v432_v52 = vsel %vm431_vm6, %v425_v47, %v430_v51  ;;  %v985_v53 = vpop.permute.xlu1 %984  ;;  %v983_v54 = vpop.permute.xlu0 %982  ;;  %vm269_vm6 = vcmask 1014784  }
  0x9b   : > { %v987_v55 = vrot.slane %v985_v53, 4  ;;  %v986_v56 = vrot.slane %v983_v54, 4  ;;  %v2893_v57 = vcombine.high %v414_v45, %v432_v52  ;;  %v2892_v58 = vcombine.low %v414_v45, %v432_v52 }
  0x9c   : > { %696 = vrot.lane.b32.xlu1 %v3315_v1, %s3224_s6  ;;  %694 = vrot.lane.b32.xlu0 %v3310_v0, %s3224_s6  ;;  %s3247_s6 = smov 97  }
  0x9d   : > { %v991_v59 = vsel %vm989_vm7, %v985_v53, %v987_v55  ;;  %v988_v60 = vsel %vm213_vm0, %v986_v56, %v987_v55  ;;  %2493 = vmatprep.subr.bf16.mxu0 %v2893_v57 }
  0x9e   : > { %995 = vst [vmem:[#allocation2 + $0x218] sm:$0xf] %v991_v59  ;;  %v990_v61 = vsel %vm989_vm7, %v983_v54, %v988_v60  ;;  %v1003_v62 = vpop.permute.xlu1 %1002  ;;  %v1001_v63 = vpop.permute.xlu0 %1000  ;;  %2494 = vmatpush1.bf16.msra.mxu0 %v2892_v58  ;;  %vm287_vm7 = vcmask 1006592  }
  0x9f   : > { %v1005_v3 = vrot.slane %v1003_v62, 4  ;;  %v1004_v4 = vrot.slane %v1001_v63, 4 }
  0xa0   : > { %714 = vrot.lane.b32.xlu1 %v3315_v1, %s3225_s7  ;;  %712 = vrot.lane.b32.xlu0 %v3310_v0, %s3225_s7 }
  0xa1   : > { %v1009_v5 = vsel %vm1007_vm8, %v1003_v62, %v1005_v3  ;;  %v1006_v6 = vsel %vm213_vm0, %v1004_v4, %v1005_v3 }
  0xa2   : > { %1013 = vst [vmem:[#allocation2 + $0x224] sm:$0xf] %v1009_v5  ;;  %v1008_v7 = vsel %vm1007_vm8, %v1001_v63, %v1006_v6  ;;  %v373_v8 = vpop.permute.xlu1 %372  ;;  %v371_v9 = vpop.permute.xlu0 %370 }
  0xa3   : > { %v375_v10 = vrot.slane %v373_v8, 4  ;;  %v374_v11 = vrot.slane %v371_v9, 4  ;;  %v2941_v12 = vcombine.high %v990_v61, %v1008_v7  ;;  %v2940_v13 = vcombine.low %v990_v61, %v1008_v7 }
  0xa4   : > { %1258 = vrot.lane.b32.xlu1 %v3397_v32, %s3226_s8  ;;  %1256 = vrot.lane.b32.xlu0 %v3401_v35, %s3226_s8 }
  0xa5   : > { %v379_v14 = vsel %vm377_vm9, %v373_v8, %v375_v10  ;;  %v376_v15 = vsel %vm213_vm0, %v374_v11, %v375_v10  ;;  %2534 = vmatprep.subr.bf16.mxu1 %v2941_v12 }
  0xa6   : > { %383 = vst [vmem:[#allocation2 + $0x80] sm:$0xf] %v379_v14  ;;  %v378_v16 = vsel %vm377_vm9, %v371_v9, %v376_v15  ;;  %v391_v17 = vpop.permute.xlu1 %390  ;;  %v389_v18 = vpop.permute.xlu0 %388  ;;  %2535 = vmatpush1.bf16.msra.mxu1 %v2940_v13  ;;  %vm845_vm9 = vcmask 261120  }
  0xa7   : > { %v393_v19 = vrot.slane %v391_v17, 4  ;;  %v392_v20 = vrot.slane %v389_v18, 4 }
  0xa8   : > { %1276 = vrot.lane.b32.xlu1 %v3397_v32, %s3227_s9  ;;  %1274 = vrot.lane.b32.xlu0 %v3401_v35, %s3227_s9  ;;  %s3249_s9 = smov 96  }
  0xa9   : > { %v397_v21 = vsel %vm395_vm10, %v391_v17, %v393_v19  ;;  %v394_v22 = vsel %vm213_vm0, %v392_v20, %v393_v19 }
  0xaa   : > { %401 = vst [vmem:[#allocation2 + $0x8c] sm:$0xf] %v397_v21  ;;  %v396_v23 = vsel %vm395_vm10, %v389_v18, %v394_v22  ;;  %v949_v24 = vpop.permute.xlu1 %948  ;;  %v947_v25 = vpop.permute.xlu0 %946  ;;  %vm863_vm10 = vcmask 252928  }
  0xab   : > { %v951_v26 = vrot.slane %v949_v24, 4  ;;  %v950_v27 = vrot.slane %v947_v25, 4  ;;  %v2890_v28 = vcombine.high %v378_v16, %v396_v23  ;;  %v2889_v29 = vcombine.low %v378_v16, %v396_v23 }
  0xac   : > { %660 = vrot.lane.b32.xlu1 %v3315_v1, %s3228_s10  ;;  %658 = vrot.lane.b32.xlu0 %v3310_v0, %s3228_s10  ;;  %s3250_s10 = smov 5  }
  0xad   : > { %v955_v30 = vsel %vm953_vm11, %v949_v24, %v951_v26  ;;  %v952_v31 = vsel %vm213_vm0, %v950_v27, %v951_v26  ;;  %2495 = vmatprep.subr.bf16.mxu0 %v2890_v28 }
  0xae   : > { %959 = vst [vmem:[#allocation2 + $0x200] sm:$0xf] %v955_v30  ;;  %v954_v33 = vsel %vm953_vm11, %v947_v25, %v952_v31  ;;  %v967_v34 = vpop.permute.xlu1 %966  ;;  %v965_v36 = vpop.permute.xlu0 %964  ;;  %2496 = vmatpush1.bf16.msra.mxu0 %v2889_v29  ;;  %vm233_vm11 = vcmask 1031168  }
  0xaf   : > { %v969_v37 = vrot.slane %v967_v34, 4  ;;  %v968_v38 = vrot.slane %v965_v36, 4 }
  0xb0   : > { %678 = vrot.lane.b32.xlu1 %v3315_v1, %s3229_s11  ;;  %676 = vrot.lane.b32.xlu0 %v3310_v0, %s3229_s11 }
  0xb1   : > { %v973_v39 = vsel %vm971_vm12, %v967_v34, %v969_v37  ;;  %v970_v40 = vsel %vm213_vm0, %v968_v38, %v969_v37 }
  0xb2   : > { %977 = vst [vmem:[#allocation2 + $0x20c] sm:$0xf] %v973_v39  ;;  %v972_v41 = vsel %vm971_vm12, %v965_v36, %v970_v40  ;;  %v337_v42 = vpop.permute.xlu1 %336  ;;  %v335_v43 = vpop.permute.xlu0 %334  ;;  %vm251_vm12 = vcmask 1022976  }
  0xb3   : > { %v339_v44 = vrot.slane %v337_v42, 4  ;;  %v338_v45 = vrot.slane %v335_v43, 4  ;;  %v2938_v46 = vcombine.high %v954_v33, %v972_v41  ;;  %v2937_v47 = vcombine.low %v954_v33, %v972_v41 }
  0xb4   : > { %1222 = vrot.lane.b32.xlu1 %v3397_v32, %s3230_s12  ;;  %1220 = vrot.lane.b32.xlu0 %v3401_v35, %s3230_s12  ;;  %s3251_s12 = smov 4  }
  0xb5   : > { %v343_v48 = vsel %vm341_vm13, %v337_v42, %v339_v44  ;;  %v340_v49 = vsel %vm213_vm0, %v338_v45, %v339_v44  ;;  %2536 = vmatprep.subr.bf16.mxu1 %v2938_v46 }
  0xb6   : > { %347 = vst [vmem:[#allocation2 + $0x68] sm:$0xf] %v343_v48  ;;  %v342_v50 = vsel %vm341_vm13, %v335_v43, %v340_v49  ;;  %v355_v51 = vpop.permute.xlu1 %354  ;;  %v353_v52 = vpop.permute.xlu0 %352  ;;  %2537 = vmatpush1.bf16.msra.mxu1 %v2937_v47  ;;  %vm809_vm13 = vcmask 400384  }
  0xb7   : > { %v357_v53 = vrot.slane %v355_v51, 4  ;;  %v356_v54 = vrot.slane %v353_v52, 4 }
  0xb8   : > { %1240 = vrot.lane.b32.xlu1 %v3397_v32, %s3231_s13  ;;  %1238 = vrot.lane.b32.xlu0 %v3401_v35, %s3231_s13  ;;  %s3252_s13 = smov 58  }
  0xb9   : > { %v361_v55 = vsel %vm359_vm14, %v355_v51, %v357_v53  ;;  %v358_v56 = vsel %vm213_vm0, %v356_v54, %v357_v53 }
  0xba   : > { %365 = vst [vmem:[#allocation2 + $0x74] sm:$0xf] %v361_v55  ;;  %v360_v57 = vsel %vm359_vm14, %v353_v52, %v358_v56  ;;  %v913_v58 = vpop.permute.xlu1 %912  ;;  %v911_v59 = vpop.permute.xlu0 %910 }
  0xbb   : > { %v915_v60 = vrot.slane %v913_v58, 4  ;;  %v914_v61 = vrot.slane %v911_v59, 4  ;;  %v2887_v62 = vcombine.high %v342_v50, %v360_v57  ;;  %v2886_v63 = vcombine.low %v342_v50, %v360_v57 }
  0xbc   : > { %624 = vrot.lane.b32.xlu1 %v3315_v1, %s3232_s14  ;;  %622 = vrot.lane.b32.xlu0 %v3310_v0, %s3232_s14  ;;  %s3254_s14 = smov 60  }
  0xbd   : > { %v919_v3 = vsel %vm917_vm15, %v913_v58, %v915_v60  ;;  %v916_v4 = vsel %vm213_vm0, %v914_v61, %v915_v60  ;;  %2497 = vmatprep.subr.bf16.mxu0 %v2887_v62  ;;  %v3466_v60 = vld [vmem:[%s3307_s20 + $0x8] sm:$0xff] }
  0xbe   : > { %923 = vst [vmem:[#allocation2 + $0x1e8] sm:$0xf] %v919_v3  ;;  %v918_v5 = vsel %vm917_vm15, %v911_v59, %v916_v4  ;;  %v931_v6 = vpop.permute.xlu1 %930  ;;  %v929_v7 = vpop.permute.xlu0 %928  ;;  %2498 = vmatpush1.bf16.msra.mxu0 %v2886_v63  ;;  %v1141_v61 = vld [vmem:[%s3307_s20 + $0xc] sm:$0xf]  ;;  %vm827_vm15 = vcmask 392192  }
  0xbf   : > { %v933_v8 = vrot.slane %v931_v6, 4  ;;  %v932_v9 = vrot.slane %v929_v7, 4  ;;  %1143 = vst [vmem:[#allocation2 + $0x284] sm:$0xf] %v1141_v61 }
  0xc0   : > { %642 = vrot.lane.b32.xlu1 %v3315_v1, %s3233_s17  ;;  %640 = vrot.lane.b32.xlu0 %v3310_v0, %s3233_s17  ;;  %s3255_s17 = smov 59  }
  0xc1   : > { %v937_v10 = vsel %vm935_vm1, %v931_v6, %v933_v8  ;;  %v934_v11 = vsel %vm213_vm0, %v932_v9, %v933_v8 }
  0xc2   : > { %941 = vst [vmem:[#allocation2 + $0x1f4] sm:$0xf] %v937_v10  ;;  %v936_v12 = vsel %vm935_vm1, %v929_v7, %v934_v11  ;;  %v301_v13 = vpop.permute.xlu1 %300  ;;  %v299_v14 = vpop.permute.xlu0 %298  ;;  %vm215_vm1 = vcmask 1039360  }
  0xc3   : > { %v303_v15 = vrot.slane %v301_v13, 4  ;;  %v302_v16 = vrot.slane %v299_v14, 4  ;;  %v2935_v17 = vcombine.high %v918_v5, %v936_v12  ;;  %v2934_v18 = vcombine.low %v918_v5, %v936_v12 }
  0xc4   : > { %1186 = vrot.lane.b32.xlu1 %v3397_v32, %s3234_s18  ;;  %1184 = vrot.lane.b32.xlu0 %v3401_v35, %s3234_s18  ;;  %s3256_s18 = smov 62  }
  0xc5   : > { %v307_v19 = vsel %vm305_vm2, %v301_v13, %v303_v15  ;;  %v304_v20 = vsel %vm213_vm0, %v302_v16, %v303_v15  ;;  %2538 = vmatprep.subr.bf16.mxu1 %v2935_v17 }
  0xc6   : > { %311 = vst [vmem:[#allocation2 + $0x50] sm:$0xf] %v307_v19  ;;  %v306_v21 = vsel %vm305_vm2, %v299_v14, %v304_v20  ;;  %v319_v22 = vpop.permute.xlu1 %318  ;;  %v317_v23 = vpop.permute.xlu0 %316  ;;  %2539 = vmatpush1.bf16.msra.mxu1 %v2934_v18  ;;  %vm773_vm2 = vcmask 416768  }
  0xc7   : > { %v321_v24 = vrot.slane %v319_v22, 4  ;;  %v320_v25 = vrot.slane %v317_v23, 4 }
  0xc8   : > { %1204 = vrot.lane.b32.xlu1 %v3397_v32, %s3235_s19  ;;  %1202 = vrot.lane.b32.xlu0 %v3401_v35, %s3235_s19  ;;  %s3257_s19 = smov 61  }
  0xc9   : > { %v325_v26 = vsel %vm323_vm3, %v319_v22, %v321_v24  ;;  %v322_v27 = vsel %vm213_vm0, %v320_v25, %v321_v24 }
  0xca   : > { %329 = vst [vmem:[#allocation2 + $0x5c] sm:$0xf] %v325_v26  ;;  %v324_v28 = vsel %vm323_vm3, %v317_v23, %v322_v27  ;;  %v877_v29 = vpop.permute.xlu1 %876  ;;  %v875_v30 = vpop.permute.xlu0 %874  ;;  %vm791_vm3 = vcmask 408576  }
  0xcb   : > { %v879_v31 = vrot.slane %v877_v29, 4  ;;  %v878_v33 = vrot.slane %v875_v30, 4  ;;  %v2884_v34 = vcombine.high %v306_v21, %v324_v28  ;;  %v2883_v36 = vcombine.low %v306_v21, %v324_v28 }
  0xcc   : > { %588 = vrot.lane.b32.xlu1 %v3315_v1, %s3236_s21  ;;  %586 = vrot.lane.b32.xlu0 %v3310_v0, %s3236_s21  ;;  %s3258_s21 = smov 64  }
  0xcd   : > { %v883_v37 = vsel %vm881_vm4, %v877_v29, %v879_v31  ;;  %v880_v38 = vsel %vm213_vm0, %v878_v33, %v879_v31  ;;  %2499 = vmatprep.subr.bf16.mxu0 %v2884_v34 }
  0xce   : > { %887 = vst [vmem:[#allocation2 + $0x1d0] sm:$0xf] %v883_v37  ;;  %v882_v39 = vsel %vm881_vm4, %v875_v30, %v880_v38  ;;  %v895_v40 = vpop.permute.xlu1 %894  ;;  %v893_v41 = vpop.permute.xlu0 %892  ;;  %2500 = vmatpush1.bf16.msra.mxu0 %v2883_v36  ;;  %vm737_vm4 = vcmask 433152  }
  0xcf   : > { %v897_v42 = vrot.slane %v895_v40, 4  ;;  %v896_v43 = vrot.slane %v893_v41, 4 }
  0xd0   : > { %606 = vrot.lane.b32.xlu1 %v3315_v1, %s3237_s22  ;;  %604 = vrot.lane.b32.xlu0 %v3310_v0, %s3237_s22  ;;  %s3259_s22 = smov 63  }
  0xd1   : > { %v901_v44 = vsel %vm899_vm5, %v895_v40, %v897_v42  ;;  %v898_v45 = vsel %vm213_vm0, %v896_v43, %v897_v42 }
  0xd2   : > { %905 = vst [vmem:[#allocation2 + $0x1dc] sm:$0xf] %v901_v44  ;;  %v900_v46 = vsel %vm899_vm5, %v893_v41, %v898_v45  ;;  %v265_v47 = vpop.permute.xlu1 %264  ;;  %v263_v48 = vpop.permute.xlu0 %262  ;;  %vm755_vm5 = vcmask 424960  }
  0xd3   : > { %v267_v49 = vrot.slane %v265_v47, 4  ;;  %v266_v50 = vrot.slane %v263_v48, 4  ;;  %v2932_v51 = vcombine.high %v882_v39, %v900_v46  ;;  %v2931_v52 = vcombine.low %v882_v39, %v900_v46 }
  0xd4   : > { %1150 = vrot.lane.b32.xlu1 %v3397_v32, %s3238_s23  ;;  %1148 = vrot.lane.b32.xlu0 %v3401_v35, %s3238_s23  ;;  %s3260_s23 = smov 81  }
  0xd5   : > { %v271_v1 = vsel %vm269_vm6, %v265_v47, %v267_v49  ;;  %v268_v0 = vsel %vm213_vm0, %v266_v50, %v267_v49  ;;  %2540 = vmatprep.subr.bf16.mxu1 %v2932_v51 }
  0xd6   : > { %275 = vst [vmem:[#allocation2 + $0x38] sm:$0xf] %v271_v1  ;;  %v270_v53 = vsel %vm269_vm6, %v263_v48, %v268_v0  ;;  %v283_v54 = vpop.permute.xlu1 %282  ;;  %v281_v55 = vpop.permute.xlu0 %280  ;;  %2541 = vmatpush1.bf16.msra.mxu1 %v2931_v52  ;;  %vm1316_vm6 = vcmask 719872  }
  0xd7   : > { %v285_v56 = vrot.slane %v283_v54, 4  ;;  %v284_v57 = vrot.slane %v281_v55, 4 }
  0xd8   : > { %1168 = vrot.lane.b32.xlu1 %v3397_v32, %s3239_s24  ;;  %1166 = vrot.lane.b32.xlu0 %v3401_v35, %s3239_s24  ;;  %s3261_s24 = smov 83  }
  0xd9   : > { %v289_v58 = vsel %vm287_vm7, %v283_v54, %v285_v56  ;;  %v286_v59 = vsel %vm213_vm0, %v284_v57, %v285_v56 }
  0xda   : > { %293 = vst [vmem:[#allocation2 + $0x44] sm:$0xf] %v289_v58  ;;  %v288_v62 = vsel %vm287_vm7, %v281_v55, %v286_v59  ;;  %v841_v63 = vpop.permute.xlu1 %840  ;;  %v839_v3 = vpop.permute.xlu0 %838  ;;  %vm701_vm7 = vcmask 449536  }
  0xdb   : > { %v843_v4 = vrot.slane %v841_v63, 4  ;;  %v842_v5 = vrot.slane %v839_v3, 4  ;;  %v2881_v6 = vcombine.high %v270_v53, %v288_v62  ;;  %v2880_v7 = vcombine.low %v270_v53, %v288_v62 }
  0xdc   : > { %552 = vrot.lane.b32.xlu1 %v3466_v60, %s3240_s25  ;;  %550 = vrot.lane.b32.xlu0 %v3356_v2, %s3240_s25  ;;  %s3262_s25 = smov 82  }
  0xdd   : > { %v847_v32 = vsel %vm845_vm9, %v841_v63, %v843_v4  ;;  %v844_v35 = vsel %vm213_vm0, %v842_v5, %v843_v4  ;;  %2501 = vmatprep.subr.bf16.mxu0 %v2881_v6  ;;  %v1803_v5 = vlaneseq }
  0xde   : > { %851 = vst [vmem:[#allocation2 + $0x1b8] sm:$0xf] %v847_v32  ;;  %v846_v8 = vsel %vm845_vm9, %v839_v3, %v844_v35  ;;  %v859_v9 = vpop.permute.xlu1 %858  ;;  %v857_v10 = vpop.permute.xlu0 %856  ;;  %2502 = vmatpush1.bf16.msra.mxu0 %v2880_v7  ;;  %v3248_v3 = vmov 1983009808   ;;  %vm1263_vm9 = vcmask 867328  }
  0xdf   : > { %v861_v11 = vrot.slane %v859_v9, 4  ;;  %v860_v12 = vrot.slane %v857_v10, 4  ;;  %v1801_v4 = vunpack.c.l.s4 %v3248_v3 }
  0xe0   : > { %570 = vrot.lane.b32.xlu1 %v3466_v60, %s3241_s26  ;;  %568 = vrot.lane.b32.xlu0 %v3356_v2, %s3241_s26  ;;  %s3263_s26 = smov 85  }
  0xe1   : > { %v865_v13 = vsel %vm863_vm10, %v859_v9, %v861_v11  ;;  %v862_v14 = vsel %vm213_vm0, %v860_v12, %v861_v11  ;;  %v1627_v9 = vld [vmem:[%s3699_s1] sm:$0xff] }
  0xe2   : > { %869 = vst [vmem:[#allocation2 + $0x1c4] sm:$0xf] %v865_v13  ;;  %v864_v15 = vsel %vm863_vm10, %v857_v10, %v862_v14  ;;  %v229_v16 = vpop.permute.xlu1 %228  ;;  %v227_v17 = vpop.permute.xlu0 %226  ;;  %v3502_v10 = vshrl.u32 %v1803_v5, 7  ;;  %v1799_v13 = vcombine.high %v1627_v9, %v1627_v9  ;;  %v3180_v14 = vld [vmem:[#allocation2] sm:$0xff]  ;;  %vm1281_vm10 = vcmask 859136  }
  0xe3   : > { %v231_v18 = vrot.slane %v229_v16, 4  ;;  %v230_v19 = vrot.slane %v227_v17, 4  ;;  %v2929_v20 = vcombine.high %v846_v8, %v864_v15  ;;  %v2928_v21 = vcombine.low %v846_v8, %v864_v15 }
  0xe4   : > { %1128 = vrot.lane.b32.xlu1 %v3466_v60, %s3242_s27  ;;  %1126 = vrot.lane.b32.xlu0 %v3356_v2, %s3242_s27  ;;  %s3264_s27 = smov 84  }
  0xe5   : > { %v235_v22 = vsel %vm233_vm11, %v229_v16, %v231_v18  ;;  %v232_v23 = vsel %vm213_vm0, %v230_v19, %v231_v18  ;;  %2542 = vmatprep.subr.bf16.mxu1 %v2929_v20 }
  0xe6   : > { %239 = vst [vmem:[#allocation2 + $0x20] sm:$0xf] %v235_v22  ;;  %v234_v24 = vsel %vm233_vm11, %v227_v17, %v232_v23  ;;  %v247_v25 = vpop.permute.xlu1 %246  ;;  %v245_v26 = vpop.permute.xlu0 %244  ;;  %2543 = vmatpush1.bf16.msra.mxu1 %v2928_v21  ;;  %vm665_vm11 = vcmask 588800  }
  0xe7   : > { %v249_v27 = vrot.slane %v247_v25, 4  ;;  %v248_v28 = vrot.slane %v245_v26, 4 }
  0xe8   : > { %516 = vrot.lane.b32.xlu1 %v3466_v60, %s3243_s28  ;;  %514 = vrot.lane.b32.xlu0 %v3356_v2, %s3243_s28 }
  0xe9   : > { %v253_v29 = vsel %vm251_vm12, %v247_v25, %v249_v27  ;;  %v250_v30 = vsel %vm213_vm0, %v248_v28, %v249_v27 }
  0xea   : > { %257 = vst [vmem:[#allocation2 + $0x2c] sm:$0xf] %v253_v29  ;;  %v252_v31 = vsel %vm251_vm12, %v245_v26, %v250_v30  ;;  %v805_v33 = vpop.permute.xlu1 %804  ;;  %v803_v34 = vpop.permute.xlu0 %802  ;;  %vm683_vm12 = vcmask 457728  }
  0xeb   : > { %v807_v36 = vrot.slane %v805_v33, 4  ;;  %v806_v37 = vrot.slane %v803_v34, 4  ;;  %v2878_v38 = vcombine.high %v234_v24, %v252_v31  ;;  %v2877_v39 = vcombine.low %v234_v24, %v252_v31 }
  0xec   : > { %534 = vrot.lane.b32.xlu1 %v3466_v60, %s3244_s29  ;;  %532 = vrot.lane.b32.xlu0 %v3356_v2, %s3244_s29  ;;  %s3266_s29 = smov 86  }
  0xed   : > { %v811_v40 = vsel %vm809_vm13, %v805_v33, %v807_v36  ;;  %v808_v41 = vsel %vm213_vm0, %v806_v37, %v807_v36  ;;  %2503 = vmatprep.subr.bf16.mxu0 %v2878_v38 }
  0xee   : > { %815 = vst [vmem:[#allocation2 + $0x1a0] sm:$0xf] %v811_v40  ;;  %v810_v42 = vsel %vm809_vm13, %v803_v34, %v808_v41  ;;  %v823_v43 = vpop.permute.xlu1 %822  ;;  %v821_v44 = vpop.permute.xlu0 %820  ;;  %2504 = vmatpush1.bf16.msra.mxu0 %v2877_v39  ;;  %v3534_v40 = vld [vmem:[%s3307_s20 + $0xc] sm:$0xff]  ;;  %s3253_s20 = smov 57   ;;  %vm1227_vm13 = vcmask 883712  }
  0xef   : > { %v825_v45 = vrot.slane %v823_v43, 4  ;;  %v824_v46 = vrot.slane %v821_v44, 4 }
  0xf0   : > { %1092 = vrot.lane.b32.xlu1 %v3466_v60, %s3245_s30  ;;  %1090 = vrot.lane.b32.xlu0 %v3356_v2, %s3245_s30 }
  0xf1   : > { %v829_v47 = vsel %vm827_vm15, %v823_v43, %v825_v45  ;;  %v826_v48 = vsel %vm213_vm0, %v824_v46, %v825_v45 }
  0xf2   : > { %833 = vst [vmem:[#allocation2 + $0x1ac] sm:$0xf] %v829_v47  ;;  %v828_v49 = vsel %vm827_vm15, %v821_v44, %v826_v48  ;;  %v210_v50 = vpop.permute.xlu1 %209  ;;  %v208_v51 = vpop.permute.xlu0 %207  ;;  %vm1245_vm15 = vcmask 875520  }
  0xf3   : > { %v212_v52 = vrot.slane %v210_v50, 4  ;;  %v211_v1 = vrot.slane %v208_v51, 4  ;;  %v2926_v0 = vcombine.high %v810_v42, %v828_v49  ;;  %v2925_v53 = vcombine.low %v810_v42, %v828_v49 }
  0xf4   : > { %1110 = vrot.lane.b32.xlu1 %v3466_v60, %s3246_s5  ;;  %1108 = vrot.lane.b32.xlu0 %v3356_v2, %s3246_s5 }
  0xf5   : > { %v217_v54 = vsel %vm215_vm1, %v210_v50, %v212_v52  ;;  %v214_v55 = vsel %vm213_vm0, %v211_v1, %v212_v52  ;;  %2544 = vmatprep.subr.bf16.mxu1 %v2926_v0 }
  0xf6   : > { %221 = vst [vmem:[#allocation2 + $0x14] sm:$0xf] %v217_v54  ;;  %v216_v56 = vsel %vm215_vm1, %v208_v51, %v214_v55  ;;  %v769_v57 = vpop.permute.xlu1 %768  ;;  %v767_v58 = vpop.permute.xlu0 %766  ;;  %2545 = vmatpush1.bf16.msra.mxu1 %v2925_v53  ;;  %vm629_vm1 = vcmask 605184  }
  0xf7   : > { %v771_v59 = vrot.slane %v769_v57, 4  ;;  %v770_v61 = vrot.slane %v767_v58, 4  ;;  %v2875_v62 = vcombine.high %v3356_v2, %v216_v56  ;;  %v2874_v63 = vcombine.low %v3356_v2, %v216_v56 }
  0xf8   : > { %480 = vrot.lane.b32.xlu1 %v3466_v60, %s3247_s6  ;;  %478 = vrot.lane.b32.xlu0 %v3356_v2, %s3247_s6  ;;  %v1802_v2 = vunpack.c.0.s8 %v1801_v4 }
  0xf9   : > { %v775_v6 = vsel %vm773_vm2, %v769_v57, %v771_v59  ;;  %v772_v7 = vsel %vm213_vm0, %v770_v61, %v771_v59  ;;  %2505 = vmatprep.subr.bf16.mxu0 %v2875_v62 }
  0xfa   : > { %779 = vst [vmem:[#allocation2 + $0x188] sm:$0xf] %v775_v6  ;;  %v774_v32 = vsel %vm773_vm2, %v767_v58, %v772_v7  ;;  %v787_v35 = vpop.permute.xlu1 %786  ;;  %v785_v8 = vpop.permute.xlu0 %784  ;;  %2506 = vmatpush1.bf16.msra.mxu0 %v2874_v63  ;;  %v3506_v15 = vsub.s32 %v1802_v2, %v3502_v10  ;;  %vm647_vm2 = vcmask 596992  }
  0xfb   : > { %v789_v11 = vrot.slane %v787_v35, 4  ;;  %v788_v12 = vrot.slane %v785_v8, 4 }
  0xfc   : > { %498 = vrot.lane.b32.xlu1 %v3466_v60, %s3249_s9  ;;  %496 = vrot.lane.b32.xlu0 %v3180_v14, %s3249_s9  ;;  %v3512_v21 = vrot.slane %v1799_v13, %v3506_v15  ;;  %v3522_v29 = vrot.slane %v1627_v9, %v3506_v15  ;;  %s3048_s9 = smul.u32 6, %s3704_s16 }
  0xfd   : > { %v793_v16 = vsel %vm791_vm3, %v787_v35, %v789_v11  ;;  %v790_v17 = vsel %vm213_vm0, %v788_v12, %v789_v11 }
  0xfe   : > { %797 = vst [vmem:[#allocation2 + $0x194] sm:$0xf] %v793_v16  ;;  %v792_v18 = vsel %vm791_vm3, %v785_v8, %v790_v17  ;;  %v733_v19 = vpop.permute.xlu1 %732  ;;  %v731_v20 = vpop.permute.xlu0 %730  ;;  %v3517_v26 = vcombine.high %v3512_v21, %v3512_v21  ;;  %v3528_v37 = vcombine.high %v3522_v29, %v3522_v29  ;;  %vm1191_vm3 = vcmask 900096  }
  0xff   : > { %v735_v22 = vrot.slane %v733_v19, 4  ;;  %v734_v23 = vrot.slane %v731_v20, 4  ;;  %v2923_v24 = vcombine.high %v774_v32, %v792_v18  ;;  %v2922_v25 = vcombine.low %v774_v32, %v792_v18 }
 0x100   : > { %1056 = vrot.lane.b32.xlu1 %v3466_v60, %s3250_s10  ;;  %1054 = vrot.lane.b32.xlu0 %v3180_v14, %s3250_s10 }
 0x101   : > { %v739_v27 = vsel %vm737_vm4, %v733_v19, %v735_v22  ;;  %v736_v28 = vsel %vm213_vm0, %v734_v23, %v735_v22  ;;  %2546 = vmatprep.subr.bf16.mxu1 %v2923_v24  ;;  %2564 = vmatprep.mubr.bf16.mxu1 %v3517_v26 }
 0x102   : > { %743 = vst [vmem:[#allocation2 + $0x170] sm:$0xf] %v739_v27  ;;  %v738_v30 = vsel %vm737_vm4, %v731_v20, %v736_v28  ;;  %v751_v31 = vpop.permute.xlu1 %750  ;;  %v749_v33 = vpop.permute.xlu0 %748  ;;  %2547 = vmatpush1.bf16.msra.mxu1 %v2922_v25  ;;  %2523 = vmatprep.mubr.bf16.mxu0 %v3528_v37  ;;  %vm1209_vm4 = vcmask 891904  }
 0x103   : > { %v753_v34 = vrot.slane %v751_v31, 4  ;;  %v752_v36 = vrot.slane %v749_v33, 4 }
 0x104   : > { %1074 = vrot.lane.b32.xlu1 %v3466_v60, %s3251_s12  ;;  %1072 = vrot.lane.b32.xlu0 %v3180_v14, %s3251_s12  ;;  %v3539_v60 = vld [vmem:[#allocation2 + $0x27c] sm:$0xff] }
 0x105   : > { %v757_v38 = vsel %vm755_vm5, %v751_v31, %v753_v34  ;;  %v754_v39 = vsel %vm213_vm0, %v752_v36, %v753_v34 }
 0x106   : > { %761 = vst [vmem:[#allocation2 + $0x17c] sm:$0xf] %v757_v38  ;;  %v756_v41 = vsel %vm755_vm5, %v749_v33, %v754_v39  ;;  %v1295_v42 = vpop.permute.xlu1 %1294  ;;  %v1293_v43 = vpop.permute.xlu0 %1292  ;;  %vm593_vm5 = vcmask 621568  }
 0x107   : > { %v1297_v44 = vrot.slane %v1295_v42, 4  ;;  %v1296_v45 = vrot.slane %v1293_v43, 4  ;;  %v2920_v46 = vcombine.high %v738_v30, %v756_v41  ;;  %v2919_v47 = vcombine.low %v738_v30, %v756_v41 }
 0x108   : > { %1580 = vrot.lane.b32.xlu1 %v3534_v40, %s3252_s13  ;;  %1578 = vrot.lane.b32.xlu0 %v3539_v60, %s3252_s13  ;;  %s197_s13 = scalar_lea.vmem %s3702_s4, %s3048_s9 }
 0x109   : > { %v1300_v48 = vsel %vm359_vm14, %v1295_v42, %v1297_v44  ;;  %v1298_v49 = vsel %vm213_vm0, %v1296_v45, %v1297_v44  ;;  %2507 = vmatprep.subr.bf16.mxu0 %v2920_v46 }
 0x10a   : > { %1304 = vst [vmem:[#allocation2 + $0x2f0] sm:$0xf] %v1300_v48  ;;  %v1299_v50 = vsel %vm359_vm14, %v1293_v43, %v1298_v49  ;;  %v1312_v51 = vpop.permute.xlu1 %1311  ;;  %v1310_v52 = vpop.permute.xlu0 %1309  ;;  %2508 = vmatpush2.bf16.msra.mxu0 %v2919_v47  ;;  %vm719_vm14 = vcmask 441344  }
 0x10b   : > { %v1314_v1 = vrot.slane %v1312_v51, 4  ;;  %v1313_v0 = vrot.slane %v1310_v52, 4 }
 0x10c   : > { %1598 = vrot.lane.b32.xlu1 %v3534_v40, %s3253_s20  ;;  %1596 = vrot.lane.b32.xlu0 %v3539_v60, %s3253_s20 }
 0x10d   : > { %v1318_v53 = vsel %vm1316_vm6, %v1312_v51, %v1314_v1  ;;  %v1315_v54 = vsel %vm213_vm0, %v1313_v0, %v1314_v1 }
 0x10e   : > { %1322 = vst [vmem:[#allocation2 + $0x2fc] sm:$0xf] %v1318_v53  ;;  %v1317_v55 = vsel %vm1316_vm6, %v1310_v52, %v1315_v54  ;;  %v697_v56 = vpop.permute.xlu1 %696  ;;  %v695_v57 = vpop.permute.xlu0 %694  ;;  %vm611_vm6 = vcmask 613376  }
 0x10f   : > { %v699_v58 = vrot.slane %v697_v56, 4  ;;  %v698_v59 = vrot.slane %v695_v57, 4  ;;  %v2968_v61 = vcombine.high %v1299_v50, %v1317_v55  ;;  %v2967_v62 = vcombine.low %v1299_v50, %v1317_v55 }
 0x110   : > { %1544 = vrot.lane.b32.xlu1 %v3534_v40, %s3254_s14  ;;  %1542 = vrot.lane.b32.xlu0 %v3539_v60, %s3254_s14 }
 0x111   : > { %v703_v63 = vsel %vm701_vm7, %v697_v56, %v699_v58  ;;  %v700_v3 = vsel %vm213_vm0, %v698_v59, %v699_v58  ;;  %2548 = vmatprep.subr.bf16.mxu1 %v2968_v61 }
 0x112   : > { %707 = vst [vmem:[#allocation2 + $0x158] sm:$0xf] %v703_v63  ;;  %v702_v4 = vsel %vm701_vm7, %v695_v57, %v700_v3  ;;  %v715_v5 = vpop.permute.xlu1 %714  ;;  %v713_v6 = vpop.permute.xlu0 %712  ;;  %2549 = vmatpush2.bf16.msra.mxu1 %v2967_v62  ;;  %vm1155_vm7 = vcmask 916480  }
 0x113   : > { %v717_v7 = vrot.slane %v715_v5, 4  ;;  %v716_v32 = vrot.slane %v713_v6, 4 }
 0x114   : > { %1562 = vrot.lane.b32.xlu1 %v3534_v40, %s3255_s17  ;;  %1560 = vrot.lane.b32.xlu0 %v3539_v60, %s3255_s17 }
 0x115   : > { %v721_v35 = vsel %vm719_vm14, %v715_v5, %v717_v7  ;;  %v718_v8 = vsel %vm213_vm0, %v716_v32, %v717_v7 }
 0x116   : > { %725 = vst [vmem:[#allocation2 + $0x164] sm:$0xf] %v721_v35  ;;  %v720_v9 = vsel %vm719_vm14, %v713_v6, %v718_v8  ;;  %v1259_v2 = vpop.permute.xlu1 %1258  ;;  %v1257_v11 = vpop.permute.xlu0 %1256  ;;  %vm1173_vm14 = vcmask 908288  }
 0x117   : > { %v1261_v12 = vrot.slane %v1259_v2, 4  ;;  %v1260_v13 = vrot.slane %v1257_v11, 4  ;;  %v2917_v14 = vcombine.high %v702_v4, %v720_v9  ;;  %v2916_v16 = vcombine.low %v702_v4, %v720_v9 }
 0x118   : > { %1508 = vrot.lane.b32.xlu1 %v3534_v40, %s3256_s18  ;;  %1506 = vrot.lane.b32.xlu0 %v3539_v60, %s3256_s18 }
 0x119   : > { %v1265_v17 = vsel %vm1263_vm9, %v1259_v2, %v1261_v12  ;;  %v1262_v18 = vsel %vm213_vm0, %v1260_v13, %v1261_v12  ;;  %2509 = vmatprep.subr.bf16.mxu0 %v2917_v14 }
 0x11a   : > { %1269 = vst [vmem:[#allocation2 + $0x2d8] sm:$0xf] %v1265_v17  ;;  %v1264_v19 = vsel %vm1263_vm9, %v1257_v11, %v1262_v18  ;;  %v1277_v20 = vpop.permute.xlu1 %1276  ;;  %v1275_v22 = vpop.permute.xlu0 %1274  ;;  %2510 = vmatpush2.bf16.msra.mxu0 %v2916_v16  ;;  %vm557_vm9 = vcmask 637952  }
 0x11b   : > { %v1279_v23 = vrot.slane %v1277_v20, 4  ;;  %v1278_v24 = vrot.slane %v1275_v22, 4 }
 0x11c   : > { %1526 = vrot.lane.b32.xlu1 %v3534_v40, %s3257_s19  ;;  %1524 = vrot.lane.b32.xlu0 %v3539_v60, %s3257_s19 }
 0x11d   : > { %v1283_v25 = vsel %vm1281_vm10, %v1277_v20, %v1279_v23  ;;  %v1280_v27 = vsel %vm213_vm0, %v1278_v24, %v1279_v23 }
 0x11e   : > { %1287 = vst [vmem:[#allocation2 + $0x2e4] sm:$0xf] %v1283_v25  ;;  %v1282_v28 = vsel %vm1281_vm10, %v1275_v22, %v1280_v27  ;;  %v661_v30 = vpop.permute.xlu1 %660  ;;  %v659_v31 = vpop.permute.xlu0 %658  ;;  %vm575_vm10 = vcmask 629760  }
 0x11f   : > { %v663_v33 = vrot.slane %v661_v30, 4  ;;  %v662_v34 = vrot.slane %v659_v31, 4  ;;  %v2965_v36 = vcombine.high %v1264_v19, %v1282_v28  ;;  %v2964_v38 = vcombine.low %v1264_v19, %v1282_v28 }
 0x120   : > { %1472 = vrot.lane.b32.xlu1 %v3534_v40, %s3258_s21  ;;  %1470 = vrot.lane.b32.xlu0 %v3539_v60, %s3258_s21 }
 0x121   : > { %v667_v39 = vsel %vm665_vm11, %v661_v30, %v663_v33  ;;  %v664_v41 = vsel %vm213_vm0, %v662_v34, %v663_v33  ;;  %2550 = vmatprep.subr.bf16.mxu1 %v2965_v36 }
 0x122   : > { %671 = vst [vmem:[#allocation2 + $0x140] sm:$0xf] %v667_v39  ;;  %v666_v42 = vsel %vm665_vm11, %v659_v31, %v664_v41  ;;  %v679_v43 = vpop.permute.xlu1 %678  ;;  %v677_v44 = vpop.permute.xlu0 %676  ;;  %2551 = vmatpush2.bf16.msra.mxu1 %v2964_v38  ;;  %vm1133_vm11 = vcmask 7168  }
 0x123   : > { %v681_v45 = vrot.slane %v679_v43, 4  ;;  %v680_v46 = vrot.slane %v677_v44, 4 }
 0x124   : > { %1490 = vrot.lane.b32.xlu1 %v3534_v40, %s3259_s22  ;;  %1488 = vrot.lane.b32.xlu0 %v3539_v60, %s3259_s22 }
 0x125   : > { %v685_v47 = vsel %vm683_vm12, %v679_v43, %v681_v45  ;;  %v682_v48 = vsel %vm213_vm0, %v680_v46, %v681_v45 }
 0x126   : > { %689 = vst [vmem:[#allocation2 + $0x14c] sm:$0xf] %v685_v47  ;;  %v684_v49 = vsel %vm683_vm12, %v677_v44, %v682_v48  ;;  %v1223_v50 = vpop.permute.xlu1 %1222  ;;  %v1221_v51 = vpop.permute.xlu0 %1220 }
 0x127   : > { %v1225_v52 = vrot.slane %v1223_v50, 4  ;;  %v1224_v1 = vrot.slane %v1221_v51, 4  ;;  %v2914_v0 = vcombine.high %v666_v42, %v684_v49  ;;  %v2913_v53 = vcombine.low %v666_v42, %v684_v49 }
 0x128   : > { %1437 = vrot.lane.b32.xlu1 %v3534_v40, %s3260_s23  ;;  %1435 = vrot.lane.b32.xlu0 %v3539_v60, %s3260_s23 }
 0x129   : > { %v1229_v54 = vsel %vm1227_vm13, %v1223_v50, %v1225_v52  ;;  %v1226_v55 = vsel %vm213_vm0, %v1224_v1, %v1225_v52  ;;  %2511 = vmatprep.subr.bf16.mxu0 %v2914_v0 }
 0x12a   : > { %1233 = vst [vmem:[#allocation2 + $0x2c0] sm:$0xf] %v1229_v54  ;;  %v1228_v56 = vsel %vm1227_vm13, %v1221_v51, %v1226_v55  ;;  %v1241_v57 = vpop.permute.xlu1 %1240  ;;  %v1239_v58 = vpop.permute.xlu0 %1238  ;;  %2512 = vmatpush2.bf16.msra.mxu0 %v2913_v53  ;;  %v3267_v55 = vmov 0   ;;  %vm521_vm13 = vcmask 654336  }
 0x12b   : > { %v1243_v59 = vrot.slane %v1241_v57, 4  ;;  %v1242_v61 = vrot.slane %v1239_v58, 4  ;;  %3135 = vset.pattern.permute.xlu0 %v3267_v55 }
 0x12c   : > { %1455 = vrot.lane.b32.xlu1 %v3534_v40, %s3243_s28  ;;  %1453 = vrot.lane.b32.xlu0 %v3539_v60, %s3243_s28  ;;  %s3265_s28 = smov 87  }
 0x12d   : > { %v1247_v62 = vsel %vm1245_vm15, %v1241_v57, %v1243_v59  ;;  %v1244_v63 = vsel %vm213_vm0, %v1242_v61, %v1243_v59 }
 0x12e   : > { %1251 = vst [vmem:[#allocation2 + $0x2cc] sm:$0xf] %v1247_v62  ;;  %v1246_v3 = vsel %vm1245_vm15, %v1239_v58, %v1244_v63  ;;  %v625_v4 = vpop.permute.xlu1 %624  ;;  %v623_v5 = vpop.permute.xlu0 %622  ;;  %vm539_vm15 = vcmask 646144  }
 0x12f   : > { %v627_v6 = vrot.slane %v625_v4, 4  ;;  %v626_v7 = vrot.slane %v623_v5, 4  ;;  %v2962_v32 = vcombine.high %v1228_v56, %v1246_v3  ;;  %v2961_v35 = vcombine.low %v1228_v56, %v1246_v3 }
 0x130   : > { %1401 = vrot.lane.b32.xlu1 %v3534_v40, %s3261_s24  ;;  %1399 = vrot.lane.b32.xlu0 %v3539_v60, %s3261_s24 }
 0x131   : > { %v631_v8 = vsel %vm629_vm1, %v625_v4, %v627_v6  ;;  %v628_v9 = vsel %vm213_vm0, %v626_v7, %v627_v6  ;;  %2552 = vmatprep.subr.bf16.mxu1 %v2962_v32 }
 0x132   : > { %635 = vst [vmem:[#allocation2 + $0x128] sm:$0xf] %v631_v8  ;;  %v630_v2 = vsel %vm629_vm1, %v623_v5, %v628_v9  ;;  %v643_v11 = vpop.permute.xlu1 %642  ;;  %v641_v12 = vpop.permute.xlu0 %640  ;;  %2553 = vmatpush2.bf16.msra.mxu1 %v2961_v35  ;;  %vm1097_vm1 = vcmask 23552  }
 0x133   : > { %v645_v13 = vrot.slane %v643_v11, 4  ;;  %v644_v14 = vrot.slane %v641_v12, 4 }
 0x134   : > { %1419 = vrot.lane.b32.xlu1 %v3534_v40, %s3262_s25  ;;  %1417 = vrot.lane.b32.xlu0 %v3539_v60, %s3262_s25 }
 0x135   : > { %v649_v16 = vsel %vm647_vm2, %v643_v11, %v645_v13  ;;  %v646_v17 = vsel %vm213_vm0, %v644_v14, %v645_v13 }
 0x136   : > { %653 = vst [vmem:[#allocation2 + $0x134] sm:$0xf] %v649_v16  ;;  %v648_v18 = vsel %vm647_vm2, %v641_v12, %v646_v17  ;;  %v1187_v19 = vpop.permute.xlu1 %1186  ;;  %v1185_v20 = vpop.permute.xlu0 %1184  ;;  %vm1115_vm2 = vcmask 15360  }
 0x137   : > { %v1189_v22 = vrot.slane %v1187_v19, 4  ;;  %v1188_v23 = vrot.slane %v1185_v20, 4  ;;  %v2911_v24 = vcombine.high %v630_v2, %v648_v18  ;;  %v2910_v25 = vcombine.low %v630_v2, %v648_v18 }
 0x138   : > { %1365 = vrot.lane.b32.xlu1 %v3534_v40, %s3263_s26  ;;  %1363 = vrot.lane.b32.xlu0 %v3539_v60, %s3263_s26 }
 0x139   : > { %v1193_v27 = vsel %vm1191_vm3, %v1187_v19, %v1189_v22  ;;  %v1190_v28 = vsel %vm213_vm0, %v1188_v23, %v1189_v22  ;;  %2513 = vmatprep.subr.bf16.mxu0 %v2911_v24 }
 0x13a   : > { %1197 = vst [vmem:[#allocation2 + $0x2a8] sm:$0xf] %v1193_v27  ;;  %v1192_v30 = vsel %vm1191_vm3, %v1185_v20, %v1190_v28  ;;  %v1205_v31 = vpop.permute.xlu1 %1204  ;;  %v1203_v33 = vpop.permute.xlu0 %1202  ;;  %2514 = vmatpush2.bf16.msra.mxu0 %v2910_v25  ;;  %vm485_vm3 = vcmask 793600  }
 0x13b   : > { %v1207_v34 = vrot.slane %v1205_v31, 4  ;;  %v1206_v36 = vrot.slane %v1203_v33, 4 }
 0x13c   : > { %1383 = vrot.lane.b32.xlu1 %v3534_v40, %s3264_s27  ;;  %1381 = vrot.lane.b32.xlu0 %v3539_v60, %s3264_s27 }
 0x13d   : > { %v1211_v38 = vsel %vm1209_vm4, %v1205_v31, %v1207_v34  ;;  %v1208_v39 = vsel %vm213_vm0, %v1206_v36, %v1207_v34 }
 0x13e   : > { %1215 = vst [vmem:[#allocation2 + $0x2b4] sm:$0xf] %v1211_v38  ;;  %v1210_v41 = vsel %vm1209_vm4, %v1203_v33, %v1208_v39  ;;  %v589_v42 = vpop.permute.xlu1 %588  ;;  %v587_v43 = vpop.permute.xlu0 %586  ;;  %vm503_vm4 = vcmask 785408  }
 0x13f   : > { %v591_v44 = vrot.slane %v589_v42, 4  ;;  %v590_v45 = vrot.slane %v587_v43, 4  ;;  %v2959_v46 = vcombine.high %v1192_v30, %v1210_v41  ;;  %v2958_v47 = vcombine.low %v1192_v30, %v1210_v41 }
 0x140   : > { %1329 = vrot.lane.b32.xlu1 %v3534_v40, %s3265_s28  ;;  %1327 = vrot.lane.b32.xlu0 %v3539_v60, %s3265_s28 }
 0x141   : > { %v595_v48 = vsel %vm593_vm5, %v589_v42, %v591_v44  ;;  %v592_v49 = vsel %vm213_vm0, %v590_v45, %v591_v44  ;;  %2554 = vmatprep.subr.bf16.mxu1 %v2959_v46 }
 0x142   : > { %599 = vst [vmem:[#allocation2 + $0x110] sm:$0xf] %v595_v48  ;;  %v594_v50 = vsel %vm593_vm5, %v587_v43, %v592_v49  ;;  %v607_v51 = vpop.permute.xlu1 %606  ;;  %v605_v52 = vpop.permute.xlu0 %604  ;;  %2555 = vmatpush2.bf16.msra.mxu1 %v2958_v47  ;;  %vm1061_vm5 = vcmask 39936  }
 0x143   : > { %v609_v1 = vrot.slane %v607_v51, 4  ;;  %v608_v0 = vrot.slane %v605_v52, 4 }
 0x144   : > { %1347 = vrot.lane.b32.xlu1 %v3534_v40, %s3266_s29  ;;  %1345 = vrot.lane.b32.xlu0 %v3539_v60, %s3266_s29 }
 0x145   : > { %v613_v53 = vsel %vm611_vm6, %v607_v51, %v609_v1  ;;  %v610_v54 = vsel %vm213_vm0, %v608_v0, %v609_v1 }
 0x146   : > { %617 = vst [vmem:[#allocation2 + $0x11c] sm:$0xf] %v613_v53  ;;  %v612_v56 = vsel %vm611_vm6, %v605_v52, %v610_v54  ;;  %v1151_v57 = vpop.permute.xlu1 %1150  ;;  %v1149_v58 = vpop.permute.xlu0 %1148  ;;  %vm1079_vm6 = vcmask 31744  }
 0x147   : > { %v1153_v59 = vrot.slane %v1151_v57, 4  ;;  %v1152_v61 = vrot.slane %v1149_v58, 4  ;;  %v2908_v62 = vcombine.high %v594_v50, %v612_v56  ;;  %v2907_v63 = vcombine.low %v594_v50, %v612_v56 }
 0x148   : > { %1616 = vrot.lane.b32.xlu1 %v3534_v40, %s3229_s11  ;;  %1614 = vrot.lane.b32.xlu0 %v3539_v60, %s3229_s11 }
 0x149   : > { %v1157_v3 = vsel %vm1155_vm7, %v1151_v57, %v1153_v59  ;;  %v1154_v4 = vsel %vm213_vm0, %v1152_v61, %v1153_v59  ;;  %2515 = vmatprep.subr.bf16.mxu0 %v2908_v62 }
 0x14a   : > { %1161 = vst [vmem:[#allocation2 + $0x290] sm:$0xf] %v1157_v3  ;;  %v1156_v5 = vsel %vm1155_vm7, %v1149_v58, %v1154_v4  ;;  %v1169_v6 = vpop.permute.xlu1 %1168  ;;  %v1167_v7 = vpop.permute.xlu0 %1166  ;;  %2516 = vmatpush2.bf16.msra.mxu0 %v2907_v63  ;;  %vm1585_vm7 = vcmask 474112  }
 0x14b   : > { %v1171_v32 = vrot.slane %v1169_v6, 4  ;;  %v1170_v35 = vrot.slane %v1167_v7, 4 }
 0x14d   : > { %v1175_v8 = vsel %vm1173_vm14, %v1169_v6, %v1171_v32  ;;  %v1172_v9 = vsel %vm213_vm0, %v1170_v35, %v1171_v32  ;;  %v1791_v32 = vld [vmem:[%s3700_s2] sm:$0xf] }
 0x14e   : > { %1179 = vst [vmem:[#allocation2 + $0x29c] sm:$0xf] %v1175_v8  ;;  %v1174_v40 = vsel %vm1173_vm14, %v1167_v7, %v1172_v9  ;;  %v553_v2 = vpop.permute.xlu1 %552  ;;  %v551_v11 = vpop.permute.xlu0 %550  ;;  %1794 = vperm.xlu0 %3135, %v1791_v32   ;;  %vm1603_vm14 = vcmask 465920   ;;  %v3139_v32 = vld [vmem:[#allocation2 + $0x158] ss:$12 sps:$4 sm:$0xff]  }
 0x14f   : > { %v555_v12 = vrot.slane %v553_v2, 4  ;;  %v554_v13 = vrot.slane %v551_v11, 4  ;;  %v2956_v14 = vcombine.high %v1156_v5, %v1174_v40  ;;  %v2955_v16 = vcombine.low %v1156_v5, %v1174_v40 }
 0x151   : > { %v559_v17 = vsel %vm557_vm9, %v553_v2, %v555_v12  ;;  %v556_v18 = vsel %vm213_vm0, %v554_v13, %v555_v12  ;;  %2556 = vmatprep.subr.bf16.mxu1 %v2956_v14 }
 0x152   : > { %563 = vst [vmem:[#allocation2 + $0xf8] sm:$0xf] %v559_v17  ;;  %v558_v19 = vsel %vm557_vm9, %v551_v11, %v556_v18  ;;  %v571_v20 = vpop.permute.xlu1 %570  ;;  %v569_v22 = vpop.permute.xlu0 %568  ;;  %2557 = vmatpush2.bf16.msra.mxu1 %v2955_v16  ;;  %vm1549_vm9 = vcmask 490496  }
 0x153   : > { %v573_v23 = vrot.slane %v571_v20, 4  ;;  %v572_v24 = vrot.slane %v569_v22, 4 }
 0x155   : > { %v577_v25 = vsel %vm575_vm10, %v571_v20, %v573_v23  ;;  %v574_v27 = vsel %vm213_vm0, %v572_v24, %v573_v23 }
 0x156   : > { %581 = vst [vmem:[#allocation2 + $0x104] sm:$0xf] %v577_v25  ;;  %v576_v28 = vsel %vm575_vm10, %v569_v22, %v574_v27  ;;  %v1129_v30 = vpop.permute.xlu1 %1128  ;;  %v1127_v31 = vpop.permute.xlu0 %1126  ;;  %vm1567_vm10 = vcmask 482304  }
 0x157   : > { %v1131_v33 = vrot.slane %v1129_v30, 4  ;;  %v1130_v34 = vrot.slane %v1127_v31, 4  ;;  %v2905_v36 = vcombine.high %v558_v19, %v576_v28  ;;  %v2904_v38 = vcombine.low %v558_v19, %v576_v28 }
 0x159   : > { %v1135_v39 = vsel %vm1133_vm11, %v1129_v30, %v1131_v33  ;;  %v1132_v41 = vsel %vm213_vm0, %v1130_v34, %v1131_v33  ;;  %2517 = vmatprep.subr.bf16.mxu0 %v2905_v36 }
 0x15a   : > { %1139 = vst [vmem:[#allocation2 + $0x278] sm:$0xf] %v1135_v39  ;;  %v1134_v42 = vsel %vm1133_vm11, %v1127_v31, %v1132_v41  ;;  %v517_v43 = vpop.permute.xlu1 %516  ;;  %v515_v44 = vpop.permute.xlu0 %514  ;;  %2518 = vmatpush2.bf16.msra.mxu0 %v2904_v38  ;;  %v3620_v41 = vld.sshfl [vmem:[%s3699_s1 + $0x8] sm:$0x33 pattern:$0x76325410] }
 0x15b   : > { %v519_v45 = vrot.slane %v517_v43, 4  ;;  %v518_v46 = vrot.slane %v515_v44, 4  ;;  %v2953_v47 = vcombine.high %v1134_v42, %v3539_v60  ;;  %v2952_v48 = vcombine.low %v1134_v42, %v3539_v60 }
 0x15c   : > { %vm1513_vm11 = vcmask 506880  }
 0x15d   : > { %v523_v49 = vsel %vm521_vm13, %v517_v43, %v519_v45  ;;  %v520_v50 = vsel %vm213_vm0, %v518_v46, %v519_v45  ;;  %2558 = vmatprep.subr.bf16.mxu1 %v2953_v47  ;;  %v3625_v47 = vcombine.high %v3620_v41, %v3620_v41 }
 0x15e   : > { %527 = vst [vmem:[#allocation2 + $0xe0] sm:$0xf] %v523_v49  ;;  %v522_v51 = vsel %vm521_vm13, %v515_v44, %v520_v50  ;;  %v535_v52 = vpop.permute.xlu1 %534  ;;  %v533_v1 = vpop.permute.xlu0 %532  ;;  %2559 = vmatpush2.bf16.msra.mxu1 %v2952_v48 }
 0x15f   : > { %v537_v0 = vrot.slane %v535_v52, 4  ;;  %v536_v53 = vrot.slane %v533_v1, 4 }
 0x161   : > { %v541_v54 = vsel %vm539_vm15, %v535_v52, %v537_v0  ;;  %v538_v56 = vsel %vm213_vm0, %v536_v53, %v537_v0 }
 0x162   : > { %545 = vst [vmem:[#allocation2 + $0xec] sm:$0xf] %v541_v54  ;;  %v540_v57 = vsel %vm539_vm15, %v533_v1, %v538_v56  ;;  %v1093_v60 = vpop.permute.xlu1 %1092  ;;  %v1091_v58 = vpop.permute.xlu0 %1090  ;;  %vm1531_vm15 = vcmask 498688  }
 0x163   : > { %v1095_v59 = vrot.slane %v1093_v60, 4  ;;  %v1094_v61 = vrot.slane %v1091_v58, 4  ;;  %v2902_v62 = vcombine.high %v522_v51, %v540_v57  ;;  %v2901_v63 = vcombine.low %v522_v51, %v540_v57 }
 0x165   : > { %v1099_v3 = vsel %vm1097_vm1, %v1093_v60, %v1095_v59  ;;  %v1096_v4 = vsel %vm213_vm0, %v1094_v61, %v1095_v59  ;;  %2519 = vmatprep.subr.bf16.mxu0 %v2902_v62  ;;  %v3136_v59 = vld [vmem:[#allocation2 + $0x170] ss:$12 sps:$4 sm:$0xff]  }
 0x166   : > { %1103 = vst [vmem:[#allocation2 + $0x260] sm:$0xf] %v1099_v3  ;;  %v1098_v5 = vsel %vm1097_vm1, %v1091_v58, %v1096_v4  ;;  %v1111_v6 = vpop.permute.xlu1 %1110  ;;  %v1109_v7 = vpop.permute.xlu0 %1108  ;;  %2520 = vmatpush2.bf16.msra.mxu0 %v2901_v63  ;;  %vm1477_vm1 = vcmask 523264  }
 0x167   : > { %v1113_v35 = vrot.slane %v1111_v6, 4  ;;  %v1112_v8 = vrot.slane %v1109_v7, 4 }
 0x169   : > { %v1117_v9 = vsel %vm1115_vm2, %v1111_v6, %v1113_v35  ;;  %v1114_v40 = vsel %vm213_vm0, %v1112_v8, %v1113_v35 }
 0x16a   : > { %1121 = vst [vmem:[#allocation2 + $0x26c] sm:$0xf] %v1117_v9  ;;  %v1116_v2 = vsel %vm1115_vm2, %v1109_v7, %v1114_v40  ;;  %v481_v11 = vpop.permute.xlu1 %480  ;;  %v479_v12 = vpop.permute.xlu0 %478  ;;  %vm1495_vm2 = vcmask 515072  }
 0x16b   : > { %v483_v13 = vrot.slane %v481_v11, 4  ;;  %v482_v14 = vrot.slane %v479_v12, 4  ;;  %v2950_v16 = vcombine.high %v1098_v5, %v1116_v2  ;;  %v2949_v17 = vcombine.low %v1098_v5, %v1116_v2  ;;  %v3138_v5 = vld [vmem:[#allocation2 + $0xb0] ss:$12 sps:$4 sm:$0xff]  }
 0x16d   : > { %v487_v18 = vsel %vm485_vm3, %v481_v11, %v483_v13  ;;  %v484_v19 = vsel %vm213_vm0, %v482_v14, %v483_v13  ;;  %2560 = vmatprep.subr.bf16.mxu1 %v2950_v16  ;;  %v3140_v13 = vld [vmem:[#allocation2 + $0x98] ss:$12 sps:$4 sm:$0xff]  }
 0x16e   : > { %491 = vst [vmem:[#allocation2 + $0xc8] sm:$0xf] %v487_v18  ;;  %v486_v20 = vsel %vm485_vm3, %v479_v12, %v484_v19  ;;  %v499_v22 = vpop.permute.xlu1 %498  ;;  %v497_v23 = vpop.permute.xlu0 %496  ;;  %2561 = vmatpush2.bf16.msra.mxu1 %v2949_v17  ;;  %v3141_v17 = vld [vmem:[#allocation2 + $0x140] ss:$12 sps:$4 sm:$0xff]   ;;  %vm1442_vm3 = vcmask 662528  }
 0x16f   : > { %v501_v24 = vrot.slane %v499_v22, 4  ;;  %v500_v25 = vrot.slane %v497_v23, 4 }
 0x171   : > { %v505_v27 = vsel %vm503_vm4, %v499_v22, %v501_v24  ;;  %v502_v28 = vsel %vm213_vm0, %v500_v25, %v501_v24 }
 0x172   : > { %509 = vst [vmem:[#allocation2 + $0xd4] sm:$0xf] %v505_v27  ;;  %v504_v30 = vsel %vm503_vm4, %v497_v23, %v502_v28  ;;  %v1057_v31 = vpop.permute.xlu1 %1056  ;;  %v1055_v33 = vpop.permute.xlu0 %1054  ;;  %v3142_v23 = vld [vmem:[#allocation2 + $0x80] ss:$12 sps:$4 sm:$0xff]   ;;  %v3143_v27 = vld [vmem:[#allocation2 + $0x128] ss:$12 sps:$4 sm:$0xff]  }
 0x173   : > { %v1059_v34 = vrot.slane %v1057_v31, 4  ;;  %v1058_v36 = vrot.slane %v1055_v33, 4  ;;  %v2899_v38 = vcombine.high %v486_v20, %v504_v30  ;;  %v2898_v39 = vcombine.low %v486_v20, %v504_v30 }
 0x174   : > { %vm1406_vm4 = vcmask 678912  }
 0x175   : > { %v1063_v42 = vsel %vm1061_vm5, %v1057_v31, %v1059_v34  ;;  %v1060_v43 = vsel %vm213_vm0, %v1058_v36, %v1059_v34  ;;  %2521 = vmatprep.subr.bf16.mxu0 %v2899_v38 }
 0x176   : > { %1067 = vst [vmem:[#allocation2 + $0x248] sm:$0xf] %v1063_v42  ;;  %v1062_v44 = vsel %vm1061_vm5, %v1055_v33, %v1060_v43  ;;  %v1075_v45 = vpop.permute.xlu1 %1074  ;;  %v1073_v46 = vpop.permute.xlu0 %1072  ;;  %2522 = vmatpush2.bf16.msra.mxu0 %v2898_v39  ;;  %v3144_v39 = vld [vmem:[#allocation2 + $0x68] ss:$12 sps:$4 sm:$0xff]   ;;  %vm1370_vm5 = vcmask 695296  }
 0x177   : > { %v1077_v48 = vrot.slane %v1075_v45, 4  ;;  %v1076_v49 = vrot.slane %v1073_v46, 4 }
 0x179   : > { %v1081_v50 = vsel %vm1079_vm6, %v1075_v45, %v1077_v48  ;;  %v1078_v51 = vsel %vm213_vm0, %v1076_v49, %v1077_v48  ;;  %2524 = vmatmul.mubr.bf16.vlgmr.msra.gmra.mxu0 %v3522_v29 }
 0x17a   : > { %1085 = vst [vmem:[#allocation2 + $0x254] sm:$0xf] %v1081_v50  ;;  %v1080_v52 = vsel %vm1079_vm6, %v1073_v46, %v1078_v51  ;;  %v1581_v1 = vpop.permute.xlu1 %1580  ;;  %v1579_v0 = vpop.permute.xlu0 %1578  ;;  %2998 = vmatprep.mubr.msk.bf16.mxu0 %vm1007_vm8, %v3625_v47  ;;  %v3146_v51 = vld [vmem:[#allocation2 + $0x50] ss:$12 sps:$4 sm:$0xff]   ;;  %vm1388_vm6 = vcmask 687104  }
 0x17b   : > { %v1583_v53 = vrot.slane %v1581_v1, 4  ;;  %v1582_v54 = vrot.slane %v1579_v0, 4  ;;  %v2947_v56 = vcombine.high %v1062_v44, %v1080_v52  ;;  %v2946_v57 = vcombine.low %v1062_v44, %v1080_v52  ;;  %v3145_v44 = vld [vmem:[#allocation2 + $0x110] ss:$12 sps:$4 sm:$0xff]  }
 0x17d   : > { %v1587_v60 = vsel %vm1585_vm7, %v1581_v1, %v1583_v53  ;;  %v1584_v58 = vsel %vm213_vm0, %v1582_v54, %v1583_v53  ;;  %2562 = vmatprep.subr.bf16.mxu1 %v2947_v56 }
 0x17e   : > { %1591 = vst [vmem:[#allocation2 + $0x3b0] sm:$0xf] %v1587_v60  ;;  %v1586_v61 = vsel %vm1585_vm7, %v1579_v0, %v1584_v58  ;;  %v1599_v62 = vpop.permute.xlu1 %1598  ;;  %v1597_v63 = vpop.permute.xlu0 %1596  ;;  %2563 = vmatpush2.bf16.msra.mxu1 %v2946_v57  ;;  %v3147_v0 = vld [vmem:[#allocation2 + $0xf8] ss:$12 sps:$4 sm:$0xff]   ;;  %vm1334_vm7 = vcmask 711680  }
 0x17f   : > { %v1601_v3 = vrot.slane %v1599_v62, 4  ;;  %v1600_v4 = vrot.slane %v1597_v63, 4  ;;  %3003 = vmatprep.subr.bf16.mxu1 %v3136_v59 }
 0x181   : > { %v1605_v6 = vsel %vm1603_vm14, %v1599_v62, %v1601_v3  ;;  %v1602_v7 = vsel %vm213_vm0, %v1600_v4, %v1601_v3  ;;  %2565 = vmatmul.mubr.bf16.vlgmr.msra.gmra.mxu1 %v3512_v21  ;;  %v3149_v3 = vld [vmem:[#allocation2 + $0xe0] ss:$12 sps:$4 sm:$0xff]  }
 0x182   : > { %1609 = vst [vmem:[#allocation2 + $0x3bc] sm:$0xf] %v1605_v6  ;;  %v1604_v35 = vsel %vm1603_vm14, %v1597_v63, %v1602_v7  ;;  %v1545_v8 = vpop.permute.xlu1 %1544  ;;  %v1543_v9 = vpop.permute.xlu0 %1542  ;;  %3004 = vmatpush3.bf16.msra.mxu1 %v3138_v5  ;;  %2646 = vmatprep.mubr.bf16.mxu1 %v3528_v37  ;;  %vm1352_vm14 = vcmask 703488  }
 0x183   : > { %v1547_v40 = vrot.slane %v1545_v8, 4  ;;  %v1546_v2 = vrot.slane %v1543_v9, 4  ;;  %3005 = vmatprep.subr.bf16.mxu1 %v3139_v32  ;;  %v2991_v11 = vcombine.low %v1586_v61, %v1604_v35  ;;  %v2992_v12 = vcombine.high %v1586_v61, %v1604_v35  ;;  %v3148_v61 = vld [vmem:[#allocation2 + $0x38] ss:$12 sps:$4 sm:$0xff]   ;;  %v3150_v35 = vld [vmem:[#allocation2 + $0x20] ss:$12 sps:$4 sm:$0xff]  }
 0x185   : > { %v1551_v14 = vsel %vm1549_vm9, %v1545_v8, %v1547_v40  ;;  %v1548_v16 = vsel %vm213_vm0, %v1546_v2, %v1547_v40  ;;  %2573 = vmatprep.subr.bf16.mxu0 %v2992_v12  ;;  %v3151_v40 = vld [vmem:[#allocation2 + $0xc8] ss:$12 sps:$4 sm:$0xff]  }
 0x186   : > { %1555 = vst [vmem:[#allocation2 + $0x398] sm:$0xf] %v1551_v14  ;;  %v1550_v18 = vsel %vm1549_vm9, %v1543_v9, %v1548_v16  ;;  %v1563_v19 = vpop.permute.xlu1 %1562  ;;  %v1561_v20 = vpop.permute.xlu0 %1560  ;;  %3006 = vmatpush3.bf16.msra.mxu1 %v3140_v13  ;;  %2574 = vmatpush1.bf16.msra.mxu0 %v2991_v11 }
 0x187   : > { %v1565_v37 = vrot.slane %v1563_v19, 4  ;;  %v1564_v22 = vrot.slane %v1561_v20, 4  ;;  %3007 = vmatprep.subr.bf16.mxu1 %v3141_v17 }
 0x189   : > { %v1569_v24 = vsel %vm1567_vm10, %v1563_v19, %v1565_v37  ;;  %v1566_v25 = vsel %vm213_vm0, %v1564_v22, %v1565_v37  ;;  %v3153_v37 = vld [vmem:[#allocation2 + $0x2f0] ss:$12 sps:$4 sm:$0xff]  }
 0x18a   : > { %1573 = vst [vmem:[#allocation2 + $0x3a4] sm:$0xf] %v1569_v24  ;;  %v1568_v28 = vsel %vm1567_vm10, %v1561_v20, %v1566_v25  ;;  %v1509_v30 = vpop.permute.xlu1 %1508  ;;  %v1507_v31 = vpop.permute.xlu0 %1506  ;;  %3008 = vmatpush3.bf16.msra.mxu1 %v3142_v23 }
 0x18b   : > { %v1511_v33 = vrot.slane %v1509_v30, 4  ;;  %v1510_v34 = vrot.slane %v1507_v31, 4  ;;  %3009 = vmatprep.subr.bf16.mxu1 %v3143_v27  ;;  %v2988_v36 = vcombine.low %v1550_v18, %v1568_v28  ;;  %v2989_v38 = vcombine.high %v1550_v18, %v1568_v28  ;;  %v3152_v18 = vld [vmem:[#allocation2 + $0x8] ss:$12 sps:$4 sm:$0xff]   ;;  %v3154_v28 = vld [vmem:[#allocation2 + $0x230] ss:$12 sps:$4 sm:$0xff]  }
 0x18d   : > { %v1515_v42 = vsel %vm1513_vm11, %v1509_v30, %v1511_v33  ;;  %v1512_v43 = vsel %vm213_vm0, %v1510_v34, %v1511_v33  ;;  %2575 = vmatprep.subr.bf16.mxu0 %v2989_v38  ;;  %v3155_v33 = vld [vmem:[#allocation2 + $0x2d8] ss:$12 sps:$4 sm:$0xff]  }
 0x18e   : > { %1519 = vst [vmem:[#allocation2 + $0x380] sm:$0xf] %v1515_v42  ;;  %v1514_v45 = vsel %vm1513_vm11, %v1507_v31, %v1512_v43  ;;  %v1527_v46 = vpop.permute.xlu1 %1526  ;;  %v1525_v48 = vpop.permute.xlu0 %1524  ;;  %3010 = vmatpush3.bf16.msra.mxu1 %v3144_v39  ;;  %2576 = vmatpush1.bf16.msra.mxu0 %v2988_v36 }
 0x18f   : > { %v1529_v49 = vrot.slane %v1527_v46, 4  ;;  %v1528_v50 = vrot.slane %v1525_v48, 4  ;;  %3011 = vmatprep.subr.bf16.mxu1 %v3145_v44 }
 0x191   : > { %v1533_v52 = vsel %vm1531_vm15, %v1527_v46, %v1529_v49  ;;  %v1530_v1 = vsel %vm213_vm0, %v1528_v50, %v1529_v49 }
 0x192   : > { %1537 = vst [vmem:[#allocation2 + $0x38c] sm:$0xf] %v1533_v52  ;;  %v1532_v53 = vsel %vm1531_vm15, %v1525_v48, %v1530_v1  ;;  %v1473_v54 = vpop.permute.xlu1 %1472  ;;  %v1471_v56 = vpop.permute.xlu0 %1470  ;;  %3012 = vmatpush3.bf16.msra.mxu1 %v3146_v51  ;;  %v3157_v48 = vld [vmem:[#allocation2 + $0x2c0] ss:$12 sps:$4 sm:$0xff]  }
 0x193   : > { %v1475_v57 = vrot.slane %v1473_v54, 4  ;;  %v1474_v60 = vrot.slane %v1471_v56, 4  ;;  %3013 = vmatprep.subr.bf16.mxu1 %v3147_v0  ;;  %v2985_v58 = vcombine.low %v1514_v45, %v1532_v53  ;;  %v2986_v59 = vcombine.high %v1514_v45, %v1532_v53  ;;  %v3156_v45 = vld [vmem:[#allocation2 + $0x218] ss:$12 sps:$4 sm:$0xff]   ;;  %v3158_v1 = vld [vmem:[#allocation2 + $0x200] ss:$12 sps:$4 sm:$0xff]  }
 0x195   : > { %v1479_v62 = vsel %vm1477_vm1, %v1473_v54, %v1475_v57  ;;  %v1476_v63 = vsel %vm213_vm0, %v1474_v60, %v1475_v57  ;;  %2577 = vmatprep.subr.bf16.mxu0 %v2986_v59  ;;  %v3159_v54 = vld [vmem:[#allocation2 + $0x2a8] ss:$12 sps:$4 sm:$0xff]  }
 0x196   : > { %1483 = vst [vmem:[#allocation2 + $0x368] sm:$0xf] %v1479_v62  ;;  %v1478_v4 = vsel %vm1477_vm1, %v1471_v56, %v1476_v63  ;;  %v1491_v5 = vpop.permute.xlu1 %1490  ;;  %v1489_v6 = vpop.permute.xlu0 %1488  ;;  %3014 = vmatpush3.bf16.msra.mxu1 %v3148_v61  ;;  %2578 = vmatpush1.bf16.msra.mxu0 %v2985_v58  ;;  %v3160_v63 = vld [vmem:[#allocation2 + $0x1e8] ss:$12 sps:$4 sm:$0xff]  }
 0x197   : > { %v1493_v7 = vrot.slane %v1491_v5, 4  ;;  %v1492_v32 = vrot.slane %v1489_v6, 4  ;;  %3015 = vmatprep.subr.bf16.mxu1 %v3149_v3 }
 0x199   : > { %v1497_v8 = vsel %vm1495_vm2, %v1491_v5, %v1493_v7  ;;  %v1494_v9 = vsel %vm213_vm0, %v1492_v32, %v1493_v7  ;;  %v3161_v5 = vld [vmem:[#allocation2 + $0x290] ss:$12 sps:$4 sm:$0xff]  }
 0x19a   : > { %1501 = vst [vmem:[#allocation2 + $0x374] sm:$0xf] %v1497_v8  ;;  %v1496_v2 = vsel %vm1495_vm2, %v1489_v6, %v1494_v9  ;;  %v1438_v11 = vpop.permute.xlu1 %1437  ;;  %v1436_v12 = vpop.permute.xlu0 %1435  ;;  %3016 = vmatpush3.bf16.msra.mxu1 %v3150_v35  ;;  %v3162_v9 = vld [vmem:[#allocation2 + $0x1d0] ss:$12 sps:$4 sm:$0xff]  }
 0x19b   : > { %v1440_v13 = vrot.slane %v1438_v11, 4  ;;  %v1439_v14 = vrot.slane %v1436_v12, 4  ;;  %3017 = vmatprep.subr.bf16.mxu1 %v3151_v40  ;;  %v2982_v16 = vcombine.low %v1478_v4, %v1496_v2  ;;  %v2983_v17 = vcombine.high %v1478_v4, %v1496_v2 }
 0x19d   : > { %v1444_v19 = vsel %vm1442_vm3, %v1438_v11, %v1440_v13  ;;  %v1441_v20 = vsel %vm213_vm0, %v1439_v14, %v1440_v13  ;;  %2579 = vmatprep.subr.bf16.mxu0 %v2983_v17  ;;  %v3163_v11 = vld [vmem:[#allocation2 + $0x278] ss:$12 sps:$4 sm:$0xff]  }
 0x19e   : > { %1448 = vst [vmem:[#allocation2 + $0x350] sm:$0xf] %v1444_v19  ;;  %v1443_v22 = vsel %vm1442_vm3, %v1436_v12, %v1441_v20  ;;  %v1456_v23 = vpop.permute.xlu1 %1455  ;;  %v1454_v24 = vpop.permute.xlu0 %1453  ;;  %2580 = vmatpush1.bf16.msra.mxu0 %v2982_v16  ;;  %3018 = vmatpush3.bf16.msra.mxu1 %v3152_v18  ;;  %v3164_v20 = vld [vmem:[#allocation2 + $0x1b8] ss:$12 sps:$4 sm:$0xff]  }
 0x19f   : > { %v1458_v25 = vrot.slane %v1456_v23, 4  ;;  %v1457_v27 = vrot.slane %v1454_v24, 4  ;;  %3025 = vmatprep.subr.bf16.mxu1 %v3153_v37 }
 0x1a1   : > { %v1461_v30 = vsel %vm521_vm13, %v1456_v23, %v1458_v25  ;;  %v1459_v31 = vsel %vm213_vm0, %v1457_v27, %v1458_v25  ;;  %2647 = vmatmul.mubr.bf16.vlgmr.msra.gmra.mxu1 %v3522_v29  ;;  %v3165_v23 = vld [vmem:[#allocation2 + $0x260] ss:$12 sps:$4 sm:$0xff]  }
 0x1a2   : > { %1465 = vst [vmem:[#allocation2 + $0x35c] sm:$0xf] %v1461_v30  ;;  %v1460_v34 = vsel %vm521_vm13, %v1454_v24, %v1459_v31  ;;  %v1402_v36 = vpop.permute.xlu1 %1401  ;;  %v1400_v38 = vpop.permute.xlu0 %1399  ;;  %3026 = vmatpush3.bf16.msra.mxu1 %v3154_v28  ;;  %2686 = vmatprep.mubr.bf16.mxu1 %v3517_v26  ;;  %vm1424_vm13 = vcmask 670720   ;;  %v3166_v31 = vld [vmem:[#allocation2 + $0x1a0] ss:$12 sps:$4 sm:$0xff]  }
 0x1a3   : > { %v1404_v39 = vrot.slane %v1402_v36, 4  ;;  %v1403_v42 = vrot.slane %v1400_v38, 4  ;;  %3027 = vmatprep.subr.bf16.mxu1 %v3155_v33  ;;  %v2979_v43 = vcombine.low %v1443_v22, %v1460_v34  ;;  %v2980_v44 = vcombine.high %v1443_v22, %v1460_v34 }
 0x1a5   : > { %v1408_v46 = vsel %vm1406_vm4, %v1402_v36, %v1404_v39  ;;  %v1405_v29 = vsel %vm213_vm0, %v1403_v42, %v1404_v39  ;;  %2581 = vmatprep.subr.bf16.mxu0 %v2980_v44  ;;  %v3167_v36 = vld [vmem:[#allocation2 + $0x248] ss:$12 sps:$4 sm:$0xff]  }
 0x1a6   : > { %1412 = vst [vmem:[#allocation2 + $0x338] sm:$0xf] %v1408_v46  ;;  %v1407_v49 = vsel %vm1406_vm4, %v1400_v38, %v1405_v29  ;;  %v1420_v50 = vpop.permute.xlu1 %1419  ;;  %v1418_v51 = vpop.permute.xlu0 %1417  ;;  %2582 = vmatpush1.bf16.msra.mxu0 %v2979_v43  ;;  %3028 = vmatpush3.bf16.msra.mxu1 %v3156_v45  ;;  %v3168_v29 = vld [vmem:[#allocation2 + $0x188] ss:$12 sps:$4 sm:$0xff]  }
 0x1a7   : > { %v1422_v26 = vrot.slane %v1420_v50, 4  ;;  %v1421_v52 = vrot.slane %v1418_v51, 4  ;;  %3029 = vmatprep.subr.bf16.mxu1 %v3157_v48 }
 0x1a9   : > { %v1426_v0 = vsel %vm1424_vm13, %v1420_v50, %v1422_v26  ;;  %v1423_v53 = vsel %vm213_vm0, %v1421_v52, %v1422_v26 }
 0x1aa   : > { %1430 = vst [vmem:[#allocation2 + $0x344] sm:$0xf] %v1426_v0  ;;  %v1425_v56 = vsel %vm1424_vm13, %v1418_v51, %v1423_v53  ;;  %v1366_v57 = vpop.permute.xlu1 %1365  ;;  %v1364_v60 = vpop.permute.xlu0 %1363  ;;  %3030 = vmatpush3.bf16.msra.mxu1 %v3158_v1  ;;  %v3169_v1 = vld [vmem:[#allocation2 + $0x3b0] ss:$12 sps:$4 sm:$0xff]   ;;  %v3170_v0 = vld [vmem:[#allocation2 + $0x398] ss:$12 sps:$4 sm:$0xff]  }
 0x1ab   : > { %v1368_v58 = vrot.slane %v1366_v57, 4  ;;  %v1367_v59 = vrot.slane %v1364_v60, 4  ;;  %3031 = vmatprep.subr.bf16.mxu1 %v3159_v54  ;;  %v2976_v61 = vcombine.low %v1407_v49, %v1425_v56  ;;  %v2977_v62 = vcombine.high %v1407_v49, %v1425_v56  ;;  %v3171_v53 = vld [vmem:[#allocation2 + $0x380] ss:$12 sps:$4 sm:$0xff]   ;;  %v3173_v54 = vld [vmem:[#allocation2 + $0x350] ss:$12 sps:$4 sm:$0xff]  }
 0x1ad   : > { %v1372_v3 = vsel %vm1370_vm5, %v1366_v57, %v1368_v58  ;;  %v1369_v4 = vsel %vm213_vm0, %v1367_v59, %v1368_v58  ;;  %2583 = vmatprep.subr.bf16.mxu0 %v2977_v62 }
 0x1ae   : > { %1376 = vst [vmem:[#allocation2 + $0x320] sm:$0xf] %v1372_v3  ;;  %v1371_v6 = vsel %vm1370_vm5, %v1364_v60, %v1369_v4  ;;  %v1384_v7 = vpop.permute.xlu1 %1383  ;;  %v1382_v32 = vpop.permute.xlu0 %1381  ;;  %2584 = vmatpush1.bf16.msra.mxu0 %v2976_v61  ;;  %3032 = vmatpush3.bf16.msra.mxu1 %v3160_v63 }
 0x1af   : > { %v1386_v35 = vrot.slane %v1384_v7, 4  ;;  %v1385_v8 = vrot.slane %v1382_v32, 4  ;;  %3033 = vmatprep.subr.bf16.mxu1 %v3161_v5 }
 0x1b1   : > { %v1390_v40 = vsel %vm1388_vm6, %v1384_v7, %v1386_v35  ;;  %v1387_v2 = vsel %vm213_vm0, %v1385_v8, %v1386_v35  ;;  %v3174_v56 = vld [vmem:[#allocation2 + $0x338] ss:$12 sps:$4 sm:$0xff]  }
 0x1b2   : > { %1394 = vst [vmem:[#allocation2 + $0x32c] sm:$0xf] %v1390_v40  ;;  %v1389_v12 = vsel %vm1388_vm6, %v1382_v32, %v1387_v2  ;;  %v1330_v13 = vpop.permute.xlu1 %1329  ;;  %v1328_v14 = vpop.permute.xlu0 %1327  ;;  %3034 = vmatpush3.bf16.msra.mxu1 %v3162_v9 }
 0x1b3   : > { %v1332_v16 = vrot.slane %v1330_v13, 4  ;;  %v1331_v17 = vrot.slane %v1328_v14, 4  ;;  %3035 = vmatprep.subr.bf16.mxu1 %v3163_v11  ;;  %v2973_v18 = vcombine.low %v1371_v6, %v1389_v12  ;;  %v2974_v19 = vcombine.high %v1371_v6, %v1389_v12 }
 0x1b5   : > { %v1336_v37 = vsel %vm1334_vm7, %v1330_v13, %v1332_v16  ;;  %v1333_v22 = vsel %vm213_vm0, %v1331_v17, %v1332_v16  ;;  %2585 = vmatprep.subr.bf16.mxu0 %v2974_v19 }
 0x1b6   : > { %1340 = vst [vmem:[#allocation2 + $0x308] sm:$0xf] %v1336_v37  ;;  %v1335_v24 = vsel %vm1334_vm7, %v1328_v14, %v1333_v22  ;;  %v1348_v25 = vpop.permute.xlu1 %1347  ;;  %v1346_v27 = vpop.permute.xlu0 %1345  ;;  %2586 = vmatpush1.bf16.msra.mxu0 %v2973_v18  ;;  %3036 = vmatpush3.bf16.msra.mxu1 %v3164_v20  ;;  %v2742_v37 = vsub.s32 1, %v3502_v10  ;;  %v2738_v22 = vsub.s32 0, %v3502_v10 }
 0x1b7   : > { %v1350_v28 = vrot.slane %v1348_v25, 4  ;;  %v1349_v30 = vrot.slane %v1346_v27, 4  ;;  %3037 = vmatprep.subr.bf16.mxu1 %v3165_v23  ;;  %v2734_v23 = vld [vmem:[%s3701_s3] sm:$0x7] }
 0x1b9   : > { %v1354_v33 = vsel %vm1352_vm14, %v1348_v25, %v1350_v28  ;;  %v1351_v34 = vsel %vm213_vm0, %v1349_v30, %v1350_v28  ;;  %v2743_v25 = vrot.slane %v2734_v23, %v2742_v37  ;;  %v2739_v28 = vrot.slane %v2734_v23, %v2738_v22 }
 0x1ba   : > { %1358 = vst [vmem:[#allocation2 + $0x314] sm:$0xf] %v1354_v33  ;;  %v1353_v38 = vsel %vm1352_vm14, %v1346_v27, %v1351_v34  ;;  %v1617_v39 = vpop.permute.xlu1 %1616  ;;  %v1615_v42 = vpop.permute.xlu0 %1614  ;;  %3038 = vmatpush3.bf16.msra.mxu1 %v3166_v31  ;;  %v2746_v34 = vsub.s32 2, %v3502_v10 }
 0x1bb   : > { %v1619_v43 = vrot.slane %v1617_v39, 4  ;;  %v1618_v44 = vrot.slane %v1615_v42, 4  ;;  %3039 = vmatprep.subr.bf16.mxu1 %v3167_v36  ;;  %v2970_v45 = vcombine.low %v1335_v24, %v1353_v38  ;;  %v2971_v46 = vcombine.high %v1335_v24, %v1353_v38 }
 0x1bd   : > { %v1622_v48 = vsel %vm683_vm12, %v1617_v39, %v1619_v43  ;;  %v1620_v49 = vsel %vm213_vm0, %v1618_v44, %v1619_v43  ;;  %2587 = vmatprep.subr.bf16.mxu0 %v2971_v46 }
 0x1be   : > { %1626 = vst [vmem:[#allocation2 + $0x3c8] sm:$0xf] %v1622_v48  ;;  %v1621_v50 = vsel %vm683_vm12, %v1615_v42, %v1620_v49  ;;  %2588 = vmatpush1.bf16.msra.mxu0 %v2970_v45  ;;  %3040 = vmatpush3.bf16.msra.mxu1 %v3168_v29  ;;  %v2747_v42 = vrot.slane %v2734_v23, %v2746_v34 }
 0x1bf   : > { %v2995_v51 = vcombine.high %v1621_v50, %v1621_v50  ;;  %v2994_v26 = vcombine.low %v1621_v50, %v1621_v50 }
 0x1c1   : > { %2997 = vmatprep.subr.msk.bf16.mxu0 %vm213_vm0, %v2995_v51  ;;  %v2483_v52 = vsel %vm213_vm0, %v2994_v26, 0  ;;  %2687 = vmatmul.mubr.bf16.vlgmr.msra.gmra.mxu1 %v3512_v21  ;;  %v3172_v21 = vld [vmem:[#allocation2 + $0x368] ss:$12 sps:$4 sm:$0xff]  }
 0x1c2   : > { %2604 = vmatpush2.bf16.msra.mxu0 %v2483_v52  ;;  %v3176_v57 = vld [vmem:[#allocation2 + $0x308] ss:$12 sps:$4 sm:$0xff]  }
 0x1c3   : > { %2694 = vmatprep.subr.bf16.mxu0 %v3267_v55 }
 0x1c5   : > { %2606 = vmatmul.mubr.bf16.vlgmr.msra.gmra.mxu0 %v3620_v41  ;;  %v3177_v60 = vld [vmem:[#allocation2 + $0x3c8] ss:$0 sps:$4 sm:$0xff]  }
 0x1c6   : > { %2695 = vmatpush1.bf16.msra.mxu0 %v3169_v1  ;;  %2999 = vmatprep.mubr.msk.bf16.mxu0 %vm1007_vm8, %v3625_v47  ;;  %v3175_v47 = vld [vmem:[#allocation2 + $0x320] ss:$12 sps:$4 sm:$0xff]   ;;  %v2489_v58 = vsel %vm213_vm0, %v3177_v60, 0 }
 0x1c7   : > { %2696 = vmatprep.subr.bf16.mxu0 %v3267_v55 }
 0x1c9   : > { %v1795_v62 = vpop.permute.xlu0 %1794 }
 0x1ca   : > { %2697 = vmatpush1.bf16.msra.mxu0 %v3170_v0 }
 0x1cb   : > { %2698 = vmatprep.subr.bf16.mxu0 %v3267_v55 }
 0x1ce   : > { %2699 = vmatpush1.bf16.msra.mxu0 %v3171_v53 }
 0x1cf   : > { %2700 = vmatprep.subr.bf16.mxu0 %v3267_v55 }
 0x1d2   : > { %2701 = vmatpush1.bf16.msra.mxu0 %v3172_v21 }
 0x1d3   : > { %2702 = vmatprep.subr.bf16.mxu0 %v3267_v55 }
 0x1d6   : > { %2703 = vmatpush1.bf16.msra.mxu0 %v3173_v54 }
 0x1d7   : > { %2704 = vmatprep.subr.bf16.mxu0 %v3267_v55 }
 0x1da   : > { %2705 = vmatpush1.bf16.msra.mxu0 %v3174_v56 }
 0x1db   : > { %2706 = vmatprep.subr.bf16.mxu0 %v3267_v55 }
 0x1de   : > { %2707 = vmatpush1.bf16.msra.mxu0 %v3175_v47 }
 0x1df   : > { %2708 = vmatprep.subr.bf16.mxu0 %v3267_v55 }
 0x1e2   : > { %2709 = vmatpush1.bf16.msra.mxu0 %v3176_v57 }
 0x1e3   : > { %2724 = vmatprep.subr.bf16.mxu0 %v3267_v55 }
 0x1e6   : > { %2725 = vmatpush2.bf16.msra.mxu0 %v2489_v58 }
 0x1e9   : > { %2727 = vmatmul.mubr.bf16.vlgmr.msra.gmra.mxu0 %v3620_v41 }
 0x239   : > { %v2525_v59 = vpop.f32.mrf.mxu0 }
 0x23a   : > { %v2526_v3 = vadd.f32 %v2525_v59, %v1795_v62 }
 0x23b   : > { %v2527_v61 = vpop.f32.mrf.mxu0 }
 0x23c   : > { %v2528_v5 = vadd.f32 %v2527_v61, %v1795_v62 }
 0x23d   : > { %v2529_v63 = vpop.f32.mrf.mxu0 }
 0x23f   : > { %v2530_v4 = vpop.f32.mrf.mxu0 }
 0x241   : > { %v2566_v6 = vpop.f32.mrf.mxu1 }
 0x242   : > { %v2567_v7 = vadd.f32 %v2566_v6, %v2526_v3 }
 0x243   : > { %v2568_v32 = vpop.f32.mrf.mxu1 }
 0x244   : > { %v2569_v35 = vadd.f32 %v2568_v32, %v2528_v5 }
 0x245   : > { %v2570_v8 = vpop.f32.mrf.mxu1 }
 0x247   : > { %v2571_v9 = vpop.f32.mrf.mxu1 }
 0x261   : > { %v3019_v40 = vpop.f32.mrf.mxu1 }
 0x263   : > { %v3020_v55 = vpop.f32.mrf.mxu1 }
 0x264   : > { %v3021_v2 = vadd.f32 %v3020_v55, %v3019_v40 }
 0x265   : > { %v3022_v11 = vpop.f32.mrf.mxu1 }
 0x266   : > { %v2649_v30 = vadd.f32 %v3021_v2, %v1795_v62 }
 0x267   : > { %v3023_v12 = vpop.f32.mrf.mxu1 }
 0x281   : > { %v3041_v13 = vpop.f32.mrf.mxu1 }
 0x283   : > { %v3042_v41 = vpop.f32.mrf.mxu1 }
 0x284   : > { %v3043_v31 = vadd.f32 %v3042_v41, %v3041_v13 }
 0x285   : > { %v2607_v14 = vpop.f32.mrf.mxu0  ;;  %v3044_v16 = vpop.f32.mrf.mxu1 }
 0x286   : > { %v2608_v27 = vadd.f32 %v2607_v14, %v2567_v7  ;;  %v2689_v39 = vadd.f32 %v3043_v31, %v2649_v30 }
 0x287   : > { %v2609_v17 = vpop.f32.mrf.mxu0  ;;  %v3045_v18 = vpop.f32.mrf.mxu1 }
 0x288   : > { %v2610_v24 = vadd.f32 %v2609_v17, %v2569_v35  ;;  %v2751_v36 = vmul.f32 %v2739_v28, %v2608_v27 }
 0x289   : > { %v2611_v19 = vpop.f32.mrf.mxu0 }
 0x28a   : > { %v2752_v33 = vmul.f32 %v2743_v25, %v2610_v24  ;;  %v2762_v44 = vmul.f32 %v2751_v36, %v2751_v36  ;;  %v2754_v48 = vsel %vm213_vm0, %v2751_v36, 0.0 }
 0x28b   : > { %v2612_v20 = vpop.f32.mrf.mxu0 }
 0x28c   : > { %v2763_v38 = vmul.f32 %v2752_v33, %v2752_v33  ;;  %v2755_v45 = vsel %vm213_vm0, %v2752_v33, 0.0  ;;  %v2765_v52 = vsel %vm213_vm0, %v2762_v44, 0.0 }
 0x28d   : > { %v2756_v51 = vadd.f32 %v2755_v45, %v2754_v48 }
 0x28e   : > { %v2766_v49 = vsel %vm213_vm0, %v2763_v38, 0.0 }
 0x28f   : > { %v2767_v21 = vadd.f32 %v2766_v49, %v2765_v52 }
 0x2a9   : > { %v2728_v43 = vpop.f32.mrf.mxu0 }
 0x2aa   : > { %v2729_v46 = vadd.f32 %v2728_v43, %v2689_v39 }
 0x2ab   : > { %v2730_v29 = vpop.f32.mrf.mxu0 }
 0x2ac   : > { %v2753_v50 = vmul.f32 %v2747_v42, %v2729_v46 }
 0x2ad   : > { %v2731_v26 = vpop.f32.mrf.mxu0 }
 0x2ae   : > { %v2757_v10 = vsel %vm213_vm0, %v2753_v50, 0.0  ;;  %v2764_v1 = vmul.f32 %v2753_v50, %v2753_v50 }
 0x2af   : > { %v2732_v0 = vpop.f32.mrf.mxu0  ;;  %v2758_v53 = vadd.f32 %v2757_v10, %v2756_v51 }
 0x2b0   : > { %v2768_v54 = vsel %vm213_vm0, %v2764_v1, 0.0 }
 0x2b1   : > { %2759 = vadd.xlane.f32.xlu1 %v2758_v53  ;;  %v2769_v56 = vadd.f32 %v2768_v54, %v2767_v21 }
 0x2b3   : > { %2770 = vadd.xlane.f32.xlu0 %v2769_v56 }
 0x33a   : > { %v2760_v47 = vpop.xlane.xlu1 %2759 }
 0x33b   : > { %v2761_v57 = vmul.f32 0.00390625, %v2760_v47 }
 0x33c   : > { %v2771_v60 = vpop.xlane.xlu0 %2770 }
 0x33d   : > { %v2772_v58 = vmul.f32 0.00390625, %v2771_v60  ;;  %v2773_v59 = vmul.f32 %v2761_v57, %v2761_v57  ;;  %v2776_v3 = vsub.f32 %v2608_v27, %v2761_v57  ;;  %v2777_v4 = vsub.f32 %v2610_v24, %v2761_v57 }
 0x33e   : > { %v2778_v5 = vsub.f32 %v2729_v46, %v2761_v57 }
 0x33f   : > { %v2774_v61 = vsub.f32 %v2772_v58, %v2773_v59 }
 0x341   : > { %v2775_v62 = vmax.f32 %v2774_v61, 0.0 }
 0x343   : > { %v2779_v63 = vadd.f32 1e-05, %v2775_v62 }
 0x345   : > { %3178 = vrsqrt.f32 %v2779_v63 }
 0x352   : > { %v3179_v6 = vpop.eup %3178 }
 0x353   : > { %v2781_v7 = vmul.f32 %v3179_v6, %v2776_v3  ;;  %v2782_v32 = vmul.f32 %v3179_v6, %v2777_v4  ;;  %v2783_v35 = vmul.f32 %v3179_v6, %v2778_v5 }
 0x355   : > { %v2784_v8 = vmax.f32 %v2781_v7, 0.0  ;;  %v2785_v9 = vmax.f32 %v2782_v32, 0.0  ;;  %v2786_v40 = vmax.f32 %v2783_v35, 0.0 }
 0x357   : > { %v2789_v55 = vpack.c.bf16 %v2786_v40, %v2786_v40  ;;  %v3000_v2 = vpack.c.bf16 %v2785_v9, %v2784_v8 }
 0x359   : > { %v2800_v11 = vrot.slane %v3000_v2, %v3506_v15  ;;  %v2807_v12 = vrot.slane %v2789_v55, %v3506_v15 }
 0x35b   : > { %v2808_v13 = vcombine.low %v2800_v11, %v2807_v12 }
 0x35d   : > { %2810 = vst [vmem:[%s197_s13] sm:$0x3f] %v2808_v13 }
 0x35e PF: > { %s14_s15 = sadd.s32 1, %s3188_s15  }
 0x35f   : > { %p11_p4 = scmp.ge.s32.totalorder %s14_s15, 4  }
 0x361   :  { %13 = sbr.rel (!%p11_p4) target bundleno = 1 (0x1), region = 66 }

// kernel: transform_net_forward.18
= control target key start
LH: loop header
LB: loop body
LE: loop exit
PB: predicated region body
PF: predicated region fallthrough
CT: control target
= control target key end

     0   :  { %s569_s15 = smov 0   ;;  %s613_s0 = inlined_call_operand.vmem [shape: bf16[2,4,8,30], index: 0, kind: input, shape index: {}]   ;;  %s614_s1 = inlined_call_operand.vmem [shape: bf16[1,16,72], index: 1, kind: input, shape index: {}]   ;;  %s615_s2 = inlined_call_operand.vmem [shape: f32[16,1], index: 2, kind: input, shape index: {}]   ;;  %s616_s3 = inlined_call_operand.vmem [shape: f32[1,20], index: 3, kind: input, shape index: {}]   ;;  %s617_s4 = inlined_call_operand.vmem [shape: bf16[2,16,20], index: 4, kind: output, shape index: {}]  }
   0x1 LB: > { %s454_s16 = sadd.s32 4294967295, %s536_s15   ;;  %p458_p0 = scmp.ge.s32.totalorder %s536_s15, 1  ;;  %s536_s15 = sphi %s569_s15, %s14_s15  }
   0x2   : > { %p162_p1 = scmp.lt.s32.totalorder %s536_s15, 3 }
   0x4   : > { %p163_p2 = pnand %p458_p0, %p162_p1 }
   0x5   : > { %p188_p3 = scmp.lt.s32.totalorder (!%p163_p2), %s454_s16, 1  ;;  %s539_s21 = smov (!%p163_p2), 122  }
   0x6   : > { %166 = sbr.rel (%p163_p2) target bundleno = 531 (0x213), region = 36  ;;  %s540_s22 = smov (!%p163_p2), 123  }
   0x7   : > { %s541_s23 = smov (!%p163_p2), 127  }
   0xb   : > { %v538_v0 = vmov 0.0   ;;  %s619_s16 = smov (!%p188_p3, %s454_s16), 1  ;;  %vm200_vm0 = vcmask 158720   ;;  %vm542_vm1 = vmmov 0   ;;  %v252_v10 = vld [vmem:[%s615_s2] sm:$0xff]  ;;  %v253_v11 = vld [vmem:[%s615_s2 + $0x8] sm:$0xff] }
   0xc   : > { %490 = vmatprep.subr.bf16.mxu0 %v538_v0  ;;  %s480_s17 = sshll.u32 %s619_s16, 4  ;;  %500 = vmatprep.mubr.msk.bf16.mxu0 %vm542_vm1, %v538_v0  ;;  %v543_v12 = vmov 0   ;;  %vm300_vm2 = vcmask 1043456   ;;  %v525_v24 = vld [vmem:[%s614_s1] sm:$0xff]   ;;  %vm296_vm3 = vcmask 588800   ;;  %vm354_vm4 = vcmask 162816  }
   0xd   : > { %s192_s20 = scalar_lea.vmem %s613_s0, %s480_s17  ;;  %518 = vset.pattern.permute.xlu1 %v543_v12  ;;  %519 = vset.pattern.permute.xlu0 %v543_v12  ;;  %v475_v27 = vld [vmem:[%s616_s3] ss:$0 sm:$0xff]  ;;  %s481_s6 = sshll.u32 %s619_s16, 3 }
   0xe   : > { %v235_v1 = vld [vmem:[%s192_s20] sm:$0xf]  ;;  %v467_v2 = vld [vmem:[%s192_s20 + $0x4] sm:$0xf]  ;;  %v466_v4 = vld [vmem:[%s192_s20 + $0x8] sm:$0xf]  ;;  %s197_s9 = scalar_lea.vmem %s617_s4, %s481_s6 }
   0xf   : > { %237 = vrot.lane.b32.xlu0 %v235_v1, %s539_s21  ;;  %231 = vrot.lane.b32.xlu1 %v467_v2, %s540_s22  ;;  %v223_v3 = vld [vmem:[%s192_s20] sm:$0xf]  ;;  %v465_v5 = vld [vmem:[%s192_s20 + $0xc] sm:$0xf] }
  0x10   : > { %v464_v6 = vld [vmem:[%s192_s20 + $0x8] sm:$0xf]  ;;  %216 = vst.msk [vmem:[#allocation2 + $0x10] sm:$0xf] %vm200_vm0, %v465_v5  ;;  %v199_v7 = vld [vmem:[%s192_s20] sm:$0xf] }
  0x11   : > { %213 = vst.msk [vmem:[#allocation2 + $0xc] sm:$0xf] %vm200_vm0, %v464_v6  ;;  %v463_v8 = vld [vmem:[%s192_s20 + $0x4] sm:$0xf]  ;;  %201 = vst.msk [vmem:[#allocation2] sm:$0xf] %vm200_vm0, %v199_v7 }
  0x12   : > { %204 = vst.msk [vmem:[#allocation2 + $0x4] sm:$0xf] %vm200_vm0, %v463_v8  ;;  %v205_v9 = vld [vmem:[%s192_s20] sm:$0xf] }
  0x13   : > { %225 = vrot.lane.b32.xlu0 %v223_v3, %s540_s22  ;;  %219 = vrot.lane.b32.xlu1 %v466_v4, %s541_s23 }
  0x17   : > { %207 = vrot.lane.b32.xlu0 %v205_v9, %s541_s23  ;;  %256 = vperm.xlu1 %518, %v252_v10  }
  0x19   : > { %v524_v23 = vld [vmem:[#allocation2] sm:$0xff]  }
  0x1b   : > { %261 = vperm.xlu0 %519, %v253_v11  }
  0x81   : > { %v238_v13 = vpop.permute.xlu0 %237  ;;  %v232_v14 = vpop.permute.xlu1 %231 }
  0x82   : > { %240 = vst.msk [vmem:[#allocation2 + $0x20] sm:$0xf] %vm200_vm0, %v238_v13  ;;  %234 = vst.msk [vmem:[#allocation2 + $0x1c] sm:$0xf] %vm200_vm0, %v232_v14 }
  0x85   : > { %v226_v15 = vpop.permute.xlu0 %225  ;;  %v220_v16 = vpop.permute.xlu1 %219 }
  0x86   : > { %228 = vst.msk [vmem:[#allocation2 + $0x18] sm:$0xf] %vm200_vm0, %v226_v15  ;;  %222 = vst.msk [vmem:[#allocation2 + $0x14] sm:$0xf] %vm200_vm0, %v220_v16 }
  0x89   : > { %v520_v17 = vld [vmem:[#allocation2 + $0x20] ss:$0 sps:$4 sm:$0xff]   ;;  %v208_v18 = vpop.permute.xlu0 %207 }
  0x8a   : > { %210 = vst.msk [vmem:[#allocation2 + $0x8] sm:$0xf] %vm200_vm0, %v208_v18  ;;  %v302_v19 = vsel %vm300_vm2, %v520_v17, 0 }
  0x8b   : > { %491 = vmatpush3.bf16.msra.mxu0 %v302_v19 }
  0x8c   : > { %492 = vmatprep.subr.bf16.mxu0 %v538_v0 }
  0x8d   : > { %v521_v20 = vld [vmem:[#allocation2 + $0x18] sm:$0xff]   ;;  %v522_v21 = vld [vmem:[#allocation2 + $0x10] sm:$0xff]  }
  0x8f   : > { %493 = vmatpush3.bf16.msra.mxu0 %v521_v20 }
  0x90   : > { %494 = vmatprep.subr.bf16.mxu0 %v538_v0 }
  0x91   : > { %v523_v22 = vld [vmem:[#allocation2 + $0x8] sm:$0xff]  }
  0x92   : > { %v257_v25 = vpop.permute.xlu1 %256 }
  0x93   : > { %495 = vmatpush3.bf16.msra.mxu0 %v522_v21 }
  0x94   : > { %496 = vmatprep.subr.bf16.mxu0 %v538_v0 }
  0x96   : > { %v262_v30 = vpop.permute.xlu0 %261 }
  0x97   : > { %497 = vmatpush3.bf16.msra.mxu0 %v523_v22 }
  0x98   : > { %498 = vmatprep.subr.bf16.mxu0 %v538_v0 }
  0x9b   : > { %499 = vmatpush3.bf16.msra.mxu0 %v524_v23 }
  0x9e   : > { %501 = vmatmul.mubr.msk.bf16.vlgmr.msra.gmra.mxu0 %vm296_vm3, %v525_v24 }
 0x15e   : > { %v338_v26 = vpop.f32.mrf.mxu0 }
 0x15f   : > { %v339_v28 = vadd.f32 %v338_v26, %v257_v25 }
 0x160   : > { %v502_v29 = vpop.f32.mrf.mxu0 }
 0x161   : > { %v352_v31 = vmul.f32 %v475_v27, %v339_v28 }
 0x162   : > { %v341_v32 = vpop.f32.mrf.mxu0 }
 0x163   : > { %v342_v33 = vadd.f32 %v341_v32, %v262_v30  ;;  %v355_v34 = vsel %vm354_vm4, %v352_v31, 0.0  ;;  %v363_v35 = vmul.f32 %v352_v31, %v352_v31 }
 0x164   : > { %356 = vadd.xlane.f32.xlu1 %v355_v34  ;;  %v503_v36 = vpop.f32.mrf.mxu0 }
 0x165   : > { %v353_v37 = vmul.f32 %v475_v27, %v342_v33  ;;  %v365_v38 = vsel %vm354_vm4, %v363_v35, 0.0 }
 0x167   : > { %v358_v39 = vsel %vm354_vm4, %v353_v37, 0.0  ;;  %v364_v40 = vmul.f32 %v353_v37, %v353_v37 }
 0x168   : > { %366 = vadd.xlane.f32.xlu1 %v365_v38  ;;  %359 = vadd.xlane.f32.xlu0 %v358_v39 }
 0x169   : > { %v368_v41 = vsel %vm354_vm4, %v364_v40, 0.0 }
 0x16c   : > { %369 = vadd.xlane.f32.xlu0 %v368_v41 }
 0x1ed   : > { %v357_v42 = vpop.xlane.xlu1 %356 }
 0x1ee   : > { %v361_v43 = vmul.f32 0.0625, %v357_v42 }
 0x1f0   : > { %v373_v46 = vmul.f32 %v361_v43, %v361_v43  ;;  %v379_v58 = vsub.f32 %v339_v28, %v361_v43 }
 0x1f1   : > { %v367_v44 = vpop.xlane.xlu1 %366  ;;  %v360_v45 = vpop.xlane.xlu0 %359 }
 0x1f2   : > { %v371_v47 = vmul.f32 0.0625, %v367_v44  ;;  %v362_v48 = vmul.f32 0.0625, %v360_v45 }
 0x1f4   : > { %v375_v49 = vsub.f32 %v371_v47, %v373_v46  ;;  %v374_v52 = vmul.f32 %v362_v48, %v362_v48  ;;  %v380_v62 = vsub.f32 %v342_v33, %v362_v48 }
 0x1f5   : > { %v370_v50 = vpop.xlane.xlu0 %369 }
 0x1f6   : > { %v377_v51 = vmax.f32 %v375_v49, 0.0  ;;  %v372_v53 = vmul.f32 0.0625, %v370_v50 }
 0x1f8   : > { %v381_v54 = vadd.f32 1e-05, %v377_v51  ;;  %v376_v55 = vsub.f32 %v372_v53, %v374_v52 }
 0x1fa   : > { %526 = vrsqrt.f32 %v381_v54  ;;  %v378_v56 = vmax.f32 %v376_v55, 0.0 }
 0x1fc   : > { %v382_v57 = vadd.f32 1e-05, %v378_v56 }
 0x1fe   : > { %528 = vrsqrt.f32 %v382_v57 }
 0x207   : > { %v527_v59 = vpop.eup %526 }
 0x208   : > { %v385_v60 = vmul.f32 %v527_v59, %v379_v58 }
 0x20a   : > { %v387_v61 = vmax.f32 %v385_v60, 0.0 }
 0x20b   : > { %v529_v63 = vpop.eup %528 }
 0x20c   : > { %v482_v0 = vpack.c.bf16 %v387_v61, %v387_v61  ;;  %v386_v1 = vmul.f32 %v529_v63, %v380_v62 }
 0x20e   : > { %397 = vst.msk [vmem:[%s197_s9] sm:$0xf] %vm200_vm0, %v482_v0  ;;  %v388_v2 = vmax.f32 %v386_v1, 0.0 }
 0x210   : > { %v483_v3 = vpack.c.bf16 %v388_v2, %v388_v2 }
 0x212   : > { %398 = vst.msk [vmem:[%s197_s9 + $0x4] sm:$0xf] %vm200_vm0, %v483_v3 }
 0x213 PF: > { %s14_s15 = sadd.s32 1, %s536_s15  }
 0x214   : > { %p11_p4 = scmp.ge.s32.totalorder %s14_s15, 4  }
 0x216   :  { %13 = sbr.rel (!%p11_p4) target bundleno = 1 (0x1), region = 69 }

// kernel: transform_net_forward.19
= control target key start
LH: loop header
LB: loop body
LE: loop exit
PB: predicated region body
PF: predicated region fallthrough
CT: control target
= control target key end

     0   :  { %s656_s15 = smov 0   ;;  %s746_s0 = inlined_call_operand.vmem [shape: bf16[2,1,16,42], index: 0, kind: input, shape index: {}]   ;;  %s747_s1 = inlined_call_operand.vmem [shape: bf16[1,16,144], index: 1, kind: input, shape index: {}]   ;;  %s748_s2 = inlined_call_operand.vmem [shape: f32[16,1], index: 2, kind: input, shape index: {}]   ;;  %s749_s3 = inlined_call_operand.vmem [shape: f32[1,24], index: 3, kind: input, shape index: {}]   ;;  %s750_s4 = inlined_call_operand.vmem [shape: bf16[2,16,24], index: 4, kind: output, shape index: {}]  }
   0x1 LB: > { %s549_s16 = sadd.s32 4294967295, %s620_s15   ;;  %p553_p0 = scmp.ge.s32.totalorder %s620_s15, 1  ;;  %s620_s15 = sphi %s656_s15, %s14_s15  }
   0x2   : > { %p162_p1 = scmp.lt.s32.totalorder %s620_s15, 3 }
   0x4   : > { %p163_p2 = pnand %p553_p0, %p162_p1 }
   0x5   : > { %p188_p3 = scmp.lt.s32.totalorder (!%p163_p2), %s549_s16, 1  ;;  %s623_s21 = smov (!%p163_p2), 115  }
   0x6   : > { %166 = sbr.rel (%p163_p2) target bundleno = 550 (0x226), region = 36  ;;  %s624_s22 = smov (!%p163_p2), 116  }
   0x7   : > { %s625_s23 = smov (!%p163_p2), 120   ;;  %s626_s24 = smov (!%p163_p2), 121  }
   0x8   : > { %s627_s25 = smov (!%p163_p2), 122   ;;  %s628_s26 = smov (!%p163_p2), 126  }
   0x9   : > { %s629_s27 = smov (!%p163_p2), 127   ;;  %s630_s28 = smov (!%p163_p2), 114  }
   0xb   : > { %s752_s16 = smov (!%p188_p3, %s549_s16), 1  ;;  %v622_v0 = vmov 0   ;;  %vm201_vm0 = vcmask 191488   ;;  %v609_v19 = vld [vmem:[%s747_s1 + $0x4] ss:$8 sps:$4 sm:$0xff]   ;;  %vm395_vm1 = vcmask 130048  }
   0xc   : > { %399 = vmatprep.subr.bf16.mxu0 %v622_v0  ;;  %596 = vset.pattern.permute.xlu0 %v622_v0  ;;  %s575_s17 = sshll.u32 %s752_s16, 3  ;;  %v320_v20 = vld [vmem:[%s748_s2] sm:$0xff]  ;;  %v321_v21 = vld [vmem:[%s748_s2 + $0x8] sm:$0xff]  ;;  %vm449_vm2 = vcmask 195584  }
   0xd   : > { %597 = vset.pattern.permute.xlu1 %v622_v0  ;;  %s675_s20 = scalar_lea.vmem %s746_s0, %s575_s17  ;;  %569 = vmatprep.mubr.msk.bf16.mxu0 %vm395_vm1, %v609_v19  ;;  %v607_v47 = vld [vmem:[%s747_s1] ss:$8 sps:$4 sm:$0xff]   ;;  %s197_s18 = scalar_lea.vmem %s750_s4, %s575_s17 }
   0xe   : > { %v276_v1 = vld [vmem:[%s675_s20] sm:$0xf]  ;;  %v277_v3 = vld [vmem:[%s675_s20 + $0x4] sm:$0xf] }
   0xf   : > { %v264_v2 = vld [vmem:[%s675_s20] sm:$0xf]  ;;  %280 = vrot.lane.b32.xlu0 %v276_v1, %s623_s21  ;;  %v265_v4 = vld [vmem:[%s675_s20 + $0x4] sm:$0xf] }
  0x10   : > { %268 = vrot.lane.b32.xlu1 %v264_v2, %s624_s22  ;;  %v253_v5 = vld [vmem:[%s675_s20 + $0x4] sm:$0xf]  ;;  %v252_v6 = vld [vmem:[%s675_s20] sm:$0xf] }
  0x11   : > { %v241_v7 = vld [vmem:[%s675_s20 + $0x4] sm:$0xf]  ;;  %v240_v8 = vld [vmem:[%s675_s20] sm:$0xf] }
  0x12   : > { %v229_v9 = vld [vmem:[%s675_s20 + $0x4] sm:$0xf]  ;;  %v228_v10 = vld [vmem:[%s675_s20] sm:$0xf] }
  0x13   : > { %282 = vrot.lane.b32.xlu0 %v277_v3, %s623_s21  ;;  %v217_v11 = vld [vmem:[%s675_s20 + $0x4] sm:$0xf]  ;;  %v216_v12 = vld [vmem:[%s675_s20] sm:$0xf] }
  0x14   : > { %270 = vrot.lane.b32.xlu1 %v265_v4, %s624_s22  ;;  %v199_v13 = vld [vmem:[%s675_s20] sm:$0xf]  ;;  %v200_v14 = vld [vmem:[%s675_s20 + $0x4] sm:$0xf] }
  0x15   : > { %202 = vst.msk [vmem:[#allocation2] sm:$0xf] %vm201_vm0, %v199_v13  ;;  %203 = vst.msk [vmem:[#allocation2 + $0x4] sm:$0xf] %vm201_vm0, %v200_v14  ;;  %v205_v15 = vld [vmem:[%s675_s20 + $0x4] sm:$0xf] }
  0x16   : > { %v204_v16 = vld [vmem:[%s675_s20] sm:$0xf]  ;;  %v289_v17 = vld [vmem:[%s675_s20 + $0x4] sm:$0xf] }
  0x17   : > { %256 = vrot.lane.b32.xlu0 %v252_v6, %s625_s23  ;;  %v288_v18 = vld [vmem:[%s675_s20] sm:$0xf] }
  0x18   : > { %258 = vrot.lane.b32.xlu1 %v253_v5, %s625_s23  ;;  %v570_v50 = vld [vmem:[%s749_s3] ss:$0 sm:$0xff] }
  0x1b   : > { %244 = vrot.lane.b32.xlu0 %v240_v8, %s626_s24 }
  0x1c   : > { %246 = vrot.lane.b32.xlu1 %v241_v7, %s626_s24  ;;  %v605_v45 = vld [vmem:[#allocation2] sm:$0xff]  }
  0x1f   : > { %232 = vrot.lane.b32.xlu0 %v228_v10, %s627_s25 }
  0x20   : > { %234 = vrot.lane.b32.xlu1 %v229_v9, %s627_s25 }
  0x23   : > { %220 = vrot.lane.b32.xlu0 %v216_v12, %s628_s26 }
  0x24   : > { %222 = vrot.lane.b32.xlu1 %v217_v11, %s628_s26 }
  0x27   : > { %208 = vrot.lane.b32.xlu0 %v204_v16, %s629_s27 }
  0x28   : > { %210 = vrot.lane.b32.xlu1 %v205_v15, %s629_s27 }
  0x2b   : > { %292 = vrot.lane.b32.xlu0 %v288_v18, %s630_s28 }
  0x2c   : > { %294 = vrot.lane.b32.xlu1 %v289_v17, %s630_s28 }
  0x2f   : > { %324 = vperm.xlu0 %596, %v320_v20  }
  0x30   : > { %329 = vperm.xlu1 %597, %v321_v21  }
  0x81   : > { %v281_v22 = vpop.permute.xlu0 %280 }
  0x82   : > { %v269_v23 = vpop.permute.xlu1 %268  ;;  %286 = vst.msk [vmem:[#allocation2 + $0x38] sm:$0xf] %vm201_vm0, %v281_v22 }
  0x83   : > { %274 = vst.msk [vmem:[#allocation2 + $0x30] sm:$0xf] %vm201_vm0, %v269_v23 }
  0x85   : > { %v283_v24 = vpop.permute.xlu0 %282 }
  0x86   : > { %v271_v25 = vpop.permute.xlu1 %270  ;;  %287 = vst.msk [vmem:[#allocation2 + $0x3c] sm:$0xf] %vm201_vm0, %v283_v24 }
  0x87   : > { %275 = vst.msk [vmem:[#allocation2 + $0x34] sm:$0xf] %vm201_vm0, %v271_v25 }
  0x89   : > { %v257_v27 = vpop.permute.xlu0 %256 }
  0x8a   : > { %v259_v26 = vpop.permute.xlu1 %258  ;;  %262 = vst.msk [vmem:[#allocation2 + $0x28] sm:$0xf] %vm201_vm0, %v257_v27 }
  0x8b   : > { %263 = vst.msk [vmem:[#allocation2 + $0x2c] sm:$0xf] %vm201_vm0, %v259_v26 }
  0x8d   : > { %v598_v28 = vld [vmem:[#allocation2 + $0x38] sm:$0xff]   ;;  %v245_v30 = vpop.permute.xlu0 %244 }
  0x8e   : > { %v247_v29 = vpop.permute.xlu1 %246  ;;  %250 = vst.msk [vmem:[#allocation2 + $0x20] sm:$0xf] %vm201_vm0, %v245_v30  ;;  %400 = vmatpush1.bf16.msra.mxu0 %v598_v28  ;;  %v599_v31 = vld [vmem:[#allocation2 + $0x30] sm:$0xff]  }
  0x8f   : > { %251 = vst.msk [vmem:[#allocation2 + $0x24] sm:$0xf] %vm201_vm0, %v247_v29  ;;  %401 = vmatprep.subr.bf16.mxu0 %v622_v0 }
  0x91   : > { %v233_v33 = vpop.permute.xlu0 %232 }
  0x92   : > { %v235_v32 = vpop.permute.xlu1 %234  ;;  %238 = vst.msk [vmem:[#allocation2 + $0x18] sm:$0xf] %vm201_vm0, %v233_v33  ;;  %402 = vmatpush1.bf16.msra.mxu0 %v599_v31  ;;  %v600_v34 = vld [vmem:[#allocation2 + $0x28] sm:$0xff]  }
  0x93   : > { %239 = vst.msk [vmem:[#allocation2 + $0x1c] sm:$0xf] %vm201_vm0, %v235_v32  ;;  %403 = vmatprep.subr.bf16.mxu0 %v622_v0 }
  0x95   : > { %v221_v36 = vpop.permute.xlu0 %220 }
  0x96   : > { %v223_v35 = vpop.permute.xlu1 %222  ;;  %226 = vst.msk [vmem:[#allocation2 + $0x10] sm:$0xf] %vm201_vm0, %v221_v36  ;;  %404 = vmatpush1.bf16.msra.mxu0 %v600_v34  ;;  %v601_v37 = vld [vmem:[#allocation2 + $0x20] sm:$0xff]  }
  0x97   : > { %227 = vst.msk [vmem:[#allocation2 + $0x14] sm:$0xf] %vm201_vm0, %v223_v35  ;;  %405 = vmatprep.subr.bf16.mxu0 %v622_v0 }
  0x99   : > { %v209_v39 = vpop.permute.xlu0 %208 }
  0x9a   : > { %v211_v38 = vpop.permute.xlu1 %210  ;;  %214 = vst.msk [vmem:[#allocation2 + $0x8] sm:$0xf] %vm201_vm0, %v209_v39  ;;  %406 = vmatpush1.bf16.msra.mxu0 %v601_v37  ;;  %v602_v40 = vld [vmem:[#allocation2 + $0x18] sm:$0xff]  }
  0x9b   : > { %215 = vst.msk [vmem:[#allocation2 + $0xc] sm:$0xf] %vm201_vm0, %v211_v38  ;;  %407 = vmatprep.subr.bf16.mxu0 %v622_v0 }
  0x9d   : > { %v293_v42 = vpop.permute.xlu0 %292 }
  0x9e   : > { %v295_v41 = vpop.permute.xlu1 %294  ;;  %298 = vst.msk [vmem:[#allocation2 + $0x40] sm:$0xf] %vm201_vm0, %v293_v42  ;;  %408 = vmatpush1.bf16.msra.mxu0 %v602_v40  ;;  %v603_v43 = vld [vmem:[#allocation2 + $0x10] sm:$0xff]  }
  0x9f   : > { %299 = vst.msk [vmem:[#allocation2 + $0x44] sm:$0xf] %vm201_vm0, %v295_v41  ;;  %409 = vmatprep.subr.bf16.mxu0 %v622_v0 }
  0xa2   : > { %410 = vmatpush1.bf16.msra.mxu0 %v603_v43  ;;  %v604_v44 = vld [vmem:[#allocation2 + $0x8] sm:$0xff]  }
  0xa3   : > { %411 = vmatprep.subr.bf16.mxu0 %v622_v0 }
  0xa6   : > { %412 = vmatpush1.bf16.msra.mxu0 %v604_v44  ;;  %v606_v46 = vld [vmem:[#allocation2 + $0x40] sm:$0xff]  }
  0xa7   : > { %413 = vmatprep.subr.bf16.mxu0 %v622_v0 }
  0xaa   : > { %414 = vmatpush1.bf16.msra.mxu0 %v605_v45  ;;  %v325_v48 = vpop.permute.xlu0 %324 }
  0xab   : > { %429 = vmatprep.subr.bf16.mxu0 %v622_v0  ;;  %v330_v53 = vpop.permute.xlu1 %329 }
  0xae   : > { %430 = vmatpush2.bf16.msra.mxu0 %v606_v46 }
  0xb1   : > { %432 = vmatmul.mubr.bf16.vlgmr.msra.gmra.mxu0 %v607_v47 }
 0x171   : > { %v433_v49 = vpop.f32.mrf.mxu0 }
 0x172   : > { %v434_v51 = vadd.f32 %v433_v49, %v325_v48 }
 0x173   : > { %v435_v52 = vpop.f32.mrf.mxu0 }
 0x174   : > { %v447_v54 = vmul.f32 %v570_v50, %v434_v51 }
 0x175   : > { %v436_v55 = vpop.f32.mrf.mxu0 }
 0x176   : > { %v437_v56 = vadd.f32 %v436_v55, %v330_v53  ;;  %v450_v57 = vsel %vm449_vm2, %v447_v54, 0.0  ;;  %v458_v62 = vmul.f32 %v447_v54, %v447_v54 }
 0x177   : > { %v438_v58 = vpop.f32.mrf.mxu0  ;;  %451 = vadd.xlane.f32.xlu1 %v450_v57 }
 0x178   : > { %v448_v59 = vmul.f32 %v570_v50, %v437_v56  ;;  %v460_v0 = vsel %vm449_vm2, %v458_v62, 0.0 }
 0x17a   : > { %v453_v60 = vsel %vm449_vm2, %v448_v59, 0.0  ;;  %v459_v61 = vmul.f32 %v448_v59, %v448_v59 }
 0x17b   : > { %454 = vadd.xlane.f32.xlu0 %v453_v60 }
 0x17c   : > { %v463_v63 = vsel %vm449_vm2, %v459_v61, 0.0 }
 0x17d   : > { %464 = vadd.xlane.f32.xlu1 %v463_v63 }
 0x17f   : > { %461 = vadd.xlane.f32.xlu0 %v460_v0 }
 0x200   : > { %v452_v1 = vpop.xlane.xlu1 %451 }
 0x201   : > { %v456_v3 = vmul.f32 0.0625, %v452_v1 }
 0x203   : > { %v468_v9 = vmul.f32 %v456_v3, %v456_v3  ;;  %v474_v19 = vsub.f32 %v434_v51, %v456_v3 }
 0x204   : > { %v455_v2 = vpop.xlane.xlu0 %454 }
 0x205   : > { %v457_v4 = vmul.f32 0.0625, %v455_v2 }
 0x206   : > { %v465_v5 = vpop.xlane.xlu1 %464 }
 0x207   : > { %v469_v6 = vmul.f32 %v457_v4, %v457_v4  ;;  %v467_v7 = vmul.f32 0.0625, %v465_v5  ;;  %v475_v17 = vsub.f32 %v437_v56, %v457_v4 }
 0x208   : > { %v462_v8 = vpop.xlane.xlu0 %461 }
 0x209   : > { %v471_v10 = vsub.f32 %v467_v7, %v469_v6  ;;  %v466_v11 = vmul.f32 0.0625, %v462_v8 }
 0x20b   : > { %v473_v12 = vmax.f32 %v471_v10, 0.0  ;;  %v470_v13 = vsub.f32 %v466_v11, %v468_v9 }
 0x20d   : > { %v477_v14 = vadd.f32 1e-05, %v473_v12  ;;  %v472_v15 = vmax.f32 %v470_v13, 0.0 }
 0x20f   : > { %610 = vrsqrt.f32 %v477_v14  ;;  %v476_v16 = vadd.f32 1e-05, %v472_v15 }
 0x211   : > { %612 = vrsqrt.f32 %v476_v16 }
 0x21c   : > { %v611_v18 = vpop.eup %610 }
 0x21d   : > { %v481_v20 = vmul.f32 %v611_v18, %v475_v17 }
 0x21e   : > { %v613_v21 = vpop.eup %612 }
 0x21f   : > { %v483_v22 = vmax.f32 %v481_v20, 0.0  ;;  %v480_v23 = vmul.f32 %v613_v21, %v474_v19 }
 0x221   : > { %v578_v24 = vpack.c.bf16 %v483_v22, %v483_v22  ;;  %v482_v25 = vmax.f32 %v480_v23, 0.0 }
 0x223   : > { %493 = vst.msk [vmem:[%s197_s18 + $0x4] sm:$0xf] %vm201_vm0, %v578_v24  ;;  %v577_v26 = vpack.c.bf16 %v482_v25, %v482_v25 }
 0x225   : > { %492 = vst.msk [vmem:[%s197_s18] sm:$0xf] %vm201_vm0, %v577_v26 }
 0x226 PF: > { %s14_s15 = sadd.s32 1, %s620_s15  }
 0x227   : > { %p11_p4 = scmp.ge.s32.totalorder %s14_s15, 4  }
 0x229   :  { %13 = sbr.rel (!%p11_p4) target bundleno = 1 (0x1), region = 66 }

// kernel: transform_net_forward.20
= control target key start
LH: loop header
LB: loop body
LE: loop exit
PB: predicated region body
PF: predicated region fallthrough
CT: control target
= control target key end

     0   :  { %s733_s18 = smov 0   ;;  %s824_s0 = inlined_call_operand.vmem [shape: bf16[2,1,16,42], index: 0, kind: input, shape index: {}]   ;;  %s825_s1 = inlined_call_operand.vmem [shape: bf16[1,16,144], index: 1, kind: input, shape index: {}]   ;;  %s826_s2 = inlined_call_operand.vmem [shape: f32[16,1], index: 2, kind: input, shape index: {}]   ;;  %s827_s3 = inlined_call_operand.vmem [shape: f32[1,24], index: 3, kind: input, shape index: {}]   ;;  %s828_s4 = inlined_call_operand.vmem [shape: bf16[2,16,24], index: 4, kind: input, shape index: {}]   ;;  %s829_s5 = inlined_call_operand.vmem [shape: bf16[2,16,24], index: 5, kind: output, shape index: {}]  }
   0x1 LB: > { %s614_s19 = sadd.s32 4294967295, %s692_s18   ;;  %p618_p0 = scmp.ge.s32.totalorder %s692_s18, 1  ;;  %s692_s18 = sphi %s733_s18, %s15_s18  }
   0x2   : > { %p197_p1 = scmp.lt.s32.totalorder %s692_s18, 3 }
   0x4   : > { %p198_p2 = pnand %p618_p0, %p197_p1 }
   0x5   : > { %p230_p3 = scmp.lt.s32.totalorder (!%p198_p2), %s614_s19, 1  ;;  %s695_s24 = smov (!%p198_p2), 115  }
   0x6   : > { %201 = sbr.rel (%p198_p2) target bundleno = 552 (0x228), region = 40  ;;  %s696_s25 = smov (!%p198_p2), 116  }
   0x7   : > { %s697_s26 = smov (!%p198_p2), 120   ;;  %s698_s27 = smov (!%p198_p2), 121  }
   0x8   : > { %s699_s28 = smov (!%p198_p2), 122   ;;  %s700_s29 = smov (!%p198_p2), 126  }
   0x9   : > { %s701_s30 = smov (!%p198_p2), 127   ;;  %s702_s6 = smov (!%p198_p2), 114  }
   0xb   : > { %s831_s19 = smov (!%p230_p3, %s614_s19), 1  ;;  %v694_v0 = vmov 0   ;;  %vm248_vm0 = vcmask 191488   ;;  %v681_v19 = vld [vmem:[%s825_s1 + $0x4] ss:$8 sps:$4 sm:$0xff]   ;;  %vm442_vm1 = vcmask 130048  }
   0xc   : > { %446 = vmatprep.subr.bf16.mxu0 %v694_v0  ;;  %668 = vset.pattern.permute.xlu0 %v694_v0  ;;  %s743_s20 = sshll.u32 %s831_s19, 3  ;;  %v367_v20 = vld [vmem:[%s826_s2] sm:$0xff]  ;;  %v368_v21 = vld [vmem:[%s826_s2 + $0x8] sm:$0xff]  ;;  %vm496_vm2 = vcmask 195584  }
   0xd   : > { %669 = vset.pattern.permute.xlu1 %v694_v0  ;;  %s750_s23 = scalar_lea.vmem %s824_s0, %s743_s20  ;;  %636 = vmatprep.mubr.msk.bf16.mxu0 %vm442_vm1, %v681_v19  ;;  %v679_v47 = vld [vmem:[%s825_s1] ss:$8 sps:$4 sm:$0xff]   ;;  %s239_s21 = scalar_lea.vmem %s828_s4, %s743_s20 }
   0xe   : > { %v323_v1 = vld [vmem:[%s750_s23] sm:$0xf]  ;;  %v324_v3 = vld [vmem:[%s750_s23 + $0x4] sm:$0xf] }
   0xf   : > { %v311_v2 = vld [vmem:[%s750_s23] sm:$0xf]  ;;  %327 = vrot.lane.b32.xlu0 %v323_v1, %s695_s24  ;;  %v312_v4 = vld [vmem:[%s750_s23 + $0x4] sm:$0xf] }
  0x10   : > { %315 = vrot.lane.b32.xlu1 %v311_v2, %s696_s25  ;;  %v300_v5 = vld [vmem:[%s750_s23 + $0x4] sm:$0xf]  ;;  %v299_v6 = vld [vmem:[%s750_s23] sm:$0xf] }
  0x11   : > { %v288_v7 = vld [vmem:[%s750_s23 + $0x4] sm:$0xf]  ;;  %v287_v8 = vld [vmem:[%s750_s23] sm:$0xf] }
  0x12   : > { %v276_v9 = vld [vmem:[%s750_s23 + $0x4] sm:$0xf]  ;;  %v275_v10 = vld [vmem:[%s750_s23] sm:$0xf] }
  0x13   : > { %329 = vrot.lane.b32.xlu0 %v324_v3, %s695_s24  ;;  %v264_v11 = vld [vmem:[%s750_s23 + $0x4] sm:$0xf]  ;;  %v263_v12 = vld [vmem:[%s750_s23] sm:$0xf]  ;;  %s244_s24 = scalar_lea.vmem %s829_s5, %s743_s20 }
  0x14   : > { %317 = vrot.lane.b32.xlu1 %v312_v4, %s696_s25  ;;  %v246_v13 = vld [vmem:[%s750_s23] sm:$0xf]  ;;  %v247_v14 = vld [vmem:[%s750_s23 + $0x4] sm:$0xf] }
  0x15   : > { %249 = vst.msk [vmem:[#allocation2] sm:$0xf] %vm248_vm0, %v246_v13  ;;  %250 = vst.msk [vmem:[#allocation2 + $0x4] sm:$0xf] %vm248_vm0, %v247_v14  ;;  %v252_v15 = vld [vmem:[%s750_s23 + $0x4] sm:$0xf] }
  0x16   : > { %v251_v16 = vld [vmem:[%s750_s23] sm:$0xf]  ;;  %v336_v17 = vld [vmem:[%s750_s23 + $0x4] sm:$0xf] }
  0x17   : > { %303 = vrot.lane.b32.xlu0 %v299_v6, %s697_s26  ;;  %v335_v18 = vld [vmem:[%s750_s23] sm:$0xf] }
  0x18   : > { %305 = vrot.lane.b32.xlu1 %v300_v5, %s697_s26  ;;  %v637_v50 = vld [vmem:[%s827_s3] ss:$0 sm:$0xff] }
  0x1b   : > { %291 = vrot.lane.b32.xlu0 %v287_v8, %s698_s27 }
  0x1c   : > { %293 = vrot.lane.b32.xlu1 %v288_v7, %s698_s27  ;;  %v677_v45 = vld [vmem:[#allocation2] sm:$0xff]  }
  0x1f   : > { %279 = vrot.lane.b32.xlu0 %v275_v10, %s699_s28 }
  0x20   : > { %281 = vrot.lane.b32.xlu1 %v276_v9, %s699_s28 }
  0x23   : > { %267 = vrot.lane.b32.xlu0 %v263_v12, %s700_s29 }
  0x24   : > { %269 = vrot.lane.b32.xlu1 %v264_v11, %s700_s29 }
  0x27   : > { %255 = vrot.lane.b32.xlu0 %v251_v16, %s701_s30 }
  0x28   : > { %257 = vrot.lane.b32.xlu1 %v252_v15, %s701_s30 }
  0x2b   : > { %339 = vrot.lane.b32.xlu0 %v335_v18, %s702_s6 }
  0x2c   : > { %341 = vrot.lane.b32.xlu1 %v336_v17, %s702_s6  ;;  %v648_v17 = vld [vmem:[%s239_s21] sm:$0xff]  }
  0x2f   : > { %371 = vperm.xlu0 %668, %v367_v20  }
  0x30   : > { %376 = vperm.xlu1 %669, %v368_v21   ;;  %v650_v21 = vunpack.c.h.bf16 %v648_v17 }
  0x81   : > { %v328_v22 = vpop.permute.xlu0 %327 }
  0x82   : > { %v316_v23 = vpop.permute.xlu1 %315  ;;  %333 = vst.msk [vmem:[#allocation2 + $0x38] sm:$0xf] %vm248_vm0, %v328_v22 }
  0x83   : > { %321 = vst.msk [vmem:[#allocation2 + $0x30] sm:$0xf] %vm248_vm0, %v316_v23 }
  0x85   : > { %v330_v24 = vpop.permute.xlu0 %329 }
  0x86   : > { %v318_v25 = vpop.permute.xlu1 %317  ;;  %334 = vst.msk [vmem:[#allocation2 + $0x3c] sm:$0xf] %vm248_vm0, %v330_v24 }
  0x87   : > { %322 = vst.msk [vmem:[#allocation2 + $0x34] sm:$0xf] %vm248_vm0, %v318_v25  ;;  %v649_v25 = vunpack.c.l.bf16 %v648_v17 }
  0x89   : > { %v304_v27 = vpop.permute.xlu0 %303 }
  0x8a   : > { %v306_v26 = vpop.permute.xlu1 %305  ;;  %309 = vst.msk [vmem:[#allocation2 + $0x28] sm:$0xf] %vm248_vm0, %v304_v27 }
  0x8b   : > { %310 = vst.msk [vmem:[#allocation2 + $0x2c] sm:$0xf] %vm248_vm0, %v306_v26 }
  0x8d   : > { %v670_v28 = vld [vmem:[#allocation2 + $0x38] sm:$0xff]   ;;  %v292_v30 = vpop.permute.xlu0 %291 }
  0x8e   : > { %v294_v29 = vpop.permute.xlu1 %293  ;;  %297 = vst.msk [vmem:[#allocation2 + $0x20] sm:$0xf] %vm248_vm0, %v292_v30  ;;  %447 = vmatpush1.bf16.msra.mxu0 %v670_v28  ;;  %v671_v31 = vld [vmem:[#allocation2 + $0x30] sm:$0xff]  }
  0x8f   : > { %298 = vst.msk [vmem:[#allocation2 + $0x24] sm:$0xf] %vm248_vm0, %v294_v29  ;;  %448 = vmatprep.subr.bf16.mxu0 %v694_v0 }
  0x91   : > { %v280_v33 = vpop.permute.xlu0 %279 }
  0x92   : > { %v282_v32 = vpop.permute.xlu1 %281  ;;  %285 = vst.msk [vmem:[#allocation2 + $0x18] sm:$0xf] %vm248_vm0, %v280_v33  ;;  %449 = vmatpush1.bf16.msra.mxu0 %v671_v31  ;;  %v672_v34 = vld [vmem:[#allocation2 + $0x28] sm:$0xff]  }
  0x93   : > { %286 = vst.msk [vmem:[#allocation2 + $0x1c] sm:$0xf] %vm248_vm0, %v282_v32  ;;  %450 = vmatprep.subr.bf16.mxu0 %v694_v0 }
  0x95   : > { %v268_v36 = vpop.permute.xlu0 %267 }
  0x96   : > { %v270_v35 = vpop.permute.xlu1 %269  ;;  %273 = vst.msk [vmem:[#allocation2 + $0x10] sm:$0xf] %vm248_vm0, %v268_v36  ;;  %451 = vmatpush1.bf16.msra.mxu0 %v672_v34  ;;  %v673_v37 = vld [vmem:[#allocation2 + $0x20] sm:$0xff]  }
  0x97   : > { %274 = vst.msk [vmem:[#allocation2 + $0x14] sm:$0xf] %vm248_vm0, %v270_v35  ;;  %452 = vmatprep.subr.bf16.mxu0 %v694_v0 }
  0x99   : > { %v256_v39 = vpop.permute.xlu0 %255 }
  0x9a   : > { %v258_v38 = vpop.permute.xlu1 %257  ;;  %261 = vst.msk [vmem:[#allocation2 + $0x8] sm:$0xf] %vm248_vm0, %v256_v39  ;;  %453 = vmatpush1.bf16.msra.mxu0 %v673_v37  ;;  %v674_v40 = vld [vmem:[#allocation2 + $0x18] sm:$0xff]  }
  0x9b   : > { %262 = vst.msk [vmem:[#allocation2 + $0xc] sm:$0xf] %vm248_vm0, %v258_v38  ;;  %454 = vmatprep.subr.bf16.mxu0 %v694_v0 }
  0x9d   : > { %v340_v42 = vpop.permute.xlu0 %339 }
  0x9e   : > { %v342_v41 = vpop.permute.xlu1 %341  ;;  %345 = vst.msk [vmem:[#allocation2 + $0x40] sm:$0xf] %vm248_vm0, %v340_v42  ;;  %455 = vmatpush1.bf16.msra.mxu0 %v674_v40  ;;  %v675_v43 = vld [vmem:[#allocation2 + $0x10] sm:$0xff]  }
  0x9f   : > { %346 = vst.msk [vmem:[#allocation2 + $0x44] sm:$0xf] %vm248_vm0, %v342_v41  ;;  %456 = vmatprep.subr.bf16.mxu0 %v694_v0 }
  0xa2   : > { %457 = vmatpush1.bf16.msra.mxu0 %v675_v43  ;;  %v676_v44 = vld [vmem:[#allocation2 + $0x8] sm:$0xff]  }
  0xa3   : > { %458 = vmatprep.subr.bf16.mxu0 %v694_v0 }
  0xa6   : > { %459 = vmatpush1.bf16.msra.mxu0 %v676_v44  ;;  %v678_v46 = vld [vmem:[#allocation2 + $0x40] sm:$0xff]  }
  0xa7   : > { %460 = vmatprep.subr.bf16.mxu0 %v694_v0 }
  0xaa   : > { %461 = vmatpush1.bf16.msra.mxu0 %v677_v45  ;;  %v372_v48 = vpop.permute.xlu0 %371 }
  0xab   : > { %476 = vmatprep.subr.bf16.mxu0 %v694_v0  ;;  %v377_v53 = vpop.permute.xlu1 %376 }
  0xae   : > { %477 = vmatpush2.bf16.msra.mxu0 %v678_v46 }
  0xb1   : > { %479 = vmatmul.mubr.bf16.vlgmr.msra.gmra.mxu0 %v679_v47 }
 0x171   : > { %v480_v49 = vpop.f32.mrf.mxu0 }
 0x172   : > { %v481_v51 = vadd.f32 %v480_v49, %v372_v48 }
 0x173   : > { %v482_v52 = vpop.f32.mrf.mxu0 }
 0x174   : > { %v494_v54 = vmul.f32 %v637_v50, %v481_v51 }
 0x175   : > { %v483_v55 = vpop.f32.mrf.mxu0 }
 0x176   : > { %v484_v56 = vadd.f32 %v483_v55, %v377_v53  ;;  %v497_v57 = vsel %vm496_vm2, %v494_v54, 0.0  ;;  %v505_v62 = vmul.f32 %v494_v54, %v494_v54 }
 0x177   : > { %v485_v58 = vpop.f32.mrf.mxu0  ;;  %498 = vadd.xlane.f32.xlu1 %v497_v57 }
 0x178   : > { %v495_v59 = vmul.f32 %v637_v50, %v484_v56  ;;  %v507_v0 = vsel %vm496_vm2, %v505_v62, 0.0 }
 0x17a   : > { %v500_v60 = vsel %vm496_vm2, %v495_v59, 0.0  ;;  %v506_v61 = vmul.f32 %v495_v59, %v495_v59 }
 0x17b   : > { %501 = vadd.xlane.f32.xlu0 %v500_v60 }
 0x17c   : > { %v510_v63 = vsel %vm496_vm2, %v506_v61, 0.0 }
 0x17d   : > { %511 = vadd.xlane.f32.xlu1 %v510_v63 }
 0x17f   : > { %508 = vadd.xlane.f32.xlu0 %v507_v0 }
 0x200   : > { %v499_v1 = vpop.xlane.xlu1 %498 }
 0x201   : > { %v503_v3 = vmul.f32 0.0625, %v499_v1 }
 0x203   : > { %v515_v9 = vmul.f32 %v503_v3, %v503_v3  ;;  %v521_v20 = vsub.f32 %v481_v51, %v503_v3 }
 0x204   : > { %v502_v2 = vpop.xlane.xlu0 %501 }
 0x205   : > { %v504_v4 = vmul.f32 0.0625, %v502_v2 }
 0x206   : > { %v512_v5 = vpop.xlane.xlu1 %511 }
 0x207   : > { %v516_v6 = vmul.f32 %v504_v4, %v504_v4  ;;  %v514_v7 = vmul.f32 0.0625, %v512_v5  ;;  %v522_v18 = vsub.f32 %v484_v56, %v504_v4 }
 0x208   : > { %v509_v8 = vpop.xlane.xlu0 %508 }
 0x209   : > { %v518_v10 = vsub.f32 %v514_v7, %v516_v6  ;;  %v513_v11 = vmul.f32 0.0625, %v509_v8 }
 0x20b   : > { %v520_v12 = vmax.f32 %v518_v10, 0.0  ;;  %v517_v13 = vsub.f32 %v513_v11, %v515_v9 }
 0x20d   : > { %v524_v14 = vadd.f32 1e-05, %v520_v12  ;;  %v519_v15 = vmax.f32 %v517_v13, 0.0 }
 0x20f   : > { %682 = vrsqrt.f32 %v524_v14  ;;  %v523_v16 = vadd.f32 1e-05, %v519_v15 }
 0x211   : > { %684 = vrsqrt.f32 %v523_v16 }
 0x21c   : > { %v683_v19 = vpop.eup %682 }
 0x21d   : > { %v528_v22 = vmul.f32 %v683_v19, %v522_v18 }
 0x21e   : > { %v685_v23 = vpop.eup %684 }
 0x21f   : > { %v530_v24 = vmax.f32 %v528_v22, 0.0  ;;  %v527_v26 = vmul.f32 %v685_v23, %v521_v20 }
 0x221   : > { %v536_v27 = vadd.f32 %v650_v21, %v530_v24  ;;  %v529_v28 = vmax.f32 %v527_v26, 0.0 }
 0x223   : > { %v646_v29 = vpack.c.bf16 %v536_v27, %v536_v27  ;;  %v535_v30 = vadd.f32 %v649_v25, %v529_v28 }
 0x225   : > { %546 = vst.msk [vmem:[%s244_s24 + $0x4] sm:$0xf] %vm248_vm0, %v646_v29  ;;  %v645_v31 = vpack.c.bf16 %v535_v30, %v535_v30 }
 0x227   : > { %545 = vst.msk [vmem:[%s244_s24] sm:$0xf] %vm248_vm0, %v645_v31 }
 0x228 PF: > { %s15_s18 = sadd.s32 1, %s692_s18  }
 0x229   : > { %p12_p4 = scmp.ge.s32.totalorder %s15_s18, 4  }
 0x22b   :  { %14 = sbr.rel (!%p12_p4) target bundleno = 1 (0x1), region = 73 }

// kernel: transform_net_forward.29
= control target key start
LH: loop header
LB: loop body
LE: loop exit
PB: predicated region body
PF: predicated region fallthrough
CT: control target
= control target key end

     0   :  { %s605_s15 = smov 0   ;;  %s690_s0 = inlined_call_operand.vmem [shape: bf16[2,1,16,110], index: 0, kind: input, shape index: {}]   ;;  %s691_s1 = inlined_call_operand.vmem [shape: bf16[1,8,144], index: 1, kind: input, shape index: {}]   ;;  %s692_s2 = inlined_call_operand.vmem [shape: f32[8,1], index: 2, kind: input, shape index: {}]   ;;  %s693_s3 = inlined_call_operand.vmem [shape: f32[1,80], index: 3, kind: input, shape index: {}]   ;;  %s694_s4 = inlined_call_operand.vmem [shape: bf16[2,8,80], index: 4, kind: output, shape index: {}]  }
   0x1 LB: > { %s508_s16 = sadd.s32 4294967295, %s569_s15   ;;  %p512_p0 = scmp.ge.s32.totalorder %s569_s15, 1  ;;  %s569_s15 = sphi %s605_s15, %s14_s15  }
   0x2   : > { %p162_p1 = scmp.lt.s32.totalorder %s569_s15, 3 }
   0x4   : > { %p163_p2 = pnand %p512_p0, %p162_p1 }
   0x5   : > { %p187_p3 = scmp.lt.s32.totalorder (!%p163_p2), %s508_s16, 1  ;;  %s572_s21 = smov (!%p163_p2), 107  }
   0x6   : > { %166 = sbr.rel (%p163_p2) target bundleno = 544 (0x220), region = 36  ;;  %s573_s22 = smov (!%p163_p2), 108  }
   0x7   : > { %s574_s23 = smov (!%p163_p2), 116   ;;  %s575_s24 = smov (!%p163_p2), 117  }
   0x8   : > { %s576_s25 = smov (!%p163_p2), 118   ;;  %s577_s26 = smov (!%p163_p2), 126  }
   0x9   : > { %s578_s27 = smov (!%p163_p2), 127   ;;  %s579_s28 = smov (!%p163_p2), 106  }
   0xb   : > { %s696_s16 = smov (!%p187_p3, %s508_s16), 1  ;;  %v571_v0 = vmov 0   ;;  %vm199_vm0 = vcmask 650240   ;;  %v646_v19 = vld [vmem:[%s691_s1] sm:$0xff]  ;;  %vm383_vm1 = vcmask 130048   ;;  %vm435_vm2 = vcmask 654336  }
   0xc   : > { %387 = vmatprep.subr.bf16.mxu0 %v571_v0  ;;  %549 = vset.pattern.permute.xlu0 %v571_v0  ;;  %s531_s17 = sshll.u32 %s696_s16, 3  ;;  %v517_v20 = vcombine.high %v646_v19, %v646_v19  ;;  %v317_v21 = vld [vmem:[%s692_s2] sm:$0xff]  ;;  %v516_v47 = vcombine.low %v646_v19, %v646_v19  ;;  %s515_s9 = sshll.u32 %s696_s16, 2 }
   0xd   : > { %s621_s20 = scalar_lea.vmem %s690_s0, %s531_s17  ;;  %v528_v50 = vld [vmem:[%s693_s3] ss:$0 sm:$0xff]  ;;  %s195_s12 = scalar_lea.vmem %s694_s4, %s515_s9 }
   0xe   : > { %v274_v1 = vld [vmem:[%s621_s20] sm:$0xf]  ;;  %v275_v3 = vld [vmem:[%s621_s20 + $0x4] sm:$0xf]  ;;  %527 = vmatprep.mubr.msk.bf16.mxu0 %vm383_vm1, %v517_v20 }
   0xf   : > { %v262_v2 = vld [vmem:[%s621_s20] sm:$0xf]  ;;  %278 = vrot.lane.b32.xlu0 %v274_v1, %s572_s21  ;;  %v263_v4 = vld [vmem:[%s621_s20 + $0x4] sm:$0xf] }
  0x10   : > { %266 = vrot.lane.b32.xlu1 %v262_v2, %s573_s22  ;;  %v251_v5 = vld [vmem:[%s621_s20 + $0x4] sm:$0xf]  ;;  %v250_v6 = vld [vmem:[%s621_s20] sm:$0xf] }
  0x11   : > { %v239_v7 = vld [vmem:[%s621_s20 + $0x4] sm:$0xf]  ;;  %v238_v8 = vld [vmem:[%s621_s20] sm:$0xf] }
  0x12   : > { %v227_v9 = vld [vmem:[%s621_s20 + $0x4] sm:$0xf]  ;;  %v226_v10 = vld [vmem:[%s621_s20] sm:$0xf] }
  0x13   : > { %280 = vrot.lane.b32.xlu0 %v275_v3, %s572_s21  ;;  %v215_v11 = vld [vmem:[%s621_s20 + $0x4] sm:$0xf]  ;;  %v214_v12 = vld [vmem:[%s621_s20] sm:$0xf] }
  0x14   : > { %268 = vrot.lane.b32.xlu1 %v263_v4, %s573_s22  ;;  %v197_v13 = vld [vmem:[%s621_s20] sm:$0xf]  ;;  %v198_v14 = vld [vmem:[%s621_s20 + $0x4] sm:$0xf] }
  0x15   : > { %200 = vst.msk [vmem:[#allocation2] sm:$0xf] %vm199_vm0, %v197_v13  ;;  %201 = vst.msk [vmem:[#allocation2 + $0x4] sm:$0xf] %vm199_vm0, %v198_v14  ;;  %v203_v15 = vld [vmem:[%s621_s20 + $0x4] sm:$0xf] }
  0x16   : > { %v202_v16 = vld [vmem:[%s621_s20] sm:$0xf]  ;;  %v287_v17 = vld [vmem:[%s621_s20 + $0x4] sm:$0xf] }
  0x17   : > { %254 = vrot.lane.b32.xlu0 %v250_v6, %s574_s23  ;;  %v286_v18 = vld [vmem:[%s621_s20] sm:$0xf] }
  0x18   : > { %256 = vrot.lane.b32.xlu1 %v251_v5, %s574_s23 }
  0x1b   : > { %242 = vrot.lane.b32.xlu0 %v238_v8, %s575_s24 }
  0x1c   : > { %244 = vrot.lane.b32.xlu1 %v239_v7, %s575_s24  ;;  %v557_v45 = vld [vmem:[#allocation2] sm:$0xff]  }
  0x1f   : > { %230 = vrot.lane.b32.xlu0 %v226_v10, %s576_s25 }
  0x20   : > { %232 = vrot.lane.b32.xlu1 %v227_v9, %s576_s25 }
  0x23   : > { %218 = vrot.lane.b32.xlu0 %v214_v12, %s577_s26 }
  0x24   : > { %220 = vrot.lane.b32.xlu1 %v215_v11, %s577_s26 }
  0x27   : > { %206 = vrot.lane.b32.xlu0 %v202_v16, %s578_s27 }
  0x28   : > { %208 = vrot.lane.b32.xlu1 %v203_v15, %s578_s27 }
  0x2b   : > { %290 = vrot.lane.b32.xlu0 %v286_v18, %s579_s28 }
  0x2c   : > { %292 = vrot.lane.b32.xlu1 %v287_v17, %s579_s28 }
  0x2f   : > { %320 = vperm.xlu0 %549, %v317_v21  }
  0x81   : > { %v279_v22 = vpop.permute.xlu0 %278 }
  0x82   : > { %v267_v23 = vpop.permute.xlu1 %266  ;;  %284 = vst.msk [vmem:[#allocation2 + $0x38] sm:$0xf] %vm199_vm0, %v279_v22 }
  0x83   : > { %272 = vst.msk [vmem:[#allocation2 + $0x30] sm:$0xf] %vm199_vm0, %v267_v23 }
  0x85   : > { %v281_v24 = vpop.permute.xlu0 %280 }
  0x86   : > { %v269_v25 = vpop.permute.xlu1 %268  ;;  %285 = vst.msk [vmem:[#allocation2 + $0x3c] sm:$0xf] %vm199_vm0, %v281_v24 }
  0x87   : > { %273 = vst.msk [vmem:[#allocation2 + $0x34] sm:$0xf] %vm199_vm0, %v269_v25 }
  0x89   : > { %v255_v27 = vpop.permute.xlu0 %254 }
  0x8a   : > { %v257_v26 = vpop.permute.xlu1 %256  ;;  %260 = vst.msk [vmem:[#allocation2 + $0x28] sm:$0xf] %vm199_vm0, %v255_v27 }
  0x8b   : > { %261 = vst.msk [vmem:[#allocation2 + $0x2c] sm:$0xf] %vm199_vm0, %v257_v26 }
  0x8d   : > { %v550_v28 = vld [vmem:[#allocation2 + $0x38] sm:$0xff]   ;;  %v243_v30 = vpop.permute.xlu0 %242 }
  0x8e   : > { %v245_v29 = vpop.permute.xlu1 %244  ;;  %248 = vst.msk [vmem:[#allocation2 + $0x20] sm:$0xf] %vm199_vm0, %v243_v30  ;;  %388 = vmatpush1.bf16.msra.mxu0 %v550_v28  ;;  %v551_v31 = vld [vmem:[#allocation2 + $0x30] sm:$0xff]  }
  0x8f   : > { %249 = vst.msk [vmem:[#allocation2 + $0x24] sm:$0xf] %vm199_vm0, %v245_v29  ;;  %389 = vmatprep.subr.bf16.mxu0 %v571_v0 }
  0x91   : > { %v231_v33 = vpop.permute.xlu0 %230 }
  0x92   : > { %v233_v32 = vpop.permute.xlu1 %232  ;;  %236 = vst.msk [vmem:[#allocation2 + $0x18] sm:$0xf] %vm199_vm0, %v231_v33  ;;  %390 = vmatpush1.bf16.msra.mxu0 %v551_v31  ;;  %v552_v34 = vld [vmem:[#allocation2 + $0x28] sm:$0xff]  }
  0x93   : > { %237 = vst.msk [vmem:[#allocation2 + $0x1c] sm:$0xf] %vm199_vm0, %v233_v32  ;;  %391 = vmatprep.subr.bf16.mxu0 %v571_v0 }
  0x95   : > { %v219_v36 = vpop.permute.xlu0 %218 }
  0x96   : > { %v221_v35 = vpop.permute.xlu1 %220  ;;  %224 = vst.msk [vmem:[#allocation2 + $0x10] sm:$0xf] %vm199_vm0, %v219_v36  ;;  %392 = vmatpush1.bf16.msra.mxu0 %v552_v34  ;;  %v553_v37 = vld [vmem:[#allocation2 + $0x20] sm:$0xff]  }
  0x97   : > { %225 = vst.msk [vmem:[#allocation2 + $0x14] sm:$0xf] %vm199_vm0, %v221_v35  ;;  %393 = vmatprep.subr.bf16.mxu0 %v571_v0 }
  0x99   : > { %v207_v39 = vpop.permute.xlu0 %206 }
  0x9a   : > { %v209_v38 = vpop.permute.xlu1 %208  ;;  %212 = vst.msk [vmem:[#allocation2 + $0x8] sm:$0xf] %vm199_vm0, %v207_v39  ;;  %394 = vmatpush1.bf16.msra.mxu0 %v553_v37  ;;  %v554_v40 = vld [vmem:[#allocation2 + $0x18] sm:$0xff]  }
  0x9b   : > { %213 = vst.msk [vmem:[#allocation2 + $0xc] sm:$0xf] %vm199_vm0, %v209_v38  ;;  %395 = vmatprep.subr.bf16.mxu0 %v571_v0 }
  0x9d   : > { %v291_v42 = vpop.permute.xlu0 %290 }
  0x9e   : > { %v293_v41 = vpop.permute.xlu1 %292  ;;  %296 = vst.msk [vmem:[#allocation2 + $0x40] sm:$0xf] %vm199_vm0, %v291_v42  ;;  %396 = vmatpush1.bf16.msra.mxu0 %v554_v40  ;;  %v555_v43 = vld [vmem:[#allocation2 + $0x10] sm:$0xff]  }
  0x9f   : > { %297 = vst.msk [vmem:[#allocation2 + $0x44] sm:$0xf] %vm199_vm0, %v293_v41  ;;  %397 = vmatprep.subr.bf16.mxu0 %v571_v0 }
  0xa2   : > { %398 = vmatpush1.bf16.msra.mxu0 %v555_v43  ;;  %v556_v44 = vld [vmem:[#allocation2 + $0x8] sm:$0xff]  }
  0xa3   : > { %399 = vmatprep.subr.bf16.mxu0 %v571_v0 }
  0xa6   : > { %400 = vmatpush1.bf16.msra.mxu0 %v556_v44  ;;  %v558_v46 = vld [vmem:[#allocation2 + $0x40] sm:$0xff]  }
  0xa7   : > { %401 = vmatprep.subr.bf16.mxu0 %v571_v0 }
  0xaa   : > { %402 = vmatpush1.bf16.msra.mxu0 %v557_v45  ;;  %v321_v48 = vpop.permute.xlu0 %320 }
  0xab   : > { %417 = vmatprep.subr.bf16.mxu0 %v571_v0 }
  0xae   : > { %418 = vmatpush2.bf16.msra.mxu0 %v558_v46 }
  0xb1   : > { %420 = vmatmul.mubr.bf16.vlgmr.msra.gmra.mxu0 %v516_v47 }
 0x171   : > { %v421_v49 = vpop.f32.mrf.mxu0 }
 0x172   : > { %v422_v51 = vadd.f32 %v421_v49, %v321_v48 }
 0x173   : > { %v423_v52 = vpop.f32.mrf.mxu0 }
 0x174   : > { %v434_v53 = vmul.f32 %v528_v50, %v422_v51 }
 0x175   : > { %v424_v54 = vpop.f32.mrf.mxu0 }
 0x176   : > { %v436_v55 = vsel %vm435_vm2, %v434_v53, 0.0  ;;  %v440_v56 = vmul.f32 %v434_v53, %v434_v53 }
 0x177   : > { %v425_v57 = vpop.f32.mrf.mxu0  ;;  %437 = vadd.xlane.f32.xlu1 %v436_v55 }
 0x178   : > { %v441_v58 = vsel %vm435_vm2, %v440_v56, 0.0 }
 0x179   : > { %442 = vadd.xlane.f32.xlu0 %v441_v58 }
 0x200   : > { %v438_v59 = vpop.xlane.xlu1 %437 }
 0x201   : > { %v439_v60 = vmul.f32 0.015625, %v438_v59 }
 0x202   : > { %v443_v61 = vpop.xlane.xlu0 %442 }
 0x203   : > { %v445_v62 = vmul.f32 %v439_v60, %v439_v60  ;;  %v444_v63 = vmul.f32 0.015625, %v443_v61  ;;  %v448_v3 = vsub.f32 %v422_v51, %v439_v60 }
 0x205   : > { %v446_v0 = vsub.f32 %v444_v63, %v445_v62 }
 0x207   : > { %v447_v1 = vmax.f32 %v446_v0, 0.0 }
 0x209   : > { %v449_v2 = vadd.f32 1e-05, %v447_v1 }
 0x20b   : > { %561 = vrsqrt.f32 %v449_v2 }
 0x218   : > { %v562_v4 = vpop.eup %561 }
 0x219   : > { %v451_v5 = vmul.f32 %v562_v4, %v448_v3 }
 0x21b   : > { %v452_v6 = vmax.f32 %v451_v5, 0.0 }
 0x21d   : > { %v453_v7 = vpack.c.bf16 %v452_v6, %v452_v6 }
 0x21f   : > { %454 = vst.msk [vmem:[%s195_s12] sm:$0xf] %vm199_vm0, %v453_v7 }
 0x220 PF: > { %s14_s15 = sadd.s32 1, %s569_s15  }
 0x221   : > { %p11_p4 = scmp.ge.s32.totalorder %s14_s15, 4  }
 0x223   :  { %13 = sbr.rel (!%p11_p4) target bundleno = 1 (0x1), region = 66 }

// kernel: transform_net_forward.30
= control target key start
LH: loop header
LB: loop body
LE: loop exit
PB: predicated region body
PF: predicated region fallthrough
CT: control target
= control target key end

     0   :  { %s793_s15 = smov 0   ;;  %s880_s0 = inlined_call_operand.vmem [shape: bf16[2,1,8,342], index: 0, kind: input, shape index: {}]   ;;  %s881_s1 = inlined_call_operand.vmem [shape: bf16[1,4,72], index: 1, kind: input, shape index: {}]   ;;  %s882_s2 = inlined_call_operand.vmem [shape: f32[4,1], index: 2, kind: input, shape index: {}]   ;;  %s883_s3 = inlined_call_operand.vmem [shape: f32[1,288], index: 3, kind: input, shape index: {}]   ;;  %s884_s4 = inlined_call_operand.vmem [shape: bf16[2,4,288], index: 4, kind: output, shape index: {}]  }
   0x1 LB: > { %s670_s16 = sadd.s32 4294967295, %s754_s15   ;;  %p674_p0 = scmp.ge.s32.totalorder %s754_s15, 1  ;;  %s754_s15 = sphi %s793_s15, %s14_s15  }
   0x2   : > { %p162_p1 = scmp.lt.s32.totalorder %s754_s15, 3 }
   0x4   : > { %p163_p2 = pnand %p674_p0, %p162_p1 }
   0x5   : > { %p188_p3 = scmp.lt.s32.totalorder (!%p163_p2), %s670_s16, 1  ;;  %s756_s21 = smov (!%p163_p2), 90  }
   0x6   : > { %166 = sbr.rel (%p163_p2) target bundleno = 546 (0x222), region = 36  ;;  %s757_s22 = smov (!%p163_p2), 92  }
   0x7   : > { %s759_s23 = smov (!%p163_p2), 91   ;;  %s760_s24 = smov (!%p163_p2), 109  }
   0x8   : > { %s761_s25 = smov (!%p163_p2), 108   ;;  %s762_s26 = smov (!%p163_p2), 126  }
   0x9   : > { %s763_s27 = smov (!%p163_p2), 110   ;;  %s766_s28 = smov (!%p163_p2), 127  }
   0xb   : > { %s886_s16 = smov (!%p188_p3, %s670_s16), 1  ;;  %v758_v3 = vmov 0.0   ;;  %vm202_vm0 = vcmask 257024   ;;  %vm764_vm1 = vmmov 0   ;;  %v765_v11 = vmov 0  }
   0xc   : > { %s718_s17 = smul.u32 12, %s886_s16  ;;  %704 = vmatprep.subr.bf16.mxu1 %v758_v3  ;;  %714 = vmatprep.mubr.msk.bf16.mxu1 %vm764_vm1, %v758_v3  ;;  %v360_v12 = vld [vmem:[%s882_s2] sm:$0xf]  ;;  %vm214_vm2 = vcmask 1043456   ;;  %vm335_vm3 = vcmask 736256   ;;  %vm301_vm4 = vcmask 752640  }
   0xd   : > { %484 = vmatprep.mubr.bf16.mxu0 %v765_v11  ;;  %740 = vset.pattern.permute.xlu0 %v765_v11  ;;  %vm318_vm5 = vcmask 744448   ;;  %vm267_vm6 = vcmask 891904   ;;  %vm284_vm7 = vcmask 883712   ;;  %vm233_vm8 = vcmask 1031168   ;;  %s719_s9 = smul.u32 6, %s886_s16 }
   0xe   : > { %s807_s20 = scalar_lea.vmem %s880_s0, %s718_s17  ;;  %vm250_vm9 = vcmask 900096   ;;  %vm216_vm10 = vcmask 1039360   ;;  %vm438_vm11 = vcmask 588800   ;;  %vm609_vm12 = vcmask 1041408  }
   0xf   : > { %v810_v0 = vld [vmem:[%s807_s20] sm:$0xff]  ;;  %v325_v1 = vld [vmem:[%s807_s20 + $0x8] sm:$0xf]  ;;  %vm610_vm13 = vcmask 1043458   ;;  %vm612_vm15 = vcmask 259076   ;;  %s197_s12 = scalar_lea.vmem %s884_s4, %s719_s9 }
  0x10   : > { %328 = vrot.lane.b32.xlu0 %v810_v0, %s756_s21  ;;  %294 = vrot.lane.b32.xlu1 %v810_v0, %s757_s22  ;;  %v291_v2 = vld [vmem:[%s807_s20 + $0x8] sm:$0xf]  ;;  %vm611_vm14 = vmor %vm610_vm13, %vm609_vm12 }
  0x11   : > { %v308_v4 = vld [vmem:[%s807_s20 + $0x8] sm:$0xf] }
  0x12   : > { %v257_v5 = vld [vmem:[%s807_s20 + $0x8] sm:$0xf] }
  0x13   : > { %v274_v6 = vld [vmem:[%s807_s20 + $0x8] sm:$0xf] }
  0x14   : > { %330 = vrot.lane.b32.xlu0 %v325_v1, %s756_s21  ;;  %296 = vrot.lane.b32.xlu1 %v291_v2, %s757_s22  ;;  %v200_v7 = vld [vmem:[%s807_s20 + $0x8] sm:$0xf] }
  0x15   : > { %203 = vst.msk [vmem:[#allocation2 + $0x8] sm:$0xf] %vm202_vm0, %v200_v7  ;;  %v223_v8 = vld [vmem:[%s807_s20 + $0x8] sm:$0xf] }
  0x16   : > { %v240_v9 = vld [vmem:[%s807_s20 + $0x8] sm:$0xf] }
  0x17   : > { %v205_v10 = vld [vmem:[%s807_s20 + $0x8] sm:$0xf] }
  0x18   : > { %311 = vrot.lane.b32.xlu0 %v810_v0, %s759_s23  ;;  %313 = vrot.lane.b32.xlu1 %v308_v4, %s759_s23 }
  0x1c   : > { %262 = vrot.lane.b32.xlu1 %v257_v5, %s760_s24  ;;  %260 = vrot.lane.b32.xlu0 %v810_v0, %s760_s24 }
  0x20   : > { %279 = vrot.lane.b32.xlu1 %v274_v6, %s761_s25  ;;  %277 = vrot.lane.b32.xlu0 %v810_v0, %s761_s25 }
  0x24   : > { %228 = vrot.lane.b32.xlu1 %v223_v8, %s762_s26  ;;  %226 = vrot.lane.b32.xlu0 %v810_v0, %s762_s26 }
  0x28   : > { %245 = vrot.lane.b32.xlu1 %v240_v9, %s763_s27  ;;  %243 = vrot.lane.b32.xlu0 %v810_v0, %s763_s27 }
  0x2c   : > { %210 = vrot.lane.b32.xlu1 %v205_v10, %s766_s28  ;;  %208 = vrot.lane.b32.xlu0 %v810_v0, %s766_s28 }
  0x30   : > { %363 = vperm.xlu0 %740, %v360_v12  }
  0x82   : > { %v329_v13 = vpop.permute.xlu0 %328  ;;  %v295_v14 = vpop.permute.xlu1 %294 }
  0x83   : > { %v332_v17 = vrot.slane %v329_v13, 4  ;;  %v298_v18 = vrot.slane %v295_v14, 4 }
  0x86   : > { %v331_v15 = vpop.permute.xlu0 %330  ;;  %v297_v16 = vpop.permute.xlu1 %296 }
  0x87   : > { %v333_v19 = vrot.slane %v331_v15, 4  ;;  %340 = vst.msk [vmem:[#allocation2 + $0x68] sm:$0xf] %vm202_vm0, %v331_v15  ;;  %v299_v20 = vrot.slane %v297_v16, 4  ;;  %306 = vst.msk [vmem:[#allocation2 + $0x50] sm:$0xf] %vm202_vm0, %v297_v16 }
  0x88   : > { %v341_v15 = vld [vmem:[%s881_s1] sm:$0x3] }
  0x89   : > { %v334_v21 = vsel %vm214_vm2, %v332_v17, %v333_v19  ;;  %v300_v22 = vsel %vm214_vm2, %v298_v18, %v299_v20  ;;  %v535_v17 = vlaneseq }
  0x8a   : > { %v336_v23 = vsel %vm335_vm3, %v329_v13, %v334_v21  ;;  %v302_v24 = vsel %vm301_vm4, %v295_v14, %v300_v22  ;;  %v312_v25 = vpop.permute.xlu0 %311  ;;  %v314_v26 = vpop.permute.xlu1 %313 }
  0x8b   : > { %v315_v27 = vrot.slane %v312_v25, 4  ;;  %v316_v28 = vrot.slane %v314_v26, 4  ;;  %323 = vst.msk [vmem:[#allocation2 + $0x5c] sm:$0xf] %vm202_vm0, %v314_v26  ;;  %v690_v29 = vcombine.high %v336_v23, %v336_v23  ;;  %v689_v30 = vcombine.low %v336_v23, %v336_v23 }
  0x8c   : > { %v536_v18 = vshrl.u32 %v535_v17, 7 }
  0x8d   : > { %v317_v31 = vsel %vm214_vm2, %v315_v27, %v316_v28  ;;  %692 = vmatprep.subr.msk.bf16.mxu0 %vm214_vm2, %v690_v29  ;;  %v444_v32 = vsel %vm214_vm2, %v689_v30, 0 }
  0x8e   : > { %v319_v33 = vsel %vm318_vm5, %v312_v25, %v317_v31  ;;  %v263_v34 = vpop.permute.xlu1 %262  ;;  %v261_v35 = vpop.permute.xlu0 %260  ;;  %v741_v36 = vld [vmem:[#allocation2 + $0x68] ss:$0 sps:$4 sm:$0xff]   ;;  %459 = vmatpush1.bf16.msra.mxu0 %v444_v32  ;;  %v537_v19 = vsub.s32 0, %v536_v18  ;;  %v541_v20 = vsub.s32 1, %v536_v18 }
  0x8f   : > { %v265_v37 = vrot.slane %v263_v34, 4  ;;  %272 = vst.msk [vmem:[#allocation2 + $0x38] sm:$0xf] %vm202_vm0, %v263_v34  ;;  %v264_v38 = vrot.slane %v261_v35, 4  ;;  %v687_v39 = vcombine.high %v302_v24, %v319_v33  ;;  %v686_v40 = vcombine.low %v302_v24, %v319_v33 }
  0x90   : > { %v450_v41 = vsel %vm214_vm2, %v741_v36, 0 }
  0x91   : > { %v266_v42 = vsel %vm214_vm2, %v264_v38, %v265_v37  ;;  %705 = vmatpush3.bf16.msra.mxu1 %v450_v41  ;;  %460 = vmatprep.subr.bf16.mxu0 %v687_v39 }
  0x92   : > { %v268_v43 = vsel %vm267_vm6, %v261_v35, %v266_v42  ;;  %v280_v44 = vpop.permute.xlu1 %279  ;;  %v278_v45 = vpop.permute.xlu0 %277  ;;  %706 = vmatprep.subr.bf16.mxu1 %v758_v3  ;;  %v742_v46 = vld [vmem:[#allocation2 + $0x50] ss:$12 sps:$4 sm:$0xff]   ;;  %461 = vmatpush1.bf16.msra.mxu0 %v686_v40 }
  0x93   : > { %v282_v47 = vrot.slane %v280_v44, 4  ;;  %289 = vst.msk [vmem:[#allocation2 + $0x44] sm:$0xf] %vm202_vm0, %v280_v44  ;;  %v281_v48 = vrot.slane %v278_v45, 4 }
  0x95   : > { %v283_v49 = vsel %vm214_vm2, %v281_v48, %v282_v47  ;;  %707 = vmatpush3.bf16.msra.mxu1 %v742_v46 }
  0x96   : > { %v285_v50 = vsel %vm284_vm7, %v278_v45, %v283_v49  ;;  %v229_v51 = vpop.permute.xlu1 %228  ;;  %v227_v52 = vpop.permute.xlu0 %226  ;;  %708 = vmatprep.subr.bf16.mxu1 %v758_v3 }
  0x97   : > { %v231_v53 = vrot.slane %v229_v51, 4  ;;  %238 = vst.msk [vmem:[#allocation2 + $0x20] sm:$0xf] %vm202_vm0, %v229_v51  ;;  %v230_v54 = vrot.slane %v227_v52, 4  ;;  %v684_v55 = vcombine.high %v268_v43, %v285_v50  ;;  %v683_v56 = vcombine.low %v268_v43, %v285_v50 }
  0x99   : > { %v232_v57 = vsel %vm214_vm2, %v230_v54, %v231_v53  ;;  %462 = vmatprep.subr.bf16.mxu0 %v684_v55 }
  0x9a   : > { %v234_v58 = vsel %vm233_vm8, %v227_v52, %v232_v57  ;;  %v246_v59 = vpop.permute.xlu1 %245  ;;  %v244_v60 = vpop.permute.xlu0 %243  ;;  %v743_v61 = vld [vmem:[#allocation2 + $0x38] ss:$12 sps:$4 sm:$0xff]   ;;  %463 = vmatpush1.bf16.msra.mxu0 %v683_v56 }
  0x9b   : > { %v248_v62 = vrot.slane %v246_v59, 4  ;;  %255 = vst.msk [vmem:[#allocation2 + $0x2c] sm:$0xf] %vm202_vm0, %v246_v59  ;;  %v247_v63 = vrot.slane %v244_v60, 4  ;;  %709 = vmatpush3.bf16.msra.mxu1 %v743_v61 }
  0x9c   : > { %710 = vmatprep.subr.bf16.mxu1 %v758_v3 }
  0x9d   : > { %v249_v1 = vsel %vm214_vm2, %v247_v63, %v248_v62 }
  0x9e   : > { %v251_v2 = vsel %vm250_vm9, %v244_v60, %v249_v1  ;;  %v211_v4 = vpop.permute.xlu1 %210  ;;  %v209_v5 = vpop.permute.xlu0 %208  ;;  %v767_v60 = vmov 1983009808  }
  0x9f   : > { %v213_v6 = vrot.slane %v211_v4, 4  ;;  %221 = vst.msk [vmem:[#allocation2 + $0x14] sm:$0xf] %vm202_vm0, %v211_v4  ;;  %v212_v7 = vrot.slane %v209_v5, 4  ;;  %v681_v8 = vcombine.high %v234_v58, %v251_v2  ;;  %v680_v9 = vcombine.low %v234_v58, %v251_v2 }
  0xa0   : > { %v594_v61 = vunpack.c.l.s4 %v767_v60 }
  0xa1   : > { %v215_v10 = vsel %vm214_vm2, %v212_v7, %v213_v6  ;;  %464 = vmatprep.subr.bf16.mxu0 %v681_v8 }
  0xa2   : > { %v217_v11 = vsel %vm216_vm10, %v209_v5, %v215_v10  ;;  %v744_v12 = vld [vmem:[#allocation2 + $0x20] ss:$12 sps:$4 sm:$0xff]   ;;  %465 = vmatpush1.bf16.msra.mxu0 %v680_v9  ;;  %v595_v62 = vunpack.c.0.s8 %v594_v61 }
  0xa3   : > { %v678_v13 = vcombine.high %v810_v0, %v217_v11  ;;  %v677_v14 = vcombine.low %v810_v0, %v217_v11  ;;  %711 = vmatpush3.bf16.msra.mxu1 %v744_v12  ;;  %v533_v0 = vld [vmem:[%s883_s3] sm:$0x7] }
  0xa4   : > { %712 = vmatprep.subr.bf16.mxu1 %v758_v3  ;;  %v545_v3 = vsub.s32 2, %v536_v18  ;;  %v538_v22 = vrot.slane %v533_v0, %v537_v19  ;;  %v542_v25 = vrot.slane %v533_v0, %v541_v20  ;;  %v598_v8 = vsub.s32 %v595_v62, %v536_v18 }
  0xa5   : > { %466 = vmatprep.subr.bf16.mxu0 %v678_v13 }
  0xa6   : > { %v745_v16 = vld [vmem:[#allocation2 + $0x8] ss:$12 sps:$4 sm:$0xff]   ;;  %467 = vmatpush1.bf16.msra.mxu0 %v677_v14  ;;  %v546_v26 = vrot.slane %v533_v0, %v545_v3 }
  0xa7   : > { %713 = vmatpush3.bf16.msra.mxu1 %v745_v16 }
  0xa9   : > { %693 = vmatmul.mubr.msk.bf16.vlgmr.msra.gmra.mxu0 %vm438_vm11, %v341_v15 }
  0xaa   : > { %715 = vmatmul.mubr.msk.bf16.vlgmr.msra.gmra.mxu1 %vm438_vm11, %v341_v15 }
  0xab   : > { %v364_v21 = vpop.permute.xlu0 %363 }
 0x169   : > { %v486_v23 = vpop.f32.mrf.mxu0 }
 0x16a   : > { %v487_v24 = vadd.f32 %v486_v23, %v364_v21  ;;  %v527_v27 = vpop.f32.mrf.mxu1 }
 0x16b   : > { %v488_v28 = vpop.f32.mrf.mxu0  ;;  %v528_v29 = vadd.f32 %v527_v27, %v364_v21 }
 0x16c   : > { %v550_v30 = vmul.f32 %v538_v22, %v487_v24  ;;  %v489_v31 = vadd.f32 %v488_v28, %v364_v21  ;;  %v716_v32 = vpop.f32.mrf.mxu1 }
 0x16d   : > { %v490_v33 = vpop.f32.mrf.mxu0  ;;  %v552_v36 = vmul.f32 %v546_v26, %v528_v29 }
 0x16e   : > { %v561_v34 = vmul.f32 %v550_v30, %v550_v30  ;;  %v551_v35 = vmul.f32 %v542_v25, %v489_v31  ;;  %v530_v37 = vpop.f32.mrf.mxu1  ;;  %v553_v40 = vsel %vm214_vm2, %v550_v30, 0.0 }
 0x16f   : > { %v491_v38 = vpop.f32.mrf.mxu0  ;;  %v563_v42 = vmul.f32 %v552_v36, %v552_v36  ;;  %v556_v45 = vsel %vm202_vm0, %v552_v36, 0.0 }
 0x170   : > { %v562_v39 = vmul.f32 %v551_v35, %v551_v35  ;;  %v554_v41 = vsel %vm214_vm2, %v551_v35, 0.0  ;;  %v717_v43 = vpop.f32.mrf.mxu1  ;;  %v564_v46 = vsel %vm214_vm2, %v561_v34, 0.0 }
 0x171   : > { %v555_v44 = vadd.f32 %v554_v41, %v553_v40  ;;  %v567_v50 = vsel %vm202_vm0, %v563_v42, 0.0  ;;  %vm613_vm0 = vmor %vm612_vm15, %vm611_vm14 }
 0x172   : > { %v565_v47 = vsel %vm214_vm2, %v562_v39, 0.0 }
 0x173   : > { %v557_v48 = vadd.f32 %v556_v45, %v555_v44  ;;  %v566_v49 = vadd.f32 %v565_v47, %v564_v46 }
 0x175   : > { %558 = vadd.xlane.f32.xlu1 %v557_v48  ;;  %v568_v51 = vadd.f32 %v567_v50, %v566_v49 }
 0x177   : > { %569 = vadd.xlane.f32.xlu0 %v568_v51 }
 0x1fe   : > { %v559_v52 = vpop.xlane.xlu1 %558 }
 0x1ff   : > { %v560_v53 = vmul.f32 0.00390625, %v559_v52 }
 0x200   : > { %v570_v54 = vpop.xlane.xlu0 %569 }
 0x201   : > { %v571_v55 = vmul.f32 0.00390625, %v570_v54  ;;  %v572_v56 = vmul.f32 %v560_v53, %v560_v53  ;;  %v575_v63 = vsub.f32 %v487_v24, %v560_v53  ;;  %v576_v1 = vsub.f32 %v489_v31, %v560_v53 }
 0x202   : > { %v577_v2 = vsub.f32 %v528_v29, %v560_v53 }
 0x203   : > { %v573_v57 = vsub.f32 %v571_v55, %v572_v56 }
 0x205   : > { %v574_v58 = vmax.f32 %v573_v57, 0.0 }
 0x207   : > { %v578_v59 = vadd.f32 1e-05, %v574_v58 }
 0x209   : > { %746 = vrsqrt.f32 %v578_v59 }
 0x216   : > { %v747_v4 = vpop.eup %746 }
 0x217   : > { %v580_v5 = vmul.f32 %v747_v4, %v575_v63  ;;  %v581_v6 = vmul.f32 %v747_v4, %v576_v1  ;;  %v582_v7 = vmul.f32 %v747_v4, %v577_v2 }
 0x219   : > { %v583_v9 = vmax.f32 %v580_v5, 0.0  ;;  %v584_v10 = vmax.f32 %v581_v6, 0.0  ;;  %v585_v11 = vmax.f32 %v582_v7, 0.0 }
 0x21b   : > { %v588_v12 = vpack.c.bf16 %v585_v11, %v585_v11  ;;  %v695_v13 = vpack.c.bf16 %v584_v10, %v583_v9 }
 0x21d   : > { %v599_v14 = vrot.slane %v695_v13, %v598_v8  ;;  %v606_v15 = vrot.slane %v588_v12, %v598_v8 }
 0x21f   : > { %v607_v16 = vcombine.low %v599_v14, %v606_v15 }
 0x221   : > { %614 = vst.msk [vmem:[%s197_s12] sm:$0x3f] %vm613_vm0, %v607_v16 }
 0x222 PF: > { %s14_s15 = sadd.s32 1, %s754_s15  }
 0x223   : > { %p11_p4 = scmp.ge.s32.totalorder %s14_s15, 4  }
 0x225   :  { %13 = sbr.rel (!%p11_p4) target bundleno = 1 (0x1), region = 66 }

// kernel: transform_net_forward.31
= control target key start
LH: loop header
LB: loop body
LE: loop exit
PB: predicated region body
PF: predicated region fallthrough
CT: control target
= control target key end

     0   :  { %s3251_s15 = smov 0   ;;  %s3647_s0 = inlined_call_operand.vmem [shape: bf16[2,1,8,600], index: 0, kind: input, shape index: {}]   ;;  %s3648_s1 = inlined_call_operand.vmem [shape: bf16[1,3,648], index: 1, kind: input, shape index: {}]   ;;  %s3649_s2 = inlined_call_operand.vmem [shape: f32[3,1], index: 2, kind: input, shape index: {}]   ;;  %s3650_s3 = inlined_call_operand.vmem [shape: f32[1,384], index: 3, kind: input, shape index: {}]   ;;  %s3651_s4 = inlined_call_operand.vmem [shape: bf16[2,3,384], index: 4, kind: output, shape index: {}]  }
   0x1 LB: > { %s2826_s16 = sadd.s32 4294967295, %s3146_s15   ;;  %p2830_p0 = scmp.ge.s32.totalorder %s3146_s15, 1  ;;  %s3146_s15 = sphi %s3251_s15, %s14_s15  }
   0x2   : > { %p162_p1 = scmp.lt.s32.totalorder %s3146_s15, 3 }
   0x4   : > { %p163_p2 = pnand %p2830_p0, %p162_p1 }
   0x5   : > { %p188_p3 = scmp.lt.s32.totalorder (!%p163_p2), %s2826_s16, 1  ;;  %s3148_s20 = smov (!%p163_p2), 98  }
   0x6   : > { %166 = sbr.rel (%p163_p2) target bundleno = 692 (0x2b4), region = 36  ;;  %s3149_s21 = smov (!%p163_p2), 99  }
   0x7   : > { %s3150_s22 = smov (!%p163_p2), 7   ;;  %s3151_s23 = smov (!%p163_p2), 6  }
   0x8   : > { %s3152_s24 = smov (!%p163_p2), 101   ;;  %s3153_s25 = smov (!%p163_p2), 100  }
   0x9   : > { %s3154_s26 = smov (!%p163_p2), 24   ;;  %s3155_s27 = smov (!%p163_p2), 8  }
   0xa   : > { %s3156_s28 = smov (!%p163_p2), 103   ;;  %s3157_s29 = smov (!%p163_p2), 102  }
   0xb   : > { %s3655_s16 = smov (!%p188_p3, %s2826_s16), 1  ;;  %s3158_s30 = smov 26   ;;  %vm213_vm0 = vcmask 1043456   ;;  %vm467_vm1 = vcmask 801792   ;;  %vm449_vm2 = vcmask 809984   ;;  %vm1025_vm3 = vcmask 56320  }
   0xc   : > { %s3007_s3 = smul.u32 20, %s3655_s16  ;;  %s3159_s5 = smov 25   ;;  %vm1043_vm4 = vcmask 48128   ;;  %vm413_vm5 = vcmask 826368   ;;  %vm431_vm6 = vcmask 818176   ;;  %vm989_vm7 = vcmask 195584  }
   0xd   : > { %s3160_s6 = smov 120   ;;  %s3161_s7 = smov 104   ;;  %vm1007_vm8 = vcmask 64512   ;;  %vm377_vm9 = vcmask 842752   ;;  %vm395_vm10 = vcmask 834560   ;;  %vm953_vm11 = vcmask 211968  }
   0xe   : > { %s3265_s19 = scalar_lea.vmem %s3647_s0, %s3007_s3  ;;  %s3162_s8 = smov 28   ;;  %vm971_vm12 = vcmask 203776   ;;  %vm341_vm13 = vcmask 982016   ;;  %vm359_vm14 = vcmask 850944   ;;  %vm917_vm15 = vcmask 228352  }
   0xf   : > { %v3268_v0 = vld [vmem:[%s3265_s19] sm:$0xff]  ;;  %v3273_v1 = vld [vmem:[%s3265_s19 + $0x8] sm:$0xff]  ;;  %s3163_s9 = smov 27   ;;  %s3164_s10 = smov 122  }
  0x10   : > { %460 = vrot.lane.b32.xlu1 %v3268_v0, %s3148_s20  ;;  %442 = vrot.lane.b32.xlu0 %v3268_v0, %s3149_s21  ;;  %s3165_s11 = smov 121   ;;  %s3166_s12 = smov 30   ;;  %v3314_v2 = vld [vmem:[%s3265_s19] sm:$0xff]  ;;  %v200_v3 = vld [vmem:[%s3265_s19 + $0x8] sm:$0xf] }
  0x11   : > { %s3167_s13 = smov 29   ;;  %201 = vst [vmem:[#allocation2] sm:$0xff] %v3314_v2  ;;  %s3168_s14 = smov 124   ;;  %202 = vst [vmem:[#allocation2 + $0x8] sm:$0xf] %v200_v3  ;;  %v1574_v12 = vld [vmem:[%s3265_s19 + $0x4] sm:$0xff] }
  0x12   : > { %s3169_s3 = smov 123   ;;  %s3170_s17 = smov 32   ;;  %1142 = vst [vmem:[#allocation2 + $0x27c] sm:$0xff] %v1574_v12  ;;  %v3355_v32 = vld [vmem:[%s3265_s19 + $0xc] sm:$0xff]  ;;  %v3359_v35 = vld [vmem:[%s3265_s19 + $0x4] sm:$0xff] }
  0x13   : > { %s3171_s18 = smov 31  }
  0x14   : > { %462 = vrot.lane.b32.xlu1 %v3273_v1, %s3148_s20  ;;  %444 = vrot.lane.b32.xlu0 %v3273_v1, %s3149_s21  ;;  %s3172_s20 = smov 126   ;;  %s3173_s21 = smov 125  }
  0x18   : > { %1020 = vrot.lane.b32.xlu1 %v3273_v1, %s3150_s22  ;;  %1018 = vrot.lane.b32.xlu0 %v3268_v0, %s3150_s22  ;;  %s3174_s22 = smov 49  }
  0x1c   : > { %1038 = vrot.lane.b32.xlu1 %v3273_v1, %s3151_s23  ;;  %1036 = vrot.lane.b32.xlu0 %v3268_v0, %s3151_s23  ;;  %s3175_s23 = smov 48  }
  0x20   : > { %408 = vrot.lane.b32.xlu1 %v3273_v1, %s3152_s24  ;;  %406 = vrot.lane.b32.xlu0 %v3268_v0, %s3152_s24  ;;  %s3176_s24 = smov 127  }
  0x24   : > { %426 = vrot.lane.b32.xlu1 %v3273_v1, %s3153_s25  ;;  %424 = vrot.lane.b32.xlu0 %v3268_v0, %s3153_s25  ;;  %s3177_s25 = smov 51  }
  0x28   : > { %984 = vrot.lane.b32.xlu1 %v3273_v1, %s3154_s26  ;;  %982 = vrot.lane.b32.xlu0 %v3268_v0, %s3154_s26  ;;  %s3178_s26 = smov 50  }
  0x2c   : > { %1002 = vrot.lane.b32.xlu1 %v3273_v1, %s3155_s27  ;;  %1000 = vrot.lane.b32.xlu0 %v3268_v0, %s3155_s27  ;;  %s3179_s27 = smov 53  }
  0x30   : > { %372 = vrot.lane.b32.xlu1 %v3273_v1, %s3156_s28  ;;  %370 = vrot.lane.b32.xlu0 %v3268_v0, %s3156_s28  ;;  %s3180_s28 = smov 52  }
  0x34   : > { %390 = vrot.lane.b32.xlu1 %v3273_v1, %s3157_s29  ;;  %388 = vrot.lane.b32.xlu0 %v3268_v0, %s3157_s29  ;;  %s3181_s29 = smov 88  }
  0x38   : > { %948 = vrot.lane.b32.xlu1 %v3273_v1, %s3158_s30  ;;  %946 = vrot.lane.b32.xlu0 %v3268_v0, %s3158_s30  ;;  %s3182_s30 = smov 55  }
  0x3c   : > { %966 = vrot.lane.b32.xlu1 %v3273_v1, %s3159_s5  ;;  %964 = vrot.lane.b32.xlu0 %v3268_v0, %s3159_s5  ;;  %s3183_s5 = smov 54  }
  0x40   : > { %336 = vrot.lane.b32.xlu1 %v3273_v1, %s3160_s6  ;;  %334 = vrot.lane.b32.xlu0 %v3268_v0, %s3160_s6  ;;  %s3184_s6 = smov 106  }
  0x44   : > { %354 = vrot.lane.b32.xlu1 %v3273_v1, %s3161_s7  ;;  %352 = vrot.lane.b32.xlu0 %v3268_v0, %s3161_s7 }
  0x48   : > { %912 = vrot.lane.b32.xlu1 %v3273_v1, %s3162_s8  ;;  %910 = vrot.lane.b32.xlu0 %v3268_v0, %s3162_s8  ;;  %s3186_s8 = smov 72  }
  0x4c   : > { %930 = vrot.lane.b32.xlu1 %v3273_v1, %s3163_s9  ;;  %928 = vrot.lane.b32.xlu0 %v3268_v0, %s3163_s9  ;;  %s3187_s9 = smov 56  }
  0x50   : > { %300 = vrot.lane.b32.xlu1 %v3273_v1, %s3164_s10  ;;  %298 = vrot.lane.b32.xlu0 %v3268_v0, %s3164_s10  ;;  %s3188_s10 = smov 108  }
  0x54   : > { %318 = vrot.lane.b32.xlu1 %v3273_v1, %s3165_s11  ;;  %316 = vrot.lane.b32.xlu0 %v3268_v0, %s3165_s11  ;;  %s3189_s11 = smov 107  }
  0x58   : > { %876 = vrot.lane.b32.xlu1 %v3273_v1, %s3166_s12  ;;  %874 = vrot.lane.b32.xlu0 %v3268_v0, %s3166_s12  ;;  %s3190_s12 = smov 74  }
  0x5c   : > { %894 = vrot.lane.b32.xlu1 %v3273_v1, %s3167_s13  ;;  %892 = vrot.lane.b32.xlu0 %v3268_v0, %s3167_s13  ;;  %s3191_s13 = smov 73  }
  0x60   : > { %264 = vrot.lane.b32.xlu1 %v3273_v1, %s3168_s14  ;;  %262 = vrot.lane.b32.xlu0 %v3268_v0, %s3168_s14  ;;  %s3192_s14 = smov 110  }
  0x64   : > { %282 = vrot.lane.b32.xlu1 %v3273_v1, %s3169_s3  ;;  %280 = vrot.lane.b32.xlu0 %v3268_v0, %s3169_s3  ;;  %s3193_s3 = smov 109  }
  0x68   : > { %840 = vrot.lane.b32.xlu1 %v3273_v1, %s3170_s17  ;;  %838 = vrot.lane.b32.xlu0 %v3268_v0, %s3170_s17  ;;  %s3194_s17 = smov 76  }
  0x6c   : > { %858 = vrot.lane.b32.xlu1 %v3273_v1, %s3171_s18  ;;  %856 = vrot.lane.b32.xlu0 %v3268_v0, %s3171_s18  ;;  %s3195_s18 = smov 75  }
  0x70   : > { %228 = vrot.lane.b32.xlu1 %v3273_v1, %s3172_s20  ;;  %226 = vrot.lane.b32.xlu0 %v3268_v0, %s3172_s20  ;;  %s3196_s20 = smov 112  }
  0x74   : > { %246 = vrot.lane.b32.xlu1 %v3273_v1, %s3173_s21  ;;  %244 = vrot.lane.b32.xlu0 %v3268_v0, %s3173_s21  ;;  %s3197_s21 = smov 111  }
  0x78   : > { %804 = vrot.lane.b32.xlu1 %v3273_v1, %s3174_s22  ;;  %802 = vrot.lane.b32.xlu0 %v3268_v0, %s3174_s22  ;;  %s3198_s22 = smov 78  }
  0x7c   : > { %822 = vrot.lane.b32.xlu1 %v3273_v1, %s3175_s23  ;;  %820 = vrot.lane.b32.xlu0 %v3268_v0, %s3175_s23  ;;  %s3199_s23 = smov 77  }
  0x80   : > { %209 = vrot.lane.b32.xlu1 %v3273_v1, %s3176_s24  ;;  %207 = vrot.lane.b32.xlu0 %v3268_v0, %s3176_s24  ;;  %s3200_s24 = smov 1  }
  0x82   : > { %v461_v4 = vpop.permute.xlu1 %460  ;;  %v443_v5 = vpop.permute.xlu0 %442 }
  0x83   : > { %v464_v8 = vrot.slane %v461_v4, 4  ;;  %v446_v9 = vrot.slane %v443_v5, 4 }
  0x84   : > { %768 = vrot.lane.b32.xlu1 %v3273_v1, %s3177_s25  ;;  %766 = vrot.lane.b32.xlu0 %v3268_v0, %s3177_s25  ;;  %s3201_s25 = smov 80  }
  0x86   : > { %v463_v6 = vpop.permute.xlu1 %462  ;;  %v445_v7 = vpop.permute.xlu0 %444 }
  0x87   : > { %v465_v10 = vrot.slane %v463_v6, 4  ;;  %v447_v11 = vrot.slane %v445_v7, 4 }
  0x88   : > { %786 = vrot.lane.b32.xlu1 %v3273_v1, %s3178_s26  ;;  %784 = vrot.lane.b32.xlu0 %v3268_v0, %s3178_s26  ;;  %s3202_s26 = smov 79  }
  0x89   : > { %v466_v13 = vsel %vm213_vm0, %v464_v8, %v465_v10  ;;  %v469_v14 = vsel %vm467_vm1, %v463_v6, %v465_v10  ;;  %v448_v15 = vsel %vm213_vm0, %v446_v9, %v447_v11  ;;  %v451_v16 = vsel %vm449_vm2, %v445_v7, %v447_v11 }
  0x8a   : > { %v468_v17 = vsel %vm467_vm1, %v461_v4, %v466_v13  ;;  %473 = vst [vmem:[#allocation2 + $0xbc] sm:$0xf] %v469_v14  ;;  %v450_v18 = vsel %vm449_vm2, %v443_v5, %v448_v15  ;;  %455 = vst [vmem:[#allocation2 + $0xb0] sm:$0xf] %v451_v16  ;;  %v1021_v19 = vpop.permute.xlu1 %1020  ;;  %v1019_v20 = vpop.permute.xlu0 %1018  ;;  %vm935_vm1 = vcmask 220160   ;;  %vm305_vm2 = vcmask 998400  }
  0x8b   : > { %v1023_v21 = vrot.slane %v1021_v19, 4  ;;  %v1022_v22 = vrot.slane %v1019_v20, 4  ;;  %v2856_v23 = vcombine.high %v450_v18, %v468_v17  ;;  %v2855_v24 = vcombine.low %v450_v18, %v468_v17 }
  0x8c   : > { %732 = vrot.lane.b32.xlu1 %v3273_v1, %s3179_s27  ;;  %730 = vrot.lane.b32.xlu0 %v3268_v0, %s3179_s27  ;;  %s3203_s27 = smov 3  }
  0x8d   : > { %v1027_v25 = vsel %vm1025_vm3, %v1021_v19, %v1023_v21  ;;  %v1024_v26 = vsel %vm213_vm0, %v1022_v22, %v1023_v21  ;;  %2491 = vmatprep.subr.bf16.mxu0 %v2856_v23 }
  0x8e   : > { %1031 = vst [vmem:[#allocation2 + $0x230] sm:$0xf] %v1027_v25  ;;  %v1026_v27 = vsel %vm1025_vm3, %v1019_v20, %v1024_v26  ;;  %v1039_v28 = vpop.permute.xlu1 %1038  ;;  %v1037_v29 = vpop.permute.xlu0 %1036  ;;  %2492 = vmatpush1.bf16.msra.mxu0 %v2855_v24  ;;  %vm323_vm3 = vcmask 990208  }
  0x8f   : > { %v1041_v30 = vrot.slane %v1039_v28, 4  ;;  %v1040_v31 = vrot.slane %v1037_v29, 4 }
  0x90   : > { %750 = vrot.lane.b32.xlu1 %v3273_v1, %s3180_s28  ;;  %748 = vrot.lane.b32.xlu0 %v3268_v0, %s3180_s28  ;;  %s3204_s28 = smov 2  }
  0x91   : > { %v1045_v33 = vsel %vm1043_vm4, %v1039_v28, %v1041_v30  ;;  %v1042_v34 = vsel %vm213_vm0, %v1040_v31, %v1041_v30 }
  0x92   : > { %1049 = vst [vmem:[#allocation2 + $0x23c] sm:$0xf] %v1045_v33  ;;  %v1044_v36 = vsel %vm1043_vm4, %v1037_v29, %v1042_v34  ;;  %v409_v37 = vpop.permute.xlu1 %408  ;;  %v407_v38 = vpop.permute.xlu0 %406  ;;  %vm881_vm4 = vcmask 244736  }
  0x93   : > { %v411_v39 = vrot.slane %v409_v37, 4  ;;  %v410_v40 = vrot.slane %v407_v38, 4  ;;  %v2904_v41 = vcombine.high %v1026_v27, %v1044_v36  ;;  %v2903_v42 = vcombine.low %v1026_v27, %v1044_v36 }
  0x94   : > { %1294 = vrot.lane.b32.xlu1 %v3355_v32, %s3161_s7  ;;  %1292 = vrot.lane.b32.xlu0 %v3359_v35, %s3161_s7  ;;  %s3185_s7 = smov 105  }
  0x95   : > { %v415_v43 = vsel %vm413_vm5, %v409_v37, %v411_v39  ;;  %v412_v44 = vsel %vm213_vm0, %v410_v40, %v411_v39  ;;  %2532 = vmatprep.subr.bf16.mxu1 %v2904_v41 }
  0x96   : > { %419 = vst [vmem:[#allocation2 + $0x98] sm:$0xf] %v415_v43  ;;  %v414_v45 = vsel %vm413_vm5, %v407_v38, %v412_v44  ;;  %v427_v46 = vpop.permute.xlu1 %426  ;;  %v425_v47 = vpop.permute.xlu0 %424  ;;  %2533 = vmatpush1.bf16.msra.mxu1 %v2903_v42  ;;  %vm899_vm5 = vcmask 236544  }
  0x97   : > { %v429_v48 = vrot.slane %v427_v46, 4  ;;  %v428_v49 = vrot.slane %v425_v47, 4 }
  0x98   : > { %1311 = vrot.lane.b32.xlu1 %v3355_v32, %s3181_s29  ;;  %1309 = vrot.lane.b32.xlu0 %v3359_v35, %s3181_s29  ;;  %s3205_s29 = smov 97  }
  0x99   : > { %v433_v50 = vsel %vm431_vm6, %v427_v46, %v429_v48  ;;  %v430_v51 = vsel %vm213_vm0, %v428_v49, %v429_v48 }
  0x9a   : > { %437 = vst [vmem:[#allocation2 + $0xa4] sm:$0xf] %v433_v50  ;;  %v432_v52 = vsel %vm431_vm6, %v425_v47, %v430_v51  ;;  %v985_v53 = vpop.permute.xlu1 %984  ;;  %v983_v54 = vpop.permute.xlu0 %982  ;;  %vm269_vm6 = vcmask 1014784  }
  0x9b   : > { %v987_v55 = vrot.slane %v985_v53, 4  ;;  %v986_v56 = vrot.slane %v983_v54, 4  ;;  %v2853_v57 = vcombine.high %v414_v45, %v432_v52  ;;  %v2852_v58 = vcombine.low %v414_v45, %v432_v52 }
  0x9c   : > { %696 = vrot.lane.b32.xlu1 %v3273_v1, %s3182_s30  ;;  %694 = vrot.lane.b32.xlu0 %v3268_v0, %s3182_s30 }
  0x9d   : > { %v991_v59 = vsel %vm989_vm7, %v985_v53, %v987_v55  ;;  %v988_v60 = vsel %vm213_vm0, %v986_v56, %v987_v55  ;;  %2493 = vmatprep.subr.bf16.mxu0 %v2853_v57 }
  0x9e   : > { %995 = vst [vmem:[#allocation2 + $0x218] sm:$0xf] %v991_v59  ;;  %v990_v61 = vsel %vm989_vm7, %v983_v54, %v988_v60  ;;  %v1003_v62 = vpop.permute.xlu1 %1002  ;;  %v1001_v63 = vpop.permute.xlu0 %1000  ;;  %2494 = vmatpush1.bf16.msra.mxu0 %v2852_v58  ;;  %vm287_vm7 = vcmask 1006592  }
  0x9f   : > { %v1005_v3 = vrot.slane %v1003_v62, 4  ;;  %v1004_v4 = vrot.slane %v1001_v63, 4 }
  0xa0   : > { %714 = vrot.lane.b32.xlu1 %v3273_v1, %s3183_s5  ;;  %712 = vrot.lane.b32.xlu0 %v3268_v0, %s3183_s5 }
  0xa1   : > { %v1009_v5 = vsel %vm1007_vm8, %v1003_v62, %v1005_v3  ;;  %v1006_v6 = vsel %vm213_vm0, %v1004_v4, %v1005_v3 }
  0xa2   : > { %1013 = vst [vmem:[#allocation2 + $0x224] sm:$0xf] %v1009_v5  ;;  %v1008_v7 = vsel %vm1007_vm8, %v1001_v63, %v1006_v6  ;;  %v373_v8 = vpop.permute.xlu1 %372  ;;  %v371_v9 = vpop.permute.xlu0 %370 }
  0xa3   : > { %v375_v10 = vrot.slane %v373_v8, 4  ;;  %v374_v11 = vrot.slane %v371_v9, 4  ;;  %v2901_v12 = vcombine.high %v990_v61, %v1008_v7  ;;  %v2900_v13 = vcombine.low %v990_v61, %v1008_v7 }
  0xa4   : > { %1258 = vrot.lane.b32.xlu1 %v3355_v32, %s3184_s6  ;;  %1256 = vrot.lane.b32.xlu0 %v3359_v35, %s3184_s6  ;;  %s3207_s6 = smov 96  }
  0xa5   : > { %v379_v14 = vsel %vm377_vm9, %v373_v8, %v375_v10  ;;  %v376_v15 = vsel %vm213_vm0, %v374_v11, %v375_v10  ;;  %2534 = vmatprep.subr.bf16.mxu1 %v2901_v12 }
  0xa6   : > { %383 = vst [vmem:[#allocation2 + $0x80] sm:$0xf] %v379_v14  ;;  %v378_v16 = vsel %vm377_vm9, %v371_v9, %v376_v15  ;;  %v391_v17 = vpop.permute.xlu1 %390  ;;  %v389_v18 = vpop.permute.xlu0 %388  ;;  %2535 = vmatpush1.bf16.msra.mxu1 %v2900_v13  ;;  %vm845_vm9 = vcmask 261120  }
  0xa7   : > { %v393_v19 = vrot.slane %v391_v17, 4  ;;  %v392_v20 = vrot.slane %v389_v18, 4 }
  0xa8   : > { %1276 = vrot.lane.b32.xlu1 %v3355_v32, %s3185_s7  ;;  %1274 = vrot.lane.b32.xlu0 %v3359_v35, %s3185_s7  ;;  %s3208_s7 = smov 5  }
  0xa9   : > { %v397_v21 = vsel %vm395_vm10, %v391_v17, %v393_v19  ;;  %v394_v22 = vsel %vm213_vm0, %v392_v20, %v393_v19 }
  0xaa   : > { %401 = vst [vmem:[#allocation2 + $0x8c] sm:$0xf] %v397_v21  ;;  %v396_v23 = vsel %vm395_vm10, %v389_v18, %v394_v22  ;;  %v949_v24 = vpop.permute.xlu1 %948  ;;  %v947_v25 = vpop.permute.xlu0 %946  ;;  %vm863_vm10 = vcmask 252928  }
  0xab   : > { %v951_v26 = vrot.slane %v949_v24, 4  ;;  %v950_v27 = vrot.slane %v947_v25, 4  ;;  %v2850_v28 = vcombine.high %v378_v16, %v396_v23  ;;  %v2849_v29 = vcombine.low %v378_v16, %v396_v23 }
  0xac   : > { %660 = vrot.lane.b32.xlu1 %v3273_v1, %s3186_s8  ;;  %658 = vrot.lane.b32.xlu0 %v3268_v0, %s3186_s8  ;;  %s3209_s8 = smov 4  }
  0xad   : > { %v955_v30 = vsel %vm953_vm11, %v949_v24, %v951_v26  ;;  %v952_v31 = vsel %vm213_vm0, %v950_v27, %v951_v26  ;;  %2495 = vmatprep.subr.bf16.mxu0 %v2850_v28 }
  0xae   : > { %959 = vst [vmem:[#allocation2 + $0x200] sm:$0xf] %v955_v30  ;;  %v954_v33 = vsel %vm953_vm11, %v947_v25, %v952_v31  ;;  %v967_v34 = vpop.permute.xlu1 %966  ;;  %v965_v36 = vpop.permute.xlu0 %964  ;;  %2496 = vmatpush1.bf16.msra.mxu0 %v2849_v29  ;;  %vm233_vm11 = vcmask 1031168  }
  0xaf   : > { %v969_v37 = vrot.slane %v967_v34, 4  ;;  %v968_v38 = vrot.slane %v965_v36, 4 }
  0xb0   : > { %678 = vrot.lane.b32.xlu1 %v3273_v1, %s3187_s9  ;;  %676 = vrot.lane.b32.xlu0 %v3268_v0, %s3187_s9 }
  0xb1   : > { %v973_v39 = vsel %vm971_vm12, %v967_v34, %v969_v37  ;;  %v970_v40 = vsel %vm213_vm0, %v968_v38, %v969_v37 }
  0xb2   : > { %977 = vst [vmem:[#allocation2 + $0x20c] sm:$0xf] %v973_v39  ;;  %v972_v41 = vsel %vm971_vm12, %v965_v36, %v970_v40  ;;  %v337_v42 = vpop.permute.xlu1 %336  ;;  %v335_v43 = vpop.permute.xlu0 %334  ;;  %vm251_vm12 = vcmask 1022976  }
  0xb3   : > { %v339_v44 = vrot.slane %v337_v42, 4  ;;  %v338_v45 = vrot.slane %v335_v43, 4  ;;  %v2898_v46 = vcombine.high %v954_v33, %v972_v41  ;;  %v2897_v47 = vcombine.low %v954_v33, %v972_v41 }
  0xb4   : > { %1222 = vrot.lane.b32.xlu1 %v3355_v32, %s3188_s10  ;;  %1220 = vrot.lane.b32.xlu0 %v3359_v35, %s3188_s10  ;;  %s3210_s10 = smov 58  }
  0xb5   : > { %v343_v48 = vsel %vm341_vm13, %v337_v42, %v339_v44  ;;  %v340_v49 = vsel %vm213_vm0, %v338_v45, %v339_v44  ;;  %2536 = vmatprep.subr.bf16.mxu1 %v2898_v46 }
  0xb6   : > { %347 = vst [vmem:[#allocation2 + $0x68] sm:$0xf] %v343_v48  ;;  %v342_v50 = vsel %vm341_vm13, %v335_v43, %v340_v49  ;;  %v355_v51 = vpop.permute.xlu1 %354  ;;  %v353_v52 = vpop.permute.xlu0 %352  ;;  %2537 = vmatpush1.bf16.msra.mxu1 %v2897_v47  ;;  %vm809_vm13 = vcmask 400384  }
  0xb7   : > { %v357_v53 = vrot.slane %v355_v51, 4  ;;  %v356_v54 = vrot.slane %v353_v52, 4 }
  0xb8   : > { %1240 = vrot.lane.b32.xlu1 %v3355_v32, %s3189_s11  ;;  %1238 = vrot.lane.b32.xlu0 %v3359_v35, %s3189_s11  ;;  %s3212_s11 = smov 60  }
  0xb9   : > { %v361_v55 = vsel %vm359_vm14, %v355_v51, %v357_v53  ;;  %v358_v56 = vsel %vm213_vm0, %v356_v54, %v357_v53 }
  0xba   : > { %365 = vst [vmem:[#allocation2 + $0x74] sm:$0xf] %v361_v55  ;;  %v360_v57 = vsel %vm359_vm14, %v353_v52, %v358_v56  ;;  %v913_v58 = vpop.permute.xlu1 %912  ;;  %v911_v59 = vpop.permute.xlu0 %910 }
  0xbb   : > { %v915_v60 = vrot.slane %v913_v58, 4  ;;  %v914_v61 = vrot.slane %v911_v59, 4  ;;  %v2847_v62 = vcombine.high %v342_v50, %v360_v57  ;;  %v2846_v63 = vcombine.low %v342_v50, %v360_v57 }
  0xbc   : > { %624 = vrot.lane.b32.xlu1 %v3273_v1, %s3190_s12  ;;  %622 = vrot.lane.b32.xlu0 %v3268_v0, %s3190_s12  ;;  %s3213_s12 = smov 59  }
  0xbd   : > { %v919_v3 = vsel %vm917_vm15, %v913_v58, %v915_v60  ;;  %v916_v4 = vsel %vm213_vm0, %v914_v61, %v915_v60  ;;  %2497 = vmatprep.subr.bf16.mxu0 %v2847_v62  ;;  %v3424_v60 = vld [vmem:[%s3265_s19 + $0x8] sm:$0xff] }
  0xbe   : > { %923 = vst [vmem:[#allocation2 + $0x1e8] sm:$0xf] %v919_v3  ;;  %v918_v5 = vsel %vm917_vm15, %v911_v59, %v916_v4  ;;  %v931_v6 = vpop.permute.xlu1 %930  ;;  %v929_v7 = vpop.permute.xlu0 %928  ;;  %2498 = vmatpush1.bf16.msra.mxu0 %v2846_v63  ;;  %v1141_v61 = vld [vmem:[%s3265_s19 + $0xc] sm:$0xf]  ;;  %vm827_vm15 = vcmask 392192  }
  0xbf   : > { %v933_v8 = vrot.slane %v931_v6, 4  ;;  %v932_v9 = vrot.slane %v929_v7, 4  ;;  %1143 = vst [vmem:[#allocation2 + $0x284] sm:$0xf] %v1141_v61 }
  0xc0   : > { %642 = vrot.lane.b32.xlu1 %v3273_v1, %s3191_s13  ;;  %640 = vrot.lane.b32.xlu0 %v3268_v0, %s3191_s13  ;;  %s3214_s13 = smov 62  }
  0xc1   : > { %v937_v10 = vsel %vm935_vm1, %v931_v6, %v933_v8  ;;  %v934_v11 = vsel %vm213_vm0, %v932_v9, %v933_v8 }
  0xc2   : > { %941 = vst [vmem:[#allocation2 + $0x1f4] sm:$0xf] %v937_v10  ;;  %v936_v12 = vsel %vm935_vm1, %v929_v7, %v934_v11  ;;  %v301_v13 = vpop.permute.xlu1 %300  ;;  %v299_v14 = vpop.permute.xlu0 %298  ;;  %vm215_vm1 = vcmask 1039360  }
  0xc3   : > { %v303_v15 = vrot.slane %v301_v13, 4  ;;  %v302_v16 = vrot.slane %v299_v14, 4  ;;  %v2895_v17 = vcombine.high %v918_v5, %v936_v12  ;;  %v2894_v18 = vcombine.low %v918_v5, %v936_v12 }
  0xc4   : > { %1186 = vrot.lane.b32.xlu1 %v3355_v32, %s3192_s14  ;;  %1184 = vrot.lane.b32.xlu0 %v3359_v35, %s3192_s14  ;;  %s3215_s14 = smov 61  }
  0xc5   : > { %v307_v19 = vsel %vm305_vm2, %v301_v13, %v303_v15  ;;  %v304_v20 = vsel %vm213_vm0, %v302_v16, %v303_v15  ;;  %2538 = vmatprep.subr.bf16.mxu1 %v2895_v17 }
  0xc6   : > { %311 = vst [vmem:[#allocation2 + $0x50] sm:$0xf] %v307_v19  ;;  %v306_v21 = vsel %vm305_vm2, %v299_v14, %v304_v20  ;;  %v319_v22 = vpop.permute.xlu1 %318  ;;  %v317_v23 = vpop.permute.xlu0 %316  ;;  %2539 = vmatpush1.bf16.msra.mxu1 %v2894_v18  ;;  %vm773_vm2 = vcmask 416768  }
  0xc7   : > { %v321_v24 = vrot.slane %v319_v22, 4  ;;  %v320_v25 = vrot.slane %v317_v23, 4 }
  0xc8   : > { %1204 = vrot.lane.b32.xlu1 %v3355_v32, %s3193_s3  ;;  %1202 = vrot.lane.b32.xlu0 %v3359_v35, %s3193_s3  ;;  %s3216_s3 = smov 64  }
  0xc9   : > { %v325_v26 = vsel %vm323_vm3, %v319_v22, %v321_v24  ;;  %v322_v27 = vsel %vm213_vm0, %v320_v25, %v321_v24 }
  0xca   : > { %329 = vst [vmem:[#allocation2 + $0x5c] sm:$0xf] %v325_v26  ;;  %v324_v28 = vsel %vm323_vm3, %v317_v23, %v322_v27  ;;  %v877_v29 = vpop.permute.xlu1 %876  ;;  %v875_v30 = vpop.permute.xlu0 %874  ;;  %vm791_vm3 = vcmask 408576  }
  0xcb   : > { %v879_v31 = vrot.slane %v877_v29, 4  ;;  %v878_v33 = vrot.slane %v875_v30, 4  ;;  %v2844_v34 = vcombine.high %v306_v21, %v324_v28  ;;  %v2843_v36 = vcombine.low %v306_v21, %v324_v28 }
  0xcc   : > { %588 = vrot.lane.b32.xlu1 %v3273_v1, %s3194_s17  ;;  %586 = vrot.lane.b32.xlu0 %v3268_v0, %s3194_s17  ;;  %s3217_s17 = smov 63  }
  0xcd   : > { %v883_v37 = vsel %vm881_vm4, %v877_v29, %v879_v31  ;;  %v880_v38 = vsel %vm213_vm0, %v878_v33, %v879_v31  ;;  %2499 = vmatprep.subr.bf16.mxu0 %v2844_v34 }
  0xce   : > { %887 = vst [vmem:[#allocation2 + $0x1d0] sm:$0xf] %v883_v37  ;;  %v882_v39 = vsel %vm881_vm4, %v875_v30, %v880_v38  ;;  %v895_v40 = vpop.permute.xlu1 %894  ;;  %v893_v41 = vpop.permute.xlu0 %892  ;;  %2500 = vmatpush1.bf16.msra.mxu0 %v2843_v36  ;;  %vm737_vm4 = vcmask 433152  }
  0xcf   : > { %v897_v42 = vrot.slane %v895_v40, 4  ;;  %v896_v43 = vrot.slane %v893_v41, 4 }
  0xd0   : > { %606 = vrot.lane.b32.xlu1 %v3273_v1, %s3195_s18  ;;  %604 = vrot.lane.b32.xlu0 %v3268_v0, %s3195_s18  ;;  %s3218_s18 = smov 81  }
  0xd1   : > { %v901_v44 = vsel %vm899_vm5, %v895_v40, %v897_v42  ;;  %v898_v45 = vsel %vm213_vm0, %v896_v43, %v897_v42 }
  0xd2   : > { %905 = vst [vmem:[#allocation2 + $0x1dc] sm:$0xf] %v901_v44  ;;  %v900_v46 = vsel %vm899_vm5, %v893_v41, %v898_v45  ;;  %v265_v47 = vpop.permute.xlu1 %264  ;;  %v263_v48 = vpop.permute.xlu0 %262  ;;  %vm755_vm5 = vcmask 424960  }
  0xd3   : > { %v267_v49 = vrot.slane %v265_v47, 4  ;;  %v266_v50 = vrot.slane %v263_v48, 4  ;;  %v2892_v51 = vcombine.high %v882_v39, %v900_v46  ;;  %v2891_v52 = vcombine.low %v882_v39, %v900_v46 }
  0xd4   : > { %1150 = vrot.lane.b32.xlu1 %v3355_v32, %s3196_s20  ;;  %1148 = vrot.lane.b32.xlu0 %v3359_v35, %s3196_s20  ;;  %s3219_s20 = smov 83  }
  0xd5   : > { %v271_v1 = vsel %vm269_vm6, %v265_v47, %v267_v49  ;;  %v268_v0 = vsel %vm213_vm0, %v266_v50, %v267_v49  ;;  %2540 = vmatprep.subr.bf16.mxu1 %v2892_v51 }
  0xd6   : > { %275 = vst [vmem:[#allocation2 + $0x38] sm:$0xf] %v271_v1  ;;  %v270_v53 = vsel %vm269_vm6, %v263_v48, %v268_v0  ;;  %v283_v54 = vpop.permute.xlu1 %282  ;;  %v281_v55 = vpop.permute.xlu0 %280  ;;  %2541 = vmatpush1.bf16.msra.mxu1 %v2891_v52  ;;  %vm1316_vm6 = vcmask 719872  }
  0xd7   : > { %v285_v56 = vrot.slane %v283_v54, 4  ;;  %v284_v57 = vrot.slane %v281_v55, 4 }
  0xd8   : > { %1168 = vrot.lane.b32.xlu1 %v3355_v32, %s3197_s21  ;;  %1166 = vrot.lane.b32.xlu0 %v3359_v35, %s3197_s21  ;;  %s3220_s21 = smov 82  }
  0xd9   : > { %v289_v58 = vsel %vm287_vm7, %v283_v54, %v285_v56  ;;  %v286_v59 = vsel %vm213_vm0, %v284_v57, %v285_v56 }
  0xda   : > { %293 = vst [vmem:[#allocation2 + $0x44] sm:$0xf] %v289_v58  ;;  %v288_v62 = vsel %vm287_vm7, %v281_v55, %v286_v59  ;;  %v841_v63 = vpop.permute.xlu1 %840  ;;  %v839_v3 = vpop.permute.xlu0 %838  ;;  %vm701_vm7 = vcmask 449536  }
  0xdb   : > { %v843_v4 = vrot.slane %v841_v63, 4  ;;  %v842_v5 = vrot.slane %v839_v3, 4  ;;  %v2841_v6 = vcombine.high %v270_v53, %v288_v62  ;;  %v2840_v7 = vcombine.low %v270_v53, %v288_v62 }
  0xdc   : > { %552 = vrot.lane.b32.xlu1 %v3424_v60, %s3198_s22  ;;  %550 = vrot.lane.b32.xlu0 %v3314_v2, %s3198_s22  ;;  %s3221_s22 = smov 85  }
  0xdd   : > { %v847_v32 = vsel %vm845_vm9, %v841_v63, %v843_v4  ;;  %v844_v35 = vsel %vm213_vm0, %v842_v5, %v843_v4  ;;  %2501 = vmatprep.subr.bf16.mxu0 %v2841_v6  ;;  %v1803_v5 = vlaneseq }
  0xde   : > { %851 = vst [vmem:[#allocation2 + $0x1b8] sm:$0xf] %v847_v32  ;;  %v846_v8 = vsel %vm845_vm9, %v839_v3, %v844_v35  ;;  %v859_v9 = vpop.permute.xlu1 %858  ;;  %v857_v10 = vpop.permute.xlu0 %856  ;;  %2502 = vmatpush1.bf16.msra.mxu0 %v2840_v7  ;;  %v3206_v3 = vmov 1983009808   ;;  %vm1263_vm9 = vcmask 867328  }
  0xdf   : > { %v861_v11 = vrot.slane %v859_v9, 4  ;;  %v860_v12 = vrot.slane %v857_v10, 4  ;;  %v1801_v4 = vunpack.c.l.s4 %v3206_v3 }
  0xe0   : > { %570 = vrot.lane.b32.xlu1 %v3424_v60, %s3199_s23  ;;  %568 = vrot.lane.b32.xlu0 %v3314_v2, %s3199_s23  ;;  %s3222_s23 = smov 84  }
  0xe1   : > { %v865_v13 = vsel %vm863_vm10, %v859_v9, %v861_v11  ;;  %v862_v14 = vsel %vm213_vm0, %v860_v12, %v861_v11  ;;  %v1627_v9 = vld [vmem:[%s3648_s1] sm:$0xff] }
  0xe2   : > { %869 = vst [vmem:[#allocation2 + $0x1c4] sm:$0xf] %v865_v13  ;;  %v864_v15 = vsel %vm863_vm10, %v857_v10, %v862_v14  ;;  %v229_v16 = vpop.permute.xlu1 %228  ;;  %v227_v17 = vpop.permute.xlu0 %226  ;;  %v1804_v10 = vshrl.u32 %v1803_v5, 7  ;;  %v1799_v13 = vcombine.high %v1627_v9, %v1627_v9  ;;  %v3138_v14 = vld [vmem:[#allocation2] sm:$0xff]  ;;  %vm1281_vm10 = vcmask 859136  }
  0xe3   : > { %v231_v18 = vrot.slane %v229_v16, 4  ;;  %v230_v19 = vrot.slane %v227_v17, 4  ;;  %v2889_v20 = vcombine.high %v846_v8, %v864_v15  ;;  %v2888_v21 = vcombine.low %v846_v8, %v864_v15 }
  0xe4   : > { %1128 = vrot.lane.b32.xlu1 %v3424_v60, %s3200_s24  ;;  %1126 = vrot.lane.b32.xlu0 %v3314_v2, %s3200_s24  ;;  %s3223_s24 = smov 87  }
  0xe5   : > { %v235_v22 = vsel %vm233_vm11, %v229_v16, %v231_v18  ;;  %v232_v23 = vsel %vm213_vm0, %v230_v19, %v231_v18  ;;  %2542 = vmatprep.subr.bf16.mxu1 %v2889_v20 }
  0xe6   : > { %239 = vst [vmem:[#allocation2 + $0x20] sm:$0xf] %v235_v22  ;;  %v234_v24 = vsel %vm233_vm11, %v227_v17, %v232_v23  ;;  %v247_v25 = vpop.permute.xlu1 %246  ;;  %v245_v26 = vpop.permute.xlu0 %244  ;;  %2543 = vmatpush1.bf16.msra.mxu1 %v2888_v21  ;;  %vm665_vm11 = vcmask 588800  }
  0xe7   : > { %v249_v27 = vrot.slane %v247_v25, 4  ;;  %v248_v28 = vrot.slane %v245_v26, 4 }
  0xe8   : > { %516 = vrot.lane.b32.xlu1 %v3424_v60, %s3201_s25  ;;  %514 = vrot.lane.b32.xlu0 %v3314_v2, %s3201_s25 }
  0xe9   : > { %v253_v29 = vsel %vm251_vm12, %v247_v25, %v249_v27  ;;  %v250_v30 = vsel %vm213_vm0, %v248_v28, %v249_v27 }
  0xea   : > { %257 = vst [vmem:[#allocation2 + $0x2c] sm:$0xf] %v253_v29  ;;  %v252_v31 = vsel %vm251_vm12, %v245_v26, %v250_v30  ;;  %v805_v33 = vpop.permute.xlu1 %804  ;;  %v803_v34 = vpop.permute.xlu0 %802  ;;  %vm683_vm12 = vcmask 457728  }
  0xeb   : > { %v807_v36 = vrot.slane %v805_v33, 4  ;;  %v806_v37 = vrot.slane %v803_v34, 4  ;;  %v2838_v38 = vcombine.high %v234_v24, %v252_v31  ;;  %v2837_v39 = vcombine.low %v234_v24, %v252_v31 }
  0xec   : > { %534 = vrot.lane.b32.xlu1 %v3424_v60, %s3202_s26  ;;  %532 = vrot.lane.b32.xlu0 %v3314_v2, %s3202_s26 }
  0xed   : > { %v811_v40 = vsel %vm809_vm13, %v805_v33, %v807_v36  ;;  %v808_v41 = vsel %vm213_vm0, %v806_v37, %v807_v36  ;;  %2503 = vmatprep.subr.bf16.mxu0 %v2838_v38 }
  0xee   : > { %815 = vst [vmem:[#allocation2 + $0x1a0] sm:$0xf] %v811_v40  ;;  %v810_v42 = vsel %vm809_vm13, %v803_v34, %v808_v41  ;;  %v823_v43 = vpop.permute.xlu1 %822  ;;  %v821_v44 = vpop.permute.xlu0 %820  ;;  %2504 = vmatpush1.bf16.msra.mxu0 %v2837_v39  ;;  %v3489_v40 = vld [vmem:[%s3265_s19 + $0xc] sm:$0xff]  ;;  %s3211_s19 = smov 57   ;;  %vm1227_vm13 = vcmask 883712  }
  0xef   : > { %v825_v45 = vrot.slane %v823_v43, 4  ;;  %v824_v46 = vrot.slane %v821_v44, 4 }
  0xf0   : > { %1092 = vrot.lane.b32.xlu1 %v3424_v60, %s3203_s27  ;;  %1090 = vrot.lane.b32.xlu0 %v3314_v2, %s3203_s27 }
  0xf1   : > { %v829_v47 = vsel %vm827_vm15, %v823_v43, %v825_v45  ;;  %v826_v48 = vsel %vm213_vm0, %v824_v46, %v825_v45 }
  0xf2   : > { %833 = vst [vmem:[#allocation2 + $0x1ac] sm:$0xf] %v829_v47  ;;  %v828_v49 = vsel %vm827_vm15, %v821_v44, %v826_v48  ;;  %v210_v50 = vpop.permute.xlu1 %209  ;;  %v208_v51 = vpop.permute.xlu0 %207  ;;  %vm1245_vm15 = vcmask 875520  }
  0xf3   : > { %v212_v52 = vrot.slane %v210_v50, 4  ;;  %v211_v1 = vrot.slane %v208_v51, 4  ;;  %v2886_v0 = vcombine.high %v810_v42, %v828_v49  ;;  %v2885_v53 = vcombine.low %v810_v42, %v828_v49 }
  0xf4   : > { %1110 = vrot.lane.b32.xlu1 %v3424_v60, %s3204_s28  ;;  %1108 = vrot.lane.b32.xlu0 %v3314_v2, %s3204_s28 }
  0xf5   : > { %v217_v54 = vsel %vm215_vm1, %v210_v50, %v212_v52  ;;  %v214_v55 = vsel %vm213_vm0, %v211_v1, %v212_v52  ;;  %2544 = vmatprep.subr.bf16.mxu1 %v2886_v0 }
  0xf6   : > { %221 = vst [vmem:[#allocation2 + $0x14] sm:$0xf] %v217_v54  ;;  %v216_v56 = vsel %vm215_vm1, %v208_v51, %v214_v55  ;;  %v769_v57 = vpop.permute.xlu1 %768  ;;  %v767_v58 = vpop.permute.xlu0 %766  ;;  %2545 = vmatpush1.bf16.msra.mxu1 %v2885_v53  ;;  %vm629_vm1 = vcmask 605184  }
  0xf7   : > { %v771_v59 = vrot.slane %v769_v57, 4  ;;  %v770_v61 = vrot.slane %v767_v58, 4  ;;  %v2835_v62 = vcombine.high %v3314_v2, %v216_v56  ;;  %v2834_v63 = vcombine.low %v3314_v2, %v216_v56 }
  0xf8   : > { %480 = vrot.lane.b32.xlu1 %v3424_v60, %s3205_s29  ;;  %478 = vrot.lane.b32.xlu0 %v3314_v2, %s3205_s29  ;;  %v1802_v2 = vunpack.c.0.s8 %v1801_v4  ;;  %s3008_s29 = smul.u32 6, %s3655_s16 }
  0xf9   : > { %v775_v6 = vsel %vm773_vm2, %v769_v57, %v771_v59  ;;  %v772_v7 = vsel %vm213_vm0, %v770_v61, %v771_v59  ;;  %2505 = vmatprep.subr.bf16.mxu0 %v2835_v62 }
  0xfa   : > { %779 = vst [vmem:[#allocation2 + $0x188] sm:$0xf] %v775_v6  ;;  %v774_v32 = vsel %vm773_vm2, %v767_v58, %v772_v7  ;;  %v787_v35 = vpop.permute.xlu1 %786  ;;  %v785_v8 = vpop.permute.xlu0 %784  ;;  %2506 = vmatpush1.bf16.msra.mxu0 %v2834_v63  ;;  %v3461_v15 = vsub.s32 %v1802_v2, %v1804_v10  ;;  %vm647_vm2 = vcmask 596992  }
  0xfb   : > { %v789_v11 = vrot.slane %v787_v35, 4  ;;  %v788_v12 = vrot.slane %v785_v8, 4 }
  0xfc   : > { %498 = vrot.lane.b32.xlu1 %v3424_v60, %s3207_s6  ;;  %496 = vrot.lane.b32.xlu0 %v3138_v14, %s3207_s6  ;;  %v3467_v21 = vrot.slane %v1799_v13, %v3461_v15  ;;  %v3477_v29 = vrot.slane %v1627_v9, %v3461_v15  ;;  %s197_s6 = scalar_lea.vmem %s3651_s4, %s3008_s29 }
  0xfd   : > { %v793_v16 = vsel %vm791_vm3, %v787_v35, %v789_v11  ;;  %v790_v17 = vsel %vm213_vm0, %v788_v12, %v789_v11 }
  0xfe   : > { %797 = vst [vmem:[#allocation2 + $0x194] sm:$0xf] %v793_v16  ;;  %v792_v18 = vsel %vm791_vm3, %v785_v8, %v790_v17  ;;  %v733_v19 = vpop.permute.xlu1 %732  ;;  %v731_v20 = vpop.permute.xlu0 %730  ;;  %v3472_v26 = vcombine.high %v3467_v21, %v3467_v21  ;;  %v3483_v37 = vcombine.high %v3477_v29, %v3477_v29  ;;  %vm1191_vm3 = vcmask 900096  }
  0xff   : > { %v735_v22 = vrot.slane %v733_v19, 4  ;;  %v734_v23 = vrot.slane %v731_v20, 4  ;;  %v2883_v24 = vcombine.high %v774_v32, %v792_v18  ;;  %v2882_v25 = vcombine.low %v774_v32, %v792_v18 }
 0x100   : > { %1056 = vrot.lane.b32.xlu1 %v3424_v60, %s3208_s7  ;;  %1054 = vrot.lane.b32.xlu0 %v3138_v14, %s3208_s7 }
 0x101   : > { %v739_v27 = vsel %vm737_vm4, %v733_v19, %v735_v22  ;;  %v736_v28 = vsel %vm213_vm0, %v734_v23, %v735_v22  ;;  %2546 = vmatprep.subr.bf16.mxu1 %v2883_v24  ;;  %2564 = vmatprep.mubr.bf16.mxu1 %v3472_v26 }
 0x102   : > { %743 = vst [vmem:[#allocation2 + $0x170] sm:$0xf] %v739_v27  ;;  %v738_v30 = vsel %vm737_vm4, %v731_v20, %v736_v28  ;;  %v751_v31 = vpop.permute.xlu1 %750  ;;  %v749_v33 = vpop.permute.xlu0 %748  ;;  %2547 = vmatpush1.bf16.msra.mxu1 %v2882_v25  ;;  %2523 = vmatprep.mubr.bf16.mxu0 %v3483_v37  ;;  %vm1209_vm4 = vcmask 891904  }
 0x103   : > { %v753_v34 = vrot.slane %v751_v31, 4  ;;  %v752_v36 = vrot.slane %v749_v33, 4 }
 0x104   : > { %1074 = vrot.lane.b32.xlu1 %v3424_v60, %s3209_s8  ;;  %1072 = vrot.lane.b32.xlu0 %v3138_v14, %s3209_s8  ;;  %v3494_v60 = vld [vmem:[#allocation2 + $0x27c] sm:$0xff] }
 0x105   : > { %v757_v38 = vsel %vm755_vm5, %v751_v31, %v753_v34  ;;  %v754_v39 = vsel %vm213_vm0, %v752_v36, %v753_v34 }
 0x106   : > { %761 = vst [vmem:[#allocation2 + $0x17c] sm:$0xf] %v757_v38  ;;  %v756_v41 = vsel %vm755_vm5, %v749_v33, %v754_v39  ;;  %v1295_v42 = vpop.permute.xlu1 %1294  ;;  %v1293_v43 = vpop.permute.xlu0 %1292  ;;  %vm593_vm5 = vcmask 621568  }
 0x107   : > { %v1297_v44 = vrot.slane %v1295_v42, 4  ;;  %v1296_v45 = vrot.slane %v1293_v43, 4  ;;  %v2880_v46 = vcombine.high %v738_v30, %v756_v41  ;;  %v2879_v47 = vcombine.low %v738_v30, %v756_v41 }
 0x108   : > { %1580 = vrot.lane.b32.xlu1 %v3489_v40, %s3210_s10  ;;  %1578 = vrot.lane.b32.xlu0 %v3494_v60, %s3210_s10 }
 0x109   : > { %v1300_v48 = vsel %vm359_vm14, %v1295_v42, %v1297_v44  ;;  %v1298_v49 = vsel %vm213_vm0, %v1296_v45, %v1297_v44  ;;  %2507 = vmatprep.subr.bf16.mxu0 %v2880_v46 }
 0x10a   : > { %1304 = vst [vmem:[#allocation2 + $0x2f0] sm:$0xf] %v1300_v48  ;;  %v1299_v50 = vsel %vm359_vm14, %v1293_v43, %v1298_v49  ;;  %v1312_v51 = vpop.permute.xlu1 %1311  ;;  %v1310_v52 = vpop.permute.xlu0 %1309  ;;  %2508 = vmatpush2.bf16.msra.mxu0 %v2879_v47  ;;  %vm719_vm14 = vcmask 441344  }
 0x10b   : > { %v1314_v1 = vrot.slane %v1312_v51, 4  ;;  %v1313_v0 = vrot.slane %v1310_v52, 4 }
 0x10c   : > { %1598 = vrot.lane.b32.xlu1 %v3489_v40, %s3211_s19  ;;  %1596 = vrot.lane.b32.xlu0 %v3494_v60, %s3211_s19 }
 0x10d   : > { %v1318_v53 = vsel %vm1316_vm6, %v1312_v51, %v1314_v1  ;;  %v1315_v54 = vsel %vm213_vm0, %v1313_v0, %v1314_v1 }
 0x10e   : > { %1322 = vst [vmem:[#allocation2 + $0x2fc] sm:$0xf] %v1318_v53  ;;  %v1317_v55 = vsel %vm1316_vm6, %v1310_v52, %v1315_v54  ;;  %v697_v56 = vpop.permute.xlu1 %696  ;;  %v695_v57 = vpop.permute.xlu0 %694  ;;  %vm611_vm6 = vcmask 613376  }
 0x10f   : > { %v699_v58 = vrot.slane %v697_v56, 4  ;;  %v698_v59 = vrot.slane %v695_v57, 4  ;;  %v2928_v61 = vcombine.high %v1299_v50, %v1317_v55  ;;  %v2927_v62 = vcombine.low %v1299_v50, %v1317_v55 }
 0x110   : > { %1544 = vrot.lane.b32.xlu1 %v3489_v40, %s3212_s11  ;;  %1542 = vrot.lane.b32.xlu0 %v3494_v60, %s3212_s11 }
 0x111   : > { %v703_v63 = vsel %vm701_vm7, %v697_v56, %v699_v58  ;;  %v700_v3 = vsel %vm213_vm0, %v698_v59, %v699_v58  ;;  %2548 = vmatprep.subr.bf16.mxu1 %v2928_v61 }
 0x112   : > { %707 = vst [vmem:[#allocation2 + $0x158] sm:$0xf] %v703_v63  ;;  %v702_v4 = vsel %vm701_vm7, %v695_v57, %v700_v3  ;;  %v715_v5 = vpop.permute.xlu1 %714  ;;  %v713_v6 = vpop.permute.xlu0 %712  ;;  %2549 = vmatpush2.bf16.msra.mxu1 %v2927_v62  ;;  %vm1155_vm7 = vcmask 916480  }
 0x113   : > { %v717_v7 = vrot.slane %v715_v5, 4  ;;  %v716_v32 = vrot.slane %v713_v6, 4 }
 0x114   : > { %1562 = vrot.lane.b32.xlu1 %v3489_v40, %s3213_s12  ;;  %1560 = vrot.lane.b32.xlu0 %v3494_v60, %s3213_s12 }
 0x115   : > { %v721_v35 = vsel %vm719_vm14, %v715_v5, %v717_v7  ;;  %v718_v8 = vsel %vm213_vm0, %v716_v32, %v717_v7 }
 0x116   : > { %725 = vst [vmem:[#allocation2 + $0x164] sm:$0xf] %v721_v35  ;;  %v720_v9 = vsel %vm719_vm14, %v713_v6, %v718_v8  ;;  %v1259_v2 = vpop.permute.xlu1 %1258  ;;  %v1257_v10 = vpop.permute.xlu0 %1256  ;;  %vm1173_vm14 = vcmask 908288  }
 0x117   : > { %v1261_v11 = vrot.slane %v1259_v2, 4  ;;  %v1260_v12 = vrot.slane %v1257_v10, 4  ;;  %v2877_v13 = vcombine.high %v702_v4, %v720_v9  ;;  %v2876_v14 = vcombine.low %v702_v4, %v720_v9 }
 0x118   : > { %1508 = vrot.lane.b32.xlu1 %v3489_v40, %s3214_s13  ;;  %1506 = vrot.lane.b32.xlu0 %v3494_v60, %s3214_s13 }
 0x119   : > { %v1265_v16 = vsel %vm1263_vm9, %v1259_v2, %v1261_v11  ;;  %v1262_v17 = vsel %vm213_vm0, %v1260_v12, %v1261_v11  ;;  %2509 = vmatprep.subr.bf16.mxu0 %v2877_v13 }
 0x11a   : > { %1269 = vst [vmem:[#allocation2 + $0x2d8] sm:$0xf] %v1265_v16  ;;  %v1264_v18 = vsel %vm1263_vm9, %v1257_v10, %v1262_v17  ;;  %v1277_v19 = vpop.permute.xlu1 %1276  ;;  %v1275_v20 = vpop.permute.xlu0 %1274  ;;  %2510 = vmatpush2.bf16.msra.mxu0 %v2876_v14  ;;  %vm557_vm9 = vcmask 637952  }
 0x11b   : > { %v1279_v22 = vrot.slane %v1277_v19, 4  ;;  %v1278_v23 = vrot.slane %v1275_v20, 4 }
 0x11c   : > { %1526 = vrot.lane.b32.xlu1 %v3489_v40, %s3215_s14  ;;  %1524 = vrot.lane.b32.xlu0 %v3494_v60, %s3215_s14 }
 0x11d   : > { %v1283_v24 = vsel %vm1281_vm10, %v1277_v19, %v1279_v22  ;;  %v1280_v25 = vsel %vm213_vm0, %v1278_v23, %v1279_v22 }
 0x11e   : > { %1287 = vst [vmem:[#allocation2 + $0x2e4] sm:$0xf] %v1283_v24  ;;  %v1282_v27 = vsel %vm1281_vm10, %v1275_v20, %v1280_v25  ;;  %v661_v28 = vpop.permute.xlu1 %660  ;;  %v659_v30 = vpop.permute.xlu0 %658  ;;  %vm575_vm10 = vcmask 629760  }
 0x11f   : > { %v663_v31 = vrot.slane %v661_v28, 4  ;;  %v662_v33 = vrot.slane %v659_v30, 4  ;;  %v2925_v34 = vcombine.high %v1264_v18, %v1282_v27  ;;  %v2924_v36 = vcombine.low %v1264_v18, %v1282_v27 }
 0x120   : > { %1472 = vrot.lane.b32.xlu1 %v3489_v40, %s3216_s3  ;;  %1470 = vrot.lane.b32.xlu0 %v3494_v60, %s3216_s3 }
 0x121   : > { %v667_v38 = vsel %vm665_vm11, %v661_v28, %v663_v31  ;;  %v664_v39 = vsel %vm213_vm0, %v662_v33, %v663_v31  ;;  %2550 = vmatprep.subr.bf16.mxu1 %v2925_v34 }
 0x122   : > { %671 = vst [vmem:[#allocation2 + $0x140] sm:$0xf] %v667_v38  ;;  %v666_v41 = vsel %vm665_vm11, %v659_v30, %v664_v39  ;;  %v679_v42 = vpop.permute.xlu1 %678  ;;  %v677_v43 = vpop.permute.xlu0 %676  ;;  %2551 = vmatpush2.bf16.msra.mxu1 %v2924_v36  ;;  %vm1133_vm11 = vcmask 7168  }
 0x123   : > { %v681_v44 = vrot.slane %v679_v42, 4  ;;  %v680_v45 = vrot.slane %v677_v43, 4 }
 0x124   : > { %1490 = vrot.lane.b32.xlu1 %v3489_v40, %s3217_s17  ;;  %1488 = vrot.lane.b32.xlu0 %v3494_v60, %s3217_s17 }
 0x125   : > { %v685_v46 = vsel %vm683_vm12, %v679_v42, %v681_v44  ;;  %v682_v47 = vsel %vm213_vm0, %v680_v45, %v681_v44 }
 0x126   : > { %689 = vst [vmem:[#allocation2 + $0x14c] sm:$0xf] %v685_v46  ;;  %v684_v48 = vsel %vm683_vm12, %v677_v43, %v682_v47  ;;  %v1223_v49 = vpop.permute.xlu1 %1222  ;;  %v1221_v50 = vpop.permute.xlu0 %1220 }
 0x127   : > { %v1225_v51 = vrot.slane %v1223_v49, 4  ;;  %v1224_v52 = vrot.slane %v1221_v50, 4  ;;  %v2874_v1 = vcombine.high %v666_v41, %v684_v48  ;;  %v2873_v0 = vcombine.low %v666_v41, %v684_v48 }
 0x128   : > { %1437 = vrot.lane.b32.xlu1 %v3489_v40, %s3218_s18  ;;  %1435 = vrot.lane.b32.xlu0 %v3494_v60, %s3218_s18 }
 0x129   : > { %v1229_v53 = vsel %vm1227_vm13, %v1223_v49, %v1225_v51  ;;  %v1226_v54 = vsel %vm213_vm0, %v1224_v52, %v1225_v51  ;;  %2511 = vmatprep.subr.bf16.mxu0 %v2874_v1 }
 0x12a   : > { %1233 = vst [vmem:[#allocation2 + $0x2c0] sm:$0xf] %v1229_v53  ;;  %v1228_v55 = vsel %vm1227_vm13, %v1221_v50, %v1226_v54  ;;  %v1241_v56 = vpop.permute.xlu1 %1240  ;;  %v1239_v57 = vpop.permute.xlu0 %1238  ;;  %2512 = vmatpush2.bf16.msra.mxu0 %v2873_v0  ;;  %v3225_v53 = vmov 0   ;;  %vm521_vm13 = vcmask 654336  }
 0x12b   : > { %v1243_v58 = vrot.slane %v1241_v56, 4  ;;  %v1242_v59 = vrot.slane %v1239_v57, 4  ;;  %3095 = vset.pattern.permute.xlu0 %v3225_v53 }
 0x12c   : > { %1455 = vrot.lane.b32.xlu1 %v3489_v40, %s3201_s25  ;;  %1453 = vrot.lane.b32.xlu0 %v3494_v60, %s3201_s25  ;;  %s3224_s25 = smov 86  }
 0x12d   : > { %v1247_v61 = vsel %vm1245_vm15, %v1241_v56, %v1243_v58  ;;  %v1244_v62 = vsel %vm213_vm0, %v1242_v59, %v1243_v58 }
 0x12e   : > { %1251 = vst [vmem:[#allocation2 + $0x2cc] sm:$0xf] %v1247_v61  ;;  %v1246_v63 = vsel %vm1245_vm15, %v1239_v57, %v1244_v62  ;;  %v625_v3 = vpop.permute.xlu1 %624  ;;  %v623_v4 = vpop.permute.xlu0 %622  ;;  %vm539_vm15 = vcmask 646144  }
 0x12f   : > { %v627_v5 = vrot.slane %v625_v3, 4  ;;  %v626_v6 = vrot.slane %v623_v4, 4  ;;  %v2922_v7 = vcombine.high %v1228_v55, %v1246_v63  ;;  %v2921_v32 = vcombine.low %v1228_v55, %v1246_v63 }
 0x130   : > { %1401 = vrot.lane.b32.xlu1 %v3489_v40, %s3219_s20  ;;  %1399 = vrot.lane.b32.xlu0 %v3494_v60, %s3219_s20 }
 0x131   : > { %v631_v35 = vsel %vm629_vm1, %v625_v3, %v627_v5  ;;  %v628_v8 = vsel %vm213_vm0, %v626_v6, %v627_v5  ;;  %2552 = vmatprep.subr.bf16.mxu1 %v2922_v7 }
 0x132   : > { %635 = vst [vmem:[#allocation2 + $0x128] sm:$0xf] %v631_v35  ;;  %v630_v9 = vsel %vm629_vm1, %v623_v4, %v628_v8  ;;  %v643_v2 = vpop.permute.xlu1 %642  ;;  %v641_v10 = vpop.permute.xlu0 %640  ;;  %2553 = vmatpush2.bf16.msra.mxu1 %v2921_v32  ;;  %vm1097_vm1 = vcmask 23552  }
 0x133   : > { %v645_v11 = vrot.slane %v643_v2, 4  ;;  %v644_v12 = vrot.slane %v641_v10, 4 }
 0x134   : > { %1419 = vrot.lane.b32.xlu1 %v3489_v40, %s3220_s21  ;;  %1417 = vrot.lane.b32.xlu0 %v3494_v60, %s3220_s21 }
 0x135   : > { %v649_v13 = vsel %vm647_vm2, %v643_v2, %v645_v11  ;;  %v646_v14 = vsel %vm213_vm0, %v644_v12, %v645_v11 }
 0x136   : > { %653 = vst [vmem:[#allocation2 + $0x134] sm:$0xf] %v649_v13  ;;  %v648_v16 = vsel %vm647_vm2, %v641_v10, %v646_v14  ;;  %v1187_v17 = vpop.permute.xlu1 %1186  ;;  %v1185_v18 = vpop.permute.xlu0 %1184  ;;  %vm1115_vm2 = vcmask 15360  }
 0x137   : > { %v1189_v19 = vrot.slane %v1187_v17, 4  ;;  %v1188_v20 = vrot.slane %v1185_v18, 4  ;;  %v2871_v22 = vcombine.high %v630_v9, %v648_v16  ;;  %v2870_v23 = vcombine.low %v630_v9, %v648_v16 }
 0x138   : > { %1365 = vrot.lane.b32.xlu1 %v3489_v40, %s3221_s22  ;;  %1363 = vrot.lane.b32.xlu0 %v3494_v60, %s3221_s22 }
 0x139   : > { %v1193_v24 = vsel %vm1191_vm3, %v1187_v17, %v1189_v19  ;;  %v1190_v25 = vsel %vm213_vm0, %v1188_v20, %v1189_v19  ;;  %2513 = vmatprep.subr.bf16.mxu0 %v2871_v22 }
 0x13a   : > { %1197 = vst [vmem:[#allocation2 + $0x2a8] sm:$0xf] %v1193_v24  ;;  %v1192_v27 = vsel %vm1191_vm3, %v1185_v18, %v1190_v25  ;;  %v1205_v28 = vpop.permute.xlu1 %1204  ;;  %v1203_v30 = vpop.permute.xlu0 %1202  ;;  %2514 = vmatpush2.bf16.msra.mxu0 %v2870_v23  ;;  %vm485_vm3 = vcmask 793600  }
 0x13b   : > { %v1207_v31 = vrot.slane %v1205_v28, 4  ;;  %v1206_v33 = vrot.slane %v1203_v30, 4 }
 0x13c   : > { %1383 = vrot.lane.b32.xlu1 %v3489_v40, %s3222_s23  ;;  %1381 = vrot.lane.b32.xlu0 %v3494_v60, %s3222_s23 }
 0x13d   : > { %v1211_v34 = vsel %vm1209_vm4, %v1205_v28, %v1207_v31  ;;  %v1208_v36 = vsel %vm213_vm0, %v1206_v33, %v1207_v31 }
 0x13e   : > { %1215 = vst [vmem:[#allocation2 + $0x2b4] sm:$0xf] %v1211_v34  ;;  %v1210_v38 = vsel %vm1209_vm4, %v1203_v30, %v1208_v36  ;;  %v589_v39 = vpop.permute.xlu1 %588  ;;  %v587_v41 = vpop.permute.xlu0 %586  ;;  %vm503_vm4 = vcmask 785408  }
 0x13f   : > { %v591_v42 = vrot.slane %v589_v39, 4  ;;  %v590_v43 = vrot.slane %v587_v41, 4  ;;  %v2919_v44 = vcombine.high %v1192_v27, %v1210_v38  ;;  %v2918_v45 = vcombine.low %v1192_v27, %v1210_v38 }
 0x140   : > { %1329 = vrot.lane.b32.xlu1 %v3489_v40, %s3223_s24  ;;  %1327 = vrot.lane.b32.xlu0 %v3494_v60, %s3223_s24 }
 0x141   : > { %v595_v46 = vsel %vm593_vm5, %v589_v39, %v591_v42  ;;  %v592_v47 = vsel %vm213_vm0, %v590_v43, %v591_v42  ;;  %2554 = vmatprep.subr.bf16.mxu1 %v2919_v44 }
 0x142   : > { %599 = vst [vmem:[#allocation2 + $0x110] sm:$0xf] %v595_v46  ;;  %v594_v48 = vsel %vm593_vm5, %v587_v41, %v592_v47  ;;  %v607_v49 = vpop.permute.xlu1 %606  ;;  %v605_v50 = vpop.permute.xlu0 %604  ;;  %2555 = vmatpush2.bf16.msra.mxu1 %v2918_v45  ;;  %vm1061_vm5 = vcmask 39936  }
 0x143   : > { %v609_v51 = vrot.slane %v607_v49, 4  ;;  %v608_v52 = vrot.slane %v605_v50, 4 }
 0x144   : > { %1347 = vrot.lane.b32.xlu1 %v3489_v40, %s3224_s25  ;;  %1345 = vrot.lane.b32.xlu0 %v3494_v60, %s3224_s25 }
 0x145   : > { %v613_v1 = vsel %vm611_vm6, %v607_v49, %v609_v51  ;;  %v610_v0 = vsel %vm213_vm0, %v608_v52, %v609_v51 }
 0x146   : > { %617 = vst [vmem:[#allocation2 + $0x11c] sm:$0xf] %v613_v1  ;;  %v612_v54 = vsel %vm611_vm6, %v605_v50, %v610_v0  ;;  %v1151_v55 = vpop.permute.xlu1 %1150  ;;  %v1149_v56 = vpop.permute.xlu0 %1148  ;;  %vm1079_vm6 = vcmask 31744  }
 0x147   : > { %v1153_v57 = vrot.slane %v1151_v55, 4  ;;  %v1152_v58 = vrot.slane %v1149_v56, 4  ;;  %v2868_v59 = vcombine.high %v594_v48, %v612_v54  ;;  %v2867_v61 = vcombine.low %v594_v48, %v612_v54 }
 0x148   : > { %1616 = vrot.lane.b32.xlu1 %v3489_v40, %s3187_s9  ;;  %1614 = vrot.lane.b32.xlu0 %v3494_v60, %s3187_s9 }
 0x149   : > { %v1157_v62 = vsel %vm1155_vm7, %v1151_v55, %v1153_v57  ;;  %v1154_v63 = vsel %vm213_vm0, %v1152_v58, %v1153_v57  ;;  %2515 = vmatprep.subr.bf16.mxu0 %v2868_v59 }
 0x14a   : > { %1161 = vst [vmem:[#allocation2 + $0x290] sm:$0xf] %v1157_v62  ;;  %v1156_v3 = vsel %vm1155_vm7, %v1149_v56, %v1154_v63  ;;  %v1169_v4 = vpop.permute.xlu1 %1168  ;;  %v1167_v5 = vpop.permute.xlu0 %1166  ;;  %2516 = vmatpush2.bf16.msra.mxu0 %v2867_v61  ;;  %vm1585_vm7 = vcmask 474112  }
 0x14b   : > { %v1171_v6 = vrot.slane %v1169_v4, 4  ;;  %v1170_v7 = vrot.slane %v1167_v5, 4 }
 0x14d   : > { %v1175_v32 = vsel %vm1173_vm14, %v1169_v4, %v1171_v6  ;;  %v1172_v35 = vsel %vm213_vm0, %v1170_v7, %v1171_v6 }
 0x14e   : > { %1179 = vst [vmem:[#allocation2 + $0x29c] sm:$0xf] %v1175_v32  ;;  %v1174_v40 = vsel %vm1173_vm14, %v1167_v5, %v1172_v35  ;;  %v553_v8 = vpop.permute.xlu1 %552  ;;  %v551_v9 = vpop.permute.xlu0 %550  ;;  %v1791_v5 = vld [vmem:[%s3649_s2] sm:$0x7]  ;;  %vm1603_vm14 = vcmask 465920  }
 0x14f   : > { %v555_v2 = vrot.slane %v553_v8, 4  ;;  %v554_v10 = vrot.slane %v551_v9, 4  ;;  %v2916_v11 = vcombine.high %v1156_v3, %v1174_v40  ;;  %v2915_v12 = vcombine.low %v1156_v3, %v1174_v40  ;;  %1794 = vperm.xlu0 %3095, %v1791_v5  }
 0x151   : > { %v559_v13 = vsel %vm557_vm9, %v553_v8, %v555_v2  ;;  %v556_v14 = vsel %vm213_vm0, %v554_v10, %v555_v2  ;;  %2556 = vmatprep.subr.bf16.mxu1 %v2916_v11 }
 0x152   : > { %563 = vst [vmem:[#allocation2 + $0xf8] sm:$0xf] %v559_v13  ;;  %v558_v16 = vsel %vm557_vm9, %v551_v9, %v556_v14  ;;  %v571_v17 = vpop.permute.xlu1 %570  ;;  %v569_v18 = vpop.permute.xlu0 %568  ;;  %2557 = vmatpush2.bf16.msra.mxu1 %v2915_v12  ;;  %vm1549_vm9 = vcmask 490496  }
 0x153   : > { %v573_v19 = vrot.slane %v571_v17, 4  ;;  %v572_v20 = vrot.slane %v569_v18, 4 }
 0x155   : > { %v577_v22 = vsel %vm575_vm10, %v571_v17, %v573_v19  ;;  %v574_v23 = vsel %vm213_vm0, %v572_v20, %v573_v19 }
 0x156   : > { %581 = vst [vmem:[#allocation2 + $0x104] sm:$0xf] %v577_v22  ;;  %v576_v24 = vsel %vm575_vm10, %v569_v18, %v574_v23  ;;  %v1129_v25 = vpop.permute.xlu1 %1128  ;;  %v1127_v27 = vpop.permute.xlu0 %1126  ;;  %vm1567_vm10 = vcmask 482304  }
 0x157   : > { %v1131_v28 = vrot.slane %v1129_v25, 4  ;;  %v1130_v30 = vrot.slane %v1127_v27, 4  ;;  %v2865_v31 = vcombine.high %v558_v16, %v576_v24  ;;  %v2864_v33 = vcombine.low %v558_v16, %v576_v24 }
 0x159   : > { %v1135_v34 = vsel %vm1133_vm11, %v1129_v25, %v1131_v28  ;;  %v1132_v36 = vsel %vm213_vm0, %v1130_v30, %v1131_v28  ;;  %2517 = vmatprep.subr.bf16.mxu0 %v2865_v31 }
 0x15a   : > { %1139 = vst [vmem:[#allocation2 + $0x278] sm:$0xf] %v1135_v34  ;;  %v1134_v38 = vsel %vm1133_vm11, %v1127_v27, %v1132_v36  ;;  %v517_v39 = vpop.permute.xlu1 %516  ;;  %v515_v41 = vpop.permute.xlu0 %514  ;;  %2518 = vmatpush2.bf16.msra.mxu0 %v2864_v33  ;;  %v3575_v34 = vld.sshfl [vmem:[%s3648_s1 + $0x8] sm:$0x33 pattern:$0x76325410] }
 0x15b   : > { %v519_v42 = vrot.slane %v517_v39, 4  ;;  %v518_v43 = vrot.slane %v515_v41, 4  ;;  %v2913_v44 = vcombine.high %v1134_v38, %v3494_v60  ;;  %v2912_v45 = vcombine.low %v1134_v38, %v3494_v60 }
 0x15c   : > { %vm1513_vm11 = vcmask 506880  }
 0x15d   : > { %v523_v46 = vsel %vm521_vm13, %v517_v39, %v519_v42  ;;  %v520_v47 = vsel %vm213_vm0, %v518_v43, %v519_v42  ;;  %2558 = vmatprep.subr.bf16.mxu1 %v2913_v44  ;;  %v3580_v43 = vcombine.high %v3575_v34, %v3575_v34 }
 0x15e   : > { %527 = vst [vmem:[#allocation2 + $0xe0] sm:$0xf] %v523_v46  ;;  %v522_v48 = vsel %vm521_vm13, %v515_v41, %v520_v47  ;;  %v535_v49 = vpop.permute.xlu1 %534  ;;  %v533_v50 = vpop.permute.xlu0 %532  ;;  %2559 = vmatpush2.bf16.msra.mxu1 %v2912_v45 }
 0x15f   : > { %v537_v51 = vrot.slane %v535_v49, 4  ;;  %v536_v52 = vrot.slane %v533_v50, 4 }
 0x161   : > { %v541_v1 = vsel %vm539_vm15, %v535_v49, %v537_v51  ;;  %v538_v0 = vsel %vm213_vm0, %v536_v52, %v537_v51 }
 0x162   : > { %545 = vst [vmem:[#allocation2 + $0xec] sm:$0xf] %v541_v1  ;;  %v540_v54 = vsel %vm539_vm15, %v533_v50, %v538_v0  ;;  %v1093_v60 = vpop.permute.xlu1 %1092  ;;  %v1091_v55 = vpop.permute.xlu0 %1090  ;;  %vm1531_vm15 = vcmask 498688  }
 0x163   : > { %v1095_v56 = vrot.slane %v1093_v60, 4  ;;  %v1094_v57 = vrot.slane %v1091_v55, 4  ;;  %v2862_v58 = vcombine.high %v522_v48, %v540_v54  ;;  %v2861_v59 = vcombine.low %v522_v48, %v540_v54 }
 0x165   : > { %v1099_v61 = vsel %vm1097_vm1, %v1093_v60, %v1095_v56  ;;  %v1096_v62 = vsel %vm213_vm0, %v1094_v57, %v1095_v56  ;;  %2519 = vmatprep.subr.bf16.mxu0 %v2862_v58 }
 0x166   : > { %1103 = vst [vmem:[#allocation2 + $0x260] sm:$0xf] %v1099_v61  ;;  %v1098_v63 = vsel %vm1097_vm1, %v1091_v55, %v1096_v62  ;;  %v1111_v3 = vpop.permute.xlu1 %1110  ;;  %v1109_v4 = vpop.permute.xlu0 %1108  ;;  %2520 = vmatpush2.bf16.msra.mxu0 %v2861_v59  ;;  %v3096_v55 = vld [vmem:[#allocation2 + $0x170] ss:$12 sps:$4 sm:$0xff]   ;;  %vm1477_vm1 = vcmask 523264  }
 0x167   : > { %v1113_v6 = vrot.slane %v1111_v3, 4  ;;  %v1112_v7 = vrot.slane %v1109_v4, 4  ;;  %v3098_v62 = vld [vmem:[#allocation2 + $0xb0] ss:$12 sps:$4 sm:$0xff]  }
 0x169   : > { %v1117_v32 = vsel %vm1115_vm2, %v1111_v3, %v1113_v6  ;;  %v1114_v35 = vsel %vm213_vm0, %v1112_v7, %v1113_v6 }
 0x16a   : > { %1121 = vst [vmem:[#allocation2 + $0x26c] sm:$0xf] %v1117_v32  ;;  %v1116_v40 = vsel %vm1115_vm2, %v1109_v4, %v1114_v35  ;;  %v481_v8 = vpop.permute.xlu1 %480  ;;  %v479_v9 = vpop.permute.xlu0 %478  ;;  %v3099_v4 = vld [vmem:[#allocation2 + $0x158] ss:$12 sps:$4 sm:$0xff]   ;;  %vm1495_vm2 = vcmask 515072  }
 0x16b   : > { %v483_v2 = vrot.slane %v481_v8, 4  ;;  %v482_v10 = vrot.slane %v479_v9, 4  ;;  %v2910_v11 = vcombine.high %v1098_v63, %v1116_v40  ;;  %v2909_v12 = vcombine.low %v1098_v63, %v1116_v40 }
 0x16d   : > { %v487_v13 = vsel %vm485_vm3, %v481_v8, %v483_v2  ;;  %v484_v14 = vsel %vm213_vm0, %v482_v10, %v483_v2  ;;  %2560 = vmatprep.subr.bf16.mxu1 %v2910_v11  ;;  %v3101_v11 = vld [vmem:[#allocation2 + $0x140] ss:$12 sps:$4 sm:$0xff]  }
 0x16e   : > { %491 = vst [vmem:[#allocation2 + $0xc8] sm:$0xf] %v487_v13  ;;  %v486_v16 = vsel %vm485_vm3, %v479_v9, %v484_v14  ;;  %v499_v17 = vpop.permute.xlu1 %498  ;;  %v497_v18 = vpop.permute.xlu0 %496  ;;  %2561 = vmatpush2.bf16.msra.mxu1 %v2909_v12  ;;  %v3100_v9 = vld [vmem:[#allocation2 + $0x98] ss:$12 sps:$4 sm:$0xff]   ;;  %vm1442_vm3 = vcmask 662528  }
 0x16f   : > { %v501_v19 = vrot.slane %v499_v17, 4  ;;  %v500_v20 = vrot.slane %v497_v18, 4 }
 0x171   : > { %v505_v22 = vsel %vm503_vm4, %v499_v17, %v501_v19  ;;  %v502_v23 = vsel %vm213_vm0, %v500_v20, %v501_v19  ;;  %v3102_v17 = vld [vmem:[#allocation2 + $0x80] ss:$12 sps:$4 sm:$0xff]   ;;  %v3103_v20 = vld [vmem:[#allocation2 + $0x128] ss:$12 sps:$4 sm:$0xff]  }
 0x172   : > { %509 = vst [vmem:[#allocation2 + $0xd4] sm:$0xf] %v505_v22  ;;  %v504_v24 = vsel %vm503_vm4, %v497_v18, %v502_v23  ;;  %v1057_v25 = vpop.permute.xlu1 %1056  ;;  %v1055_v27 = vpop.permute.xlu0 %1054  ;;  %vm1406_vm4 = vcmask 678912  }
 0x173   : > { %v1059_v28 = vrot.slane %v1057_v25, 4  ;;  %v1058_v30 = vrot.slane %v1055_v27, 4  ;;  %v2859_v31 = vcombine.high %v486_v16, %v504_v24  ;;  %v2858_v33 = vcombine.low %v486_v16, %v504_v24 }
 0x175   : > { %v1063_v36 = vsel %vm1061_vm5, %v1057_v25, %v1059_v28  ;;  %v1060_v38 = vsel %vm213_vm0, %v1058_v30, %v1059_v28  ;;  %2521 = vmatprep.subr.bf16.mxu0 %v2859_v31  ;;  %v3104_v31 = vld [vmem:[#allocation2 + $0x68] ss:$12 sps:$4 sm:$0xff]  }
 0x176   : > { %1067 = vst [vmem:[#allocation2 + $0x248] sm:$0xf] %v1063_v36  ;;  %v1062_v39 = vsel %vm1061_vm5, %v1055_v27, %v1060_v38  ;;  %v1075_v41 = vpop.permute.xlu1 %1074  ;;  %v1073_v42 = vpop.permute.xlu0 %1072  ;;  %2522 = vmatpush2.bf16.msra.mxu0 %v2858_v33  ;;  %v3105_v38 = vld [vmem:[#allocation2 + $0x110] ss:$12 sps:$4 sm:$0xff]   ;;  %vm1370_vm5 = vcmask 695296  }
 0x177   : > { %v1077_v44 = vrot.slane %v1075_v41, 4  ;;  %v1076_v45 = vrot.slane %v1073_v42, 4 }
 0x179   : > { %v1081_v46 = vsel %vm1079_vm6, %v1075_v41, %v1077_v44  ;;  %v1078_v47 = vsel %vm213_vm0, %v1076_v45, %v1077_v44  ;;  %2524 = vmatmul.mubr.bf16.vlgmr.msra.gmra.mxu0 %v3477_v29 }
 0x17a   : > { %1085 = vst [vmem:[#allocation2 + $0x254] sm:$0xf] %v1081_v46  ;;  %v1080_v48 = vsel %vm1079_vm6, %v1073_v42, %v1078_v47  ;;  %v1581_v49 = vpop.permute.xlu1 %1580  ;;  %v1579_v50 = vpop.permute.xlu0 %1578  ;;  %2958 = vmatprep.mubr.msk.bf16.mxu0 %vm1007_vm8, %v3580_v43  ;;  %v3106_v46 = vld [vmem:[#allocation2 + $0x50] ss:$12 sps:$4 sm:$0xff]   ;;  %vm1388_vm6 = vcmask 687104  }
 0x17b   : > { %v1583_v51 = vrot.slane %v1581_v49, 4  ;;  %v1582_v52 = vrot.slane %v1579_v50, 4  ;;  %v2907_v1 = vcombine.high %v1062_v39, %v1080_v48  ;;  %v2906_v0 = vcombine.low %v1062_v39, %v1080_v48 }
 0x17d   : > { %v1587_v54 = vsel %vm1585_vm7, %v1581_v49, %v1583_v51  ;;  %v1584_v60 = vsel %vm213_vm0, %v1582_v52, %v1583_v51  ;;  %2562 = vmatprep.subr.bf16.mxu1 %v2907_v1  ;;  %v3107_v49 = vld [vmem:[#allocation2 + $0xf8] ss:$12 sps:$4 sm:$0xff]  }
 0x17e   : > { %1591 = vst [vmem:[#allocation2 + $0x3b0] sm:$0xf] %v1587_v54  ;;  %v1586_v56 = vsel %vm1585_vm7, %v1579_v50, %v1584_v60  ;;  %v1599_v57 = vpop.permute.xlu1 %1598  ;;  %v1597_v58 = vpop.permute.xlu0 %1596  ;;  %2563 = vmatpush2.bf16.msra.mxu1 %v2906_v0  ;;  %vm1334_vm7 = vcmask 711680  }
 0x17f   : > { %v1601_v59 = vrot.slane %v1599_v57, 4  ;;  %v1600_v61 = vrot.slane %v1597_v58, 4  ;;  %2963 = vmatprep.subr.bf16.mxu1 %v3096_v55  ;;  %v3108_v55 = vld [vmem:[#allocation2 + $0x38] ss:$12 sps:$4 sm:$0xff]  }
 0x181   : > { %v1605_v63 = vsel %vm1603_vm14, %v1599_v57, %v1601_v59  ;;  %v1602_v3 = vsel %vm213_vm0, %v1600_v61, %v1601_v59  ;;  %2565 = vmatmul.mubr.bf16.vlgmr.msra.gmra.mxu1 %v3467_v21 }
 0x182   : > { %1609 = vst [vmem:[#allocation2 + $0x3bc] sm:$0xf] %v1605_v63  ;;  %v1604_v5 = vsel %vm1603_vm14, %v1597_v58, %v1602_v3  ;;  %v1545_v6 = vpop.permute.xlu1 %1544  ;;  %v1543_v7 = vpop.permute.xlu0 %1542  ;;  %2964 = vmatpush3.bf16.msra.mxu1 %v3098_v62  ;;  %2646 = vmatprep.mubr.bf16.mxu1 %v3483_v37  ;;  %v3109_v58 = vld [vmem:[#allocation2 + $0xe0] ss:$12 sps:$4 sm:$0xff]   ;;  %vm1352_vm14 = vcmask 703488  }
 0x183   : > { %v1547_v32 = vrot.slane %v1545_v6, 4  ;;  %v1546_v35 = vrot.slane %v1543_v7, 4  ;;  %2965 = vmatprep.subr.bf16.mxu1 %v3099_v4  ;;  %v2951_v40 = vcombine.low %v1586_v56, %v1604_v5  ;;  %v2952_v8 = vcombine.high %v1586_v56, %v1604_v5  ;;  %v3110_v4 = vld [vmem:[#allocation2 + $0x20] ss:$12 sps:$4 sm:$0xff]  }
 0x185   : > { %v1551_v2 = vsel %vm1549_vm9, %v1545_v6, %v1547_v32  ;;  %v1548_v10 = vsel %vm213_vm0, %v1546_v35, %v1547_v32  ;;  %2573 = vmatprep.subr.bf16.mxu0 %v2952_v8 }
 0x186   : > { %1555 = vst [vmem:[#allocation2 + $0x398] sm:$0xf] %v1551_v2  ;;  %v1550_v12 = vsel %vm1549_vm9, %v1543_v7, %v1548_v10  ;;  %v1563_v13 = vpop.permute.xlu1 %1562  ;;  %v1561_v14 = vpop.permute.xlu0 %1560  ;;  %2966 = vmatpush3.bf16.msra.mxu1 %v3100_v9  ;;  %2574 = vmatpush1.bf16.msra.mxu0 %v2951_v40  ;;  %v3111_v7 = vld [vmem:[#allocation2 + $0xc8] ss:$12 sps:$4 sm:$0xff]   ;;  %vm2761_vm9 = vsmask.f32 3328 }
 0x187   : > { %v1565_v37 = vrot.slane %v1563_v13, 4  ;;  %v1564_v16 = vrot.slane %v1561_v14, 4  ;;  %2967 = vmatprep.subr.bf16.mxu1 %v3101_v11  ;;  %v3112_v11 = vld [vmem:[#allocation2 + $0x8] ss:$12 sps:$4 sm:$0xff]  }
 0x189   : > { %v1569_v18 = vsel %vm1567_vm10, %v1563_v13, %v1565_v37  ;;  %v1566_v19 = vsel %vm213_vm0, %v1564_v16, %v1565_v37 }
 0x18a   : > { %1573 = vst [vmem:[#allocation2 + $0x3a4] sm:$0xf] %v1569_v18  ;;  %v1568_v22 = vsel %vm1567_vm10, %v1561_v14, %v1566_v19  ;;  %v1509_v23 = vpop.permute.xlu1 %1508  ;;  %v1507_v24 = vpop.permute.xlu0 %1506  ;;  %2968 = vmatpush3.bf16.msra.mxu1 %v3102_v17  ;;  %v3113_v14 = vld [vmem:[#allocation2 + $0x2f0] ss:$12 sps:$4 sm:$0xff]  }
 0x18b   : > { %v1511_v25 = vrot.slane %v1509_v23, 4  ;;  %v1510_v27 = vrot.slane %v1507_v24, 4  ;;  %2969 = vmatprep.subr.bf16.mxu1 %v3103_v20  ;;  %v2948_v28 = vcombine.low %v1550_v12, %v1568_v22  ;;  %v2949_v30 = vcombine.high %v1550_v12, %v1568_v22  ;;  %v3114_v20 = vld [vmem:[#allocation2 + $0x230] ss:$12 sps:$4 sm:$0xff]  }
 0x18d   : > { %v1515_v33 = vsel %vm1513_vm11, %v1509_v23, %v1511_v25  ;;  %v1512_v36 = vsel %vm213_vm0, %v1510_v27, %v1511_v25  ;;  %2575 = vmatprep.subr.bf16.mxu0 %v2949_v30 }
 0x18e   : > { %1519 = vst [vmem:[#allocation2 + $0x380] sm:$0xf] %v1515_v33  ;;  %v1514_v39 = vsel %vm1513_vm11, %v1507_v24, %v1512_v36  ;;  %v1527_v41 = vpop.permute.xlu1 %1526  ;;  %v1525_v42 = vpop.permute.xlu0 %1524  ;;  %2970 = vmatpush3.bf16.msra.mxu1 %v3104_v31  ;;  %2576 = vmatpush1.bf16.msra.mxu0 %v2948_v28  ;;  %v3115_v24 = vld [vmem:[#allocation2 + $0x2d8] ss:$12 sps:$4 sm:$0xff]  }
 0x18f   : > { %v1529_v44 = vrot.slane %v1527_v41, 4  ;;  %v1528_v45 = vrot.slane %v1525_v42, 4  ;;  %2971 = vmatprep.subr.bf16.mxu1 %v3105_v38  ;;  %v3116_v38 = vld [vmem:[#allocation2 + $0x218] ss:$12 sps:$4 sm:$0xff]  }
 0x191   : > { %v1533_v47 = vsel %vm1531_vm15, %v1527_v41, %v1529_v44  ;;  %v1530_v48 = vsel %vm213_vm0, %v1528_v45, %v1529_v44  ;;  %v3117_v41 = vld [vmem:[#allocation2 + $0x2c0] ss:$12 sps:$4 sm:$0xff]  }
 0x192   : > { %1537 = vst [vmem:[#allocation2 + $0x38c] sm:$0xf] %v1533_v47  ;;  %v1532_v50 = vsel %vm1531_vm15, %v1525_v42, %v1530_v48  ;;  %v1473_v51 = vpop.permute.xlu1 %1472  ;;  %v1471_v52 = vpop.permute.xlu0 %1470  ;;  %2972 = vmatpush3.bf16.msra.mxu1 %v3106_v46  ;;  %v3118_v47 = vld [vmem:[#allocation2 + $0x200] ss:$12 sps:$4 sm:$0xff]   ;;  %vm2764_vm15 = vcmask 1045508  }
 0x193   : > { %v1475_v1 = vrot.slane %v1473_v51, 4  ;;  %v1474_v0 = vrot.slane %v1471_v52, 4  ;;  %2973 = vmatprep.subr.bf16.mxu1 %v3107_v49  ;;  %v2945_v54 = vcombine.low %v1514_v39, %v1532_v50  ;;  %v2946_v60 = vcombine.high %v1514_v39, %v1532_v50  ;;  %v3119_v50 = vld [vmem:[#allocation2 + $0x2a8] ss:$12 sps:$4 sm:$0xff]  }
 0x195   : > { %v1479_v56 = vsel %vm1477_vm1, %v1473_v51, %v1475_v1  ;;  %v1476_v57 = vsel %vm213_vm0, %v1474_v0, %v1475_v1  ;;  %2577 = vmatprep.subr.bf16.mxu0 %v2946_v60 }
 0x196   : > { %1483 = vst [vmem:[#allocation2 + $0x368] sm:$0xf] %v1479_v56  ;;  %v1478_v59 = vsel %vm1477_vm1, %v1471_v52, %v1476_v57  ;;  %v1491_v61 = vpop.permute.xlu1 %1490  ;;  %v1489_v62 = vpop.permute.xlu0 %1488  ;;  %2974 = vmatpush3.bf16.msra.mxu1 %v3108_v55  ;;  %2578 = vmatpush1.bf16.msra.mxu0 %v2945_v54  ;;  %v3120_v56 = vld [vmem:[#allocation2 + $0x1e8] ss:$12 sps:$4 sm:$0xff]   ;;  %vm2765_vm1 = vsmask.f32 5376 }
 0x197   : > { %v1493_v63 = vrot.slane %v1491_v61, 4  ;;  %v1492_v3 = vrot.slane %v1489_v62, 4  ;;  %2975 = vmatprep.subr.bf16.mxu1 %v3109_v58 }
 0x199   : > { %v1497_v5 = vsel %vm1495_vm2, %v1491_v61, %v1493_v63  ;;  %v1494_v6 = vsel %vm213_vm0, %v1492_v3, %v1493_v63 }
 0x19a   : > { %1501 = vst [vmem:[#allocation2 + $0x374] sm:$0xf] %v1497_v5  ;;  %v1496_v32 = vsel %vm1495_vm2, %v1489_v62, %v1494_v6  ;;  %v1438_v35 = vpop.permute.xlu1 %1437  ;;  %v1436_v40 = vpop.permute.xlu0 %1435  ;;  %2976 = vmatpush3.bf16.msra.mxu1 %v3110_v4  ;;  %v3122_v5 = vld [vmem:[#allocation2 + $0x1d0] ss:$12 sps:$4 sm:$0xff]  }
 0x19b   : > { %v1440_v8 = vrot.slane %v1438_v35, 4  ;;  %v1439_v9 = vrot.slane %v1436_v40, 4  ;;  %2977 = vmatprep.subr.bf16.mxu1 %v3111_v7  ;;  %v2942_v2 = vcombine.low %v1478_v59, %v1496_v32  ;;  %v2943_v10 = vcombine.high %v1478_v59, %v1496_v32  ;;  %v3121_v59 = vld [vmem:[#allocation2 + $0x290] ss:$12 sps:$4 sm:$0xff]   ;;  %v3123_v32 = vld [vmem:[#allocation2 + $0x278] ss:$12 sps:$4 sm:$0xff]  }
 0x19d   : > { %v1444_v12 = vsel %vm1442_vm3, %v1438_v35, %v1440_v8  ;;  %v1441_v13 = vsel %vm213_vm0, %v1439_v9, %v1440_v8  ;;  %2579 = vmatprep.subr.bf16.mxu0 %v2943_v10 }
 0x19e   : > { %1448 = vst [vmem:[#allocation2 + $0x350] sm:$0xf] %v1444_v12  ;;  %v1443_v37 = vsel %vm1442_vm3, %v1436_v40, %v1441_v13  ;;  %v1456_v16 = vpop.permute.xlu1 %1455  ;;  %v1454_v17 = vpop.permute.xlu0 %1453  ;;  %2580 = vmatpush1.bf16.msra.mxu0 %v2942_v2  ;;  %2978 = vmatpush3.bf16.msra.mxu1 %v3112_v11  ;;  %v3124_v12 = vld [vmem:[#allocation2 + $0x1b8] ss:$12 sps:$4 sm:$0xff]   ;;  %vm2766_vm3 = vmand %vm2764_vm15, %vm2765_vm1 }
 0x19f   : > { %v1458_v18 = vrot.slane %v1456_v16, 4  ;;  %v1457_v19 = vrot.slane %v1454_v17, 4  ;;  %2985 = vmatprep.subr.bf16.mxu1 %v3113_v14 }
 0x1a1   : > { %v1461_v22 = vsel %vm521_vm13, %v1456_v16, %v1458_v18  ;;  %v1459_v23 = vsel %vm213_vm0, %v1457_v19, %v1458_v18  ;;  %2647 = vmatmul.mubr.bf16.vlgmr.msra.gmra.mxu1 %v3477_v29 }
 0x1a2   : > { %1465 = vst [vmem:[#allocation2 + $0x35c] sm:$0xf] %v1461_v22  ;;  %v1460_v25 = vsel %vm521_vm13, %v1454_v17, %v1459_v23  ;;  %v1402_v27 = vpop.permute.xlu1 %1401  ;;  %v1400_v28 = vpop.permute.xlu0 %1399  ;;  %2986 = vmatpush3.bf16.msra.mxu1 %v3114_v20  ;;  %2686 = vmatprep.mubr.bf16.mxu1 %v3472_v26  ;;  %vm1424_vm13 = vcmask 670720   ;;  %v3126_v22 = vld [vmem:[#allocation2 + $0x1a0] ss:$12 sps:$4 sm:$0xff]  }
 0x1a3   : > { %v1404_v30 = vrot.slane %v1402_v27, 4  ;;  %v1403_v31 = vrot.slane %v1400_v28, 4  ;;  %2987 = vmatprep.subr.bf16.mxu1 %v3115_v24  ;;  %v2939_v33 = vcombine.low %v1443_v37, %v1460_v25  ;;  %v2940_v36 = vcombine.high %v1443_v37, %v1460_v25  ;;  %v3125_v37 = vld [vmem:[#allocation2 + $0x260] ss:$12 sps:$4 sm:$0xff]   ;;  %v3127_v25 = vld [vmem:[#allocation2 + $0x248] ss:$12 sps:$4 sm:$0xff]  }
 0x1a5   : > { %v1408_v39 = vsel %vm1406_vm4, %v1402_v27, %v1404_v30  ;;  %v1405_v29 = vsel %vm213_vm0, %v1403_v31, %v1404_v30  ;;  %2581 = vmatprep.subr.bf16.mxu0 %v2940_v36 }
 0x1a6   : > { %1412 = vst [vmem:[#allocation2 + $0x338] sm:$0xf] %v1408_v39  ;;  %v1407_v42 = vsel %vm1406_vm4, %v1400_v28, %v1405_v29  ;;  %v1420_v44 = vpop.permute.xlu1 %1419  ;;  %v1418_v45 = vpop.permute.xlu0 %1417  ;;  %2582 = vmatpush1.bf16.msra.mxu0 %v2939_v33  ;;  %2988 = vmatpush3.bf16.msra.mxu1 %v3116_v38  ;;  %v3128_v39 = vld [vmem:[#allocation2 + $0x188] ss:$12 sps:$4 sm:$0xff]  }
 0x1a7   : > { %v1422_v26 = vrot.slane %v1420_v44, 4  ;;  %v1421_v46 = vrot.slane %v1418_v45, 4  ;;  %2989 = vmatprep.subr.bf16.mxu1 %v3117_v41 }
 0x1a9   : > { %v1426_v48 = vsel %vm1424_vm13, %v1420_v44, %v1422_v26  ;;  %v1423_v49 = vsel %vm213_vm0, %v1421_v46, %v1422_v26  ;;  %v3129_v46 = vld [vmem:[#allocation2 + $0x3b0] ss:$12 sps:$4 sm:$0xff]  }
 0x1aa   : > { %1430 = vst [vmem:[#allocation2 + $0x344] sm:$0xf] %v1426_v48  ;;  %v1425_v51 = vsel %vm1424_vm13, %v1418_v45, %v1423_v49  ;;  %v1366_v52 = vpop.permute.xlu1 %1365  ;;  %v1364_v1 = vpop.permute.xlu0 %1363  ;;  %2990 = vmatpush3.bf16.msra.mxu1 %v3118_v47  ;;  %v3130_v47 = vld [vmem:[#allocation2 + $0x398] ss:$12 sps:$4 sm:$0xff]   ;;  %v3131_v48 = vld [vmem:[#allocation2 + $0x380] ss:$12 sps:$4 sm:$0xff]  }
 0x1ab   : > { %v1368_v0 = vrot.slane %v1366_v52, 4  ;;  %v1367_v54 = vrot.slane %v1364_v1, 4  ;;  %2991 = vmatprep.subr.bf16.mxu1 %v3119_v50  ;;  %v2936_v60 = vcombine.low %v1407_v42, %v1425_v51  ;;  %v2937_v55 = vcombine.high %v1407_v42, %v1425_v51  ;;  %v3133_v49 = vld [vmem:[#allocation2 + $0x350] ss:$12 sps:$4 sm:$0xff]  }
 0x1ad   : > { %v1372_v57 = vsel %vm1370_vm5, %v1366_v52, %v1368_v0  ;;  %v1369_v58 = vsel %vm213_vm0, %v1367_v54, %v1368_v0  ;;  %2583 = vmatprep.subr.bf16.mxu0 %v2937_v55 }
 0x1ae   : > { %1376 = vst [vmem:[#allocation2 + $0x320] sm:$0xf] %v1372_v57  ;;  %v1371_v61 = vsel %vm1370_vm5, %v1364_v1, %v1369_v58  ;;  %v1384_v62 = vpop.permute.xlu1 %1383  ;;  %v1382_v63 = vpop.permute.xlu0 %1381  ;;  %2584 = vmatpush1.bf16.msra.mxu0 %v2936_v60  ;;  %2992 = vmatpush3.bf16.msra.mxu1 %v3120_v56 }
 0x1af   : > { %v1386_v3 = vrot.slane %v1384_v62, 4  ;;  %v1385_v4 = vrot.slane %v1382_v63, 4  ;;  %2993 = vmatprep.subr.bf16.mxu1 %v3121_v59 }
 0x1b1   : > { %v1390_v6 = vsel %vm1388_vm6, %v1384_v62, %v1386_v3  ;;  %v1387_v7 = vsel %vm213_vm0, %v1385_v4, %v1386_v3  ;;  %v3134_v50 = vld [vmem:[#allocation2 + $0x338] ss:$12 sps:$4 sm:$0xff]  }
 0x1b2   : > { %1394 = vst [vmem:[#allocation2 + $0x32c] sm:$0xf] %v1390_v6  ;;  %v1389_v35 = vsel %vm1388_vm6, %v1382_v63, %v1387_v7  ;;  %v1330_v40 = vpop.permute.xlu1 %1329  ;;  %v1328_v8 = vpop.permute.xlu0 %1327  ;;  %2994 = vmatpush3.bf16.msra.mxu1 %v3122_v5 }
 0x1b3   : > { %v1332_v9 = vrot.slane %v1330_v40, 4  ;;  %v1331_v2 = vrot.slane %v1328_v8, 4  ;;  %2995 = vmatprep.subr.bf16.mxu1 %v3123_v32  ;;  %v2933_v10 = vcombine.low %v1371_v61, %v1389_v35  ;;  %v2934_v11 = vcombine.high %v1371_v61, %v1389_v35 }
 0x1b5   : > { %v1336_v13 = vsel %vm1334_vm7, %v1330_v40, %v1332_v9  ;;  %v1333_v14 = vsel %vm213_vm0, %v1331_v2, %v1332_v9  ;;  %2585 = vmatprep.subr.bf16.mxu0 %v2934_v11 }
 0x1b6   : > { %1340 = vst [vmem:[#allocation2 + $0x308] sm:$0xf] %v1336_v13  ;;  %v1335_v16 = vsel %vm1334_vm7, %v1328_v8, %v1333_v14  ;;  %v1348_v17 = vpop.permute.xlu1 %1347  ;;  %v1346_v18 = vpop.permute.xlu0 %1345  ;;  %2586 = vmatpush1.bf16.msra.mxu0 %v2933_v10  ;;  %2996 = vmatpush3.bf16.msra.mxu1 %v3124_v12 }
 0x1b7   : > { %v1350_v19 = vrot.slane %v1348_v17, 4  ;;  %v1349_v20 = vrot.slane %v1346_v18, 4  ;;  %2997 = vmatprep.subr.bf16.mxu1 %v3125_v37 }
 0x1b9   : > { %v1354_v23 = vsel %vm1352_vm14, %v1348_v17, %v1350_v19  ;;  %v1351_v24 = vsel %vm213_vm0, %v1349_v20, %v1350_v19 }
 0x1ba   : > { %1358 = vst [vmem:[#allocation2 + $0x314] sm:$0xf] %v1354_v23  ;;  %v1353_v27 = vsel %vm1352_vm14, %v1346_v18, %v1351_v24  ;;  %v1617_v28 = vpop.permute.xlu1 %1616  ;;  %v1615_v30 = vpop.permute.xlu0 %1614  ;;  %2998 = vmatpush3.bf16.msra.mxu1 %v3126_v22 }
 0x1bb   : > { %v1619_v31 = vrot.slane %v1617_v28, 4  ;;  %v1618_v33 = vrot.slane %v1615_v30, 4  ;;  %2999 = vmatprep.subr.bf16.mxu1 %v3127_v25  ;;  %v2930_v36 = vcombine.low %v1335_v16, %v1353_v27  ;;  %v2931_v38 = vcombine.high %v1335_v16, %v1353_v27 }
 0x1bd   : > { %v1622_v29 = vsel %vm683_vm12, %v1617_v28, %v1619_v31  ;;  %v1620_v41 = vsel %vm213_vm0, %v1618_v33, %v1619_v31  ;;  %2587 = vmatprep.subr.bf16.mxu0 %v2931_v38  ;;  %v2768_v28 = vld [vmem:[%s197_s6] sm:$0x3f] }
 0x1be   : > { %1626 = vst [vmem:[#allocation2 + $0x3c8] sm:$0xf] %v1622_v29  ;;  %v1621_v42 = vsel %vm683_vm12, %v1615_v30, %v1620_v41  ;;  %2588 = vmatpush1.bf16.msra.mxu0 %v2930_v36  ;;  %3000 = vmatpush3.bf16.msra.mxu1 %v3128_v39  ;;  %vm2760_vm12 = vcmask 1043458  }
 0x1bf   : > { %v2955_v44 = vcombine.high %v1621_v42, %v1621_v42  ;;  %v2954_v45 = vcombine.low %v1621_v42, %v1621_v42  ;;  %vm2762_vm11 = vmand %vm2760_vm12, %vm2761_vm9 }
 0x1c1   : > { %2957 = vmatprep.subr.msk.bf16.mxu0 %vm213_vm0, %v2955_v44  ;;  %v2483_v26 = vsel %vm213_vm0, %v2954_v45, 0  ;;  %2687 = vmatmul.mubr.bf16.vlgmr.msra.gmra.mxu1 %v3467_v21  ;;  %v3132_v21 = vld [vmem:[#allocation2 + $0x368] ss:$12 sps:$4 sm:$0xff]  }
 0x1c2   : > { %2604 = vmatpush2.bf16.msra.mxu0 %v2483_v26  ;;  %v3136_v51 = vld [vmem:[#allocation2 + $0x308] ss:$12 sps:$4 sm:$0xff]  }
 0x1c3   : > { %2694 = vmatprep.subr.bf16.mxu0 %v3225_v53 }
 0x1c5   : > { %2606 = vmatmul.mubr.bf16.vlgmr.msra.gmra.mxu0 %v3575_v34  ;;  %v3137_v52 = vld [vmem:[#allocation2 + $0x3c8] ss:$0 sps:$4 sm:$0xff]  }
 0x1c6   : > { %2695 = vmatpush1.bf16.msra.mxu0 %v3129_v46  ;;  %2959 = vmatprep.mubr.msk.bf16.mxu0 %vm1007_vm8, %v3580_v43  ;;  %v3135_v43 = vld [vmem:[#allocation2 + $0x320] ss:$12 sps:$4 sm:$0xff]   ;;  %v2489_v1 = vsel %vm213_vm0, %v3137_v52, 0  ;;  %vm2757_vm0 = vcmask 1041408   ;;  %vm2758_vm8 = vsmask.f32 1280 }
 0x1c7   : > { %2696 = vmatprep.subr.bf16.mxu0 %v3225_v53  ;;  %vm3632_vm10 = vmand %vm2757_vm0, %vm2758_vm8 }
 0x1c8   : > { %vm2763_vm2 = vmor %vm2762_vm11, %vm3632_vm10 }
 0x1c9   : > { %vm2767_vm4 = vmor %vm2766_vm3, %vm2763_vm2 }
 0x1ca   : > { %2697 = vmatpush1.bf16.msra.mxu0 %v3130_v47  ;;  %v1795_v60 = vpop.permute.xlu0 %1794 }
 0x1cb   : > { %2698 = vmatprep.subr.bf16.mxu0 %v3225_v53 }
 0x1ce   : > { %2699 = vmatpush1.bf16.msra.mxu0 %v3131_v48 }
 0x1cf   : > { %2700 = vmatprep.subr.bf16.mxu0 %v3225_v53 }
 0x1d2   : > { %2701 = vmatpush1.bf16.msra.mxu0 %v3132_v21 }
 0x1d3   : > { %2702 = vmatprep.subr.bf16.mxu0 %v3225_v53 }
 0x1d6   : > { %2703 = vmatpush1.bf16.msra.mxu0 %v3133_v49 }
 0x1d7   : > { %2704 = vmatprep.subr.bf16.mxu0 %v3225_v53 }
 0x1da   : > { %2705 = vmatpush1.bf16.msra.mxu0 %v3134_v50 }
 0x1db   : > { %2706 = vmatprep.subr.bf16.mxu0 %v3225_v53 }
 0x1de   : > { %2707 = vmatpush1.bf16.msra.mxu0 %v3135_v43 }
 0x1df   : > { %2708 = vmatprep.subr.bf16.mxu0 %v3225_v53 }
 0x1e2   : > { %2709 = vmatpush1.bf16.msra.mxu0 %v3136_v51 }
 0x1e3   : > { %2724 = vmatprep.subr.bf16.mxu0 %v3225_v53 }
 0x1e6   : > { %2725 = vmatpush2.bf16.msra.mxu0 %v2489_v1 }
 0x1e9   : > { %2727 = vmatmul.mubr.bf16.vlgmr.msra.gmra.mxu0 %v3575_v34 }
 0x239   : > { %v2525_v0 = vpop.f32.mrf.mxu0 }
 0x23a   : > { %v2526_v56 = vadd.f32 %v2525_v0, %v1795_v60 }
 0x23b   : > { %v2527_v54 = vpop.f32.mrf.mxu0 }
 0x23c   : > { %v2528_v58 = vadd.f32 %v2527_v54, %v1795_v60 }
 0x23d   : > { %v2529_v55 = vpop.f32.mrf.mxu0 }
 0x23f   : > { %v2530_v57 = vpop.f32.mrf.mxu0 }
 0x241   : > { %v2566_v59 = vpop.f32.mrf.mxu1 }
 0x242   : > { %v2567_v61 = vadd.f32 %v2566_v59, %v2526_v56 }
 0x243   : > { %v2568_v62 = vpop.f32.mrf.mxu1 }
 0x244   : > { %v2569_v63 = vadd.f32 %v2568_v62, %v2528_v58 }
 0x245   : > { %v2570_v3 = vpop.f32.mrf.mxu1 }
 0x247   : > { %v2571_v4 = vpop.f32.mrf.mxu1 }
 0x261   : > { %v2979_v5 = vpop.f32.mrf.mxu1 }
 0x263   : > { %v2980_v53 = vpop.f32.mrf.mxu1 }
 0x264   : > { %v2981_v6 = vadd.f32 %v2980_v53, %v2979_v5 }
 0x265   : > { %v2982_v7 = vpop.f32.mrf.mxu1 }
 0x266   : > { %v2649_v37 = vadd.f32 %v2981_v6, %v1795_v60 }
 0x267   : > { %v2983_v32 = vpop.f32.mrf.mxu1 }
 0x281   : > { %v3001_v35 = vpop.f32.mrf.mxu1 }
 0x283   : > { %v3002_v34 = vpop.f32.mrf.mxu1 }
 0x284   : > { %v3003_v16 = vadd.f32 %v3002_v34, %v3001_v35 }
 0x285   : > { %v2607_v40 = vpop.f32.mrf.mxu0  ;;  %v3004_v8 = vpop.f32.mrf.mxu1 }
 0x286   : > { %v2608_v10 = vadd.f32 %v2607_v40, %v2567_v61  ;;  %v2689_v18 = vadd.f32 %v3003_v16, %v2649_v37 }
 0x287   : > { %v2609_v9 = vpop.f32.mrf.mxu0  ;;  %v3005_v2 = vpop.f32.mrf.mxu1 }
 0x288   : > { %v2610_v11 = vadd.f32 %v2609_v9, %v2569_v63 }
 0x289   : > { %v2611_v12 = vpop.f32.mrf.mxu0 }
 0x28a   : > { %v2960_v13 = vpack.c.bf16 %v2610_v11, %v2608_v10 }
 0x28b   : > { %v2612_v14 = vpop.f32.mrf.mxu0 }
 0x28c   : > { %v2747_v25 = vrot.slane %v2960_v13, %v3461_v15 }
 0x2a9   : > { %v2728_v19 = vpop.f32.mrf.mxu0 }
 0x2aa   : > { %v2729_v20 = vadd.f32 %v2728_v19, %v2689_v18 }
 0x2ab   : > { %v2730_v22 = vpop.f32.mrf.mxu0 }
 0x2ac   : > { %v2736_v23 = vpack.c.bf16 %v2729_v20, %v2729_v20 }
 0x2ad   : > { %v2731_v24 = vpop.f32.mrf.mxu0 }
 0x2ae   : > { %v2754_v27 = vrot.slane %v2736_v23, %v3461_v15 }
 0x2af   : > { %v2732_v30 = vpop.f32.mrf.mxu0 }
 0x2b0   : > { %v2755_v31 = vcombine.low %v2747_v25, %v2754_v27 }
 0x2b2   : > { %v2769_v33 = vsel %vm2767_vm4, %v2755_v31, %v2768_v28 }
 0x2b3   : > { %2770 = vst [vmem:[%s197_s6] sm:$0x3f] %v2769_v33 }
 0x2b4 PF: > { %s14_s15 = sadd.s32 1, %s3146_s15  }
 0x2b5   : > { %p11_p4 = scmp.ge.s32.totalorder %s14_s15, 4  }
 0x2b7   :  { %13 = sbr.rel (!%p11_p4) target bundleno = 1 (0x1), region = 66 }

</bundles_post_ra>
